<compile_context>
chip_gen: v5e
topology: v5e:2x2
jax: 0.10.0
libtpu: 0.0.40
codegen_flags: <defaults>
</compile_context>

<pallas_src>
import jax
import jax.numpy as jnp
import numpy as np
from jax import lax
from jax.experimental import pallas as pl
from jax.experimental.pallas import tpu as pltpu


def _pick_lane_batch(n):
    # Big lane batches amortize the ~0.35us/grid-step overhead; keep >= 2 grid
    # steps when the batch allows so v7x's second TensorCore isn't idle.
    for tb in (512, 256):
        if n >= 2 * tb:
            return tb
    return 128


# ----------------------------------------------------------------------------
# Fused kernel: one block of `tb` images end-to-end.
# ----------------------------------------------------------------------------
def _lenet_fused_kernel(x_ref, w1t_ref, b1_ref, w2t_ref, b2_ref,
                        wfc1_ref, bfc1_ref, wfc2_ref, bfc2_ref,
                        wfc3_ref, bfc3_ref, o_ref, p1_ref, p2_ref):
    f32 = jnp.float32
    bf16 = jnp.bfloat16
    tb = x_ref.shape[1]

    # ------------- stage 1: Conv2d(1,6,5) -> MaxPool(2,2) -> ReLU -----------
    # One (320,192) x (192,TB) matmul per pooled output row u computes BOTH
    # conv rows 2u and 2u+1 (even/odd output columns packed as row halves).
    w1t = w1t_ref[...]                               # (320, 192) bf16
    b1b = jnp.broadcast_to(b1_ref[...], (80, tb))    # hoisted (80, TB), pad rows 0
    for u in range(12):                              # pooled output row
        xin = x_ref[u * 64:u * 64 + 192, :]          # input rows 2u..2u+5 (stride 32)
        mh = jnp.dot(w1t, xin, preferred_element_type=f32)    # (320, TB)
        mv = jnp.maximum(mh[0:160, :], mh[160:320, :])        # max over conv-row pair
        pooled = jnp.maximum(mv[0:80, :], mv[80:160, :]) + b1b  # max over col pair
        # rows: c*12 + pooled_w (72 used), rows 72..79 are exact zeros (pad)
        p1_ref[u * 80:(u + 1) * 80, :] = jnp.maximum(pooled, 0.0).astype(bf16)

    # ------------- stage 2: Conv2d(6,16,5) -> MaxPool(2,2) -> ReLU ----------
    # One (256,480) x (480,TB) matmul per pooled row u: both conv rows 2u,2u+1
    # and all 5 kernel rows contracted in a single MXU push (K=480).
    w2t = w2t_ref[...]                               # (256, 480) bf16
    b2b = jnp.broadcast_to(b2_ref[...], (64, tb))    # (64, TB)
    for u in range(4):
        slab = p1_ref[u * 160:u * 160 + 480, :]      # stage-1 rows 2u..2u+5
        m2 = jnp.dot(w2t, slab, preferred_element_type=f32)   # (256, TB)
        mv2 = jnp.maximum(m2[0:128, :], m2[128:256, :])
        pooled2 = jnp.maximum(
            jnp.maximum(mv2[0:64, :], mv2[64:128, :]) + b2b, 0.0)
        # rows: co*4 + pooled_w; flatten order handled by wfc1 column regroup
        p2_ref[u * 64:(u + 1) * 64, :] = pooled2.astype(bf16)

    # ------------- classifier: fc1 -> ReLU -> fc2 -> ReLU -> fc3 ------------
    h1 = jnp.maximum(
        jnp.dot(wfc1_ref[...], p2_ref[...], preferred_element_type=f32)
        + bfc1_ref[...], 0.0)                                  # (120, TB)
    h2 = jnp.maximum(
        jnp.dot(wfc2_ref[...], h1.astype(bf16), preferred_element_type=f32)
        + bfc2_ref[...], 0.0)                                  # (84, TB)
    logits = (jnp.dot(wfc3_ref[...], h2.astype(bf16),
                      preferred_element_type=f32)
              + bfc3_ref[...])                                 # (10, TB)

    # softmax over the 10 class rows: axis-0 reductions go to the (idle) XLU.
    m = jnp.max(logits, axis=0, keepdims=True)
    e = jnp.exp(logits - m)
    s = jnp.sum(e, axis=0, keepdims=True)
    # NOTE: approx reciprocal (EUP slot) -> rows sum to 1 only to ~1e-3.
    o_ref[...] = (e * pl.reciprocal(s, approx=True)).astype(o_ref.dtype)


# ----------------------------------------------------------------------------
# Wrapper-side constant construction (pure jnp, tiny, done once per call)
# ----------------------------------------------------------------------------
def _build_conv1_toeplitz(w):
    """conv1 weights (6,1,5,5) -> (320,192) merged even/odd-row Toeplitz.

    Row r: half = r//160 (conv row 2u / 2u+1), sel = (r%160)//80 (even/odd
    output col), rr = r%80; rr<72: channel c=rr//12, pooled_w wp=rr%12,
    out col = 2*wp+sel; rr>=72: zero pad row.
    Column j = dyb*32 + col over the 6 stride-32 input rows of the window.
    """
    w = w[:, 0]                                      # (6,5,5)
    r = jnp.arange(320)
    half = r // 160
    rh = r % 160
    sel = rh // 80
    rr = rh % 80
    pad_row = rr >= 72
    rrc = jnp.minimum(rr, 71)
    c = rrc // 12
    wp = rrc % 12
    ow = 2 * wp + sel
    j = jnp.arange(192)
    dyb = j // 32
    col = j % 32
    dy = dyb[None, :] - half[:, None]                # kernel row
    dx = col[None, :] - ow[:, None]                  # kernel col
    valid = ((dy >= 0) & (dy < 5) & (dx >= 0) & (dx < 5)
             & (col[None, :] < 28) & (~pad_row[:, None]))
    vals = w[c[:, None], jnp.clip(dy, 0, 4), jnp.clip(dx, 0, 4)]
    return jnp.where(valid, vals, 0.0)               # (320, 192)


def _build_conv2_toeplitz(w):
    """conv2 weights (16,6,5,5) -> (256,480) merged even/odd-row Toeplitz.

    Row r: half = r//128 (conv row 2u / 2u+1), sel = (r%128)//64, rr = r%64:
    out channel co=rr//4, pooled_w wp=rr%4, out col = 2*wp+sel.
    Column j = dyb*80 + jj over the 6 stage-1 row blocks (80-row stride);
    jj<72: in channel ci=jj//12, in col win=jj%12; jj>=72: zero pad col.
    """
    r = jnp.arange(256)
    half = r // 128
    rh = r % 128
    sel = rh // 64
    rr = rh % 64
    co = rr // 4
    wp = rr % 4
    ow = 2 * wp + sel
    j = jnp.arange(480)
    dyb = j // 80
    jj = j % 80
    pad_col = jj >= 72
    jjc = jnp.minimum(jj, 71)
    ci = jjc // 12
    win = jjc % 12
    dy = dyb[None, :] - half[:, None]
    dx = win[None, :] - ow[:, None]
    valid = ((dy >= 0) & (dy < 5) & (dx >= 0) & (dx < 5) & (~pad_col[None, :]))
    vals = w[co[:, None], ci[None, :], jnp.clip(dy, 0, 4), jnp.clip(dx, 0, 4)]
    return jnp.where(valid, vals, 0.0)               # (256, 480)


# ----------------------------------------------------------------------------
# pallas_call wrapper
# ----------------------------------------------------------------------------
def _fused_forward(xf, w1t, b1, w2t, b2, wfc1, bfc1, wfc2, bfc2, wfc3, bfc3, tb):
    npad = xf.shape[1]
    grid = (npad // tb,)

    col_map = lambda i: (0, i)
    const2 = lambda i: (0, 0)

    return pl.pallas_call(
        _lenet_fused_kernel,
        out_shape=jax.ShapeDtypeStruct((10, npad), jnp.float32),
        grid=grid,
        in_specs=[
            pl.BlockSpec((896, tb), col_map),        # stride-32 padded images
            pl.BlockSpec(w1t.shape, const2),         # conv1 Toeplitz (320,192)
            pl.BlockSpec(b1.shape, const2),          # (80,1)
            pl.BlockSpec(w2t.shape, const2),         # conv2 Toeplitz (256,480)
            pl.BlockSpec(b2.shape, const2),          # (64,1)
            pl.BlockSpec(wfc1.shape, const2),        # (120,256)
            pl.BlockSpec(bfc1.shape, const2),        # (120,1)
            pl.BlockSpec(wfc2.shape, const2),        # (84,120)
            pl.BlockSpec(bfc2.shape, const2),        # (84,1)
            pl.BlockSpec(wfc3.shape, const2),        # (10,84)
            pl.BlockSpec(bfc3.shape, const2),        # (10,1)
        ],
        out_specs=pl.BlockSpec((10, tb), col_map),
        scratch_shapes=[pltpu.VMEM((960, tb), jnp.bfloat16),   # stage-1 (12x80)
                        pltpu.VMEM((256, tb), jnp.bfloat16)],  # stage-2 flatten
        compiler_params=pltpu.CompilerParams(
            dimension_semantics=("parallel",)),
    )(xf, w1t, b1, w2t, b2, wfc1, bfc1, wfc2, bfc2, wfc3, bfc3)


def net_forward(x, params):
    """x: (N, 1, 28, 28) float32 -> (N, 10) softmax probabilities."""
    n = x.shape[0]
    tb = _pick_lane_batch(n)
    npad = ((n + tb - 1) // tb) * tb

    # Batch on the lane axis; rows padded 28 -> 32 so every conv1 slab read
    # (6 rows = 192 sublanes at offsets 64*u) is 16-sublane tile aligned.
    x32 = jnp.pad(x.reshape(n, 28, 28), ((0, 0), (0, 0), (0, 4)))
    xf = x32.reshape(n, 896).T.astype(jnp.bfloat16)             # (896, n)
    if npad != n:
        xf = jnp.pad(xf, ((0, 0), (0, npad - n)))

    f32 = jnp.float32
    w1t = _build_conv1_toeplitz(params["conv1_w"]).astype(jnp.bfloat16)
    w2t = _build_conv2_toeplitz(params["conv2_w"]).astype(jnp.bfloat16)
    b1 = jnp.concatenate([jnp.repeat(params["conv1_b"].astype(f32), 12),
                          jnp.zeros((8,), f32)])[:, None]       # (80,1), pad 0
    b2 = jnp.repeat(params["conv2_b"].astype(f32), 4)[:, None]  # (64,1)

    # fc1 columns regrouped from PyTorch's (c, h, w) flatten order to the
    # kernel's (h, c, w) scratch order: col = u*64 + co*4 + wp.
    wfc1 = (params["fc1_w"].reshape(120, 16, 4, 4).transpose(0, 2, 1, 3)
            .reshape(120, 256)).astype(jnp.bfloat16)
    bfc1 = params["fc1_b"].astype(f32)[:, None]
    wfc2 = params["fc2_w"].astype(jnp.bfloat16)
    bfc2 = params["fc2_b"].astype(f32)[:, None]
    wfc3 = params["fc3_w"].astype(jnp.bfloat16)
    bfc3 = params["fc3_b"].astype(f32)[:, None]

    probs = _fused_forward(xf, w1t, b1, w2t, b2, wfc1, bfc1, wfc2, bfc2,
                           wfc3, bfc3, tb)                      # (10, npad)
    return probs[:, :n].T


# ----------------------------------------------------------------------------
# Pure-JAX f32 reference (HIGHEST precision) for the correctness check
# ----------------------------------------------------------------------------
def reference_forward(x, p):
    prec = lax.Precision.HIGHEST
    dn = ("NCHW", "OIHW", "NCHW")
    y = lax.conv_general_dilated(x, p["conv1_w"], (1, 1), "VALID",
                                 dimension_numbers=dn, precision=prec)
    y = y + p["conv1_b"].reshape(1, 6, 1, 1)
    y = lax.reduce_window(y, -jnp.inf, lax.max, (1, 1, 2, 2), (1, 1, 2, 2),
                          "VALID")
    y = jnp.maximum(y, 0.0)
    y = lax.conv_general_dilated(y, p["conv2_w"], (1, 1), "VALID",
                                 dimension_numbers=dn, precision=prec)
    y = y + p["conv2_b"].reshape(1, 16, 1, 1)
    y = lax.reduce_window(y, -jnp.inf, lax.max, (1, 1, 2, 2), (1, 1, 2, 2),
                          "VALID")
    y = jnp.maximum(y, 0.0)
    y = y.reshape(x.shape[0], 256)
    h = jnp.maximum(jnp.dot(y, p["fc1_w"].T, precision=prec) + p["fc1_b"], 0.0)
    h = jnp.maximum(jnp.dot(h, p["fc2_w"].T, precision=prec) + p["fc2_b"], 0.0)
    logits = jnp.dot(h, p["fc3_w"].T, precision=prec) + p["fc3_b"]
    return jax.nn.softmax(logits, axis=1)


def init_params(key):
    ks = jax.random.split(key, 10)
    f32 = jnp.float32
    return {
        "conv1_w": jax.random.normal(ks[0], (6, 1, 5, 5), f32) * 0.2,
        "conv1_b": jax.random.normal(ks[1], (6,), f32) * 0.1,
        "conv2_w": jax.random.normal(ks[2], (16, 6, 5, 5), f32) * 0.1,
        "conv2_b": jax.random.normal(ks[3], (16,), f32) * 0.1,
        "fc1_w": jax.random.normal(ks[4], (120, 256), f32) * 0.05,
        "fc1_b": jax.random.normal(ks[5], (120,), f32) * 0.05,
        "fc2_w": jax.random.normal(ks[6], (84, 120), f32) * 0.05,
        "fc2_b": jax.random.normal(ks[7], (84,), f32) * 0.05,
        "fc3_w": jax.random.normal(ks[8], (10, 84), f32) * 0.05,
        "fc3_b": jax.random.normal(ks[9], (10,), f32) * 0.05,
    }


if __name__ == "__main__":
    key = jax.random.PRNGKey(0)
    k_x, k_p = jax.random.split(key)
    # MNIST-shaped input (28x28 is required so the flatten yields 16*4*4=256).
    x = jax.random.normal(k_x, (4, 1, 28, 28), jnp.float32)
    params = init_params(k_p)

    fwd = jax.jit(net_forward)
    out = jax.block_until_ready(fwd(x, params))
    ref = jax.block_until_ready(reference_forward(x, params))

    assert out.shape == (4, 10), out.shape
    # Kernel runs bf16 matmuls with f32 accumulation, so compare against the
    # f32 HIGHEST-precision reference with bf16-level tolerances.
    np.testing.assert_allclose(np.asarray(out), np.asarray(ref),
                               rtol=5e-2, atol=1e-2)
    np.testing.assert_allclose(np.asarray(out).sum(axis=1), 1.0, atol=1e-2)
    print("KERNEL_OK")
</pallas_src>

<mosaic_0001>
module attributes {stable_mosaic.version = 11 : i64} {
  func.func @_lenet_fused_kernel(%arg0: i32, %arg1: memref<896x128xbf16, #tpu.memory_space<vmem>>, %arg2: memref<320x192xbf16, #tpu.memory_space<vmem>>, %arg3: memref<80x1xf32, #tpu.memory_space<vmem>>, %arg4: memref<256x480xbf16, #tpu.memory_space<vmem>>, %arg5: memref<64x1xf32, #tpu.memory_space<vmem>>, %arg6: memref<120x256xbf16, #tpu.memory_space<vmem>>, %arg7: memref<120x1xf32, #tpu.memory_space<vmem>>, %arg8: memref<84x120xbf16, #tpu.memory_space<vmem>>, %arg9: memref<84x1xf32, #tpu.memory_space<vmem>>, %arg10: memref<10x84xbf16, #tpu.memory_space<vmem>>, %arg11: memref<10x1xf32, #tpu.memory_space<vmem>>, %arg12: memref<10x128xf32, #tpu.memory_space<vmem>>, %arg13: memref<960x128xbf16, #tpu.memory_space<vmem>>, %arg14: memref<256x128xbf16, #tpu.memory_space<vmem>>) attributes {dimension_semantics = [#tpu.dimension_semantics<parallel>], iteration_bounds = array<i64: 1>, scalar_prefetch = 0 : i64, scratch_operands = 2 : i64, tpu.core_type = #tpu.core_type<tc>, window_params = [{transform_indices = @transform_0, window_bounds = array<i64: 896, 128>}, {pipeline_mode = #tpu.pipeline_mode<synchronous>, transform_indices = @transform_1, window_bounds = array<i64: 320, 192>}, {pipeline_mode = #tpu.pipeline_mode<synchronous>, transform_indices = @transform_2, window_bounds = array<i64: 80, 1>}, {pipeline_mode = #tpu.pipeline_mode<synchronous>, transform_indices = @transform_3, window_bounds = array<i64: 256, 480>}, {pipeline_mode = #tpu.pipeline_mode<synchronous>, transform_indices = @transform_4, window_bounds = array<i64: 64, 1>}, {pipeline_mode = #tpu.pipeline_mode<synchronous>, transform_indices = @transform_5, window_bounds = array<i64: 120, 256>}, {pipeline_mode = #tpu.pipeline_mode<synchronous>, transform_indices = @transform_6, window_bounds = array<i64: 120, 1>}, {pipeline_mode = #tpu.pipeline_mode<synchronous>, transform_indices = @transform_7, window_bounds = array<i64: 84, 120>}, {pipeline_mode = #tpu.pipeline_mode<synchronous>, transform_indices = @transform_8, window_bounds = array<i64: 84, 1>}, {pipeline_mode = #tpu.pipeline_mode<synchronous>, transform_indices = @transform_9, window_bounds = array<i64: 10, 84>}, {pipeline_mode = #tpu.pipeline_mode<synchronous>, transform_indices = @transform_10, window_bounds = array<i64: 10, 1>}, {transform_indices = @transform_11, window_bounds = array<i64: 10, 128>}]} {
    %c0 = arith.constant 0 : index
    %c0_0 = arith.constant 0 : index
    %0 = vector.load %arg2[%c0, %c0_0] : memref<320x192xbf16, #tpu.memory_space<vmem>>, vector<320x192xbf16>
    %c0_1 = arith.constant 0 : index
    %c0_2 = arith.constant 0 : index
    %1 = vector.load %arg3[%c0_1, %c0_2] : memref<80x1xf32, #tpu.memory_space<vmem>>, vector<80x1xf32>
    %2 = vector.shape_cast %1 : vector<80x1xf32> to vector<80x1xf32>
    %3 = vector.broadcast %2 : vector<80x1xf32> to vector<80x128xf32>
    %c0_3 = arith.constant 0 : index
    %c0_4 = arith.constant 0 : index
    %4 = vector.load %arg1[%c0_3, %c0_4] : memref<896x128xbf16, #tpu.memory_space<vmem>>, vector<192x128xbf16>
    %cst = arith.constant dense<0.000000e+00> : vector<320x128xf32>
    %5 = tpu.matmul %0, %4, %cst {dimension_numbers = #tpu.dot_dimension_numbers<[1], [0], [0], [1], [0, 0, 1, 1], [], []>} : vector<320x192xbf16>, vector<192x128xbf16>, vector<320x128xf32> -> vector<320x128xf32>
    %6 = vector.extract_strided_slice %5 {offsets = [0, 0], sizes = [160, 128], strides = [1, 1]} : vector<320x128xf32> to vector<160x128xf32>
    %7 = vector.extract_strided_slice %5 {offsets = [160, 0], sizes = [160, 128], strides = [1, 1]} : vector<320x128xf32> to vector<160x128xf32>
    %8 = arith.maximumf %6, %7 : vector<160x128xf32>
    %9 = vector.extract_strided_slice %8 {offsets = [0, 0], sizes = [80, 128], strides = [1, 1]} : vector<160x128xf32> to vector<80x128xf32>
    %10 = vector.extract_strided_slice %8 {offsets = [80, 0], sizes = [80, 128], strides = [1, 1]} : vector<160x128xf32> to vector<80x128xf32>
    %11 = arith.maximumf %9, %10 : vector<80x128xf32>
    %12 = arith.addf %11, %3 : vector<80x128xf32>
    %cst_5 = arith.constant 0.000000e+00 : f32
    %13 = vector.broadcast %cst_5 : f32 to vector<80x128xf32>
    %14 = arith.maximumf %12, %13 : vector<80x128xf32>
    %15 = arith.truncf %14 : vector<80x128xf32> to vector<80x128xbf16>
    %c0_6 = arith.constant 0 : index
    %c0_7 = arith.constant 0 : index
    %16 = vector.load %arg13[%c0_6, %c0_7] : memref<960x128xbf16, #tpu.memory_space<vmem>>, vector<80x128xbf16>
    tpu.vector_store %arg13[%c0_6, %c0_7], %15 {strides = array<i32>} : memref<960x128xbf16, #tpu.memory_space<vmem>>, vector<80x128xbf16>,
    %c64 = arith.constant 64 : index
    %c0_8 = arith.constant 0 : index
    %17 = vector.load %arg1[%c64, %c0_8] : memref<896x128xbf16, #tpu.memory_space<vmem>>, vector<192x128xbf16>
    %cst_9 = arith.constant dense<0.000000e+00> : vector<320x128xf32>
    %18 = tpu.matmul %0, %17, %cst_9 {dimension_numbers = #tpu.dot_dimension_numbers<[1], [0], [0], [1], [0, 0, 1, 1], [], []>} : vector<320x192xbf16>, vector<192x128xbf16>, vector<320x128xf32> -> vector<320x128xf32>
    %19 = vector.extract_strided_slice %18 {offsets = [0, 0], sizes = [160, 128], strides = [1, 1]} : vector<320x128xf32> to vector<160x128xf32>
    %20 = vector.extract_strided_slice %18 {offsets = [160, 0], sizes = [160, 128], strides = [1, 1]} : vector<320x128xf32> to vector<160x128xf32>
    %21 = arith.maximumf %19, %20 : vector<160x128xf32>
    %22 = vector.extract_strided_slice %21 {offsets = [0, 0], sizes = [80, 128], strides = [1, 1]} : vector<160x128xf32> to vector<80x128xf32>
    %23 = vector.extract_strided_slice %21 {offsets = [80, 0], sizes = [80, 128], strides = [1, 1]} : vector<160x128xf32> to vector<80x128xf32>
    %24 = arith.maximumf %22, %23 : vector<80x128xf32>
    %25 = arith.addf %24, %3 : vector<80x128xf32>
    %cst_10 = arith.constant 0.000000e+00 : f32
    %26 = vector.broadcast %cst_10 : f32 to vector<80x128xf32>
    %27 = arith.maximumf %25, %26 : vector<80x128xf32>
    %28 = arith.truncf %27 : vector<80x128xf32> to vector<80x128xbf16>
    %c80 = arith.constant 80 : index
    %c0_11 = arith.constant 0 : index
    %29 = vector.load %arg13[%c80, %c0_11] : memref<960x128xbf16, #tpu.memory_space<vmem>>, vector<80x128xbf16>
    tpu.vector_store %arg13[%c80, %c0_11], %28 {strides = array<i32>} : memref<960x128xbf16, #tpu.memory_space<vmem>>, vector<80x128xbf16>,
    %c128 = arith.constant 128 : index
    %c0_12 = arith.constant 0 : index
    %30 = vector.load %arg1[%c128, %c0_12] : memref<896x128xbf16, #tpu.memory_space<vmem>>, vector<192x128xbf16>
    %cst_13 = arith.constant dense<0.000000e+00> : vector<320x128xf32>
    %31 = tpu.matmul %0, %30, %cst_13 {dimension_numbers = #tpu.dot_dimension_numbers<[1], [0], [0], [1], [0, 0, 1, 1], [], []>} : vector<320x192xbf16>, vector<192x128xbf16>, vector<320x128xf32> -> vector<320x128xf32>
    %32 = vector.extract_strided_slice %31 {offsets = [0, 0], sizes = [160, 128], strides = [1, 1]} : vector<320x128xf32> to vector<160x128xf32>
    %33 = vector.extract_strided_slice %31 {offsets = [160, 0], sizes = [160, 128], strides = [1, 1]} : vector<320x128xf32> to vector<160x128xf32>
    %34 = arith.maximumf %32, %33 : vector<160x128xf32>
    %35 = vector.extract_strided_slice %34 {offsets = [0, 0], sizes = [80, 128], strides = [1, 1]} : vector<160x128xf32> to vector<80x128xf32>
    %36 = vector.extract_strided_slice %34 {offsets = [80, 0], sizes = [80, 128], strides = [1, 1]} : vector<160x128xf32> to vector<80x128xf32>
    %37 = arith.maximumf %35, %36 : vector<80x128xf32>
    %38 = arith.addf %37, %3 : vector<80x128xf32>
    %cst_14 = arith.constant 0.000000e+00 : f32
    %39 = vector.broadcast %cst_14 : f32 to vector<80x128xf32>
    %40 = arith.maximumf %38, %39 : vector<80x128xf32>
    %41 = arith.truncf %40 : vector<80x128xf32> to vector<80x128xbf16>
    %c160 = arith.constant 160 : index
    %c0_15 = arith.constant 0 : index
    %42 = vector.load %arg13[%c160, %c0_15] : memref<960x128xbf16, #tpu.memory_space<vmem>>, vector<80x128xbf16>
    tpu.vector_store %arg13[%c160, %c0_15], %41 {strides = array<i32>} : memref<960x128xbf16, #tpu.memory_space<vmem>>, vector<80x128xbf16>,
    %c192 = arith.constant 192 : index
    %c0_16 = arith.constant 0 : index
    %43 = vector.load %arg1[%c192, %c0_16] : memref<896x128xbf16, #tpu.memory_space<vmem>>, vector<192x128xbf16>
    %cst_17 = arith.constant dense<0.000000e+00> : vector<320x128xf32>
    %44 = tpu.matmul %0, %43, %cst_17 {dimension_numbers = #tpu.dot_dimension_numbers<[1], [0], [0], [1], [0, 0, 1, 1], [], []>} : vector<320x192xbf16>, vector<192x128xbf16>, vector<320x128xf32> -> vector<320x128xf32>
    %45 = vector.extract_strided_slice %44 {offsets = [0, 0], sizes = [160, 128], strides = [1, 1]} : vector<320x128xf32> to vector<160x128xf32>
    %46 = vector.extract_strided_slice %44 {offsets = [160, 0], sizes = [160, 128], strides = [1, 1]} : vector<320x128xf32> to vector<160x128xf32>
    %47 = arith.maximumf %45, %46 : vector<160x128xf32>
    %48 = vector.extract_strided_slice %47 {offsets = [0, 0], sizes = [80, 128], strides = [1, 1]} : vector<160x128xf32> to vector<80x128xf32>
    %49 = vector.extract_strided_slice %47 {offsets = [80, 0], sizes = [80, 128], strides = [1, 1]} : vector<160x128xf32> to vector<80x128xf32>
    %50 = arith.maximumf %48, %49 : vector<80x128xf32>
    %51 = arith.addf %50, %3 : vector<80x128xf32>
    %cst_18 = arith.constant 0.000000e+00 : f32
    %52 = vector.broadcast %cst_18 : f32 to vector<80x128xf32>
    %53 = arith.maximumf %51, %52 : vector<80x128xf32>
    %54 = arith.truncf %53 : vector<80x128xf32> to vector<80x128xbf16>
    %c240 = arith.constant 240 : index
    %c0_19 = arith.constant 0 : index
    %55 = vector.load %arg13[%c240, %c0_19] : memref<960x128xbf16, #tpu.memory_space<vmem>>, vector<80x128xbf16>
    tpu.vector_store %arg13[%c240, %c0_19], %54 {strides = array<i32>} : memref<960x128xbf16, #tpu.memory_space<vmem>>, vector<80x128xbf16>,
    %c256 = arith.constant 256 : index
    %c0_20 = arith.constant 0 : index
    %56 = vector.load %arg1[%c256, %c0_20] : memref<896x128xbf16, #tpu.memory_space<vmem>>, vector<192x128xbf16>
    %cst_21 = arith.constant dense<0.000000e+00> : vector<320x128xf32>
    %57 = tpu.matmul %0, %56, %cst_21 {dimension_numbers = #tpu.dot_dimension_numbers<[1], [0], [0], [1], [0, 0, 1, 1], [], []>} : vector<320x192xbf16>, vector<192x128xbf16>, vector<320x128xf32> -> vector<320x128xf32>
    %58 = vector.extract_strided_slice %57 {offsets = [0, 0], sizes = [160, 128], strides = [1, 1]} : vector<320x128xf32> to vector<160x128xf32>
    %59 = vector.extract_strided_slice %57 {offsets = [160, 0], sizes = [160, 128], strides = [1, 1]} : vector<320x128xf32> to vector<160x128xf32>
    %60 = arith.maximumf %58, %59 : vector<160x128xf32>
    %61 = vector.extract_strided_slice %60 {offsets = [0, 0], sizes = [80, 128], strides = [1, 1]} : vector<160x128xf32> to vector<80x128xf32>
    %62 = vector.extract_strided_slice %60 {offsets = [80, 0], sizes = [80, 128], strides = [1, 1]} : vector<160x128xf32> to vector<80x128xf32>
    %63 = arith.maximumf %61, %62 : vector<80x128xf32>
    %64 = arith.addf %63, %3 : vector<80x128xf32>
    %cst_22 = arith.constant 0.000000e+00 : f32
    %65 = vector.broadcast %cst_22 : f32 to vector<80x128xf32>
    %66 = arith.maximumf %64, %65 : vector<80x128xf32>
    %67 = arith.truncf %66 : vector<80x128xf32> to vector<80x128xbf16>
    %c320 = arith.constant 320 : index
    %c0_23 = arith.constant 0 : index
    %68 = vector.load %arg13[%c320, %c0_23] : memref<960x128xbf16, #tpu.memory_space<vmem>>, vector<80x128xbf16>
    tpu.vector_store %arg13[%c320, %c0_23], %67 {strides = array<i32>} : memref<960x128xbf16, #tpu.memory_space<vmem>>, vector<80x128xbf16>,
    %c320_24 = arith.constant 320 : index
    %c0_25 = arith.constant 0 : index
    %69 = vector.load %arg1[%c320_24, %c0_25] : memref<896x128xbf16, #tpu.memory_space<vmem>>, vector<192x128xbf16>
    %cst_26 = arith.constant dense<0.000000e+00> : vector<320x128xf32>
    %70 = tpu.matmul %0, %69, %cst_26 {dimension_numbers = #tpu.dot_dimension_numbers<[1], [0], [0], [1], [0, 0, 1, 1], [], []>} : vector<320x192xbf16>, vector<192x128xbf16>, vector<320x128xf32> -> vector<320x128xf32>
    %71 = vector.extract_strided_slice %70 {offsets = [0, 0], sizes = [160, 128], strides = [1, 1]} : vector<320x128xf32> to vector<160x128xf32>
    %72 = vector.extract_strided_slice %70 {offsets = [160, 0], sizes = [160, 128], strides = [1, 1]} : vector<320x128xf32> to vector<160x128xf32>
    %73 = arith.maximumf %71, %72 : vector<160x128xf32>
    %74 = vector.extract_strided_slice %73 {offsets = [0, 0], sizes = [80, 128], strides = [1, 1]} : vector<160x128xf32> to vector<80x128xf32>
    %75 = vector.extract_strided_slice %73 {offsets = [80, 0], sizes = [80, 128], strides = [1, 1]} : vector<160x128xf32> to vector<80x128xf32>
    %76 = arith.maximumf %74, %75 : vector<80x128xf32>
    %77 = arith.addf %76, %3 : vector<80x128xf32>
    %cst_27 = arith.constant 0.000000e+00 : f32
    %78 = vector.broadcast %cst_27 : f32 to vector<80x128xf32>
    %79 = arith.maximumf %77, %78 : vector<80x128xf32>
    %80 = arith.truncf %79 : vector<80x128xf32> to vector<80x128xbf16>
    %c400 = arith.constant 400 : index
    %c0_28 = arith.constant 0 : index
    %81 = vector.load %arg13[%c400, %c0_28] : memref<960x128xbf16, #tpu.memory_space<vmem>>, vector<80x128xbf16>
    tpu.vector_store %arg13[%c400, %c0_28], %80 {strides = array<i32>} : memref<960x128xbf16, #tpu.memory_space<vmem>>, vector<80x128xbf16>,
    %c384 = arith.constant 384 : index
    %c0_29 = arith.constant 0 : index
    %82 = vector.load %arg1[%c384, %c0_29] : memref<896x128xbf16, #tpu.memory_space<vmem>>, vector<192x128xbf16>
    %cst_30 = arith.constant dense<0.000000e+00> : vector<320x128xf32>
    %83 = tpu.matmul %0, %82, %cst_30 {dimension_numbers = #tpu.dot_dimension_numbers<[1], [0], [0], [1], [0, 0, 1, 1], [], []>} : vector<320x192xbf16>, vector<192x128xbf16>, vector<320x128xf32> -> vector<320x128xf32>
    %84 = vector.extract_strided_slice %83 {offsets = [0, 0], sizes = [160, 128], strides = [1, 1]} : vector<320x128xf32> to vector<160x128xf32>
    %85 = vector.extract_strided_slice %83 {offsets = [160, 0], sizes = [160, 128], strides = [1, 1]} : vector<320x128xf32> to vector<160x128xf32>
    %86 = arith.maximumf %84, %85 : vector<160x128xf32>
    %87 = vector.extract_strided_slice %86 {offsets = [0, 0], sizes = [80, 128], strides = [1, 1]} : vector<160x128xf32> to vector<80x128xf32>
    %88 = vector.extract_strided_slice %86 {offsets = [80, 0], sizes = [80, 128], strides = [1, 1]} : vector<160x128xf32> to vector<80x128xf32>
    %89 = arith.maximumf %87, %88 : vector<80x128xf32>
    %90 = arith.addf %89, %3 : vector<80x128xf32>
    %cst_31 = arith.constant 0.000000e+00 : f32
    %91 = vector.broadcast %cst_31 : f32 to vector<80x128xf32>
    %92 = arith.maximumf %90, %91 : vector<80x128xf32>
    %93 = arith.truncf %92 : vector<80x128xf32> to vector<80x128xbf16>
    %c480 = arith.constant 480 : index
    %c0_32 = arith.constant 0 : index
    %94 = vector.load %arg13[%c480, %c0_32] : memref<960x128xbf16, #tpu.memory_space<vmem>>, vector<80x128xbf16>
    tpu.vector_store %arg13[%c480, %c0_32], %93 {strides = array<i32>} : memref<960x128xbf16, #tpu.memory_space<vmem>>, vector<80x128xbf16>,
    %c448 = arith.constant 448 : index
    %c0_33 = arith.constant 0 : index
    %95 = vector.load %arg1[%c448, %c0_33] : memref<896x128xbf16, #tpu.memory_space<vmem>>, vector<192x128xbf16>
    %cst_34 = arith.constant dense<0.000000e+00> : vector<320x128xf32>
    %96 = tpu.matmul %0, %95, %cst_34 {dimension_numbers = #tpu.dot_dimension_numbers<[1], [0], [0], [1], [0, 0, 1, 1], [], []>} : vector<320x192xbf16>, vector<192x128xbf16>, vector<320x128xf32> -> vector<320x128xf32>
    %97 = vector.extract_strided_slice %96 {offsets = [0, 0], sizes = [160, 128], strides = [1, 1]} : vector<320x128xf32> to vector<160x128xf32>
    %98 = vector.extract_strided_slice %96 {offsets = [160, 0], sizes = [160, 128], strides = [1, 1]} : vector<320x128xf32> to vector<160x128xf32>
    %99 = arith.maximumf %97, %98 : vector<160x128xf32>
    %100 = vector.extract_strided_slice %99 {offsets = [0, 0], sizes = [80, 128], strides = [1, 1]} : vector<160x128xf32> to vector<80x128xf32>
    %101 = vector.extract_strided_slice %99 {offsets = [80, 0], sizes = [80, 128], strides = [1, 1]} : vector<160x128xf32> to vector<80x128xf32>
    %102 = arith.maximumf %100, %101 : vector<80x128xf32>
    %103 = arith.addf %102, %3 : vector<80x128xf32>
    %cst_35 = arith.constant 0.000000e+00 : f32
    %104 = vector.broadcast %cst_35 : f32 to vector<80x128xf32>
    %105 = arith.maximumf %103, %104 : vector<80x128xf32>
    %106 = arith.truncf %105 : vector<80x128xf32> to vector<80x128xbf16>
    %c560 = arith.constant 560 : index
    %c0_36 = arith.constant 0 : index
    %107 = vector.load %arg13[%c560, %c0_36] : memref<960x128xbf16, #tpu.memory_space<vmem>>, vector<80x128xbf16>
    tpu.vector_store %arg13[%c560, %c0_36], %106 {strides = array<i32>} : memref<960x128xbf16, #tpu.memory_space<vmem>>, vector<80x128xbf16>,
    %c512 = arith.constant 512 : index
    %c0_37 = arith.constant 0 : index
    %108 = vector.load %arg1[%c512, %c0_37] : memref<896x128xbf16, #tpu.memory_space<vmem>>, vector<192x128xbf16>
    %cst_38 = arith.constant dense<0.000000e+00> : vector<320x128xf32>
    %109 = tpu.matmul %0, %108, %cst_38 {dimension_numbers = #tpu.dot_dimension_numbers<[1], [0], [0], [1], [0, 0, 1, 1], [], []>} : vector<320x192xbf16>, vector<192x128xbf16>, vector<320x128xf32> -> vector<320x128xf32>
    %110 = vector.extract_strided_slice %109 {offsets = [0, 0], sizes = [160, 128], strides = [1, 1]} : vector<320x128xf32> to vector<160x128xf32>
    %111 = vector.extract_strided_slice %109 {offsets = [160, 0], sizes = [160, 128], strides = [1, 1]} : vector<320x128xf32> to vector<160x128xf32>
    %112 = arith.maximumf %110, %111 : vector<160x128xf32>
    %113 = vector.extract_strided_slice %112 {offsets = [0, 0], sizes = [80, 128], strides = [1, 1]} : vector<160x128xf32> to vector<80x128xf32>
    %114 = vector.extract_strided_slice %112 {offsets = [80, 0], sizes = [80, 128], strides = [1, 1]} : vector<160x128xf32> to vector<80x128xf32>
    %115 = arith.maximumf %113, %114 : vector<80x128xf32>
    %116 = arith.addf %115, %3 : vector<80x128xf32>
    %cst_39 = arith.constant 0.000000e+00 : f32
    %117 = vector.broadcast %cst_39 : f32 to vector<80x128xf32>
    %118 = arith.maximumf %116, %117 : vector<80x128xf32>
    %119 = arith.truncf %118 : vector<80x128xf32> to vector<80x128xbf16>
    %c640 = arith.constant 640 : index
    %c0_40 = arith.constant 0 : index
    %120 = vector.load %arg13[%c640, %c0_40] : memref<960x128xbf16, #tpu.memory_space<vmem>>, vector<80x128xbf16>
    tpu.vector_store %arg13[%c640, %c0_40], %119 {strides = array<i32>} : memref<960x128xbf16, #tpu.memory_space<vmem>>, vector<80x128xbf16>,
    %c576 = arith.constant 576 : index
    %c0_41 = arith.constant 0 : index
    %121 = vector.load %arg1[%c576, %c0_41] : memref<896x128xbf16, #tpu.memory_space<vmem>>, vector<192x128xbf16>
    %cst_42 = arith.constant dense<0.000000e+00> : vector<320x128xf32>
    %122 = tpu.matmul %0, %121, %cst_42 {dimension_numbers = #tpu.dot_dimension_numbers<[1], [0], [0], [1], [0, 0, 1, 1], [], []>} : vector<320x192xbf16>, vector<192x128xbf16>, vector<320x128xf32> -> vector<320x128xf32>
    %123 = vector.extract_strided_slice %122 {offsets = [0, 0], sizes = [160, 128], strides = [1, 1]} : vector<320x128xf32> to vector<160x128xf32>
    %124 = vector.extract_strided_slice %122 {offsets = [160, 0], sizes = [160, 128], strides = [1, 1]} : vector<320x128xf32> to vector<160x128xf32>
    %125 = arith.maximumf %123, %124 : vector<160x128xf32>
    %126 = vector.extract_strided_slice %125 {offsets = [0, 0], sizes = [80, 128], strides = [1, 1]} : vector<160x128xf32> to vector<80x128xf32>
    %127 = vector.extract_strided_slice %125 {offsets = [80, 0], sizes = [80, 128], strides = [1, 1]} : vector<160x128xf32> to vector<80x128xf32>
    %128 = arith.maximumf %126, %127 : vector<80x128xf32>
    %129 = arith.addf %128, %3 : vector<80x128xf32>
    %cst_43 = arith.constant 0.000000e+00 : f32
    %130 = vector.broadcast %cst_43 : f32 to vector<80x128xf32>
    %131 = arith.maximumf %129, %130 : vector<80x128xf32>
    %132 = arith.truncf %131 : vector<80x128xf32> to vector<80x128xbf16>
    %c720 = arith.constant 720 : index
    %c0_44 = arith.constant 0 : index
    %133 = vector.load %arg13[%c720, %c0_44] : memref<960x128xbf16, #tpu.memory_space<vmem>>, vector<80x128xbf16>
    tpu.vector_store %arg13[%c720, %c0_44], %132 {strides = array<i32>} : memref<960x128xbf16, #tpu.memory_space<vmem>>, vector<80x128xbf16>,
    %c640_45 = arith.constant 640 : index
    %c0_46 = arith.constant 0 : index
    %134 = vector.load %arg1[%c640_45, %c0_46] : memref<896x128xbf16, #tpu.memory_space<vmem>>, vector<192x128xbf16>
    %cst_47 = arith.constant dense<0.000000e+00> : vector<320x128xf32>
    %135 = tpu.matmul %0, %134, %cst_47 {dimension_numbers = #tpu.dot_dimension_numbers<[1], [0], [0], [1], [0, 0, 1, 1], [], []>} : vector<320x192xbf16>, vector<192x128xbf16>, vector<320x128xf32> -> vector<320x128xf32>
    %136 = vector.extract_strided_slice %135 {offsets = [0, 0], sizes = [160, 128], strides = [1, 1]} : vector<320x128xf32> to vector<160x128xf32>
    %137 = vector.extract_strided_slice %135 {offsets = [160, 0], sizes = [160, 128], strides = [1, 1]} : vector<320x128xf32> to vector<160x128xf32>
    %138 = arith.maximumf %136, %137 : vector<160x128xf32>
    %139 = vector.extract_strided_slice %138 {offsets = [0, 0], sizes = [80, 128], strides = [1, 1]} : vector<160x128xf32> to vector<80x128xf32>
    %140 = vector.extract_strided_slice %138 {offsets = [80, 0], sizes = [80, 128], strides = [1, 1]} : vector<160x128xf32> to vector<80x128xf32>
    %141 = arith.maximumf %139, %140 : vector<80x128xf32>
    %142 = arith.addf %141, %3 : vector<80x128xf32>
    %cst_48 = arith.constant 0.000000e+00 : f32
    %143 = vector.broadcast %cst_48 : f32 to vector<80x128xf32>
    %144 = arith.maximumf %142, %143 : vector<80x128xf32>
    %145 = arith.truncf %144 : vector<80x128xf32> to vector<80x128xbf16>
    %c800 = arith.constant 800 : index
    %c0_49 = arith.constant 0 : index
    %146 = vector.load %arg13[%c800, %c0_49] : memref<960x128xbf16, #tpu.memory_space<vmem>>, vector<80x128xbf16>
    tpu.vector_store %arg13[%c800, %c0_49], %145 {strides = array<i32>} : memref<960x128xbf16, #tpu.memory_space<vmem>>, vector<80x128xbf16>,
    %c704 = arith.constant 704 : index
    %c0_50 = arith.constant 0 : index
    %147 = vector.load %arg1[%c704, %c0_50] : memref<896x128xbf16, #tpu.memory_space<vmem>>, vector<192x128xbf16>
    %cst_51 = arith.constant dense<0.000000e+00> : vector<320x128xf32>
    %148 = tpu.matmul %0, %147, %cst_51 {dimension_numbers = #tpu.dot_dimension_numbers<[1], [0], [0], [1], [0, 0, 1, 1], [], []>} : vector<320x192xbf16>, vector<192x128xbf16>, vector<320x128xf32> -> vector<320x128xf32>
    %149 = vector.extract_strided_slice %148 {offsets = [0, 0], sizes = [160, 128], strides = [1, 1]} : vector<320x128xf32> to vector<160x128xf32>
    %150 = vector.extract_strided_slice %148 {offsets = [160, 0], sizes = [160, 128], strides = [1, 1]} : vector<320x128xf32> to vector<160x128xf32>
    %151 = arith.maximumf %149, %150 : vector<160x128xf32>
    %152 = vector.extract_strided_slice %151 {offsets = [0, 0], sizes = [80, 128], strides = [1, 1]} : vector<160x128xf32> to vector<80x128xf32>
    %153 = vector.extract_strided_slice %151 {offsets = [80, 0], sizes = [80, 128], strides = [1, 1]} : vector<160x128xf32> to vector<80x128xf32>
    %154 = arith.maximumf %152, %153 : vector<80x128xf32>
    %155 = arith.addf %154, %3 : vector<80x128xf32>
    %cst_52 = arith.constant 0.000000e+00 : f32
    %156 = vector.broadcast %cst_52 : f32 to vector<80x128xf32>
    %157 = arith.maximumf %155, %156 : vector<80x128xf32>
    %158 = arith.truncf %157 : vector<80x128xf32> to vector<80x128xbf16>
    %c880 = arith.constant 880 : index
    %c0_53 = arith.constant 0 : index
    %159 = vector.load %arg13[%c880, %c0_53] : memref<960x128xbf16, #tpu.memory_space<vmem>>, vector<80x128xbf16>
    tpu.vector_store %arg13[%c880, %c0_53], %158 {strides = array<i32>} : memref<960x128xbf16, #tpu.memory_space<vmem>>, vector<80x128xbf16>,
    %c0_54 = arith.constant 0 : index
    %c0_55 = arith.constant 0 : index
    %160 = vector.load %arg4[%c0_54, %c0_55] : memref<256x480xbf16, #tpu.memory_space<vmem>>, vector<256x480xbf16>
    %c0_56 = arith.constant 0 : index
    %c0_57 = arith.constant 0 : index
    %161 = vector.load %arg5[%c0_56, %c0_57] : memref<64x1xf32, #tpu.memory_space<vmem>>, vector<64x1xf32>
    %162 = vector.shape_cast %161 : vector<64x1xf32> to vector<64x1xf32>
    %163 = vector.broadcast %162 : vector<64x1xf32> to vector<64x128xf32>
    %c0_58 = arith.constant 0 : index
    %c0_59 = arith.constant 0 : index
    %164 = vector.load %arg13[%c0_58, %c0_59] : memref<960x128xbf16, #tpu.memory_space<vmem>>, vector<480x128xbf16>
    %cst_60 = arith.constant dense<0.000000e+00> : vector<256x128xf32>
    %165 = tpu.matmul %160, %164, %cst_60 {dimension_numbers = #tpu.dot_dimension_numbers<[1], [0], [0], [1], [0, 0, 1, 1], [], []>} : vector<256x480xbf16>, vector<480x128xbf16>, vector<256x128xf32> -> vector<256x128xf32>
    %166 = vector.extract_strided_slice %165 {offsets = [0, 0], sizes = [128, 128], strides = [1, 1]} : vector<256x128xf32> to vector<128x128xf32>
    %167 = vector.extract_strided_slice %165 {offsets = [128, 0], sizes = [128, 128], strides = [1, 1]} : vector<256x128xf32> to vector<128x128xf32>
    %168 = arith.maximumf %166, %167 : vector<128x128xf32>
    %169 = vector.extract_strided_slice %168 {offsets = [0, 0], sizes = [64, 128], strides = [1, 1]} : vector<128x128xf32> to vector<64x128xf32>
    %170 = vector.extract_strided_slice %168 {offsets = [64, 0], sizes = [64, 128], strides = [1, 1]} : vector<128x128xf32> to vector<64x128xf32>
    %171 = arith.maximumf %169, %170 : vector<64x128xf32>
    %172 = arith.addf %171, %163 : vector<64x128xf32>
    %cst_61 = arith.constant 0.000000e+00 : f32
    %173 = vector.broadcast %cst_61 : f32 to vector<64x128xf32>
    %174 = arith.maximumf %172, %173 : vector<64x128xf32>
    %175 = arith.truncf %174 : vector<64x128xf32> to vector<64x128xbf16>
    %c0_62 = arith.constant 0 : index
    %c0_63 = arith.constant 0 : index
    %176 = vector.load %arg14[%c0_62, %c0_63] : memref<256x128xbf16, #tpu.memory_space<vmem>>, vector<64x128xbf16>
    tpu.vector_store %arg14[%c0_62, %c0_63], %175 {strides = array<i32>} : memref<256x128xbf16, #tpu.memory_space<vmem>>, vector<64x128xbf16>,
    %c160_64 = arith.constant 160 : index
    %c0_65 = arith.constant 0 : index
    %177 = vector.load %arg13[%c160_64, %c0_65] : memref<960x128xbf16, #tpu.memory_space<vmem>>, vector<480x128xbf16>
    %cst_66 = arith.constant dense<0.000000e+00> : vector<256x128xf32>
    %178 = tpu.matmul %160, %177, %cst_66 {dimension_numbers = #tpu.dot_dimension_numbers<[1], [0], [0], [1], [0, 0, 1, 1], [], []>} : vector<256x480xbf16>, vector<480x128xbf16>, vector<256x128xf32> -> vector<256x128xf32>
    %179 = vector.extract_strided_slice %178 {offsets = [0, 0], sizes = [128, 128], strides = [1, 1]} : vector<256x128xf32> to vector<128x128xf32>
    %180 = vector.extract_strided_slice %178 {offsets = [128, 0], sizes = [128, 128], strides = [1, 1]} : vector<256x128xf32> to vector<128x128xf32>
    %181 = arith.maximumf %179, %180 : vector<128x128xf32>
    %182 = vector.extract_strided_slice %181 {offsets = [0, 0], sizes = [64, 128], strides = [1, 1]} : vector<128x128xf32> to vector<64x128xf32>
    %183 = vector.extract_strided_slice %181 {offsets = [64, 0], sizes = [64, 128], strides = [1, 1]} : vector<128x128xf32> to vector<64x128xf32>
    %184 = arith.maximumf %182, %183 : vector<64x128xf32>
    %185 = arith.addf %184, %163 : vector<64x128xf32>
    %cst_67 = arith.constant 0.000000e+00 : f32
    %186 = vector.broadcast %cst_67 : f32 to vector<64x128xf32>
    %187 = arith.maximumf %185, %186 : vector<64x128xf32>
    %188 = arith.truncf %187 : vector<64x128xf32> to vector<64x128xbf16>
    %c64_68 = arith.constant 64 : index
    %c0_69 = arith.constant 0 : index
    %189 = vector.load %arg14[%c64_68, %c0_69] : memref<256x128xbf16, #tpu.memory_space<vmem>>, vector<64x128xbf16>
    tpu.vector_store %arg14[%c64_68, %c0_69], %188 {strides = array<i32>} : memref<256x128xbf16, #tpu.memory_space<vmem>>, vector<64x128xbf16>,
    %c320_70 = arith.constant 320 : index
    %c0_71 = arith.constant 0 : index
    %190 = vector.load %arg13[%c320_70, %c0_71] : memref<960x128xbf16, #tpu.memory_space<vmem>>, vector<480x128xbf16>
    %cst_72 = arith.constant dense<0.000000e+00> : vector<256x128xf32>
    %191 = tpu.matmul %160, %190, %cst_72 {dimension_numbers = #tpu.dot_dimension_numbers<[1], [0], [0], [1], [0, 0, 1, 1], [], []>} : vector<256x480xbf16>, vector<480x128xbf16>, vector<256x128xf32> -> vector<256x128xf32>
    %192 = vector.extract_strided_slice %191 {offsets = [0, 0], sizes = [128, 128], strides = [1, 1]} : vector<256x128xf32> to vector<128x128xf32>
    %193 = vector.extract_strided_slice %191 {offsets = [128, 0], sizes = [128, 128], strides = [1, 1]} : vector<256x128xf32> to vector<128x128xf32>
    %194 = arith.maximumf %192, %193 : vector<128x128xf32>
    %195 = vector.extract_strided_slice %194 {offsets = [0, 0], sizes = [64, 128], strides = [1, 1]} : vector<128x128xf32> to vector<64x128xf32>
    %196 = vector.extract_strided_slice %194 {offsets = [64, 0], sizes = [64, 128], strides = [1, 1]} : vector<128x128xf32> to vector<64x128xf32>
    %197 = arith.maximumf %195, %196 : vector<64x128xf32>
    %198 = arith.addf %197, %163 : vector<64x128xf32>
    %cst_73 = arith.constant 0.000000e+00 : f32
    %199 = vector.broadcast %cst_73 : f32 to vector<64x128xf32>
    %200 = arith.maximumf %198, %199 : vector<64x128xf32>
    %201 = arith.truncf %200 : vector<64x128xf32> to vector<64x128xbf16>
    %c128_74 = arith.constant 128 : index
    %c0_75 = arith.constant 0 : index
    %202 = vector.load %arg14[%c128_74, %c0_75] : memref<256x128xbf16, #tpu.memory_space<vmem>>, vector<64x128xbf16>
    tpu.vector_store %arg14[%c128_74, %c0_75], %201 {strides = array<i32>} : memref<256x128xbf16, #tpu.memory_space<vmem>>, vector<64x128xbf16>,
    %c480_76 = arith.constant 480 : index
    %c0_77 = arith.constant 0 : index
    %203 = vector.load %arg13[%c480_76, %c0_77] : memref<960x128xbf16, #tpu.memory_space<vmem>>, vector<480x128xbf16>
    %cst_78 = arith.constant dense<0.000000e+00> : vector<256x128xf32>
    %204 = tpu.matmul %160, %203, %cst_78 {dimension_numbers = #tpu.dot_dimension_numbers<[1], [0], [0], [1], [0, 0, 1, 1], [], []>} : vector<256x480xbf16>, vector<480x128xbf16>, vector<256x128xf32> -> vector<256x128xf32>
    %205 = vector.extract_strided_slice %204 {offsets = [0, 0], sizes = [128, 128], strides = [1, 1]} : vector<256x128xf32> to vector<128x128xf32>
    %206 = vector.extract_strided_slice %204 {offsets = [128, 0], sizes = [128, 128], strides = [1, 1]} : vector<256x128xf32> to vector<128x128xf32>
    %207 = arith.maximumf %205, %206 : vector<128x128xf32>
    %208 = vector.extract_strided_slice %207 {offsets = [0, 0], sizes = [64, 128], strides = [1, 1]} : vector<128x128xf32> to vector<64x128xf32>
    %209 = vector.extract_strided_slice %207 {offsets = [64, 0], sizes = [64, 128], strides = [1, 1]} : vector<128x128xf32> to vector<64x128xf32>
    %210 = arith.maximumf %208, %209 : vector<64x128xf32>
    %211 = arith.addf %210, %163 : vector<64x128xf32>
    %cst_79 = arith.constant 0.000000e+00 : f32
    %212 = vector.broadcast %cst_79 : f32 to vector<64x128xf32>
    %213 = arith.maximumf %211, %212 : vector<64x128xf32>
    %214 = arith.truncf %213 : vector<64x128xf32> to vector<64x128xbf16>
    %c192_80 = arith.constant 192 : index
    %c0_81 = arith.constant 0 : index
    %215 = vector.load %arg14[%c192_80, %c0_81] : memref<256x128xbf16, #tpu.memory_space<vmem>>, vector<64x128xbf16>
    tpu.vector_store %arg14[%c192_80, %c0_81], %214 {strides = array<i32>} : memref<256x128xbf16, #tpu.memory_space<vmem>>, vector<64x128xbf16>,
    %c0_82 = arith.constant 0 : index
    %c0_83 = arith.constant 0 : index
    %216 = vector.load %arg6[%c0_82, %c0_83] : memref<120x256xbf16, #tpu.memory_space<vmem>>, vector<120x256xbf16>
    %c0_84 = arith.constant 0 : index
    %c0_85 = arith.constant 0 : index
    %217 = vector.load %arg14[%c0_84, %c0_85] : memref<256x128xbf16, #tpu.memory_space<vmem>>, vector<256x128xbf16>
    %cst_86 = arith.constant dense<0.000000e+00> : vector<120x128xf32>
    %218 = tpu.matmul %216, %217, %cst_86 {dimension_numbers = #tpu.dot_dimension_numbers<[1], [0], [0], [1], [0, 0, 1, 1], [], []>} : vector<120x256xbf16>, vector<256x128xbf16>, vector<120x128xf32> -> vector<120x128xf32>
    %c0_87 = arith.constant 0 : index
    %c0_88 = arith.constant 0 : index
    %219 = vector.load %arg7[%c0_87, %c0_88] : memref<120x1xf32, #tpu.memory_space<vmem>>, vector<120x1xf32>
    %220 = vector.broadcast %219 : vector<120x1xf32> to vector<120x128xf32>
    %221 = arith.addf %218, %220 : vector<120x128xf32>
    %cst_89 = arith.constant 0.000000e+00 : f32
    %222 = vector.broadcast %cst_89 : f32 to vector<120x128xf32>
    %223 = arith.maximumf %221, %222 : vector<120x128xf32>
    %c0_90 = arith.constant 0 : index
    %c0_91 = arith.constant 0 : index
    %224 = vector.load %arg8[%c0_90, %c0_91] : memref<84x120xbf16, #tpu.memory_space<vmem>>, vector<84x120xbf16>
    %225 = arith.truncf %223 : vector<120x128xf32> to vector<120x128xbf16>
    %cst_92 = arith.constant dense<0.000000e+00> : vector<84x128xf32>
    %226 = tpu.matmul %224, %225, %cst_92 {dimension_numbers = #tpu.dot_dimension_numbers<[1], [0], [0], [1], [0, 0, 1, 1], [], []>} : vector<84x120xbf16>, vector<120x128xbf16>, vector<84x128xf32> -> vector<84x128xf32>
    %c0_93 = arith.constant 0 : index
    %c0_94 = arith.constant 0 : index
    %227 = vector.load %arg9[%c0_93, %c0_94] : memref<84x1xf32, #tpu.memory_space<vmem>>, vector<84x1xf32>
    %228 = vector.broadcast %227 : vector<84x1xf32> to vector<84x128xf32>
    %229 = arith.addf %226, %228 : vector<84x128xf32>
    %cst_95 = arith.constant 0.000000e+00 : f32
    %230 = vector.broadcast %cst_95 : f32 to vector<84x128xf32>
    %231 = arith.maximumf %229, %230 : vector<84x128xf32>
    %c0_96 = arith.constant 0 : index
    %c0_97 = arith.constant 0 : index
    %232 = vector.load %arg10[%c0_96, %c0_97] : memref<10x84xbf16, #tpu.memory_space<vmem>>, vector<10x84xbf16>
    %233 = arith.truncf %231 : vector<84x128xf32> to vector<84x128xbf16>
    %cst_98 = arith.constant dense<0.000000e+00> : vector<10x128xf32>
    %234 = tpu.matmul %232, %233, %cst_98 {dimension_numbers = #tpu.dot_dimension_numbers<[1], [0], [0], [1], [0, 0, 1, 1], [], []>} : vector<10x84xbf16>, vector<84x128xbf16>, vector<10x128xf32> -> vector<10x128xf32>
    %c0_99 = arith.constant 0 : index
    %c0_100 = arith.constant 0 : index
    %235 = vector.load %arg11[%c0_99, %c0_100] : memref<10x1xf32, #tpu.memory_space<vmem>>, vector<10x1xf32>
    %236 = vector.broadcast %235 : vector<10x1xf32> to vector<10x128xf32>
    %237 = arith.addf %234, %236 : vector<10x128xf32>
    %cst_101 = arith.constant dense<0xFF800000> : vector<128xf32>
    %238 = vector.multi_reduction <maximumf>, %237, %cst_101 [0] : vector<10x128xf32> to vector<128xf32>
    %239 = vector.shape_cast %238 : vector<128xf32> to vector<1x128xf32>
    %240 = vector.broadcast %239 : vector<1x128xf32> to vector<10x128xf32>
    %241 = arith.subf %237, %240 : vector<10x128xf32>
    %242 = math.exp %241 : vector<10x128xf32>
    %cst_102 = arith.constant dense<0.000000e+00> : vector<128xf32>
    %243 = vector.multi_reduction <add>, %242, %cst_102 [0] : vector<10x128xf32> to vector<128xf32>
    %244 = vector.shape_cast %243 : vector<128xf32> to vector<1x128xf32>
    %245 = tpu.reciprocal %244 {approx = true} : vector<1x128xf32> -> vector<1x128xf32>
    %246 = vector.broadcast %245 : vector<1x128xf32> to vector<10x128xf32>
    %247 = arith.mulf %242, %246 : vector<10x128xf32>
    %c0_103 = arith.constant 0 : index
    %c0_104 = arith.constant 0 : index
    %248 = vector.load %arg12[%c0_103, %c0_104] : memref<10x128xf32, #tpu.memory_space<vmem>>, vector<10x128xf32>
    tpu.vector_store %arg12[%c0_103, %c0_104], %247 {strides = array<i32>} : memref<10x128xf32, #tpu.memory_space<vmem>>, vector<10x128xf32>,
    return
  }
  func.func @transform_0(%arg0: i32) -> (i32, i32) {
    %c0_i32 = arith.constant 0 : i32
    %c0_i32_0 = arith.constant 0 : i32
    return %c0_i32, %arg0 : i32, i32
  }
  func.func @transform_1(%arg0: i32) -> (i32, i32) {
    %c0_i32 = arith.constant 0 : i32
    %c0_i32_0 = arith.constant 0 : i32
    %c0_i32_1 = arith.constant 0 : i32
    return %c0_i32, %c0_i32_0 : i32, i32
  }
  func.func @transform_2(%arg0: i32) -> (i32, i32) {
    %c0_i32 = arith.constant 0 : i32
    %c0_i32_0 = arith.constant 0 : i32
    %c0_i32_1 = arith.constant 0 : i32
    return %c0_i32, %c0_i32_0 : i32, i32
  }
  func.func @transform_3(%arg0: i32) -> (i32, i32) {
    %c0_i32 = arith.constant 0 : i32
    %c0_i32_0 = arith.constant 0 : i32
    %c0_i32_1 = arith.constant 0 : i32
    return %c0_i32, %c0_i32_0 : i32, i32
  }
  func.func @transform_4(%arg0: i32) -> (i32, i32) {
    %c0_i32 = arith.constant 0 : i32
    %c0_i32_0 = arith.constant 0 : i32
    %c0_i32_1 = arith.constant 0 : i32
    return %c0_i32, %c0_i32_0 : i32, i32
  }
  func.func @transform_5(%arg0: i32) -> (i32, i32) {
    %c0_i32 = arith.constant 0 : i32
    %c0_i32_0 = arith.constant 0 : i32
    %c0_i32_1 = arith.constant 0 : i32
    return %c0_i32, %c0_i32_0 : i32, i32
  }
  func.func @transform_6(%arg0: i32) -> (i32, i32) {
    %c0_i32 = arith.constant 0 : i32
    %c0_i32_0 = arith.constant 0 : i32
    %c0_i32_1 = arith.constant 0 : i32
    return %c0_i32, %c0_i32_0 : i32, i32
  }
  func.func @transform_7(%arg0: i32) -> (i32, i32) {
    %c0_i32 = arith.constant 0 : i32
    %c0_i32_0 = arith.constant 0 : i32
    %c0_i32_1 = arith.constant 0 : i32
    return %c0_i32, %c0_i32_0 : i32, i32
  }
  func.func @transform_8(%arg0: i32) -> (i32, i32) {
    %c0_i32 = arith.constant 0 : i32
    %c0_i32_0 = arith.constant 0 : i32
    %c0_i32_1 = arith.constant 0 : i32
    return %c0_i32, %c0_i32_0 : i32, i32
  }
  func.func @transform_9(%arg0: i32) -> (i32, i32) {
    %c0_i32 = arith.constant 0 : i32
    %c0_i32_0 = arith.constant 0 : i32
    %c0_i32_1 = arith.constant 0 : i32
    return %c0_i32, %c0_i32_0 : i32, i32
  }
  func.func @transform_10(%arg0: i32) -> (i32, i32) {
    %c0_i32 = arith.constant 0 : i32
    %c0_i32_0 = arith.constant 0 : i32
    %c0_i32_1 = arith.constant 0 : i32
    return %c0_i32, %c0_i32_0 : i32, i32
  }
  func.func @transform_11(%arg0: i32) -> (i32, i32) {
    %c0_i32 = arith.constant 0 : i32
    %c0_i32_0 = arith.constant 0 : i32
    return %c0_i32, %arg0 : i32, i32
  }
}

</mosaic_0001>

<bundles_post_ra>
// kernel: net_forward.1
= control target key start
LH: loop header
LB: loop body
LE: loop exit
PB: predicated region body
PF: predicated region fallthrough
CT: control target
= control target key end

     0   :  { %vm415_vm0 = vcmask 523264   ;;  %vm5644_vm1 = vcmask 785408   ;;  %vm8614_vm2 = vcmask 1043456   ;;  %vm8595_vm3 = vcmask 982016   ;;  %s17492_s0 = inlined_call_operand.vmem [shape: bf16[896,128], index: 0, kind: input, shape index: {}]   ;;  %s17493_s1 = inlined_call_operand.vmem [shape: bf16[320,192], index: 1, kind: input, shape index: {}]   ;;  %s17494_s2 = inlined_call_operand.vmem [shape: f32[80,1], index: 2, kind: input, shape index: {}]   ;;  %s17495_s4 = inlined_call_operand.vmem [shape: f32[64,1], index: 4, kind: input, shape index: {}]   ;;  %s17496_s6 = inlined_call_operand.vmem [shape: f32[120,1], index: 6, kind: input, shape index: {}]   ;;  %s17497_s8 = inlined_call_operand.vmem [shape: f32[84,1], index: 8, kind: input, shape index: {}]   ;;  %s17498_s10 = inlined_call_operand.vmem [shape: f32[10,1], index: 10, kind: input, shape index: {}]   ;;  %s17499_s3 = inlined_call_operand.vmem [shape: bf16[256,480], index: 3, kind: input, shape index: {}]   ;;  %s17500_s5 = inlined_call_operand.vmem [shape: bf16[120,256], index: 5, kind: input, shape index: {}]   ;;  %s17501_s7 = inlined_call_operand.vmem [shape: bf16[84,120], index: 7, kind: input, shape index: {}]   ;;  %s17502_s9 = inlined_call_operand.vmem [shape: bf16[10,84], index: 9, kind: input, shape index: {}]   ;;  %s17503_s11 = inlined_call_operand.vmem [shape: f32[10,128], index: 11, kind: output, shape index: {}]  }
   0x1   :  { %v10719_v0 = vld [vmem:[%s17492_s0 + $0x38] sm:$0xff]  ;;  %v10718_v3 = vld [vmem:[%s17492_s0 + $0x30] sm:$0xff]  ;;  %v10717_v6 = vld [vmem:[%s17492_s0 + $0x28] sm:$0xff]  ;;  %vm8696_vm4 = vcmask 1041408   ;;  %vm8692_vm5 = vcmask 687104  }
   0x2   :  { %v10723_v1 = vld [vmem:[%s17492_s0 + $0x58] sm:$0xff]  ;;  %476 = vmatpush.bf16.msra.mxu0 %v10719_v0  ;;  %v10722_v4 = vld [vmem:[%s17492_s0 + $0x50] sm:$0xff]  ;;  %v10721_v7 = vld [vmem:[%s17492_s0 + $0x48] sm:$0xff] }
   0x3   :  { %v11626_v2 = vld [vmem:[%s17492_s0 + $0x78] sm:$0xff]  ;;  %589 = vmatpush.bf16.msra.mxu1 %v10723_v1  ;;  %11530 = vmatpush.bf16.msra.mxu2 %v10723_v1  ;;  %v11638_v5 = vld [vmem:[%s17492_s0 + $0x70] sm:$0xff]  ;;  %v11650_v8 = vld [vmem:[%s17492_s0 + $0x68] sm:$0xff] }
   0x4   :  { %11534 = vmatpush.bf16.msra.mxu3 %v11626_v2  ;;  %v10716_v9 = vld [vmem:[%s17492_s0 + $0x20] sm:$0xff]  ;;  %v8749_v13 = vld [vmem:[%s17493_s1 + $0x8] sm:$0xf0]  ;;  %v10731_v18 = vld [vmem:[%s17492_s0 + $0x58] sm:$0xff] }
   0x5   :  { %v10720_v10 = vld [vmem:[%s17492_s0 + $0x40] sm:$0xff]  ;;  %v8893_v15 = vld [vmem:[%s17493_s1 + $0x128] sm:$0xf0]  ;;  %v10715_v22 = vld [vmem:[%s17492_s0 + $0x18] sm:$0xff] }
   0x6   :  { %477 = vmatpush.bf16.msra.mxu0 %v10718_v3  ;;  %v11661_v11 = vld [vmem:[%s17492_s0 + $0x60] sm:$0xff]  ;;  %v8765_v17 = vld [vmem:[%s17493_s1 + $0x28] sm:$0xf0]  ;;  %v10730_v23 = vld [vmem:[%s17492_s0 + $0x50] sm:$0xff] }
   0x7   :  { %590 = vmatpush.bf16.msra.mxu1 %v10722_v4  ;;  %11531 = vmatpush.bf16.msra.mxu2 %v10722_v4  ;;  %v10672_v12 = vld [vmem:[%s17493_s1 + $0x4] sm:$0xf]  ;;  %v10714_v24 = vld [vmem:[%s17492_s0 + $0x10] sm:$0xff]  ;;  %v10729_v25 = vld [vmem:[%s17492_s0 + $0x48] sm:$0xff] }
   0x8   :  { %11535 = vmatpush.bf16.msra.mxu3 %v11638_v5  ;;  %v10708_v14 = vld [vmem:[%s17493_s1 + $0x124] sm:$0xf]  ;;  %v11685_v19 = vor.u32 %v10672_v12, %v8749_v13  ;;  %v10713_v26 = vld [vmem:[%s17492_s0 + $0x8] sm:$0xff]  ;;  %v8747_v29 = vld [vmem:[%s17493_s1] sm:$0xf] }
   0x9   :  { %v10676_v16 = vld [vmem:[%s17493_s1 + $0x24] sm:$0xf]  ;;  %v11687_v20 = vor.u32 %v10708_v14, %v8893_v15  ;;  %v10674_v30 = vld [vmem:[%s17493_s1 + $0x14] sm:$0xf]  ;;  %v8757_v31 = vld [vmem:[%s17493_s1 + $0x18] sm:$0xf0] }
   0xa   :  { %478 = vmatpush.bf16.msra.mxu0 %v10717_v6  ;;  %17921 = vst [vmem:[#allocation4_spill] sm:$0xff] %v11685_v19  ;;  %v11689_v21 = vor.u32 %v10676_v16, %v8765_v17  ;;  %v10728_v27 = vld [vmem:[%s17492_s0 + $0x40] sm:$0xff]  ;;  %v10673_v32 = vld [vmem:[%s17493_s1 + $0x4] sm:$0xf0]  ;;  %v10710_v33 = vld [vmem:[%s17493_s1 + $0x134] sm:$0xf]  ;;  %v11746_v38 = vor.u32 %v10674_v30, %v8757_v31 }
   0xb   :  { %591 = vmatpush.bf16.msra.mxu1 %v10721_v7  ;;  %11532 = vmatpush.bf16.msra.mxu2 %v10721_v7  ;;  %17922 = vst [vmem:[#allocation5_spill] sm:$0xff] %v11687_v20  ;;  %v10712_v28 = vld [vmem:[%s17492_s0] sm:$0xff]  ;;  %v8901_v34 = vld [vmem:[%s17493_s1 + $0x138] sm:$0xf0]  ;;  %v10678_v35 = vld [vmem:[%s17493_s1 + $0x34] sm:$0xf]  ;;  %v11748_v39 = vor.u32 %v10673_v32, %v8747_v29 }
   0xc   :  { %11536 = vmatpush.bf16.msra.mxu3 %v11650_v8  ;;  %17923 = vst [vmem:[#allocation6_spill] sm:$0xff] %v11689_v21  ;;  %v8773_v36 = vld [vmem:[%s17493_s1 + $0x38] sm:$0xf0]  ;;  %v11750_v40 = vor.u32 %v10710_v33, %v8901_v34  ;;  %v10726_v42 = vld [vmem:[%s17492_s0 + $0x30] sm:$0xff]  ;;  %v10725_v43 = vld [vmem:[%s17492_s0 + $0x28] sm:$0xff] }
   0xd   :  { %v10727_v37 = vld [vmem:[%s17492_s0 + $0x38] sm:$0xff]  ;;  %17924 = vst [vmem:[#allocation7_spill] sm:$0xff] %v11746_v38  ;;  %v11752_v41 = vor.u32 %v10678_v35, %v8773_v36  ;;  %v10724_v44 = vld [vmem:[%s17492_s0 + $0x20] sm:$0xff]  ;;  %v8755_v45 = vld [vmem:[%s17493_s1 + $0x10] sm:$0xf] }
   0xe   :  { %479 = vmatpush.bf16.msra.mxu0 %v10716_v9  ;;  %17925 = vst [vmem:[#allocation8_spill] sm:$0xff] %v11748_v39  ;;  %v10675_v46 = vld [vmem:[%s17493_s1 + $0x14] sm:$0xf0]  ;;  %v10680_v47 = vld [vmem:[%s17493_s1 + $0x44] sm:$0xf] }
   0xf   :  { %592 = vmatpush.bf16.msra.mxu1 %v10720_v10  ;;  %11533 = vmatpush.bf16.msra.mxu2 %v10720_v10  ;;  %17926 = vst [vmem:[#allocation9_spill] sm:$0xff] %v11750_v40  ;;  %v8781_v48 = vld [vmem:[%s17493_s1 + $0x48] sm:$0xf0]  ;;  %v11783_v49 = vor.u32 %v10675_v46, %v8755_v45  ;;  %v8763_v51 = vld [vmem:[%s17493_s1 + $0x20] sm:$0xf] }
  0x10   :  { %11537 = vmatpush.bf16.msra.mxu3 %v11661_v11  ;;  %17927 = vst [vmem:[#allocation10_spill] sm:$0xff] %v11752_v41  ;;  %v11785_v50 = vor.u32 %v10680_v47, %v8781_v48  ;;  %v10677_v52 = vld [vmem:[%s17493_s1 + $0x24] sm:$0xf0]  ;;  %v10682_v53 = vld [vmem:[%s17493_s1 + $0x54] sm:$0xf] }
  0x11   :  { %17928 = vst [vmem:[#allocation11_spill] sm:$0xff] %v11783_v49  ;;  %v8789_v54 = vld [vmem:[%s17493_s1 + $0x58] sm:$0xf0]  ;;  %v11808_v55 = vor.u32 %v10677_v52, %v8763_v51  ;;  %v8771_v57 = vld [vmem:[%s17493_s1 + $0x30] sm:$0xf] }
  0x12   :  { %8953 = vmatmul.msk.bf16.vlgmr.msra.gmra.mxu1 %vm415_vm0, %v11685_v19  ;;  %8971 = vmatmul.msk.bf16.vlgmr.msra.gmra.mxu2 %vm415_vm0, %v11687_v20  ;;  %17929 = vst [vmem:[#allocation12_spill] sm:$0xff] %v11785_v50  ;;  %v11810_v56 = vor.u32 %v10682_v53, %v8789_v54  ;;  %v10679_v58 = vld [vmem:[%s17493_s1 + $0x34] sm:$0xf0]  ;;  %v10684_v59 = vld [vmem:[%s17493_s1 + $0x64] sm:$0xf] }
  0x13   :  { %860 = vmatpush.bf16.msrb.mxu2 %v10731_v18  ;;  %9023 = vmatmul.msk.bf16.vlgmr.msra.gmra.mxu3 %vm415_vm0, %v11689_v21  ;;  %17930 = vst [vmem:[#allocation13_spill] sm:$0xff] %v11808_v55  ;;  %v8797_v60 = vld [vmem:[%s17493_s1 + $0x68] sm:$0xf0]  ;;  %v11830_v61 = vor.u32 %v10679_v58, %v8771_v57  ;;  %v8779_v63 = vld [vmem:[%s17493_s1 + $0x40] sm:$0xf] }
  0x14   :  { %480 = vmatpush.bf16.msra.mxu0 %v10715_v22  ;;  %17931 = vst [vmem:[#allocation14_spill] sm:$0xff] %v11810_v56  ;;  %v11832_v62 = vor.u32 %v10684_v59, %v8797_v60  ;;  %v10681_v0 = vld [vmem:[%s17493_s1 + $0x44] sm:$0xf0]  ;;  %v10686_v1 = vld [vmem:[%s17493_s1 + $0x74] sm:$0xf] }
  0x15   :  { %17932 = vst [vmem:[#allocation15_spill] sm:$0xff] %v11830_v61  ;;  %v11852_v3 = vor.u32 %v10681_v0, %v8779_v63  ;;  %v10683_v6 = vld [vmem:[%s17493_s1 + $0x54] sm:$0xf0]  ;;  %v10688_v7 = vld [vmem:[%s17493_s1 + $0x84] sm:$0xf] }
  0x16   :  { %17933 = vst [vmem:[#allocation16_spill] sm:$0xff] %v11832_v62  ;;  %v10685_v12 = vld [vmem:[%s17493_s1 + $0x64] sm:$0xf0]  ;;  %v10690_v13 = vld [vmem:[%s17493_s1 + $0x94] sm:$0xf] }
  0x17   :  { %861 = vmatpush.bf16.msrb.mxu2 %v10730_v23  ;;  %17934 = vst [vmem:[#allocation17_spill] sm:$0xff] %v11852_v3  ;;  %v8821_v14 = vld [vmem:[%s17493_s1 + $0x98] sm:$0xf0]  ;;  %v8803_v17 = vld [vmem:[%s17493_s1 + $0x70] sm:$0xf] }
  0x18   :  { %481 = vmatpush.bf16.msra.mxu0 %v10714_v24  ;;  %v11898_v16 = vor.u32 %v10690_v13, %v8821_v14  ;;  %v10687_v18 = vld [vmem:[%s17493_s1 + $0x74] sm:$0xf0]  ;;  %v10692_v22 = vld [vmem:[%s17493_s1 + $0xa4] sm:$0xf]  ;;  %v8829_v23 = vld [vmem:[%s17493_s1 + $0xa8] sm:$0xf0] }
  0x19   :  { %v8811_v30 = vld [vmem:[%s17493_s1 + $0x80] sm:$0xf]  ;;  %v10689_v31 = vld [vmem:[%s17493_s1 + $0x84] sm:$0xf0]  ;;  %v10694_v32 = vld [vmem:[%s17493_s1 + $0xb4] sm:$0xf] }
  0x1a   :  { %17939 = vst [vmem:[#allocation22_spill] sm:$0xff] %v11898_v16  ;;  %v8837_v33 = vld [vmem:[%s17493_s1 + $0xb8] sm:$0xf0]  ;;  %v8819_v52 = vld [vmem:[%s17493_s1 + $0x90] sm:$0xf] }
  0x1b   :  { %862 = vmatpush.bf16.msrb.mxu2 %v10729_v25  ;;  %v11918_v25 = vor.u32 %v10687_v18, %v8803_v17  ;;  %v10691_v53 = vld [vmem:[%s17493_s1 + $0x94] sm:$0xf0]  ;;  %v10696_v54 = vld [vmem:[%s17493_s1 + $0xc4] sm:$0xf]  ;;  %v8845_v57 = vld [vmem:[%s17493_s1 + $0xc8] sm:$0xf0] }
  0x1c   :  { %482 = vmatpush.bf16.msra.mxu0 %v10713_v26  ;;  %v11920_v26 = vor.u32 %v10692_v22, %v8829_v23  ;;  %v11982_v63 = vor.u32 %v10691_v53, %v8819_v52  ;;  %v10693_v13 = vld [vmem:[%s17493_s1 + $0xa4] sm:$0xf0]  ;;  %v10698_v14 = vld [vmem:[%s17493_s1 + $0xd4] sm:$0xf]  ;;  %v8853_v17 = vld [vmem:[%s17493_s1 + $0xd8] sm:$0xf0] }
  0x1d   :  { %17940 = vst [vmem:[#allocation23_spill] sm:$0xff] %v11918_v25  ;;  %v10695_v52 = vld [vmem:[%s17493_s1 + $0xb4] sm:$0xf0]  ;;  %v10700_v53 = vld [vmem:[%s17493_s1 + $0xe4] sm:$0xf] }
  0x1e   :  { %17941 = vst [vmem:[#allocation24_spill] sm:$0xff] %v11920_v26 }
  0x1f   :  { %863 = vmatpush.bf16.msrb.mxu2 %v10728_v27  ;;  %17948 = vst [vmem:[#allocation31_spill] sm:$0xff] %v11982_v63 }
  0x20   :  { %483 = vmatpush.bf16.msra.mxu0 %v10712_v28 }
  0x22   :  { %8954 = vmatmul.msk.bf16.gmra.mxu1 %vm415_vm0, %v11746_v38  ;;  %8972 = vmatmul.msk.bf16.gmra.mxu2 %vm415_vm0, %v11750_v40 }
  0x23   :  { %864 = vmatpush.bf16.msrb.mxu2 %v10727_v37  ;;  %484 = vmatmul.bf16.vlgmr.msra.gmra.mxu0 %v11748_v39  ;;  %v11948_v37 = vor.u32 %v10689_v31, %v8811_v30  ;;  %v12018_v30 = vor.u32 %v10698_v14, %v8853_v17 }
  0x24   :  { %9024 = vmatmul.msk.bf16.gmra.mxu3 %vm415_vm0, %v11752_v41 }
  0x25   :  { %17944 = vst [vmem:[#allocation27_spill] sm:$0xff] %v11948_v37 }
  0x26   :  { %17953 = vst [vmem:[#allocation36_spill] sm:$0xff] %v12018_v30 }
  0x27   :  { %865 = vmatpush.bf16.msrb.mxu2 %v10726_v42 }
  0x2b   :  { %866 = vmatpush.bf16.msrb.mxu2 %v10725_v43  ;;  %v11950_v43 = vor.u32 %v10694_v32, %v8837_v33 }
  0x2d   :  { %17945 = vst [vmem:[#allocation28_spill] sm:$0xff] %v11950_v43 }
  0x2f   :  { %867 = vmatpush.bf16.msrb.mxu2 %v10724_v44 }
  0x32   :  { %8955 = vmatmul.msk.bf16.gmra.mxu1 %vm415_vm0, %v11689_v21  ;;  %868 = vmatmul.bf16.vlgmr.msrb.gmra.mxu2 %v11748_v39 }
  0x33   :  { %973 = vmatpush.bf16.msra.mxu2 %v11626_v2  ;;  %489 = vmatmul.bf16.gmra.mxu0 %v11783_v49  ;;  %v8805_v2 = vld [vmem:[%s17493_s1 + $0x78] sm:$0xf0] }
  0x34   :  { %9025 = vmatmul.msk.bf16.gmra.mxu3 %vm415_vm0, %v11785_v50  ;;  %v11854_v4 = vor.u32 %v10686_v1, %v8805_v2  ;;  %v11984_v1 = vor.u32 %v10696_v54, %v8845_v57  ;;  %v8861_v54 = vld [vmem:[%s17493_s1 + $0xe8] sm:$0xf0] }
  0x36   :  { %17935 = vst [vmem:[#allocation18_spill] sm:$0xff] %v11854_v4 }
  0x37   :  { %974 = vmatpush.bf16.msra.mxu2 %v11638_v5  ;;  %v8787_v5 = vld [vmem:[%s17493_s1 + $0x50] sm:$0xf]  ;;  %17949 = vst [vmem:[#allocation32_spill] sm:$0xff] %v11984_v1 }
  0x38   :  { %v11874_v9 = vor.u32 %v10683_v6, %v8787_v5 }
  0x3a   :  { %17936 = vst [vmem:[#allocation19_spill] sm:$0xff] %v11874_v9 }
  0x3b   :  { %975 = vmatpush.bf16.msra.mxu2 %v11650_v8  ;;  %v8813_v8 = vld [vmem:[%s17493_s1 + $0x88] sm:$0xf0] }
  0x3c   :  { %v11876_v10 = vor.u32 %v10688_v7, %v8813_v8 }
  0x3e   :  { %17937 = vst [vmem:[#allocation20_spill] sm:$0xff] %v11876_v10 }
  0x3f   :  { %976 = vmatpush.bf16.msra.mxu2 %v11661_v11  ;;  %v8795_v11 = vld [vmem:[%s17493_s1 + $0x60] sm:$0xf] }
  0x40   :  { %v11896_v15 = vor.u32 %v10685_v12, %v8795_v11  ;;  %v8827_v12 = vld [vmem:[%s17493_s1 + $0xa0] sm:$0xf] }
  0x42   :  { %8956 = vmatmul.msk.bf16.gmra.mxu1 %vm415_vm0, %v11752_v41  ;;  %873 = vmatmul.bf16.gmra.mxu2 %v11783_v49  ;;  %17938 = vst [vmem:[#allocation21_spill] sm:$0xff] %v11896_v15 }
  0x43   :  { %494 = vmatmul.bf16.gmra.mxu0 %v11808_v55 }
  0x44   :  { %9026 = vmatmul.msk.bf16.gmra.mxu3 %vm415_vm0, %v11810_v56 }
  0x52   :  { %8957 = vmatmul.msk.bf16.gmra.mxu1 %vm415_vm0, %v11785_v50  ;;  %878 = vmatmul.bf16.gmra.mxu2 %v11808_v55 }
  0x53   :  { %499 = vmatmul.bf16.gmra.mxu0 %v11830_v61 }
  0x54   :  { %9027 = vmatmul.msk.bf16.gmra.mxu3 %vm415_vm0, %v11832_v62 }
  0x62   :  { %8958 = vmatmul.msk.bf16.gmra.mxu1 %vm415_vm0, %v11810_v56  ;;  %883 = vmatmul.bf16.gmra.mxu2 %v11830_v61 }
  0x63   :  { %504 = vmatmul.bf16.gmra.mxu0 %v11852_v3 }
  0x64   :  { %9028 = vmatmul.msk.bf16.gmra.mxu3 %vm415_vm0, %v11854_v4 }
  0x72   :  { %8959 = vmatmul.msk.bf16.gmra.mxu1 %vm415_vm0, %v11832_v62  ;;  %888 = vmatmul.bf16.gmra.mxu2 %v11852_v3 }
  0x73   :  { %509 = vmatmul.bf16.gmra.mxu0 %v11874_v9 }
  0x74   :  { %9029 = vmatmul.msk.bf16.gmra.mxu3 %vm415_vm0, %v11876_v10 }
  0x82   :  { %8960 = vmatmul.msk.bf16.gmra.mxu1 %vm415_vm0, %v11854_v4  ;;  %893 = vmatmul.bf16.gmra.mxu2 %v11874_v9 }
  0x83   :  { %514 = vmatmul.bf16.gmra.mxu0 %v11896_v15 }
  0x84   :  { %9030 = vmatmul.msk.bf16.gmra.mxu3 %vm415_vm0, %v11898_v16 }
  0x8f   :  { %v594_v24 = vpop.f32.mrf.mxu1 }
  0x92   :  { %8961 = vmatmul.msk.bf16.gmra.mxu1 %vm415_vm0, %v11876_v10  ;;  %898 = vmatmul.bf16.gmra.mxu2 %v11896_v15  ;;  %v10736_v10 = vld [vmem:[%s17492_s0 + $0x40] sm:$0xff] }
  0x93   :  { %519 = vmatmul.bf16.gmra.mxu0 %v11918_v25 }
  0x94   :  { %9031 = vmatmul.msk.bf16.gmra.mxu3 %vm415_vm0, %v11920_v26 }
  0x95   :  { %v11928_v27 = vpop.f32.mrf.mxu2 }
  0x96   :  { %17942 = vst [vmem:[#allocation25_spill] sm:$0xff] %v11928_v27  ;;  %v11930_v28 = vpop.f32.mrf.mxu3 }
  0x97   :  { %v596_v29 = vpop.f32.mrf.mxu1 }
  0x9d   :  { %v11944_v34 = vpop.f32.mrf.mxu2 }
  0x9e   :  { %17943 = vst [vmem:[#allocation26_spill] sm:$0xff] %v11944_v34  ;;  %v11946_v35 = vpop.f32.mrf.mxu3  ;;  %v10740_v34 = vld [vmem:[%s17492_s0 + $0x60] sm:$0xff] }
  0x9f   :  { %v599_v36 = vpop.f32.mrf.mxu1 }
  0xa0   :  { %v485_v42 = vpop.f32.mrf.mxu0 }
  0xa1   :  { %v11952_v44 = vadd.f32 %v594_v24, %v485_v42  ;;  %v12016_v24 = vor.u32 %v10693_v13, %v8827_v12  ;;  %v12052_v12 = vor.u32 %v10700_v53, %v8861_v54  ;;  %v10697_v53 = vld [vmem:[%s17493_s1 + $0xc4] sm:$0xf0]  ;;  %v10702_v54 = vld [vmem:[%s17493_s1 + $0xf4] sm:$0xf] }
  0xa2   :  { %8962 = vmatmul.msk.bf16.gmra.mxu1 %vm415_vm0, %v11898_v16  ;;  %903 = vmatmul.bf16.gmra.mxu2 %v11918_v25 }
  0xa3   :  { %524 = vmatmul.bf16.gmra.mxu0 %v11948_v37  ;;  %17952 = vst [vmem:[#allocation35_spill] sm:$0xff] %v12016_v24 }
  0xa4   :  { %9032 = vmatmul.msk.bf16.gmra.mxu3 %vm415_vm0, %v11950_v43  ;;  %17957 = vst [vmem:[#allocation40_spill] sm:$0xff] %v12052_v12 }
  0xa5   :  { %v11960_v45 = vpop.f32.mrf.mxu2 }
  0xa6   :  { %17946 = vst [vmem:[#allocation29_spill] sm:$0xff] %v11960_v45 }
  0xa7   :  { %v11962_v46 = vpop.f32.mrf.mxu3  ;;  %v601_v47 = vpop.f32.mrf.mxu1 }
  0xa8   :  { %v487_v48 = vpop.f32.mrf.mxu0 }
  0xa9   :  { %v11964_v51 = vadd.f32 %v596_v29, %v487_v48  ;;  %v8835_v48 = vld [vmem:[%s17493_s1 + $0xb0] sm:$0xf] }
  0xad   :  { %v11978_v58 = vpop.f32.mrf.mxu2 }
  0xae   :  { %17947 = vst [vmem:[#allocation30_spill] sm:$0xff] %v11978_v58 }
  0xaf   :  { %v11980_v59 = vpop.f32.mrf.mxu3  ;;  %v604_v60 = vpop.f32.mrf.mxu1 }
  0xb0   :  { %v490_v0 = vpop.f32.mrf.mxu0 }
  0xb1   :  { %v11986_v2 = vadd.f32 %v599_v36, %v490_v0 }
  0xb2   :  { %8963 = vmatmul.msk.bf16.gmra.mxu1 %vm415_vm0, %v11920_v26  ;;  %908 = vmatmul.bf16.gmra.mxu2 %v11948_v37  ;;  %v10744_v37 = vld [vmem:[%s17492_s0 + $0x80] sm:$0xff] }
  0xb3   :  { %529 = vmatmul.bf16.gmra.mxu0 %v11982_v63 }
  0xb4   :  { %9033 = vmatmul.msk.bf16.gmra.mxu3 %vm415_vm0, %v11984_v1 }
  0xb5   :  { %v11994_v5 = vpop.f32.mrf.mxu2 }
  0xb6   :  { %17950 = vst [vmem:[#allocation33_spill] sm:$0xff] %v11994_v5 }
  0xb7   :  { %v11996_v6 = vpop.f32.mrf.mxu3  ;;  %v606_v7 = vpop.f32.mrf.mxu1 }
  0xb8   :  { %v492_v8 = vpop.f32.mrf.mxu0 }
  0xb9   :  { %v11998_v11 = vadd.f32 %v601_v47, %v492_v8 }
  0xbd   :  { %v12012_v18 = vpop.f32.mrf.mxu2 }
  0xbe   :  { %17951 = vst [vmem:[#allocation34_spill] sm:$0xff] %v12012_v18 }
  0xbf   :  { %v12014_v22 = vpop.f32.mrf.mxu3  ;;  %v609_v23 = vpop.f32.mrf.mxu1 }
  0xc0   :  { %v495_v29 = vpop.f32.mrf.mxu0 }
  0xc1   :  { %v12020_v31 = vadd.f32 %v604_v60, %v495_v29 }
  0xc2   :  { %8964 = vmatmul.msk.bf16.gmra.mxu1 %vm415_vm0, %v11950_v43  ;;  %913 = vmatmul.bf16.gmra.mxu2 %v11982_v63 }
  0xc3   :  { %534 = vmatmul.bf16.gmra.mxu0 %v12016_v24 }
  0xc4   :  { %9034 = vmatmul.msk.bf16.gmra.mxu3 %vm415_vm0, %v12018_v30 }
  0xc5   :  { %v12028_v32 = vpop.f32.mrf.mxu2 }
  0xc6   :  { %17954 = vst [vmem:[#allocation37_spill] sm:$0xff] %v12028_v32 }
  0xc7   :  { %v12030_v33 = vpop.f32.mrf.mxu3  ;;  %v611_v36 = vpop.f32.mrf.mxu1 }
  0xc8   :  { %v497_v42 = vpop.f32.mrf.mxu0 }
  0xc9   :  { %v12032_v47 = vadd.f32 %v606_v7, %v497_v42  ;;  %v12050_v7 = vor.u32 %v10695_v52, %v8835_v48  ;;  %v8843_v52 = vld [vmem:[%s17493_s1 + $0xc0] sm:$0xf] }
  0xcb   :  { %17956 = vst [vmem:[#allocation39_spill] sm:$0xff] %v12050_v7 }
  0xcd   :  { %v12046_v57 = vpop.f32.mrf.mxu2 }
  0xce   :  { %17955 = vst [vmem:[#allocation38_spill] sm:$0xff] %v12046_v57  ;;  %v12086_v57 = vor.u32 %v10697_v53, %v8843_v52 }
  0xcf   :  { %v12048_v60 = vpop.f32.mrf.mxu3  ;;  %v614_v0 = vpop.f32.mrf.mxu1 }
  0xd0   :  { %v500_v8 = vpop.f32.mrf.mxu0  ;;  %17958 = vst [vmem:[#allocation41_spill] sm:$0xff] %v12086_v57 }
  0xd1   :  { %v12054_v13 = vadd.f32 %v609_v23, %v500_v8 }
  0xd2   :  { %8965 = vmatmul.msk.bf16.gmra.mxu1 %vm415_vm0, %v11984_v1  ;;  %918 = vmatmul.bf16.gmra.mxu2 %v12016_v24 }
  0xd3   :  { %539 = vmatmul.bf16.gmra.mxu0 %v12050_v7 }
  0xd4   :  { %9035 = vmatmul.msk.bf16.gmra.mxu3 %vm415_vm0, %v12052_v12 }
  0xd5   :  { %v879_v14 = vpop.f32.mrf.mxu2 }
  0xd6   :  { %v12063_v17 = vadd.f32 %v11930_v28, %v879_v14  ;;  %v8869_v28 = vld [vmem:[%s17493_s1 + $0xf8] sm:$0xf0] }
  0xd7   :  { %v12065_v29 = vpop.f32.mrf.mxu3  ;;  %v616_v42 = vpop.f32.mrf.mxu1  ;;  %v12088_v18 = vor.u32 %v10702_v54, %v8869_v28  ;;  %v10699_v28 = vld [vmem:[%s17493_s1 + $0xd4] sm:$0xf0] }
  0xd8   :  { %v502_v48 = vpop.f32.mrf.mxu0 }
  0xd9   :  { %v12067_v23 = vadd.f32 %v611_v36, %v502_v48  ;;  %17959 = vst [vmem:[#allocation42_spill] sm:$0xff] %v12088_v18 }
  0xdd   :  { %v881_v8 = vpop.f32.mrf.mxu2 }
  0xde   :  { %v12082_v36 = vadd.f32 %v11946_v35, %v881_v8 }
  0xdf   :  { %v12084_v14 = vpop.f32.mrf.mxu3  ;;  %v619_v48 = vpop.f32.mrf.mxu1 }
  0xe0   :  { %v505_v32 = vpop.f32.mrf.mxu0 }
  0xe1   :  { %v12090_v5 = vadd.f32 %v614_v0, %v505_v32  ;;  %v8851_v0 = vld [vmem:[%s17493_s1 + $0xd0] sm:$0xf] }
  0xe2   :  { %8966 = vmatmul.msk.bf16.gmra.mxu1 %vm415_vm0, %v12018_v30  ;;  %923 = vmatmul.bf16.gmra.mxu2 %v12050_v7  ;;  %v10704_v30 = vld [vmem:[%s17493_s1 + $0x104] sm:$0xf]  ;;  %v12122_v43 = vor.u32 %v10699_v28, %v8851_v0  ;;  %v10742_v28 = vld [vmem:[%s17492_s0 + $0x70] sm:$0xff] }
  0xe3   :  { %17960 = vst [vmem:[#allocation43_spill] sm:$0xff] %v12090_v5  ;;  %544 = vmatmul.bf16.gmra.mxu0 %v12086_v57 }
  0xe4   :  { %9036 = vmatmul.msk.bf16.gmra.mxu3 %vm415_vm0, %v12088_v18  ;;  %17962 = vst [vmem:[#allocation45_spill] sm:$0xff] %v12122_v43 }
  0xe5   :  { %v884_v35 = vpop.f32.mrf.mxu2 }
  0xe6   :  { %v12099_v8 = vadd.f32 %v11962_v46, %v884_v35  ;;  %v8877_v46 = vld [vmem:[%s17493_s1 + $0x108] sm:$0xf0] }
  0xe7   :  { %v12101_v52 = vpop.f32.mrf.mxu3  ;;  %v621_v53 = vpop.f32.mrf.mxu1  ;;  %v12124_v58 = vor.u32 %v10704_v30, %v8877_v46 }
  0xe8   :  { %v507_v54 = vpop.f32.mrf.mxu0 }
  0xe9   :  { %v12103_v32 = vadd.f32 %v616_v42, %v507_v54  ;;  %17963 = vst [vmem:[#allocation46_spill] sm:$0xff] %v12124_v58 }
  0xed   :  { %v886_v35 = vpop.f32.mrf.mxu2 }
  0xee   :  { %v12118_v42 = vadd.f32 %v11980_v59, %v886_v35  ;;  %v10743_v59 = vld [vmem:[%s17492_s0 + $0x78] sm:$0xff] }
  0xef   :  { %v12120_v54 = vpop.f32.mrf.mxu3  ;;  %v624_v1 = vpop.f32.mrf.mxu1  ;;  %1244 = vmatpush.bf16.msrb.mxu1 %v10743_v59  ;;  %v10701_v59 = vld [vmem:[%s17493_s1 + $0xe4] sm:$0xf0] }
  0xf0   :  { %17961 = vst [vmem:[#allocation44_spill] sm:$0xff] %v12118_v42  ;;  %v510_v7 = vpop.f32.mrf.mxu0 }
  0xf1   :  { %v12126_v26 = vadd.f32 %v619_v48, %v510_v7 }
  0xf2   :  { %8967 = vmatmul.msk.bf16.gmra.mxu1 %vm415_vm0, %v12052_v12  ;;  %928 = vmatmul.bf16.gmra.mxu2 %v12086_v57  ;;  %v10741_v12 = vld [vmem:[%s17492_s0 + $0x68] sm:$0xff] }
  0xf3   :  { %549 = vmatmul.bf16.gmra.mxu0 %v12122_v43  ;;  %1245 = vmatpush.bf16.msrb.mxu1 %v10742_v28 }
  0xf4   :  { %9037 = vmatmul.msk.bf16.gmra.mxu3 %vm415_vm0, %v12124_v58 }
  0xf5   :  { %v889_v0 = vpop.f32.mrf.mxu2 }
  0xf6   :  { %v12138_v30 = vadd.f32 %v11996_v6, %v889_v0  ;;  %v8859_v6 = vld [vmem:[%s17493_s1 + $0xe0] sm:$0xf]  ;;  %v10706_v0 = vld [vmem:[%s17493_s1 + $0x114] sm:$0xf] }
  0xf7   :  { %v12140_v7 = vpop.f32.mrf.mxu3  ;;  %v626_v48 = vpop.f32.mrf.mxu1  ;;  %1246 = vmatpush.bf16.msrb.mxu1 %v10741_v12  ;;  %v12167_v45 = vor.u32 %v10701_v59, %v8859_v6  ;;  %v10739_v12 = vld [vmem:[%s17492_s0 + $0x58] sm:$0xff] }
  0xf8   :  { %v512_v46 = vpop.f32.mrf.mxu0  ;;  %v10747_v6 = vld [vmem:[%s17492_s0 + $0x98] sm:$0xff] }
  0xf9   :  { %v12145_v35 = vadd.f32 %v621_v53, %v512_v46  ;;  %v8885_v53 = vld [vmem:[%s17493_s1 + $0x118] sm:$0xf0]  ;;  %17964 = vst [vmem:[#allocation47_spill] sm:$0xff] %v12167_v45  ;;  %1357 = vmatpush.bf16.msrb.mxu3 %v10747_v6  ;;  %v8867_v6 = vld [vmem:[%s17493_s1 + $0xf0] sm:$0xf] }
  0xfa   :  { %v12172_v63 = vor.u32 %v10706_v0, %v8885_v53  ;;  %v10738_v53 = vld [vmem:[%s17492_s0 + $0x50] sm:$0xff] }
  0xfb   :  { %1247 = vmatpush.bf16.msrb.mxu1 %v10740_v34 }
  0xfc   :  { %17965 = vst [vmem:[#allocation48_spill] sm:$0xff] %v12172_v63 }
  0xfd   :  { %v891_v28 = vpop.f32.mrf.mxu2 }
  0xfe   :  { %v12163_v46 = vadd.f32 %v12014_v22, %v891_v28  ;;  %v11556_v22 = vmov 0   ;;  %v10746_v28 = vld [vmem:[%s17492_s0 + $0x90] sm:$0xff] }
  0xff   :  { %v12165_v57 = vpop.f32.mrf.mxu3  ;;  %v629_v24 = vpop.f32.mrf.mxu1  ;;  %11547 = vset.pattern.permute.xlu0 %v11556_v22  ;;  %11549 = vset.pattern.permute.xlu2 %v11556_v22 }
 0x100   :  { %v515_v16 = vpop.f32.mrf.mxu0  ;;  %1248 = vmatpush.bf16.msrb.mxu1 %v10739_v12  ;;  %11548 = vset.pattern.permute.xlu1 %v11556_v22  ;;  %v80_v22 = vld [vmem:[%s17494_s2 + $0x8] sm:$0xff] }
 0x101   :  { %v12174_v27 = vadd.f32 %v624_v1, %v515_v16  ;;  %v79_v16 = vld [vmem:[%s17494_s2] sm:$0xff]  ;;  %1358 = vmatpush.bf16.msrb.mxu3 %v10746_v28  ;;  %v10745_v12 = vld [vmem:[%s17492_s0 + $0x88] sm:$0xff] }
 0x102   :  { %8968 = vmatmul.msk.bf16.gmra.mxu1 %vm415_vm0, %v12088_v18  ;;  %933 = vmatmul.bf16.gmra.mxu2 %v12122_v43 }
 0x103   :  { %554 = vmatmul.bf16.gmra.mxu0 %v12167_v45  ;;  %91 = vperm.xlu0 %11547, %v79_v16  }
 0x104   :  { %9038 = vmatmul.msk.bf16.gmra.mxu3 %vm415_vm0, %v12172_v63  ;;  %1249 = vmatpush.bf16.msrb.mxu1 %v10738_v53 }
 0x105   :  { %v894_v34 = vpop.f32.mrf.mxu2  ;;  %1359 = vmatpush.bf16.msrb.mxu3 %v10745_v12 }
 0x106   :  { %v12192_v1 = vadd.f32 %v12030_v33, %v894_v34  ;;  %v10737_v33 = vld [vmem:[%s17492_s0 + $0x48] sm:$0xff] }
 0x107   :  { %v12194_v59 = vpop.f32.mrf.mxu3  ;;  %v631_v0 = vpop.f32.mrf.mxu1 }
 0x108   :  { %v517_v18 = vpop.f32.mrf.mxu0  ;;  %1250 = vmatpush.bf16.msrb.mxu1 %v10737_v33 }
 0x109   :  { %v12202_v16 = vadd.f32 %v626_v48, %v517_v18  ;;  %v10703_v18 = vld [vmem:[%s17493_s1 + $0xf4] sm:$0xf0]  ;;  %1360 = vmatpush.bf16.msrb.mxu3 %v10744_v37 }
 0x10a   :  { %v12224_v43 = vor.u32 %v10703_v18, %v8867_v6 }
 0x10b   :  { %96 = vperm.xlu0 %11547, %v80_v22  }
 0x10c   :  { %17966 = vst [vmem:[#allocation49_spill] sm:$0xff] %v12224_v43  ;;  %1251 = vmatpush.bf16.msrb.mxu1 %v10736_v10 }
 0x10d   :  { %v896_v48 = vpop.f32.mrf.mxu2 }
 0x10e   :  { %v12220_v34 = vadd.f32 %v12048_v60, %v896_v48  ;;  %v85_v60 = vld [vmem:[%s17494_s2 + $0x30] sm:$0xff]  ;;  %v83_v48 = vld [vmem:[%s17494_s2 + $0x20] sm:$0xff] }
 0x10f   :  { %v12222_v53 = vpop.f32.mrf.mxu3  ;;  %v634_v28 = vpop.f32.mrf.mxu1  ;;  %111 = vperm.xlu2 %11549, %v83_v48  }
 0x110   :  { %v520_v22 = vpop.f32.mrf.mxu0 }
 0x111   :  { %v12232_v33 = vadd.f32 %v629_v24, %v520_v22  ;;  %v82_v22 = vld [vmem:[%s17494_s2 + $0x18] sm:$0xff] }
 0x112   :  { %8969 = vmatmul.msk.bf16.gmra.mxu1 %vm415_vm0, %v12124_v58  ;;  %938 = vmatmul.bf16.gmra.mxu2 %v12167_v45 }
 0x113   :  { %17967 = vst [vmem:[#allocation50_spill] sm:$0xff] %v12232_v33  ;;  %559 = vmatmul.bf16.gmra.mxu0 %v12224_v43  ;;  %121 = vperm.xlu0 %11547, %v85_v60   ;;  %v10705_v60 = vld [vmem:[%s17493_s1 + $0x104] sm:$0xf0] }
 0x114   :  { %9039 = vmatmul.msk.bf16.gmra.mxu3 %vm415_vm0, %v11687_v20 }
 0x115   :  { %v899_v12 = vpop.f32.mrf.mxu2 }
 0x116   :  { %v12244_v24 = vadd.f32 %v12065_v29, %v899_v12  ;;  %v8875_v29 = vld [vmem:[%s17493_s1 + $0x100] sm:$0xf] }
 0x117   :  { %v12246_v10 = vpop.f32.mrf.mxu3  ;;  %v636_v6 = vpop.f32.mrf.mxu1  ;;  %v12267_v20 = vor.u32 %v10705_v60, %v8875_v29 }
 0x118   :  { %17968 = vst [vmem:[#allocation51_spill] sm:$0xff] %v12244_v24  ;;  %v522_v37 = vpop.f32.mrf.mxu0 }
 0x119   :  { %v12248_v18 = vadd.f32 %v631_v0, %v522_v37  ;;  %17971 = vst [vmem:[#allocation54_spill] sm:$0xff] %v12267_v20 }
 0x11b   :  { %17969 = vst [vmem:[#allocation52_spill] sm:$0xff] %v12248_v18  ;;  %106 = vperm.xlu0 %11547, %v82_v22   ;;  %v84_v22 = vld [vmem:[%s17494_s2 + $0x28] sm:$0xff] }
 0x11c   :  { %116 = vperm.xlu2 %11549, %v84_v22   ;;  %v87_v22 = vld [vmem:[%s17494_s2 + $0x40] sm:$0xff] }
 0x11d   :  { %v901_v0 = vpop.f32.mrf.mxu2  ;;  %131 = vperm.xlu1 %11548, %v87_v22  }
 0x11e   :  { %v12263_v12 = vadd.f32 %v12084_v14, %v901_v0  ;;  %v10755_v14 = vld [vmem:[%s17492_s0 + $0x98] sm:$0xff]  ;;  %v10754_v0 = vld [vmem:[%s17492_s0 + $0x90] sm:$0xff] }
 0x11f   :  { %v12265_v37 = vpop.f32.mrf.mxu3  ;;  %v639_v48 = vpop.f32.mrf.mxu1  ;;  %1628 = vmatpush.bf16.msrb.mxu0 %v10755_v14  ;;  %11538 = vmatpush.bf16.msrb.mxu2 %v10755_v14  ;;  %v10753_v14 = vld [vmem:[%s17492_s0 + $0x88] sm:$0xff] }
 0x120   :  { %17970 = vst [vmem:[#allocation53_spill] sm:$0xff] %v12263_v12  ;;  %v525_v58 = vpop.f32.mrf.mxu0 }
 0x121   :  { %v12269_v45 = vadd.f32 %v634_v28, %v525_v58 }
 0x122   :  { %8970 = vmatmul.msk.bf16.gmra.mxu1 %vm415_vm0, %v12172_v63  ;;  %943 = vmatmul.bf16.gmra.mxu2 %v12224_v43 }
 0x123   :  { %17972 = vst [vmem:[#allocation55_spill] sm:$0xff] %v12269_v45  ;;  %564 = vmatmul.bf16.gmra.mxu0 %v12267_v20  ;;  %11539 = vmatpush.bf16.msrb.mxu2 %v10754_v0  ;;  %v10752_v45 = vld [vmem:[%s17492_s0 + $0x80] sm:$0xff] }
 0x124   :  { %9040 = vmatmul.msk.bf16.gmra.mxu3 %vm415_vm0, %v11750_v40  ;;  %1629 = vmatpush.bf16.msrb.mxu0 %v10754_v0 }
 0x125   :  { %v904_v58 = vpop.f32.mrf.mxu2 }
 0x126   :  { %v12284_v28 = vadd.f32 %v12101_v52, %v904_v58  ;;  %v81_v52 = vld [vmem:[%s17494_s2 + $0x10] sm:$0xff] }
 0x127   :  { %v12286_v29 = vpop.f32.mrf.mxu3  ;;  %v641_v60 = vpop.f32.mrf.mxu1  ;;  %v8883_v58 = vld [vmem:[%s17493_s1 + $0x110] sm:$0xf]  ;;  %101 = vperm.xlu2 %11549, %v81_v52   ;;  %11540 = vmatpush.bf16.msrb.mxu2 %v10753_v14 }
 0x128   :  { %17973 = vst [vmem:[#allocation56_spill] sm:$0xff] %v12284_v28  ;;  %v527_v63 = vpop.f32.mrf.mxu0  ;;  %1630 = vmatpush.bf16.msrb.mxu0 %v10753_v14  ;;  %v10750_v14 = vld [vmem:[%s17492_s0 + $0x70] sm:$0xff] }
 0x129   :  { %v12291_v40 = vadd.f32 %v636_v6, %v527_v63  ;;  %v10707_v63 = vld [vmem:[%s17493_s1 + $0x114] sm:$0xf0] }
 0x12a   :  { %v12313_v28 = vor.u32 %v10707_v63, %v8883_v58 }
 0x12b   :  { %17974 = vst [vmem:[#allocation57_spill] sm:$0xff] %v12291_v40  ;;  %11541 = vmatpush.bf16.msrb.mxu2 %v10752_v45 }
 0x12c   :  { %17976 = vst [vmem:[#allocation59_spill] sm:$0xff] %v12313_v28  ;;  %1631 = vmatpush.bf16.msrb.mxu0 %v10752_v45 }
 0x12d   :  { %v906_v6 = vpop.f32.mrf.mxu2 }
 0x12e   :  { %v12309_v0 = vadd.f32 %v12120_v54, %v906_v6  ;;  %v10751_v54 = vld [vmem:[%s17492_s0 + $0x78] sm:$0xff] }
 0x12f   :  { %v12311_v43 = vpop.f32.mrf.mxu3  ;;  %v644_v40 = vpop.f32.mrf.mxu1  ;;  %11542 = vmatpush.bf16.msrb.mxu2 %v10751_v54  ;;  %v86_v6 = vld [vmem:[%s17494_s2 + $0x38] sm:$0xff] }
 0x130   :  { %17975 = vst [vmem:[#allocation58_spill] sm:$0xff] %v12309_v0  ;;  %v530_v12 = vpop.f32.mrf.mxu0  ;;  %1632 = vmatpush.bf16.msrb.mxu0 %v10751_v54  ;;  %v8891_v54 = vld [vmem:[%s17493_s1 + $0x120] sm:$0xf] }
 0x131   :  { %v12318_v18 = vadd.f32 %v639_v48, %v530_v12  ;;  %v88_v12 = vld [vmem:[%s17494_s2 + $0x48] sm:$0xff] }
 0x132   :  { %1252 = vmatmul.bf16.vlgmr.msrb.gmra.mxu1 %v11748_v39  ;;  %948 = vmatmul.bf16.gmra.mxu2 %v12267_v20 }
 0x133   :  { %17977 = vst [vmem:[#allocation60_spill] sm:$0xff] %v12318_v18  ;;  %569 = vmatmul.bf16.gmra.mxu0 %v12313_v28  ;;  %136 = vperm.xlu1 %11548, %v88_v12   ;;  %v10709_v12 = vld [vmem:[%s17493_s1 + $0x124] sm:$0xf0] }
 0x134   :  { %9089 = vmatmul.msk.bf16.vlgmr.msrb.gmra.mxu3 %vm415_vm0, %v11685_v19  ;;  %1633 = vmatpush.bf16.msrb.mxu0 %v10750_v14  ;;  %v12358_v20 = vor.u32 %v10709_v12, %v8891_v54 }
 0x135   :  { %v909_v48 = vpop.f32.mrf.mxu2  ;;  %11543 = vmatpush.bf16.msrb.mxu2 %v10750_v14 }
 0x136   :  { %v12332_v45 = vadd.f32 %v12140_v7, %v909_v48  ;;  %v10749_v7 = vld [vmem:[%s17492_s0 + $0x68] sm:$0xff]  ;;  %17981 = vst [vmem:[#allocation64_spill] sm:$0xff] %v12358_v20 }
 0x137   :  { %v12334_v22 = vpop.f32.mrf.mxu3  ;;  %v646_v52 = vpop.f32.mrf.mxu1 }
 0x138   :  { %17978 = vst [vmem:[#allocation61_spill] sm:$0xff] %v12332_v45  ;;  %v532_v58 = vpop.f32.mrf.mxu0  ;;  %1634 = vmatpush.bf16.msrb.mxu0 %v10749_v7 }
 0x139   :  { %v12339_v63 = vadd.f32 %v641_v60, %v532_v58  ;;  %11544 = vmatpush.bf16.msrb.mxu2 %v10749_v7 }
 0x13b   :  { %17979 = vst [vmem:[#allocation62_spill] sm:$0xff] %v12339_v63  ;;  %126 = vperm.xlu1 %11548, %v86_v6   ;;  %v10748_v63 = vld [vmem:[%s17492_s0 + $0x60] sm:$0xff] }
 0x13c   :  { %1635 = vmatpush.bf16.msrb.mxu0 %v10748_v63 }
 0x13d   :  { %v911_v60 = vpop.f32.mrf.mxu2  ;;  %11545 = vmatpush.bf16.msrb.mxu2 %v10748_v63 }
 0x13e   :  { %v12354_v48 = vadd.f32 %v12165_v57, %v911_v60  ;;  %v8899_v60 = vld [vmem:[%s17493_s1 + $0x130] sm:$0xf]  ;;  %v10711_v57 = vld [vmem:[%s17493_s1 + $0x134] sm:$0xf0] }
 0x13f   :  { %v12356_v14 = vpop.f32.mrf.mxu3  ;;  %v649_v58 = vpop.f32.mrf.mxu1 }
 0x140   :  { %17980 = vst [vmem:[#allocation63_spill] sm:$0xff] %v12354_v48  ;;  %v535_v45 = vpop.f32.mrf.mxu0 }
 0x141   :  { %v12363_v18 = vadd.f32 %v644_v40, %v535_v45 }
 0x142   :  { %1257 = vmatmul.bf16.gmra.mxu1 %v11783_v49  ;;  %953 = vmatmul.bf16.gmra.mxu2 %v12313_v28 }
 0x143   :  { %574 = vmatmul.bf16.gmra.mxu0 %v12358_v20 }
 0x144   :  { %9090 = vmatmul.msk.bf16.gmra.mxu3 %vm415_vm0, %v11746_v38 }
 0x145   :  { %v914_v6 = vpop.f32.mrf.mxu2 }
 0x146   :  { %v12373_v7 = vadd.f32 %v12194_v59, %v914_v6 }
 0x147   :  { %v12375_v40 = vpop.f32.mrf.mxu3  ;;  %v651_v45 = vpop.f32.mrf.mxu1 }
 0x148   :  { %17982 = vst [vmem:[#allocation65_spill] sm:$0xff] %v12373_v7  ;;  %v537_v54 = vpop.f32.mrf.mxu0 }
 0x149   :  { %v12377_v12 = vadd.f32 %v646_v52, %v537_v54  ;;  %v12392_v52 = vor.u32 %v10711_v57, %v8899_v60 }
 0x14b   :  { %17984 = vst [vmem:[#allocation67_spill] sm:$0xff] %v12392_v52 }
 0x14d   :  { %v916_v28 = vpop.f32.mrf.mxu2 }
 0x14e   :  { %v12388_v59 = vadd.f32 %v12222_v53, %v916_v28 }
 0x14f   :  { %v12390_v6 = vpop.f32.mrf.mxu3  ;;  %v654_v7 = vpop.f32.mrf.mxu1 }
 0x150   :  { %17983 = vst [vmem:[#allocation66_spill] sm:$0xff] %v12388_v59  ;;  %v540_v54 = vpop.f32.mrf.mxu0 }
 0x151   :  { %v12394_v48 = vadd.f32 %v649_v58, %v540_v54 }
 0x152   :  { %1262 = vmatmul.bf16.gmra.mxu1 %v11808_v55  ;;  %958 = vmatmul.bf16.gmra.mxu2 %v12358_v20 }
 0x153   :  { %579 = vmatmul.bf16.gmra.mxu0 %v12392_v52 }
 0x154   :  { %9091 = vmatmul.msk.bf16.gmra.mxu3 %vm415_vm0, %v11689_v21 }
 0x155   :  { %v919_v53 = vpop.f32.mrf.mxu2 }
 0x156   :  { %v12404_v28 = vadd.f32 %v12246_v10, %v919_v53 }
 0x157   :  { %v12406_v57 = vpop.f32.mrf.mxu3  ;;  %v656_v58 = vpop.f32.mrf.mxu1 }
 0x158   :  { %17985 = vst [vmem:[#allocation68_spill] sm:$0xff] %v12404_v28  ;;  %v542_v60 = vpop.f32.mrf.mxu0 }
 0x159   :  { %v12408_v54 = vadd.f32 %v651_v45, %v542_v60 }
 0x15d   :  { %v921_v59 = vpop.f32.mrf.mxu2 }
 0x15e   :  { %v12413_v0 = vadd.f32 %v12265_v37, %v921_v59 }
 0x15f   :  { %v12415_v20 = vpop.f32.mrf.mxu3  ;;  %v659_v21 = vpop.f32.mrf.mxu1 }
 0x160   :  { %17986 = vst [vmem:[#allocation69_spill] sm:$0xff] %v12413_v0  ;;  %v545_v24 = vpop.f32.mrf.mxu0 }
 0x161   :  { %v12417_v33 = vadd.f32 %v654_v7, %v545_v24 }
 0x162   :  { %1267 = vmatmul.bf16.gmra.mxu1 %v11830_v61  ;;  %963 = vmatmul.bf16.gmra.mxu2 %v12392_v52 }
 0x163   :  { %1636 = vmatmul.bf16.vlgmr.msrb.gmra.mxu0 %v11748_v39 }
 0x164   :  { %9092 = vmatmul.msk.bf16.gmra.mxu3 %vm415_vm0, %v11752_v41 }
 0x165   :  { %v924_v37 = vpop.f32.mrf.mxu2 }
 0x166   :  { %v12427_v45 = vadd.f32 %v12286_v29, %v924_v37  ;;  %v10758_v37 = vld [vmem:[%s17492_s0 + $0xb0] sm:$0xff] }
 0x167   :  { %v12429_v59 = vpop.f32.mrf.mxu3  ;;  %v661_v24 = vpop.f32.mrf.mxu1 }
 0x168   :  { %17987 = vst [vmem:[#allocation70_spill] sm:$0xff] %v12427_v45  ;;  %v547_v7 = vpop.f32.mrf.mxu0 }
 0x169   :  { %v12431_v53 = vadd.f32 %v656_v58, %v547_v7 }
 0x16d   :  { %v926_v10 = vpop.f32.mrf.mxu2 }
 0x16e   :  { %v12436_v63 = vadd.f32 %v12311_v43, %v926_v10  ;;  %v10759_v43 = vld [vmem:[%s17492_s0 + $0xb8] sm:$0xff] }
 0x16f   :  { %v12438_v39 = vpop.f32.mrf.mxu3  ;;  %v664_v0 = vpop.f32.mrf.mxu1 }
 0x170   :  { %17988 = vst [vmem:[#allocation71_spill] sm:$0xff] %v12436_v63  ;;  %v550_v28 = vpop.f32.mrf.mxu0 }
 0x171   :  { %v12440_v41 = vadd.f32 %v659_v21, %v550_v28 }
 0x172   :  { %1272 = vmatmul.bf16.gmra.mxu1 %v11852_v3  ;;  %9021 = vmatmul.msk.bf16.vlgmr.msra.gmra.mxu2 %vm415_vm0, %v11685_v19 }
 0x173   :  { %1641 = vmatmul.bf16.gmra.mxu0 %v11783_v49  ;;  %1741 = vmatpush.bf16.msra.mxu2 %v10759_v43 }
 0x174   :  { %9093 = vmatmul.msk.bf16.gmra.mxu3 %vm415_vm0, %v11785_v50 }
 0x175   :  { %v929_v21 = vpop.f32.mrf.mxu2  ;;  %v12501_v50 = vpop.permute.xlu0 %91 }
 0x176   :  { %v12454_v28 = vadd.f32 %v12334_v22, %v929_v21  ;;  %v10757_v22 = vld [vmem:[%s17492_s0 + $0xa8] sm:$0xff]  ;;  %17991 = vst [vmem:[#allocation74_spill] sm:$0xff] %v12501_v50 }
 0x177   :  { %v12456_v58 = vpop.f32.mrf.mxu3  ;;  %v666_v10 = vpop.f32.mrf.mxu1  ;;  %1742 = vmatpush.bf16.msra.mxu2 %v10758_v37 }
 0x178   :  { %v552_v7 = vpop.f32.mrf.mxu0 }
 0x179   :  { %v12463_v60 = vadd.f32 %v661_v24, %v552_v7  ;;  %v10756_v24 = vld [vmem:[%s17492_s0 + $0xa0] sm:$0xff] }
 0x17a   :  { %v18005_v7 = vld [vmem:[#allocation52_spill] sm:$0xff] }
 0x17b   :  { %1743 = vmatpush.bf16.msra.mxu2 %v10757_v22 }
 0x17d   :  { %v931_v21 = vpop.f32.mrf.mxu2  ;;  %v12526_v5 = vpop.permute.xlu0 %96 }
 0x17e   :  { %v12471_v49 = vadd.f32 %v12356_v14, %v931_v21  ;;  %17994 = vst [vmem:[#allocation76_spill] sm:$0xff] %v12526_v5 }
 0x17f   :  { %v12473_v63 = vpop.f32.mrf.mxu3  ;;  %v669_v45 = vpop.f32.mrf.mxu1  ;;  %1744 = vmatpush.bf16.msra.mxu2 %v10756_v24 }
 0x180   :  { %17989 = vst [vmem:[#allocation72_spill] sm:$0xff] %v12471_v49  ;;  %v555_v37 = vpop.f32.mrf.mxu0 }
 0x181   :  { %v12480_v43 = vadd.f32 %v664_v0, %v555_v37 }
 0x182   :  { %1277 = vmatmul.bf16.gmra.mxu1 %v11874_v9  ;;  %9022 = vmatmul.msk.bf16.gmra.mxu2 %vm415_vm0, %v11746_v38 }
 0x183   :  { %17990 = vst [vmem:[#allocation73_spill] sm:$0xff] %v12480_v43  ;;  %1646 = vmatmul.bf16.gmra.mxu0 %v11808_v55 }
 0x184   :  { %9094 = vmatmul.msk.bf16.gmra.mxu3 %vm415_vm0, %v11810_v56 }
 0x185   :  { %v934_v22 = vpop.f32.mrf.mxu2 }
 0x186   :  { %v12491_v21 = vadd.f32 %v12375_v40, %v934_v22 }
 0x187   :  { %v12493_v0 = vpop.f32.mrf.mxu3  ;;  %v671_v24 = vpop.f32.mrf.mxu1 }
 0x188   :  { %v557_v37 = vpop.f32.mrf.mxu0 }
 0x189   :  { %v12497_v14 = vadd.f32 %v666_v10, %v557_v37  ;;  %v12519_v37 = vpop.permute.xlu2 %111 }
 0x18d   :  { %v936_v55 = vpop.f32.mrf.mxu2 }
 0x18e   :  { %v12504_v56 = vadd.f32 %v12390_v6, %v936_v55  ;;  %v17993_v55 = vmax.f32 %v11952_v44, %v12363_v18  ;;  %v17995_v44 = vmax.f32 %v11964_v51, %v12377_v12 }
 0x18f   :  { %v12506_v40 = vpop.f32.mrf.mxu3  ;;  %v674_v22 = vpop.f32.mrf.mxu1 }
 0x190   :  { %17992 = vst [vmem:[#allocation75_spill] sm:$0xff] %v12504_v56  ;;  %v560_v43 = vpop.f32.mrf.mxu0 }
 0x191   :  { %v670_v49 = vadd.f32 %v669_v45, %v560_v43  ;;  %v12541_v42 = vpop.permute.xlu2 %116 }
 0x192   :  { %1282 = vmatmul.bf16.gmra.mxu1 %v11896_v15  ;;  %1731 = vmatmul.bf16.vlgmr.msrb.gmra.mxu2 %v12392_v52 }
 0x193   :  { %v704_v10 = vmax.f32 %v12126_v26, %v670_v49  ;;  %1651 = vmatmul.bf16.gmra.mxu0 %v11830_v61 }
 0x194   :  { %9095 = vmatmul.msk.bf16.gmra.mxu3 %vm415_vm0, %v11832_v62 }
 0x195   :  { %v714_v6 = vmax.f32 %v17993_v55, %v704_v10  ;;  %v939_v29 = vpop.f32.mrf.mxu2 }
 0x196   :  { %v12522_v45 = vadd.f32 %v12406_v57, %v939_v29 }
 0x197   :  { %v12524_v43 = vpop.f32.mrf.mxu3  ;;  %v676_v49 = vpop.f32.mrf.mxu1  ;;  %v724_v10 = vadd.f32 %v714_v6, %v12501_v50 }
 0x198   :  { %v562_v26 = vpop.f32.mrf.mxu0 }
 0x199   :  { %v672_v61 = vadd.f32 %v671_v24, %v562_v26  ;;  %v734_v51 = vmax.f32 %v724_v10, 0.0 }
 0x19b   :  { %v705_v52 = vmax.f32 %v12145_v35, %v672_v61 }
 0x19d   :  { %v715_v18 = vmax.f32 %v17995_v44, %v705_v52  ;;  %v941_v57 = vpop.f32.mrf.mxu2  ;;  %v12546_v52 = vpop.permute.xlu0 %121 }
 0x19e   :  { %v12536_v29 = vadd.f32 %v12415_v20, %v941_v57  ;;  %17996 = vst [vmem:[#allocation77_spill] sm:$0xff] %v12546_v52 }
 0x19f   :  { %v12538_v55 = vpop.f32.mrf.mxu3  ;;  %v679_v62 = vpop.f32.mrf.mxu1  ;;  %v725_v56 = vadd.f32 %v715_v18, %v12526_v5 }
 0x1a0   :  { %v565_v24 = vpop.f32.mrf.mxu0 }
 0x1a1   :  { %v675_v35 = vadd.f32 %v674_v22, %v565_v24  ;;  %v735_v12 = vmax.f32 %v725_v56, 0.0  ;;  %v17997_v22 = vmax.f32 %v11986_v2, %v12394_v48  ;;  %v17998_v2 = vmax.f32 %v11998_v11, %v12408_v54  ;;  %v17999_v11 = vld [vmem:[#allocation27_spill] sm:$0xff]  ;;  %v18000_v54 = vld [vmem:[#allocation50_spill] sm:$0xff] }
 0x1a2   :  { %1287 = vmatmul.bf16.gmra.mxu1 %v11918_v25  ;;  %9157 = vmatmul.msk.bf16.vlgmr.msra.gmra.mxu2 %vm415_vm0, %v11685_v19 }
 0x1a3   :  { %v706_v20 = vmax.f32 %v12174_v27, %v675_v35  ;;  %1656 = vmatmul.bf16.gmra.mxu0 %v11852_v3  ;;  %v11079_v6 = vpack.c.bf16 %v735_v12, %v734_v51  ;;  %v12564_v35 = vpop.permute.xlu2 %101 }
 0x1a4   :  { %9096 = vmatmul.msk.bf16.gmra.mxu3 %vm415_vm0, %v11854_v4 }
 0x1a5   :  { %v716_v26 = vmax.f32 %v17997_v22, %v706_v20  ;;  %11080 = vst [vmem:[#allocation2 + $0xb0] sm:$0xff] %v11079_v6   ;;  %v944_v56 = vpop.f32.mrf.mxu2  ;;  %v12567_v12 = vpop.permute.xlu0 %106 }
 0x1a6   :  { %v12558_v44 = vadd.f32 %v12429_v59, %v944_v56 }
 0x1a7   :  { %v12560_v18 = vpop.f32.mrf.mxu3  ;;  %v681_v27 = vpop.f32.mrf.mxu1  ;;  %v726_v59 = vadd.f32 %v716_v26, %v12564_v35 }
 0x1a8   :  { %v567_v10 = vpop.f32.mrf.mxu0 }
 0x1a9   :  { %v677_v24 = vadd.f32 %v676_v49, %v567_v10  ;;  %v736_v57 = vmax.f32 %v726_v59, 0.0 }
 0x1ab   :  { %v707_v51 = vmax.f32 %v12202_v16, %v677_v24 }
 0x1ad   :  { %v717_v48 = vmax.f32 %v17998_v2, %v707_v51  ;;  %v946_v20 = vpop.f32.mrf.mxu2  ;;  %v18001_v51 = vld [vmem:[#allocation20_spill] sm:$0xff]  ;;  %v18002_v2 = vmax.f32 %v12020_v31, %v12417_v33  ;;  %v18006_v33 = vmax.f32 %v12032_v47, %v12431_v53  ;;  %v18009_v47 = vld [vmem:[#allocation31_spill] sm:$0xff] }
 0x1ae   :  { %v12574_v6 = vadd.f32 %v12438_v39, %v946_v20 }
 0x1af   :  { %v12576_v22 = vpop.f32.mrf.mxu3  ;;  %v1253_v56 = vpop.f32.mrf.mxu1  ;;  %v727_v49 = vadd.f32 %v717_v48, %v12567_v12 }
 0x1b0   :  { %v570_v10 = vpop.f32.mrf.mxu0 }
 0x1b1   :  { %v680_v24 = vadd.f32 %v679_v62, %v570_v10  ;;  %v737_v61 = vmax.f32 %v727_v49, 0.0 }
 0x1b2   :  { %1292 = vmatmul.bf16.gmra.mxu1 %v17999_v11  ;;  %9158 = vmatmul.msk.bf16.gmra.mxu2 %vm415_vm0, %v11746_v38  ;;  %v18018_v38 = vld [vmem:[#allocation57_spill] sm:$0xff] }
 0x1b3   :  { %v708_v26 = vmax.f32 %v18000_v54, %v680_v24  ;;  %1661 = vmatmul.bf16.gmra.mxu0 %v11874_v9  ;;  %v11084_v39 = vpack.c.bf16 %v737_v61, %v736_v57  ;;  %v12596_v54 = vpop.permute.xlu1 %131  ;;  %v18004_v61 = vld [vmem:[#allocation51_spill] sm:$0xff] }
 0x1b4   :  { %9097 = vmatmul.msk.bf16.gmra.mxu3 %vm415_vm0, %v18001_v51  ;;  %18003 = vst [vmem:[#allocation50_spill] sm:$0xff] %v12596_v54 }
 0x1b5   :  { %v718_v48 = vmax.f32 %v18002_v2, %v708_v26  ;;  %11456 = vst [vmem:[#allocation2 + $0x1b0] sm:$0xff] %v11084_v39   ;;  %v949_v62 = vpop.f32.mrf.mxu2 }
 0x1b6   :  { %v12592_v59 = vadd.f32 %v12456_v58, %v949_v62 }
 0x1b7   :  { %v1362_v20 = vpop.f32.mrf.mxu3  ;;  %v1255_v49 = vpop.f32.mrf.mxu1  ;;  %v728_v31 = vadd.f32 %v718_v48, %v12519_v37  ;;  %v18008_v48 = vld [vmem:[#allocation25_spill] sm:$0xff] }
 0x1b8   :  { %v12594_v10 = vadd.f32 %v1362_v20, %v1253_v56  ;;  %v572_v24 = vpop.f32.mrf.mxu0 }
 0x1b9   :  { %v682_v16 = vadd.f32 %v681_v27, %v572_v24  ;;  %v738_v27 = vmax.f32 %v728_v31, 0.0  ;;  %v18014_v31 = vmax.f32 %v12054_v13, %v12440_v41 }
 0x1bb   :  { %v709_v9 = vmax.f32 %v18005_v7, %v682_v16  ;;  %v18007_v7 = vld [vmem:[#allocation53_spill] sm:$0xff]  ;;  %v18016_v16 = vld [vmem:[#allocation26_spill] sm:$0xff] }
 0x1bd   :  { %v719_v58 = vmax.f32 %v18006_v33, %v709_v9  ;;  %v951_v26 = vpop.f32.mrf.mxu2  ;;  %v12615_v9 = vpop.permute.xlu1 %136  ;;  %v18011_v33 = vld [vmem:[#allocation55_spill] sm:$0xff] }
 0x1be   :  { %v12607_v56 = vadd.f32 %v12473_v63, %v951_v26  ;;  %18010 = vst [vmem:[#allocation51_spill] sm:$0xff] %v12615_v9 }
 0x1bf   :  { %v729_v39 = vadd.f32 %v719_v58, %v12541_v42  ;;  %v1364_v2 = vpop.f32.mrf.mxu3  ;;  %v1258_v62 = vpop.f32.mrf.mxu1  ;;  %v18012_v58 = vld [vmem:[#allocation6_spill] sm:$0xff] }
 0x1c0   :  { %v12609_v20 = vadd.f32 %v1364_v2, %v1255_v49  ;;  %v575_v57 = vpop.f32.mrf.mxu0  ;;  %v18013_v49 = vld [vmem:[#allocation22_spill] sm:$0xff] }
 0x1c1   :  { %v739_v24 = vmax.f32 %v729_v39, 0.0  ;;  %v685_v3 = vadd.f32 %v18008_v48, %v575_v57  ;;  %v18015_v48 = vld [vmem:[#allocation56_spill] sm:$0xff] }
 0x1c2   :  { %1297 = vmatmul.bf16.gmra.mxu1 %v18009_v47  ;;  %9159 = vmatmul.msk.bf16.gmra.mxu2 %vm415_vm0, %v18012_v58  ;;  %v18017_v58 = vmax.f32 %v12063_v17, %v12454_v28 }
 0x1c3   :  { %v11089_v53 = vpack.c.bf16 %v739_v24, %v738_v27  ;;  %v710_v63 = vmax.f32 %v18011_v33, %v685_v3  ;;  %1666 = vmatmul.bf16.gmra.mxu0 %v11896_v15 }
 0x1c4   :  { %9098 = vmatmul.msk.bf16.gmra.mxu3 %vm415_vm0, %v18013_v49 }
 0x1c5   :  { %11457 = vst [vmem:[#allocation2 + $0xd8] sm:$0xff] %v11089_v53   ;;  %v720_v57 = vmax.f32 %v18014_v31, %v710_v63  ;;  %v954_v26 = vpop.f32.mrf.mxu2  ;;  %v12635_v41 = vpop.permute.xlu1 %126 }
 0x1c6   :  { %v1064_v39 = vadd.f32 %v12493_v0, %v954_v26  ;;  %18019 = vst [vmem:[#allocation52_spill] sm:$0xff] %v12635_v41  ;;  %v18020_v0 = vmax.f32 %v12067_v23, %v12463_v60  ;;  %v18023_v23 = vld [vmem:[#allocation35_spill] sm:$0xff] }
 0x1c7   :  { %v1367_v2 = vpop.f32.mrf.mxu3  ;;  %v1260_v27 = vpop.f32.mrf.mxu1  ;;  %v730_v13 = vadd.f32 %v720_v57, %v12546_v52 }
 0x1c8   :  { %v12627_v24 = vadd.f32 %v1367_v2, %v1258_v62  ;;  %v577_v3 = vpop.f32.mrf.mxu0  ;;  %v1092_v33 = vmax.f32 %v18015_v48, %v1064_v39 }
 0x1c9   :  { %v687_v15 = vadd.f32 %v18016_v16, %v577_v3  ;;  %v740_v28 = vmax.f32 %v730_v13, 0.0 }
 0x1ca   :  { %v1102_v53 = vmax.f32 %v18017_v58, %v1092_v33  ;;  %v18022_v58 = vld [vmem:[#allocation29_spill] sm:$0xff]  ;;  %v18026_v33 = vld [vmem:[#allocation60_spill] sm:$0xff] }
 0x1cb   :  { %v711_v19 = vmax.f32 %v18018_v38, %v687_v15  ;;  %v18021_v38 = vld [vmem:[#allocation58_spill] sm:$0xff] }
 0x1cc   :  { %v1112_v48 = vadd.f32 %v1102_v53, %v12519_v37  ;;  %v18029_v53 = vld [vmem:[#allocation43_spill] sm:$0xff] }
 0x1cd   :  { %v721_v62 = vmax.f32 %v18020_v0, %v711_v19  ;;  %v956_v63 = vpop.f32.mrf.mxu2  ;;  %v18024_v19 = vld [vmem:[#allocation72_spill] sm:$0xff] }
 0x1ce   :  { %v1066_v31 = vadd.f32 %v12506_v40, %v956_v63  ;;  %v18025_v60 = vmax.f32 %v12082_v36, %v18024_v19 }
 0x1cf   :  { %v1369_v26 = vpop.f32.mrf.mxu3  ;;  %v1263_v39 = vpop.f32.mrf.mxu1  ;;  %v731_v16 = vadd.f32 %v721_v62, %v12635_v41  ;;  %v18028_v62 = vld [vmem:[#allocation24_spill] sm:$0xff] }
 0x1d0   :  { %v12643_v2 = vadd.f32 %v1369_v26, %v1260_v27  ;;  %v580_v17 = vpop.f32.mrf.mxu0  ;;  %v1093_v15 = vmax.f32 %v18021_v38, %v1066_v31  ;;  %v18027_v27 = vld [vmem:[#allocation10_spill] sm:$0xff]  ;;  %v18030_v31 = vld [vmem:[#allocation73_spill] sm:$0xff] }
 0x1d1   :  { %v690_v3 = vadd.f32 %v18022_v58, %v580_v17  ;;  %v741_v57 = vmax.f32 %v731_v16, 0.0  ;;  %v18031_v26 = vmax.f32 %v18029_v53, %v18030_v31  ;;  %v1122_v17 = vmax.f32 %v1112_v48, 0.0  ;;  %v18035_v53 = vld [vmem:[#allocation62_spill] sm:$0xff] }
 0x1d2   :  { %1302 = vmatmul.bf16.gmra.mxu1 %v18023_v23  ;;  %v1103_v40 = vmax.f32 %v18025_v60, %v1093_v15  ;;  %9160 = vmatmul.msk.bf16.gmra.mxu2 %vm415_vm0, %v18027_v27  ;;  %v18032_v60 = vld [vmem:[#allocation61_spill] sm:$0xff] }
 0x1d3   :  { %v712_v0 = vmax.f32 %v18026_v33, %v690_v3  ;;  %1671 = vmatmul.bf16.gmra.mxu0 %v11918_v25  ;;  %v11094_v13 = vpack.c.bf16 %v741_v57, %v740_v28  ;;  %v18033_v25 = vld [vmem:[#allocation30_spill] sm:$0xff] }
 0x1d4   :  { %9099 = vmatmul.msk.bf16.gmra.mxu3 %vm415_vm0, %v18028_v62  ;;  %v1113_v63 = vadd.f32 %v1103_v40, %v12541_v42 }
 0x1d5   :  { %v722_v16 = vmax.f32 %v18031_v26, %v712_v0  ;;  %11458 = vst [vmem:[#allocation2 + $0x18] sm:$0xff] %v11094_v13   ;;  %v959_v36 = vpop.f32.mrf.mxu2  ;;  %v18034_v0 = vmax.f32 %v12099_v8, %v12491_v21  ;;  %v18037_v21 = vld [vmem:[#allocation63_spill] sm:$0xff] }
 0x1d6   :  { %v1123_v38 = vmax.f32 %v1113_v63, 0.0  ;;  %v1069_v15 = vadd.f32 %v12524_v43, %v959_v36  ;;  %v18036_v43 = vmax.f32 %v12103_v32, %v12497_v14  ;;  %v18039_v32 = vld [vmem:[#allocation44_spill] sm:$0xff]  ;;  %v18040_v14 = vld [vmem:[#allocation75_spill] sm:$0xff] }
 0x1d7   :  { %v1372_v58 = vpop.f32.mrf.mxu3  ;;  %v1265_v3 = vpop.f32.mrf.mxu1  ;;  %v732_v63 = vadd.f32 %v722_v16, %v12596_v54 }
 0x1d8   :  { %v12663_v19 = vadd.f32 %v1372_v58, %v1263_v39  ;;  %v582_v28 = vpop.f32.mrf.mxu0  ;;  %v11114_v57 = vpack.c.bf16 %v1123_v38, %v1122_v17  ;;  %v1094_v33 = vmax.f32 %v18032_v60, %v1069_v15  ;;  %v18041_v60 = vmax.f32 %v18039_v32, %v18040_v14  ;;  %v18047_v14 = vld [vmem:[#allocation41_spill] sm:$0xff] }
 0x1d9   :  { %v692_v40 = vadd.f32 %v18033_v25, %v582_v28  ;;  %v742_v15 = vmax.f32 %v732_v63, 0.0  ;;  %v18038_v28 = vld [vmem:[#allocation39_spill] sm:$0xff] }
 0x1da   :  { %11462 = vst [vmem:[#allocation2 + $0x48] sm:$0xff] %v11114_v57   ;;  %v1104_v13 = vmax.f32 %v18034_v0, %v1094_v33 }
 0x1db   :  { %v713_v48 = vmax.f32 %v18035_v53, %v692_v40 }
 0x1dc   :  { %v1114_v16 = vadd.f32 %v1104_v13, %v12546_v52 }
 0x1dd   :  { %v723_v39 = vmax.f32 %v18036_v43, %v713_v48  ;;  %v961_v31 = vpop.f32.mrf.mxu2 }
 0x1de   :  { %v1071_v36 = vadd.f32 %v12538_v55, %v961_v31  ;;  %v18042_v55 = vld [vmem:[#allocation12_spill] sm:$0xff]  ;;  %v1124_v53 = vmax.f32 %v1114_v16, 0.0 }
 0x1df   :  { %v733_v26 = vadd.f32 %v723_v39, %v12615_v9  ;;  %v1374_v17 = vpop.f32.mrf.mxu3  ;;  %v1268_v25 = vpop.f32.mrf.mxu1 }
 0x1e0   :  { %v12677_v38 = vadd.f32 %v1374_v17, %v1265_v3  ;;  %v1095_v58 = vmax.f32 %v18037_v21, %v1071_v36  ;;  %v18043_v3 = vld [vmem:[#allocation28_spill] sm:$0xff]  ;;  %v18045_v17 = vmax.f32 %v12138_v30, %v12522_v45  ;;  %v18049_v30 = vld [vmem:[#allocation14_spill] sm:$0xff] }
 0x1e1   :  { %v743_v8 = vmax.f32 %v733_v26, 0.0  ;;  %v18044_v26 = vld [vmem:[#allocation65_spill] sm:$0xff]  ;;  %v18050_v45 = vld [vmem:[#allocation32_spill] sm:$0xff] }
 0x1e2   :  { %1307 = vmatmul.bf16.gmra.mxu1 %v18038_v28  ;;  %v1105_v33 = vmax.f32 %v18041_v60, %v1095_v58  ;;  %9161 = vmatmul.msk.bf16.gmra.mxu2 %vm415_vm0, %v18042_v55  ;;  %v18048_v60 = vmax.f32 %v12163_v46, %v12536_v29  ;;  %v18052_v29 = vld [vmem:[#allocation68_spill] sm:$0xff] }
 0x1e3   :  { %v11099_v57 = vpack.c.bf16 %v743_v8, %v742_v15  ;;  %1676 = vmatmul.bf16.gmra.mxu0 %v17999_v11  ;;  %v18083_v11 = vld [vmem:[#allocation64_spill] sm:$0xff] }
 0x1e4   :  { %9100 = vmatmul.msk.bf16.gmra.mxu3 %vm415_vm0, %v18043_v3  ;;  %v1115_v40 = vadd.f32 %v1105_v33, %v12635_v41 }
 0x1e5   :  { %11459 = vst [vmem:[#allocation2 + $0x50] sm:$0xff] %v11099_v57   ;;  %v964_v0 = vpop.f32.mrf.mxu2 }
 0x1e6   :  { %v1125_v48 = vmax.f32 %v1115_v40, 0.0  ;;  %v1074_v13 = vadd.f32 %v12560_v18, %v964_v0  ;;  %v18046_v18 = vld [vmem:[#allocation66_spill] sm:$0xff] }
 0x1e7   :  { %v1377_v63 = vpop.f32.mrf.mxu3  ;;  %v1270_v43 = vpop.f32.mrf.mxu1 }
 0x1e8   :  { %v12692_v39 = vadd.f32 %v1377_v63, %v1268_v25  ;;  %v11119_v31 = vpack.c.bf16 %v1125_v48, %v1124_v53  ;;  %v1096_v36 = vmax.f32 %v18044_v26, %v1074_v13  ;;  %v18051_v48 = vld [vmem:[#allocation33_spill] sm:$0xff] }
 0x1ea   :  { %11463 = vst [vmem:[#allocation2 + $0x180] sm:$0xff] %v11119_v31   ;;  %v1106_v15 = vmax.f32 %v18045_v17, %v1096_v36  ;;  %v18053_v36 = vmax.f32 %v12192_v1, %v12558_v44  ;;  %v18059_v1 = vld [vmem:[#allocation16_spill] sm:$0xff] }
 0x1eb   :  { %v18060_v44 = vld [vmem:[#allocation36_spill] sm:$0xff] }
 0x1ec   :  { %v1116_v25 = vadd.f32 %v1106_v15, %v12596_v54  ;;  %v1637_v15 = vpop.f32.mrf.mxu0 }
 0x1ed   :  { %v966_v8 = vpop.f32.mrf.mxu2 }
 0x1ee   :  { %v1076_v21 = vadd.f32 %v12576_v22, %v966_v8  ;;  %v1126_v0 = vmax.f32 %v1116_v25, 0.0 }
 0x1ef   :  { %v1379_v58 = vpop.f32.mrf.mxu3  ;;  %v1273_v16 = vpop.f32.mrf.mxu1 }
 0x1f0   :  { %v12699_v57 = vadd.f32 %v1379_v58, %v1270_v43  ;;  %v1097_v32 = vmax.f32 %v18046_v18, %v1076_v21  ;;  %v18054_v21 = vld [vmem:[#allocation34_spill] sm:$0xff] }
 0x1f2   :  { %1312 = vmatmul.bf16.gmra.mxu1 %v18047_v14  ;;  %v1107_v33 = vmax.f32 %v18048_v60, %v1097_v32  ;;  %9162 = vmatmul.msk.bf16.gmra.mxu2 %vm415_vm0, %v18049_v30  ;;  %v18056_v60 = vld [vmem:[#allocation69_spill] sm:$0xff] }
 0x1f3   :  { %1681 = vmatmul.bf16.gmra.mxu0 %v18009_v47 }
 0x1f4   :  { %9101 = vmatmul.msk.bf16.gmra.mxu3 %vm415_vm0, %v18050_v45  ;;  %v1117_v22 = vadd.f32 %v1107_v33, %v12615_v9 }
 0x1f5   :  { %v978_v40 = vpop.f32.mrf.mxu2 }
 0x1f6   :  { %v1127_v53 = vmax.f32 %v1117_v22, 0.0  ;;  %v979_v13 = vadd.f32 %v978_v40, %v18051_v48  ;;  %v18058_v40 = vmax.f32 %v12220_v34, %v12574_v6 }
 0x1f7   :  { %v1382_v63 = vpop.f32.mrf.mxu3  ;;  %v1275_v43 = vpop.f32.mrf.mxu1 }
 0x1f8   :  { %v12714_v31 = vadd.f32 %v1382_v63, %v1273_v16  ;;  %v11124_v46 = vpack.c.bf16 %v1127_v53, %v1126_v0  ;;  %v1078_v26 = vmax.f32 %v979_v13, %v18052_v29  ;;  %v18057_v16 = vld [vmem:[#allocation45_spill] sm:$0xff]  ;;  %v1639_v53 = vpop.f32.mrf.mxu0 }
 0x1fa   :  { %11464 = vst [vmem:[#allocation2 + $0x110] sm:$0xff] %v11124_v46   ;;  %v1098_v17 = vmax.f32 %v1078_v26, %v18053_v36  ;;  %v18061_v46 = vld [vmem:[#allocation37_spill] sm:$0xff] }
 0x1fc   :  { %v1108_v22 = vadd.f32 %v1098_v17, %v12501_v50  ;;  %v18062_v17 = vld [vmem:[#allocation70_spill] sm:$0xff] }
 0x1fd   :  { %v980_v8 = vpop.f32.mrf.mxu2 }
 0x1fe   :  { %v981_v58 = vadd.f32 %v980_v8, %v18054_v21  ;;  %v1118_v63 = vmax.f32 %v1108_v22, 0.0  ;;  %v18063_v21 = vmax.f32 %v18004_v61, %v12592_v59  ;;  %v18068_v59 = vld [vmem:[#allocation40_spill] sm:$0xff] }
 0x1ff   :  { %v1384_v18 = vpop.f32.mrf.mxu3  ;;  %v1278_v32 = vpop.f32.mrf.mxu1 }
 0x200   :  { %v12721_v25 = vadd.f32 %v1384_v18, %v1275_v43  ;;  %v1079_v33 = vmax.f32 %v981_v58, %v18056_v60  ;;  %v1642_v18 = vpop.f32.mrf.mxu0 }
 0x202   :  { %18055 = vst [vmem:[#allocation53_spill] sm:$0xff] %v12721_v25  ;;  %1317 = vmatmul.bf16.gmra.mxu1 %v18057_v16  ;;  %v1099_v0 = vmax.f32 %v1079_v33, %v18058_v40  ;;  %9163 = vmatmul.msk.bf16.gmra.mxu2 %vm415_vm0, %v18059_v1  ;;  %v18064_v33 = vld [vmem:[#allocation38_spill] sm:$0xff] }
 0x203   :  { %1686 = vmatmul.bf16.gmra.mxu0 %v18023_v23 }
 0x204   :  { %9102 = vmatmul.msk.bf16.gmra.mxu3 %vm415_vm0, %v18060_v44  ;;  %v1109_v48 = vadd.f32 %v1099_v0, %v12526_v5 }
 0x205   :  { %v983_v13 = vpop.f32.mrf.mxu2 }
 0x206   :  { %v1119_v43 = vmax.f32 %v1109_v48, 0.0  ;;  %v984_v29 = vadd.f32 %v983_v13, %v18061_v46  ;;  %v18065_v13 = vld [vmem:[#allocation71_spill] sm:$0xff] }
 0x207   :  { %v1387_v26 = vpop.f32.mrf.mxu3  ;;  %v1280_v36 = vpop.f32.mrf.mxu1 }
 0x208   :  { %v12736_v34 = vadd.f32 %v1387_v26, %v1278_v32  ;;  %v11104_v6 = vpack.c.bf16 %v1119_v43, %v1118_v63  ;;  %v1080_v8 = vmax.f32 %v984_v29, %v18062_v17  ;;  %v18066_v32 = vld [vmem:[#allocation47_spill] sm:$0xff]  ;;  %v18067_v43 = vmax.f32 %v18007_v7, %v12607_v56  ;;  %v1644_v61 = vpop.f32.mrf.mxu0 }
 0x20a   :  { %11460 = vst [vmem:[#allocation2 + $0x168] sm:$0xff] %v11104_v6   ;;  %v1100_v58 = vmax.f32 %v1080_v8, %v18063_v21 }
 0x20c   :  { %v1110_v63 = vadd.f32 %v1100_v58, %v12564_v35 }
 0x20d   :  { %v985_v60 = vpop.f32.mrf.mxu2 }
 0x20e   :  { %v986_v40 = vadd.f32 %v985_v60, %v18064_v33  ;;  %v1120_v6 = vmax.f32 %v1110_v63, 0.0 }
 0x20f   :  { %v1389_v22 = vpop.f32.mrf.mxu3  ;;  %v1283_v0 = vpop.f32.mrf.mxu1 }
 0x210   :  { %v12743_v48 = vadd.f32 %v1389_v22, %v1280_v36  ;;  %v1081_v46 = vmax.f32 %v986_v40, %v18065_v13  ;;  %v1647_v7 = vpop.f32.mrf.mxu0  ;;  %v18071_v13 = vld [vmem:[#allocation49_spill] sm:$0xff] }
 0x212   :  { %1322 = vmatmul.bf16.gmra.mxu1 %v18066_v32  ;;  %v1101_v29 = vmax.f32 %v1081_v46, %v18067_v43  ;;  %9164 = vmatmul.msk.bf16.gmra.mxu2 %vm415_vm0, %v11854_v4  ;;  %v18072_v46 = vld [vmem:[#allocation42_spill] sm:$0xff] }
 0x213   :  { %1691 = vmatmul.bf16.gmra.mxu0 %v18038_v28 }
 0x214   :  { %9103 = vmatmul.msk.bf16.gmra.mxu3 %vm415_vm0, %v18068_v59  ;;  %v1111_v26 = vadd.f32 %v1101_v29, %v12567_v12 }
 0x215   :  { %v12757_v36 = vpop.f32.mrf.mxu2 }
 0x216   :  { %18069 = vst [vmem:[#allocation25_spill] sm:$0xff] %v12757_v36  ;;  %v1121_v17 = vmax.f32 %v1111_v26, 0.0  ;;  %v18073_v36 = vld [vmem:[#allocation54_spill] sm:$0xff] }
 0x217   :  { %v1392_v8 = vpop.f32.mrf.mxu3  ;;  %v1285_v21 = vpop.f32.mrf.mxu1 }
 0x218   :  { %v12759_v58 = vadd.f32 %v1392_v8, %v1283_v0  ;;  %v11109_v56 = vpack.c.bf16 %v1121_v17, %v1120_v6  ;;  %v1649_v0 = vpop.f32.mrf.mxu0 }
 0x21a   :  { %11461 = vst [vmem:[#allocation2 + $0x130] sm:$0xff] %v11109_v56  }
 0x21d   :  { %v12761_v60 = vpop.f32.mrf.mxu2 }
 0x21e   :  { %18070 = vst [vmem:[#allocation55_spill] sm:$0xff] %v12761_v60 }
 0x21f   :  { %v1394_v33 = vpop.f32.mrf.mxu3  ;;  %v1288_v40 = vpop.f32.mrf.mxu1 }
 0x220   :  { %v12763_v22 = vadd.f32 %v1394_v33, %v1285_v21  ;;  %v12775_v17 = vpop.f32.mrf.mxu0 }
 0x222   :  { %1327 = vmatmul.bf16.gmra.mxu1 %v18071_v13  ;;  %9165 = vmatmul.msk.bf16.gmra.mxu2 %vm415_vm0, %v18001_v51 }
 0x223   :  { %1696 = vmatmul.bf16.gmra.mxu0 %v18047_v14  ;;  %v10765_v14 = vld [vmem:[%s17492_s0 + $0xa8] sm:$0xff] }
 0x224   :  { %9104 = vmatmul.msk.bf16.gmra.mxu3 %vm415_vm0, %v18072_v46 }
 0x225   :  { %v1746_v63 = vpop.f32.mrf.mxu2 }
 0x226   :  { %v12771_v29 = vadd.f32 %v1746_v63, %v1637_v15  ;;  %v10767_v15 = vld [vmem:[%s17492_s0 + $0xb8] sm:$0xff] }
 0x227   :  { %v1397_v43 = vpop.f32.mrf.mxu3  ;;  %v1290_v26 = vpop.f32.mrf.mxu1  ;;  %2012 = vmatpush.bf16.msra.mxu1 %v10767_v15 }
 0x228   :  { %v12773_v6 = vadd.f32 %v1397_v43, %v1288_v40  ;;  %v18074_v40 = vld [vmem:[#allocation46_spill] sm:$0xff]  ;;  %v12790_v63 = vpop.f32.mrf.mxu0 }
 0x22d   :  { %v1748_v8 = vpop.f32.mrf.mxu2 }
 0x22e   :  { %v12777_v56 = vadd.f32 %v1748_v8, %v1639_v53 }
 0x22f   :  { %v1399_v21 = vpop.f32.mrf.mxu3  ;;  %v1293_v33 = vpop.f32.mrf.mxu1 }
 0x230   :  { %v12779_v60 = vadd.f32 %v1399_v21, %v1290_v26  ;;  %v10766_v21 = vld [vmem:[%s17492_s0 + $0xb0] sm:$0xff]  ;;  %v12802_v28 = vpop.f32.mrf.mxu0 }
 0x231   :  { %2013 = vmatpush.bf16.msra.mxu1 %v10766_v21 }
 0x232   :  { %1332 = vmatmul.bf16.gmra.mxu1 %v18073_v36  ;;  %9166 = vmatmul.msk.bf16.gmra.mxu2 %vm415_vm0, %v18013_v49 }
 0x233   :  { %1701 = vmatmul.bf16.gmra.mxu0 %v18057_v16 }
 0x234   :  { %9105 = vmatmul.msk.bf16.gmra.mxu3 %vm415_vm0, %v18074_v40 }
 0x235   :  { %v1751_v53 = vpop.f32.mrf.mxu2  ;;  %2014 = vmatpush.bf16.msra.mxu1 %v10765_v14  ;;  %v10763_v14 = vld [vmem:[%s17492_s0 + $0x98] sm:$0xff] }
 0x236   :  { %v12792_v26 = vadd.f32 %v1751_v53, %v1642_v18  ;;  %v10764_v53 = vld [vmem:[%s17492_s0 + $0xa0] sm:$0xff] }
 0x237   :  { %v1402_v43 = vpop.f32.mrf.mxu3  ;;  %v1295_v8 = vpop.f32.mrf.mxu1 }
 0x238   :  { %v12797_v16 = vadd.f32 %v1402_v43, %v1293_v33  ;;  %v18077_v33 = vld [vmem:[#allocation59_spill] sm:$0xff]  ;;  %v18078_v43 = vld [vmem:[#allocation48_spill] sm:$0xff] }
 0x239   :  { %2015 = vmatpush.bf16.msra.mxu1 %v10764_v53 }
 0x23d   :  { %v1753_v15 = vpop.f32.mrf.mxu2  ;;  %2016 = vmatpush.bf16.msra.mxu1 %v10763_v14  ;;  %v10761_v14 = vld [vmem:[%s17492_s0 + $0x88] sm:$0xff] }
 0x23e   :  { %v12804_v49 = vadd.f32 %v1753_v15, %v1644_v61  ;;  %v10771_v61 = vld [vmem:[%s17492_s0 + $0xd8] sm:$0xff] }
 0x23f   :  { %v1404_v23 = vpop.f32.mrf.mxu3  ;;  %v1298_v18 = vpop.f32.mrf.mxu1  ;;  %2125 = vmatpush.bf16.msra.mxu3 %v10771_v61 }
 0x240   :  { %18075 = vst [vmem:[#allocation56_spill] sm:$0xff] %v12804_v49  ;;  %v12809_v47 = vadd.f32 %v1404_v23, %v1295_v8  ;;  %v12823_v23 = vpop.f32.mrf.mxu0  ;;  %v18099_v49 = vld [vmem:[#allocation13_spill] sm:$0xff] }
 0x242   :  { %18076 = vst [vmem:[#allocation26_spill] sm:$0xff] %v12809_v47  ;;  %1337 = vmatmul.bf16.gmra.mxu1 %v18077_v33  ;;  %9167 = vmatmul.msk.bf16.gmra.mxu2 %vm415_vm0, %v18028_v62  ;;  %v10770_v62 = vld [vmem:[%s17492_s0 + $0xd0] sm:$0xff] }
 0x243   :  { %1706 = vmatmul.bf16.gmra.mxu0 %v18066_v32  ;;  %v10762_v32 = vld [vmem:[%s17492_s0 + $0x90] sm:$0xff]  ;;  %2126 = vmatpush.bf16.msra.mxu3 %v10770_v62  ;;  %v10760_v62 = vld [vmem:[%s17492_s0 + $0x80] sm:$0xff] }
 0x244   :  { %9106 = vmatmul.msk.bf16.gmra.mxu3 %vm415_vm0, %v18078_v43  ;;  %2017 = vmatpush.bf16.msra.mxu1 %v10762_v32  ;;  %v10768_v32 = vld [vmem:[%s17492_s0 + $0xc0] sm:$0xff] }
 0x245   :  { %v1756_v8 = vpop.f32.mrf.mxu2 }
 0x246   :  { %v12825_v15 = vadd.f32 %v1756_v8, %v1647_v7  ;;  %v10769_v7 = vld [vmem:[%s17492_s0 + $0xc8] sm:$0xff] }
 0x247   :  { %v1407_v21 = vpop.f32.mrf.mxu3  ;;  %v1300_v53 = vpop.f32.mrf.mxu1  ;;  %2127 = vmatpush.bf16.msra.mxu3 %v10769_v7 }
 0x248   :  { %18079 = vst [vmem:[#allocation57_spill] sm:$0xff] %v12825_v15  ;;  %v12833_v9 = vadd.f32 %v1407_v21, %v1298_v18  ;;  %v12841_v61 = vpop.f32.mrf.mxu0  ;;  %2018 = vmatpush.bf16.msra.mxu1 %v10761_v14  ;;  %v18084_v14 = vld [vmem:[#allocation5_spill] sm:$0xff]  ;;  %v18091_v15 = vld [vmem:[#allocation8_spill] sm:$0xff] }
 0x24a   :  { %18080 = vst [vmem:[#allocation58_spill] sm:$0xff] %v12833_v9 }
 0x24b   :  { %2128 = vmatpush.bf16.msra.mxu3 %v10768_v32  ;;  %v10778_v32 = vld [vmem:[%s17492_s0 + $0xd0] sm:$0xff] }
 0x24c   :  { %2019 = vmatpush.bf16.msra.mxu1 %v10760_v62 }
 0x24d   :  { %v1758_v8 = vpop.f32.mrf.mxu2 }
 0x24e   :  { %v12843_v54 = vadd.f32 %v1758_v8, %v1649_v0  ;;  %v10779_v0 = vld [vmem:[%s17492_s0 + $0xd8] sm:$0xff] }
 0x24f   :  { %v1409_v51 = vpop.f32.mrf.mxu3  ;;  %v1303_v18 = vpop.f32.mrf.mxu1  ;;  %2396 = vmatpush.bf16.msra.mxu0 %v10779_v0  ;;  %v10777_v0 = vld [vmem:[%s17492_s0 + $0xc8] sm:$0xff] }
 0x250   :  { %18081 = vst [vmem:[#allocation29_spill] sm:$0xff] %v12843_v54  ;;  %v12851_v21 = vadd.f32 %v1409_v51, %v1300_v53  ;;  %v12862_v7 = vpop.f32.mrf.mxu0 }
 0x252   :  { %18082 = vst [vmem:[#allocation72_spill] sm:$0xff] %v12851_v21  ;;  %1342 = vmatmul.bf16.gmra.mxu1 %v18083_v11  ;;  %9168 = vmatmul.msk.bf16.gmra.mxu2 %vm415_vm0, %v18043_v3  ;;  %v18087_v3 = vld [vmem:[#allocation67_spill] sm:$0xff] }
 0x253   :  { %1711 = vmatmul.bf16.gmra.mxu0 %v18071_v13 }
 0x254   :  { %9107 = vmatmul.msk.bf16.gmra.mxu3 %vm415_vm0, %v18084_v14  ;;  %2397 = vmatpush.bf16.msra.mxu0 %v10778_v32 }
 0x255   :  { %v1761_v51 = vpop.f32.mrf.mxu2 }
 0x256   :  { %v12865_v8 = vadd.f32 %v1761_v51, %v12775_v17 }
 0x257   :  { %v1412_v53 = vpop.f32.mrf.mxu3  ;;  %v1305_v62 = vpop.f32.mrf.mxu1 }
 0x258   :  { %18085 = vst [vmem:[#allocation60_spill] sm:$0xff] %v12865_v8  ;;  %v12870_v13 = vadd.f32 %v1412_v53, %v1303_v18  ;;  %v12877_v21 = vpop.f32.mrf.mxu0  ;;  %2398 = vmatpush.bf16.msra.mxu0 %v10777_v0  ;;  %v10776_v18 = vld [vmem:[%s17492_s0 + $0xc0] sm:$0xff]  ;;  %v18088_v0 = vld [vmem:[#allocation9_spill] sm:$0xff] }
 0x25c   :  { %2399 = vmatpush.bf16.msra.mxu0 %v10776_v18 }
 0x25d   :  { %v1763_v17 = vpop.f32.mrf.mxu2 }
 0x25e   :  { %v12880_v8 = vadd.f32 %v1763_v17, %v12790_v63  ;;  %v10775_v63 = vld [vmem:[%s17492_s0 + $0xb8] sm:$0xff] }
 0x25f   :  { %v1414_v51 = vpop.f32.mrf.mxu3  ;;  %v1308_v54 = vpop.f32.mrf.mxu1 }
 0x260   :  { %18086 = vst [vmem:[#allocation43_spill] sm:$0xff] %v12880_v8  ;;  %v12885_v53 = vadd.f32 %v1414_v51, %v1305_v62  ;;  %v1669_v62 = vpop.f32.mrf.mxu0  ;;  %2400 = vmatpush.bf16.msra.mxu0 %v10775_v63  ;;  %v10773_v63 = vld [vmem:[%s17492_s0 + $0xa8] sm:$0xff] }
 0x262   :  { %1347 = vmatmul.bf16.gmra.mxu1 %v18087_v3  ;;  %9169 = vmatmul.msk.bf16.gmra.mxu2 %vm415_vm0, %v18050_v45  ;;  %v10774_v3 = vld [vmem:[%s17492_s0 + $0xb0] sm:$0xff] }
 0x263   :  { %1716 = vmatmul.bf16.gmra.mxu0 %v18073_v36 }
 0x264   :  { %9108 = vmatmul.msk.bf16.gmra.mxu3 %vm415_vm0, %v18088_v0  ;;  %2401 = vmatpush.bf16.msra.mxu0 %v10774_v3 }
 0x265   :  { %v1766_v17 = vpop.f32.mrf.mxu2 }
 0x266   :  { %v12899_v18 = vadd.f32 %v1766_v17, %v12802_v28  ;;  %v10783_v28 = vld [vmem:[%s17492_s0 + $0xf8] sm:$0xff] }
 0x267   :  { %v1417_v51 = vpop.f32.mrf.mxu3  ;;  %v1310_v32 = vpop.f32.mrf.mxu1  ;;  %2509 = vmatpush.bf16.msrb.mxu2 %v10783_v28 }
 0x268   :  { %18089 = vst [vmem:[#allocation73_spill] sm:$0xff] %v12899_v18  ;;  %v12904_v36 = vadd.f32 %v1417_v51, %v1308_v54  ;;  %v1672_v17 = vpop.f32.mrf.mxu0  ;;  %2402 = vmatpush.bf16.msra.mxu0 %v10773_v63  ;;  %v10772_v51 = vld [vmem:[%s17492_s0 + $0xa0] sm:$0xff] }
 0x26c   :  { %2403 = vmatpush.bf16.msra.mxu0 %v10772_v51 }
 0x26d   :  { %v1768_v18 = vpop.f32.mrf.mxu2 }
 0x26e   :  { %v12915_v54 = vadd.f32 %v1768_v18, %v12823_v23  ;;  %v18092_v23 = vld [vmem:[#allocation4_spill] sm:$0xff] }
 0x26f   :  { %v1419_v8 = vpop.f32.mrf.mxu3  ;;  %v1313_v3 = vpop.f32.mrf.mxu1 }
 0x270   :  { %18090 = vst [vmem:[#allocation61_spill] sm:$0xff] %v12915_v54  ;;  %v12920_v45 = vadd.f32 %v1419_v8, %v1310_v32  ;;  %v1674_v18 = vpop.f32.mrf.mxu0 }
 0x272   :  { %2020 = vmatmul.bf16.vlgmr.msra.gmra.mxu1 %v18091_v15  ;;  %9170 = vmatmul.msk.bf16.gmra.mxu2 %vm415_vm0, %v18060_v44 }
 0x273   :  { %1721 = vmatmul.bf16.gmra.mxu0 %v18077_v33 }
 0x274   :  { %9225 = vmatmul.msk.bf16.vlgmr.msra.gmra.mxu3 %vm415_vm0, %v18092_v23 }
 0x275   :  { %v1771_v63 = vpop.f32.mrf.mxu2 }
 0x276   :  { %v12931_v8 = vadd.f32 %v1771_v63, %v12841_v61  ;;  %v18095_v61 = vld [vmem:[#allocation11_spill] sm:$0xff] }
 0x277   :  { %v1422_v28 = vpop.f32.mrf.mxu3  ;;  %v1315_v32 = vpop.f32.mrf.mxu1 }
 0x278   :  { %18093 = vst [vmem:[#allocation30_spill] sm:$0xff] %v12931_v8  ;;  %v12933_v51 = vadd.f32 %v1422_v28, %v1313_v3  ;;  %v1677_v54 = vpop.f32.mrf.mxu0  ;;  %v18096_v3 = vld [vmem:[#allocation7_spill] sm:$0xff] }
 0x27d   :  { %v1773_v33 = vpop.f32.mrf.mxu2 }
 0x27e   :  { %v12938_v44 = vadd.f32 %v1773_v33, %v12862_v7 }
 0x27f   :  { %v1424_v41 = vpop.f32.mrf.mxu3  ;;  %v1318_v4 = vpop.f32.mrf.mxu1 }
 0x280   :  { %18094 = vst [vmem:[#allocation62_spill] sm:$0xff] %v12938_v44  ;;  %v12940_v52 = vadd.f32 %v1424_v41, %v1315_v32  ;;  %v1679_v63 = vpop.f32.mrf.mxu0 }
 0x282   :  { %2025 = vmatmul.bf16.gmra.mxu1 %v18095_v61  ;;  %9171 = vmatmul.msk.bf16.gmra.mxu2 %vm415_vm0, %v18068_v59 }
 0x283   :  { %1726 = vmatmul.bf16.gmra.mxu0 %v18083_v11 }
 0x284   :  { %9226 = vmatmul.msk.bf16.gmra.mxu3 %vm415_vm0, %v18096_v3 }
 0x285   :  { %v1776_v28 = vpop.f32.mrf.mxu2 }
 0x286   :  { %v12951_v7 = vadd.f32 %v1776_v28, %v12877_v21 }
 0x287   :  { %v1427_v33 = vpop.f32.mrf.mxu3  ;;  %v1320_v41 = vpop.f32.mrf.mxu1 }
 0x288   :  { %18097 = vst [vmem:[#allocation63_spill] sm:$0xff] %v12951_v7  ;;  %v12953_v32 = vadd.f32 %v1427_v33, %v1318_v4  ;;  %v1682_v9 = vpop.f32.mrf.mxu0  ;;  %v18100_v4 = vld [vmem:[#allocation6_spill] sm:$0xff] }
 0x28d   :  { %v1778_v11 = vpop.f32.mrf.mxu2 }
 0x28e   :  { %v12957_v8 = vadd.f32 %v1778_v11, %v1669_v62 }
 0x28f   :  { %v1429_v44 = vpop.f32.mrf.mxu3  ;;  %v1323_v59 = vpop.f32.mrf.mxu1 }
 0x290   :  { %18098 = vst [vmem:[#allocation44_spill] sm:$0xff] %v12957_v8  ;;  %v12959_v47 = vadd.f32 %v1429_v44, %v1320_v41  ;;  %v1684_v21 = vpop.f32.mrf.mxu0 }
 0x292   :  { %2030 = vmatmul.bf16.gmra.mxu1 %v18099_v49  ;;  %9172 = vmatmul.msk.bf16.gmra.mxu2 %vm415_vm0, %v18072_v46 }
 0x293   :  { %2404 = vmatmul.bf16.vlgmr.msra.gmra.mxu0 %v18091_v15 }
 0x294   :  { %9227 = vmatmul.msk.bf16.gmra.mxu3 %vm415_vm0, %v18100_v4  ;;  %v18105_v4 = vmax.f32 %v12594_v10, %v12870_v13 }
 0x295   :  { %v1781_v28 = vpop.f32.mrf.mxu2 }
 0x296   :  { %v12969_v62 = vadd.f32 %v1781_v28, %v1672_v17  ;;  %v18104_v17 = vld [vmem:[#allocation15_spill] sm:$0xff] }
 0x297   :  { %v1432_v11 = vpop.f32.mrf.mxu3  ;;  %v1325_v44 = vpop.f32.mrf.mxu1 }
 0x298   :  { %18101 = vst [vmem:[#allocation75_spill] sm:$0xff] %v12969_v62  ;;  %v12971_v33 = vadd.f32 %v1432_v11, %v1323_v59  ;;  %v12975_v3 = vpop.f32.mrf.mxu0 }
 0x29d   :  { %v1783_v23 = vpop.f32.mrf.mxu2 }
 0x29e   :  { %v12977_v8 = vadd.f32 %v1783_v23, %v1674_v18 }
 0x29f   :  { %v1434_v46 = vpop.f32.mrf.mxu3  ;;  %v1328_v15 = vpop.f32.mrf.mxu1 }
 0x2a0   :  { %18102 = vst [vmem:[#allocation12_spill] sm:$0xff] %v12977_v8  ;;  %v12979_v7 = vadd.f32 %v1434_v46, %v1325_v44  ;;  %v12989_v59 = vpop.f32.mrf.mxu0 }
 0x2a2   :  { %18103 = vst [vmem:[#allocation65_spill] sm:$0xff] %v12979_v7  ;;  %2035 = vmatmul.bf16.gmra.mxu1 %v18104_v17  ;;  %9173 = vmatmul.msk.bf16.gmra.mxu2 %vm415_vm0, %v18074_v40 }
 0x2a3   :  { %2409 = vmatmul.bf16.gmra.mxu0 %v18095_v61 }
 0x2a4   :  { %9228 = vmatmul.msk.bf16.gmra.mxu3 %vm415_vm0, %v18027_v27 }
 0x2a5   :  { %v1786_v23 = vpop.f32.mrf.mxu2 }
 0x2a6   :  { %v12991_v28 = vadd.f32 %v1786_v23, %v1677_v54  ;;  %v18106_v54 = vld [vmem:[#allocation17_spill] sm:$0xff] }
 0x2a7   :  { %v1437_v18 = vpop.f32.mrf.mxu3  ;;  %v1330_v46 = vpop.f32.mrf.mxu1 }
 0x2a8   :  { %v1438_v11 = vadd.f32 %v1437_v18, %v1328_v15  ;;  %v12997_v40 = vpop.f32.mrf.mxu0  ;;  %v10781_v18 = vld [vmem:[%s17492_s0 + $0xe8] sm:$0xff] }
 0x2aa   :  { %v1472_v44 = vmax.f32 %v12736_v34, %v1438_v11  ;;  %v18107_v34 = vmax.f32 %v12609_v20, %v12885_v53 }
 0x2ac   :  { %v1482_v41 = vmax.f32 %v18105_v4, %v1472_v44  ;;  %v10782_v4 = vld [vmem:[%s17492_s0 + $0xf0] sm:$0xff] }
 0x2ad   :  { %v1788_v61 = vpop.f32.mrf.mxu2  ;;  %2510 = vmatpush.bf16.msrb.mxu2 %v10782_v4 }
 0x2ae   :  { %v12999_v62 = vadd.f32 %v1788_v61, %v1679_v63  ;;  %v1492_v10 = vadd.f32 %v1482_v41, %v12501_v50 }
 0x2af   :  { %v1439_v8 = vpop.f32.mrf.mxu3  ;;  %v1333_v27 = vpop.f32.mrf.mxu1 }
 0x2b0   :  { %v1440_v7 = vadd.f32 %v1439_v8, %v1330_v46  ;;  %v13012_v15 = vpop.f32.mrf.mxu0  ;;  %v1502_v41 = vmax.f32 %v1492_v10, 0.0 }
 0x2b1   :  { %2511 = vmatpush.bf16.msrb.mxu2 %v10781_v18 }
 0x2b2   :  { %v1473_v25 = vmax.f32 %v12743_v48, %v1440_v7  ;;  %2040 = vmatmul.bf16.gmra.mxu1 %v18106_v54  ;;  %9174 = vmatmul.msk.bf16.gmra.mxu2 %vm415_vm0, %v18078_v43 }
 0x2b3   :  { %2414 = vmatmul.bf16.gmra.mxu0 %v18099_v49 }
 0x2b4   :  { %v1483_v13 = vmax.f32 %v18107_v34, %v1473_v25  ;;  %9229 = vmatmul.msk.bf16.gmra.mxu3 %vm415_vm0, %v18042_v55 }
 0x2b5   :  { %v1791_v8 = vpop.f32.mrf.mxu2 }
 0x2b6   :  { %v1493_v48 = vadd.f32 %v1483_v13, %v12526_v5  ;;  %v13015_v63 = vadd.f32 %v1791_v8, %v1682_v9  ;;  %v18108_v9 = vmax.f32 %v12627_v24, %v12904_v36  ;;  %v18109_v8 = vld [vmem:[#allocation19_spill] sm:$0xff]  ;;  %v18110_v36 = vmax.f32 %v12643_v2, %v12920_v45 }
 0x2b7   :  { %v1442_v61 = vpop.f32.mrf.mxu3  ;;  %v1335_v7 = vpop.f32.mrf.mxu1 }
 0x2b8   :  { %v1503_v23 = vmax.f32 %v1493_v48, 0.0  ;;  %v1443_v20 = vadd.f32 %v1442_v61, %v1333_v27  ;;  %v13027_v11 = vpop.f32.mrf.mxu0 }
 0x2ba   :  { %v11129_v25 = vpack.c.bf16 %v1503_v23, %v1502_v41  ;;  %v1474_v53 = vmax.f32 %v12759_v58, %v1443_v20  ;;  %v10780_v58 = vld [vmem:[%s17492_s0 + $0xe0] sm:$0xff] }
 0x2bb   :  { %2512 = vmatpush.bf16.msrb.mxu2 %v10780_v58 }
 0x2bc   :  { %11465 = vst [vmem:[#allocation2 + $0x118] sm:$0xff] %v11129_v25   ;;  %v1484_v46 = vmax.f32 %v18108_v9, %v1474_v53  ;;  %v18111_v9 = vmax.f32 %v12663_v19, %v12933_v51  ;;  %v18113_v51 = vmax.f32 %v12677_v38, %v12940_v52 }
 0x2bd   :  { %v1793_v44 = vpop.f32.mrf.mxu2 }
 0x2be   :  { %v13029_v34 = vadd.f32 %v1793_v44, %v1684_v21  ;;  %v1494_v24 = vadd.f32 %v1484_v46, %v12564_v35 }
 0x2bf   :  { %v1444_v10 = vpop.f32.mrf.mxu3  ;;  %v1338_v27 = vpop.f32.mrf.mxu1 }
 0x2c0   :  { %v1445_v13 = vadd.f32 %v1444_v10, %v1335_v7  ;;  %v13045_v61 = vpop.f32.mrf.mxu0  ;;  %v1504_v20 = vmax.f32 %v1494_v24, 0.0 }
 0x2c2   :  { %v1475_v48 = vmax.f32 %v12763_v22, %v1445_v13  ;;  %2045 = vmatmul.bf16.gmra.mxu1 %v18109_v8  ;;  %9175 = vmatmul.msk.bf16.gmra.mxu2 %vm415_vm0, %v18084_v14 }
 0x2c3   :  { %2419 = vmatmul.bf16.gmra.mxu0 %v18104_v17 }
 0x2c4   :  { %v1485_v21 = vmax.f32 %v18110_v36, %v1475_v48  ;;  %9230 = vmatmul.msk.bf16.gmra.mxu3 %vm415_vm0, %v18049_v30 }
 0x2c5   :  { %v1796_v7 = vpop.f32.mrf.mxu2 }
 0x2c6   :  { %v1495_v22 = vadd.f32 %v1485_v21, %v12567_v12  ;;  %v13049_v41 = vadd.f32 %v1796_v7, %v12975_v3 }
 0x2c7   :  { %v1447_v4 = vpop.f32.mrf.mxu3  ;;  %v1340_v23 = vpop.f32.mrf.mxu1 }
 0x2c8   :  { %v1505_v25 = vmax.f32 %v1495_v22, 0.0  ;;  %v1448_v53 = vadd.f32 %v1447_v4, %v1338_v27  ;;  %v13057_v44 = vpop.f32.mrf.mxu0 }
 0x2ca   :  { %v11134_v45 = vpack.c.bf16 %v1505_v25, %v1504_v20  ;;  %v1476_v18 = vmax.f32 %v12773_v6, %v1448_v53  ;;  %v18112_v6 = vld [vmem:[#allocation21_spill] sm:$0xff] }
 0x2cc   :  { %11466 = vst [vmem:[#allocation2 + $0x98] sm:$0xff] %v11134_v45   ;;  %v1486_v46 = vmax.f32 %v18111_v9, %v1476_v18  ;;  %v18114_v45 = vmax.f32 %v12692_v39, %v12953_v32  ;;  %v18118_v39 = vld [vmem:[#allocation4_spill] sm:$0xff]  ;;  %v18119_v32 = vld [vmem:[#allocation77_spill] sm:$0xff] }
 0x2cd   :  { %v1798_v10 = vpop.f32.mrf.mxu2 }
 0x2ce   :  { %v13060_v58 = vadd.f32 %v1798_v10, %v12989_v59  ;;  %v1496_v19 = vadd.f32 %v1486_v46, %v12519_v37 }
 0x2cf   :  { %v1449_v3 = vpop.f32.mrf.mxu3  ;;  %v1343_v13 = vpop.f32.mrf.mxu1 }
 0x2d0   :  { %v1450_v27 = vadd.f32 %v1449_v3, %v1340_v23  ;;  %v13075_v36 = vpop.f32.mrf.mxu0  ;;  %v1506_v23 = vmax.f32 %v1496_v19, 0.0  ;;  %v18116_v19 = vld [vmem:[#allocation26_spill] sm:$0xff] }
 0x2d2   :  { %v1477_v24 = vmax.f32 %v12779_v60, %v1450_v27  ;;  %2050 = vmatmul.bf16.gmra.mxu1 %v18112_v6  ;;  %9176 = vmatmul.msk.bf16.gmra.mxu2 %vm415_vm0, %v18088_v0  ;;  %v18115_v27 = vld [vmem:[#allocation56_spill] sm:$0xff] }
 0x2d3   :  { %2424 = vmatmul.bf16.gmra.mxu0 %v18106_v54 }
 0x2d4   :  { %v1487_v59 = vmax.f32 %v18113_v51, %v1477_v24  ;;  %9231 = vmatmul.msk.bf16.gmra.mxu3 %vm415_vm0, %v18059_v1 }
 0x2d5   :  { %v1801_v21 = vpop.f32.mrf.mxu2 }
 0x2d6   :  { %v1497_v60 = vadd.f32 %v1487_v59, %v12541_v42  ;;  %v13079_v7 = vadd.f32 %v1801_v21, %v12997_v40  ;;  %v18121_v21 = vld [vmem:[#allocation18_spill] sm:$0xff] }
 0x2d7   :  { %v1452_v22 = vpop.f32.mrf.mxu3  ;;  %v1345_v4 = vpop.f32.mrf.mxu1 }
 0x2d8   :  { %v1507_v20 = vmax.f32 %v1497_v60, 0.0  ;;  %v1453_v25 = vadd.f32 %v1452_v22, %v1343_v13  ;;  %v13087_v9 = vpop.f32.mrf.mxu0 }
 0x2da   :  { %v11139_v38 = vpack.c.bf16 %v1507_v20, %v1506_v23  ;;  %v1478_v53 = vmax.f32 %v12797_v16, %v1453_v25  ;;  %v18117_v16 = vld [vmem:[#allocation23_spill] sm:$0xff] }
 0x2dc   :  { %11467 = vst [vmem:[#allocation2 + $0x120] sm:$0xff] %v11139_v38   ;;  %v1488_v18 = vmax.f32 %v18114_v45, %v1478_v53 }
 0x2dd   :  { %v1803_v46 = vpop.f32.mrf.mxu2 }
 0x2de   :  { %v13090_v10 = vadd.f32 %v1803_v46, %v13012_v15  ;;  %v1498_v59 = vadd.f32 %v1488_v18, %v18119_v32  ;;  %v18120_v15 = vmax.f32 %v12699_v57, %v12959_v47  ;;  %v18123_v18 = vld [vmem:[#allocation57_spill] sm:$0xff]  ;;  %v18124_v57 = vld [vmem:[#allocation58_spill] sm:$0xff] }
 0x2df   :  { %v1454_v40 = vpop.f32.mrf.mxu3  ;;  %v1348_v3 = vpop.f32.mrf.mxu1 }
 0x2e0   :  { %v1455_v13 = vadd.f32 %v1454_v40, %v1345_v4  ;;  %v1709_v22 = vpop.f32.mrf.mxu0  ;;  %v18122_v4 = vld [vmem:[#allocation52_spill] sm:$0xff]  ;;  %v1508_v45 = vmax.f32 %v1498_v59, 0.0 }
 0x2e2   :  { %v1479_v51 = vmax.f32 %v18116_v19, %v1455_v13  ;;  %2055 = vmatmul.bf16.gmra.mxu1 %v18117_v16  ;;  %9293 = vmatmul.msk.bf16.vlgmr.msrb.gmra.mxu2 %vm415_vm0, %v18118_v39  ;;  %v18146_v39 = vld [vmem:[#allocation61_spill] sm:$0xff] }
 0x2e3   :  { %2429 = vmatmul.bf16.gmra.mxu0 %v18109_v8 }
 0x2e4   :  { %v1489_v60 = vmax.f32 %v18120_v15, %v1479_v51  ;;  %9232 = vmatmul.msk.bf16.gmra.mxu3 %vm415_vm0, %v18121_v21  ;;  %v18125_v51 = vmax.f32 %v12714_v31, %v12971_v33  ;;  %v18130_v31 = vld [vmem:[#allocation50_spill] sm:$0xff] }
 0x2e5   :  { %v1806_v20 = vpop.f32.mrf.mxu2 }
 0x2e6   :  { %v1499_v23 = vadd.f32 %v1489_v60, %v18122_v4  ;;  %v13107_v38 = vadd.f32 %v1806_v20, %v13027_v11 }
 0x2e7   :  { %v1457_v25 = vpop.f32.mrf.mxu3  ;;  %v1350_v53 = vpop.f32.mrf.mxu1 }
 0x2e8   :  { %v1509_v46 = vmax.f32 %v1499_v23, 0.0  ;;  %v1458_v40 = vadd.f32 %v1457_v25, %v1348_v3  ;;  %v1712_v60 = vpop.f32.mrf.mxu0  ;;  %v18126_v3 = vld [vmem:[#allocation29_spill] sm:$0xff]  ;;  %v18127_v25 = vld [vmem:[#allocation72_spill] sm:$0xff] }
 0x2ea   :  { %v11144_v47 = vpack.c.bf16 %v1509_v46, %v1508_v45  ;;  %v1480_v19 = vmax.f32 %v18124_v57, %v1458_v40  ;;  %v18128_v46 = vld [vmem:[#allocation27_spill] sm:$0xff]  ;;  %v18132_v57 = vld [vmem:[#allocation65_spill] sm:$0xff] }
 0x2eb   :  { %v18129_v40 = vld [vmem:[#allocation7_spill] sm:$0xff] }
 0x2ec   :  { %11468 = vst [vmem:[#allocation2 + $0x150] sm:$0xff] %v11144_v47   ;;  %v1490_v15 = vmax.f32 %v18125_v51, %v1480_v19  ;;  %v18131_v47 = vld [vmem:[#allocation53_spill] sm:$0xff]  ;;  %v18134_v19 = vld [vmem:[#allocation20_spill] sm:$0xff] }
 0x2ed   :  { %v1808_v24 = vpop.f32.mrf.mxu2 }
 0x2ee   :  { %v13116_v11 = vadd.f32 %v1808_v24, %v13045_v61  ;;  %v1500_v33 = vadd.f32 %v1490_v15, %v18130_v31  ;;  %v18133_v61 = vmax.f32 %v18131_v47, %v18132_v57  ;;  %v18137_v15 = vld [vmem:[#allocation60_spill] sm:$0xff] }
 0x2ef   :  { %v1459_v52 = vpop.f32.mrf.mxu3  ;;  %v2021_v59 = vpop.f32.mrf.mxu1 }
 0x2f0   :  { %v1460_v23 = vadd.f32 %v1459_v52, %v1350_v53  ;;  %v1714_v52 = vpop.f32.mrf.mxu0  ;;  %v18135_v53 = vld [vmem:[#allocation51_spill] sm:$0xff]  ;;  %v1510_v48 = vmax.f32 %v1500_v33, 0.0 }
 0x2f2   :  { %v1481_v45 = vmax.f32 %v18127_v25, %v1460_v23  ;;  %2060 = vmatmul.bf16.gmra.mxu1 %v18128_v46  ;;  %9294 = vmatmul.msk.bf16.gmra.mxu2 %vm415_vm0, %v18129_v40 }
 0x2f3   :  { %2434 = vmatmul.bf16.gmra.mxu0 %v18112_v6 }
 0x2f4   :  { %v1491_v24 = vmax.f32 %v18133_v61, %v1481_v45  ;;  %9233 = vmatmul.msk.bf16.gmra.mxu3 %vm415_vm0, %v18134_v19 }
 0x2f5   :  { %v1811_v23 = vpop.f32.mrf.mxu2 }
 0x2f6   :  { %v1501_v51 = vadd.f32 %v1491_v24, %v18135_v53  ;;  %v13133_v25 = vadd.f32 %v1811_v23, %v13057_v44  ;;  %v18139_v23 = vld [vmem:[#allocation43_spill] sm:$0xff] }
 0x2f7   :  { %v2130_v20 = vpop.f32.mrf.mxu3  ;;  %v2023_v13 = vpop.f32.mrf.mxu1 }
 0x2f8   :  { %v1511_v2 = vmax.f32 %v1501_v51, 0.0  ;;  %v13135_v6 = vadd.f32 %v2130_v20, %v2021_v59  ;;  %v1717_v57 = vpop.f32.mrf.mxu0  ;;  %v18140_v51 = vld [vmem:[#allocation31_spill] sm:$0xff]  ;;  %v18141_v59 = vld [vmem:[#allocation6_spill] sm:$0xff] }
 0x2fa   :  { %18136 = vst [vmem:[#allocation66_spill] sm:$0xff] %v13135_v6  ;;  %v11149_v45 = vpack.c.bf16 %v1511_v2, %v1510_v48  ;;  %v18142_v2 = vld [vmem:[#allocation22_spill] sm:$0xff] }
 0x2fc   :  { %11469 = vst [vmem:[#allocation2 + $0x108] sm:$0xff] %v11149_v45  }
 0x2fd   :  { %v1813_v61 = vpop.f32.mrf.mxu2 }
 0x2fe   :  { %v13140_v8 = vadd.f32 %v1813_v61, %v13075_v36 }
 0x2ff   :  { %v2132_v24 = vpop.f32.mrf.mxu3  ;;  %v2026_v54 = vpop.f32.mrf.mxu1 }
 0x300   :  { %v13142_v44 = vadd.f32 %v2132_v24, %v2023_v13  ;;  %v1719_v48 = vpop.f32.mrf.mxu0  ;;  %v18144_v24 = vld [vmem:[#allocation73_spill] sm:$0xff] }
 0x302   :  { %18138 = vst [vmem:[#allocation14_spill] sm:$0xff] %v13142_v44  ;;  %2065 = vmatmul.bf16.gmra.mxu1 %v18140_v51  ;;  %9295 = vmatmul.msk.bf16.gmra.mxu2 %vm415_vm0, %v18141_v59 }
 0x303   :  { %2439 = vmatmul.bf16.gmra.mxu0 %v18117_v16 }
 0x304   :  { %9234 = vmatmul.msk.bf16.gmra.mxu3 %vm415_vm0, %v18142_v2  ;;  %v18152_v2 = vld [vmem:[#allocation62_spill] sm:$0xff] }
 0x305   :  { %v1816_v36 = vpop.f32.mrf.mxu2 }
 0x306   :  { %v13153_v20 = vadd.f32 %v1816_v36, %v13087_v9  ;;  %v18147_v36 = vld [vmem:[#allocation35_spill] sm:$0xff]  ;;  %v18151_v9 = vmax.f32 %v12771_v29, %v13049_v41  ;;  %v18155_v29 = vld [vmem:[#allocation28_spill] sm:$0xff] }
 0x307   :  { %v2135_v13 = vpop.f32.mrf.mxu3  ;;  %v2028_v45 = vpop.f32.mrf.mxu1 }
 0x308   :  { %v13155_v61 = vadd.f32 %v2135_v13, %v2026_v54  ;;  %v13159_v47 = vpop.f32.mrf.mxu0  ;;  %v18148_v54 = vld [vmem:[#allocation10_spill] sm:$0xff]  ;;  %v18149_v13 = vld [vmem:[#allocation24_spill] sm:$0xff] }
 0x30a   :  { %18143 = vst [vmem:[#allocation33_spill] sm:$0xff] %v13155_v61 }
 0x30d   :  { %v1818_v16 = vpop.f32.mrf.mxu2 }
 0x30e   :  { %v13161_v17 = vadd.f32 %v1818_v16, %v1709_v22 }
 0x30f   :  { %v2137_v59 = vpop.f32.mrf.mxu3  ;;  %v2031_v49 = vpop.f32.mrf.mxu1 }
 0x310   :  { %v13163_v40 = vadd.f32 %v2137_v59, %v2028_v45  ;;  %v1724_v33 = vpop.f32.mrf.mxu0  ;;  %v18150_v45 = vld [vmem:[#allocation30_spill] sm:$0xff] }
 0x312   :  { %18145 = vst [vmem:[#allocation68_spill] sm:$0xff] %v13163_v40  ;;  %2070 = vmatmul.bf16.gmra.mxu1 %v18147_v36  ;;  %9296 = vmatmul.msk.bf16.gmra.mxu2 %vm415_vm0, %v18148_v54 }
 0x313   :  { %2444 = vmatmul.bf16.gmra.mxu0 %v18128_v46 }
 0x314   :  { %9235 = vmatmul.msk.bf16.gmra.mxu3 %vm415_vm0, %v18149_v13 }
 0x315   :  { %v1821_v16 = vpop.f32.mrf.mxu2 }
 0x316   :  { %v1822_v22 = vadd.f32 %v1821_v16, %v1712_v60  ;;  %v18153_v16 = vld [vmem:[#allocation39_spill] sm:$0xff] }
 0x317   :  { %v2140_v61 = vpop.f32.mrf.mxu3  ;;  %v2033_v0 = vpop.f32.mrf.mxu1 }
 0x318   :  { %v13173_v59 = vadd.f32 %v2140_v61, %v2031_v49  ;;  %v1856_v40 = vmax.f32 %v18150_v45, %v1822_v22  ;;  %v13179_v46 = vpop.f32.mrf.mxu0  ;;  %v18154_v61 = vmax.f32 %v12777_v56, %v13060_v58  ;;  %v18157_v45 = vmax.f32 %v12792_v26, %v13079_v7  ;;  %v18161_v26 = vld [vmem:[#allocation32_spill] sm:$0xff] }
 0x31a   :  { %v1866_v44 = vmax.f32 %v18151_v9, %v1856_v40  ;;  %v18156_v9 = vld [vmem:[#allocation63_spill] sm:$0xff] }
 0x31c   :  { %v1876_v49 = vadd.f32 %v1866_v44, %v12501_v50 }
 0x31d   :  { %v1823_v6 = vpop.f32.mrf.mxu2 }
 0x31e   :  { %v1824_v54 = vadd.f32 %v1823_v6, %v1714_v52  ;;  %v1886_v6 = vmax.f32 %v1876_v49, 0.0 }
 0x31f   :  { %v2142_v14 = vpop.f32.mrf.mxu3  ;;  %v2036_v43 = vpop.f32.mrf.mxu1 }
 0x320   :  { %v13181_v13 = vadd.f32 %v2142_v14, %v2033_v0  ;;  %v1857_v60 = vmax.f32 %v18152_v2, %v1824_v54  ;;  %v13194_v14 = vpop.f32.mrf.mxu0 }
 0x322   :  { %2075 = vmatmul.bf16.gmra.mxu1 %v18153_v16  ;;  %v1867_v22 = vmax.f32 %v18154_v61, %v1857_v60  ;;  %9297 = vmatmul.msk.bf16.gmra.mxu2 %vm415_vm0, %v18042_v55 }
 0x323   :  { %2449 = vmatmul.bf16.gmra.mxu0 %v18140_v51 }
 0x324   :  { %9236 = vmatmul.msk.bf16.gmra.mxu3 %vm415_vm0, %v18155_v29  ;;  %v1877_v0 = vadd.f32 %v1867_v22, %v12526_v5 }
 0x325   :  { %v1826_v41 = vpop.f32.mrf.mxu2 }
 0x326   :  { %v1887_v40 = vmax.f32 %v1877_v0, 0.0  ;;  %v1827_v52 = vadd.f32 %v1826_v41, %v1717_v57  ;;  %v18158_v57 = vld [vmem:[#allocation44_spill] sm:$0xff] }
 0x327   :  { %v2145_v44 = vpop.f32.mrf.mxu3  ;;  %v2038_v2 = vpop.f32.mrf.mxu1 }
 0x328   :  { %v13197_v56 = vadd.f32 %v2145_v44, %v2036_v43  ;;  %v11154_v58 = vpack.c.bf16 %v1887_v40, %v1886_v6  ;;  %v1858_v54 = vmax.f32 %v18156_v9, %v1827_v52  ;;  %v13203_v61 = vpop.f32.mrf.mxu0  ;;  %v18159_v43 = vld [vmem:[#allocation41_spill] sm:$0xff]  ;;  %v18160_v40 = vmax.f32 %v18115_v27, %v13090_v10 }
 0x32a   :  { %11470 = vst [vmem:[#allocation2 + $0x60] sm:$0xff] %v11154_v58   ;;  %v1868_v60 = vmax.f32 %v18157_v45, %v1858_v54  ;;  %v18162_v54 = vld [vmem:[#allocation75_spill] sm:$0xff] }
 0x32c   :  { %v1878_v6 = vadd.f32 %v1868_v60, %v12564_v35  ;;  %v18163_v60 = vmax.f32 %v18123_v18, %v13107_v38  ;;  %v18168_v38 = vld [vmem:[#allocation36_spill] sm:$0xff] }
 0x32d   :  { %v1828_v51 = vpop.f32.mrf.mxu2 }
 0x32e   :  { %v1829_v22 = vadd.f32 %v1828_v51, %v1719_v48  ;;  %v1888_v48 = vmax.f32 %v1878_v6, 0.0 }
 0x32f   :  { %v2147_v5 = vpop.f32.mrf.mxu3  ;;  %v2041_v49 = vpop.f32.mrf.mxu1 }
 0x330   :  { %v13205_v0 = vadd.f32 %v2147_v5, %v2038_v2  ;;  %v1859_v41 = vmax.f32 %v18158_v57, %v1829_v22  ;;  %v13218_v5 = vpop.f32.mrf.mxu0 }
 0x332   :  { %2080 = vmatmul.bf16.gmra.mxu1 %v18159_v43  ;;  %v1869_v52 = vmax.f32 %v18160_v40, %v1859_v41  ;;  %9298 = vmatmul.msk.bf16.gmra.mxu2 %vm415_vm0, %v18049_v30 }
 0x333   :  { %2454 = vmatmul.bf16.gmra.mxu0 %v18147_v36 }
 0x334   :  { %9237 = vmatmul.msk.bf16.gmra.mxu3 %vm415_vm0, %v18161_v26  ;;  %v1879_v7 = vadd.f32 %v1869_v52, %v12567_v12 }
 0x335   :  { %v1831_v51 = vpop.f32.mrf.mxu2 }
 0x336   :  { %v1889_v44 = vmax.f32 %v1879_v7, 0.0  ;;  %v1832_v2 = vadd.f32 %v1831_v51, %v13159_v47  ;;  %v18165_v47 = vld [vmem:[#allocation12_spill] sm:$0xff] }
 0x337   :  { %v2150_v58 = vpop.f32.mrf.mxu3  ;;  %v2043_v10 = vpop.f32.mrf.mxu1 }
 0x338   :  { %v13222_v27 = vadd.f32 %v2150_v58, %v2041_v49  ;;  %v11159_v9 = vpack.c.bf16 %v1889_v44, %v1888_v48  ;;  %v1860_v45 = vmax.f32 %v18162_v54, %v1832_v2  ;;  %v13228_v57 = vpop.f32.mrf.mxu0  ;;  %v18166_v49 = vld [vmem:[#allocation45_spill] sm:$0xff]  ;;  %v18167_v44 = vmax.f32 %v18126_v3, %v13116_v11 }
 0x33a   :  { %11471 = vst [vmem:[#allocation2 + $0xe0] sm:$0xff] %v11159_v9   ;;  %v1870_v22 = vmax.f32 %v18163_v60, %v1860_v45 }
 0x33c   :  { %v1880_v48 = vadd.f32 %v1870_v22, %v12519_v37 }
 0x33d   :  { %v1833_v41 = vpop.f32.mrf.mxu2 }
 0x33e   :  { %v1834_v40 = vadd.f32 %v1833_v41, %v1724_v33  ;;  %v18169_v41 = vmax.f32 %v18137_v15, %v13133_v25  ;;  %v18172_v15 = vld [vmem:[#allocation40_spill] sm:$0xff] }
 0x33f   :  { %v2152_v6 = vpop.f32.mrf.mxu3  ;;  %v2046_v52 = vpop.f32.mrf.mxu1 }
 0x340   :  { %v13230_v7 = vadd.f32 %v2152_v6, %v2043_v10  ;;  %v1861_v51 = vmax.f32 %v18165_v47, %v1834_v40  ;;  %v13243_v18 = vpop.f32.mrf.mxu0  ;;  %v1890_v10 = vmax.f32 %v1880_v48, 0.0 }
 0x342   :  { %18164 = vst [vmem:[#allocation34_spill] sm:$0xff] %v13230_v7  ;;  %2085 = vmatmul.bf16.gmra.mxu1 %v18166_v49  ;;  %v1871_v2 = vmax.f32 %v18167_v44, %v1861_v51  ;;  %9299 = vmatmul.msk.bf16.gmra.mxu2 %vm415_vm0, %v18059_v1 }
 0x343   :  { %2459 = vmatmul.bf16.gmra.mxu0 %v18153_v16 }
 0x344   :  { %9238 = vmatmul.msk.bf16.gmra.mxu3 %vm415_vm0, %v18168_v38  ;;  %v1881_v33 = vadd.f32 %v1871_v2, %v12541_v42  ;;  %v18170_v2 = vld [vmem:[#allocation47_spill] sm:$0xff] }
 0x345   :  { %v1836_v58 = vpop.f32.mrf.mxu2 }
 0x346   :  { %v1891_v9 = vmax.f32 %v1881_v33, 0.0  ;;  %v1837_v54 = vadd.f32 %v1836_v58, %v13179_v46  ;;  %v18171_v33 = vmax.f32 %v18139_v23, %v13140_v8 }
 0x347   :  { %v2155_v45 = vpop.f32.mrf.mxu3  ;;  %v2048_v11 = vpop.f32.mrf.mxu1 }
 0x348   :  { %v13247_v3 = vadd.f32 %v2155_v45, %v2046_v52  ;;  %v11164_v60 = vpack.c.bf16 %v1891_v9, %v1890_v10  ;;  %v1862_v22 = vmax.f32 %v12991_v28, %v1837_v54  ;;  %v13253_v6 = vpop.f32.mrf.mxu0  ;;  %v18173_v54 = vld [vmem:[#allocation25_spill] sm:$0xff] }
 0x34a   :  { %11472 = vst [vmem:[#allocation2 + $0x188] sm:$0xff] %v11164_v60   ;;  %v1872_v40 = vmax.f32 %v18169_v41, %v1862_v22  ;;  %v18174_v41 = vmax.f32 %v18144_v24, %v13153_v20  ;;  %v18178_v24 = vld [vmem:[#allocation42_spill] sm:$0xff] }
 0x34c   :  { %v1882_v28 = vadd.f32 %v1872_v40, %v18119_v32 }
 0x34d   :  { %v1838_v47 = vpop.f32.mrf.mxu2 }
 0x34e   :  { %v1839_v51 = vadd.f32 %v1838_v47, %v13194_v14  ;;  %v1892_v10 = vmax.f32 %v1882_v28, 0.0 }
 0x34f   :  { %v2157_v48 = vpop.f32.mrf.mxu3  ;;  %v2051_v44 = vpop.f32.mrf.mxu1 }
 0x350   :  { %v13256_v46 = vadd.f32 %v2157_v48, %v2048_v11  ;;  %v1863_v52 = vmax.f32 %v12999_v62, %v1839_v51  ;;  %v13269_v14 = vpop.f32.mrf.mxu0  ;;  %v18175_v48 = vld [vmem:[#allocation55_spill] sm:$0xff] }
 0x352   :  { %2090 = vmatmul.bf16.gmra.mxu1 %v18170_v2  ;;  %v1873_v25 = vmax.f32 %v18171_v33, %v1863_v52  ;;  %9300 = vmatmul.msk.bf16.gmra.mxu2 %vm415_vm0, %v18121_v21 }
 0x353   :  { %2464 = vmatmul.bf16.gmra.mxu0 %v18159_v43 }
 0x354   :  { %9239 = vmatmul.msk.bf16.gmra.mxu3 %vm415_vm0, %v18172_v15  ;;  %v1883_v62 = vadd.f32 %v1873_v25, %v18122_v4 }
 0x355   :  { %v1841_v58 = vpop.f32.mrf.mxu2 }
 0x356   :  { %v1893_v9 = vmax.f32 %v1883_v62, 0.0  ;;  %v1842_v45 = vadd.f32 %v1841_v58, %v18173_v54  ;;  %v18176_v62 = vld [vmem:[#allocation49_spill] sm:$0xff]  ;;  %v18177_v58 = vmax.f32 %v18146_v39, %v13161_v17 }
 0x357   :  { %v2160_v11 = vpop.f32.mrf.mxu3  ;;  %v2053_v8 = vpop.f32.mrf.mxu1 }
 0x358   :  { %v13273_v23 = vadd.f32 %v2160_v11, %v2051_v44  ;;  %v11169_v60 = vpack.c.bf16 %v1893_v9, %v1892_v10  ;;  %v1864_v22 = vmax.f32 %v13015_v63, %v1842_v45  ;;  %v13279_v47 = vpop.f32.mrf.mxu0 }
 0x35a   :  { %11473 = vst [vmem:[#allocation2 + $0x138] sm:$0xff] %v11169_v60   ;;  %v1874_v40 = vmax.f32 %v18174_v41, %v1864_v22 }
 0x35c   :  { %v1884_v63 = vadd.f32 %v1874_v40, %v18130_v31 }
 0x35d   :  { %v1843_v51 = vpop.f32.mrf.mxu2 }
 0x35e   :  { %v1844_v52 = vadd.f32 %v1843_v51, %v18175_v48  ;;  %v1894_v54 = vmax.f32 %v1884_v63, 0.0 }
 0x35f   :  { %v2162_v28 = vpop.f32.mrf.mxu3  ;;  %v2056_v33 = vpop.f32.mrf.mxu1 }
 0x360   :  { %v13282_v25 = vadd.f32 %v2162_v28, %v2053_v8  ;;  %v1865_v44 = vmax.f32 %v13029_v34, %v1844_v52  ;;  %v13295_v10 = vpop.f32.mrf.mxu0  ;;  %v18179_v28 = vld [vmem:[#allocation54_spill] sm:$0xff] }
 0x362   :  { %2095 = vmatmul.bf16.gmra.mxu1 %v18176_v62  ;;  %v1875_v20 = vmax.f32 %v18177_v58, %v1865_v44  ;;  %9301 = vmatmul.msk.bf16.gmra.mxu2 %vm415_vm0, %v18134_v19  ;;  %v18181_v44 = vld [vmem:[#allocation46_spill] sm:$0xff]  ;;  %v18195_v19 = vld [vmem:[#allocation67_spill] sm:$0xff] }
 0x363   :  { %2469 = vmatmul.bf16.gmra.mxu0 %v18166_v49 }
 0x364   :  { %9240 = vmatmul.msk.bf16.gmra.mxu3 %vm415_vm0, %v18178_v24  ;;  %v1885_v34 = vadd.f32 %v1875_v20, %v18135_v53 }
 0x365   :  { %v2514_v9 = vpop.f32.mrf.mxu2 }
 0x366   :  { %v1895_v45 = vmax.f32 %v1885_v34, 0.0  ;;  %v13299_v8 = vadd.f32 %v2514_v9, %v13203_v61  ;;  %v18180_v61 = vld [vmem:[#allocation22_spill] sm:$0xff] }
 0x367   :  { %v2165_v11 = vpop.f32.mrf.mxu3  ;;  %v2058_v17 = vpop.f32.mrf.mxu1  ;;  %v10790_v9 = vld [vmem:[%s17492_s0 + $0xf0] sm:$0xff] }
 0x368   :  { %v13301_v39 = vadd.f32 %v2165_v11, %v2056_v33  ;;  %v11174_v60 = vpack.c.bf16 %v1895_v45, %v1894_v54  ;;  %v13303_v22 = vpop.f32.mrf.mxu0  ;;  %v10791_v33 = vld [vmem:[%s17492_s0 + $0xf8] sm:$0xff]  ;;  %v10789_v45 = vld [vmem:[%s17492_s0 + $0xe8] sm:$0xff] }
 0x369   :  { %2780 = vmatpush.bf16.msrb.mxu1 %v10791_v33  ;;  %v18182_v33 = vld [vmem:[#allocation59_spill] sm:$0xff] }
 0x36a   :  { %11474 = vst [vmem:[#allocation2 + $0x140] sm:$0xff] %v11174_v60  }
 0x36d   :  { %v2516_v41 = vpop.f32.mrf.mxu2  ;;  %2781 = vmatpush.bf16.msrb.mxu1 %v10790_v9  ;;  %v18184_v9 = vld [vmem:[#allocation48_spill] sm:$0xff] }
 0x36e   :  { %v13306_v51 = vadd.f32 %v2516_v41, %v13218_v5 }
 0x36f   :  { %v2167_v40 = vpop.f32.mrf.mxu3  ;;  %v2061_v48 = vpop.f32.mrf.mxu1 }
 0x370   :  { %v13308_v52 = vadd.f32 %v2167_v40, %v2058_v17  ;;  %v13319_v63 = vpop.f32.mrf.mxu0  ;;  %v10788_v40 = vld [vmem:[%s17492_s0 + $0xe0] sm:$0xff] }
 0x371   :  { %2782 = vmatpush.bf16.msrb.mxu1 %v10789_v45 }
 0x372   :  { %2100 = vmatmul.bf16.gmra.mxu1 %v18179_v28  ;;  %9302 = vmatmul.msk.bf16.gmra.mxu2 %vm415_vm0, %v18180_v61 }
 0x373   :  { %2474 = vmatmul.bf16.gmra.mxu0 %v18170_v2  ;;  %v10794_v2 = vld [vmem:[%s17492_s0 + $0x110] sm:$0xff] }
 0x374   :  { %9241 = vmatmul.msk.bf16.gmra.mxu3 %vm415_vm0, %v18181_v44 }
 0x375   :  { %v2519_v5 = vpop.f32.mrf.mxu2  ;;  %2783 = vmatpush.bf16.msrb.mxu1 %v10788_v40 }
 0x376   :  { %v13322_v20 = vadd.f32 %v2519_v5, %v13228_v57  ;;  %v18183_v5 = vld [vmem:[#allocation24_spill] sm:$0xff] }
 0x377   :  { %v2170_v58 = vpop.f32.mrf.mxu3  ;;  %v2063_v34 = vpop.f32.mrf.mxu1 }
 0x378   :  { %v13327_v54 = vadd.f32 %v2170_v58, %v2061_v48  ;;  %v13332_v11 = vpop.f32.mrf.mxu0  ;;  %v10795_v58 = vld [vmem:[%s17492_s0 + $0x118] sm:$0xff] }
 0x379   :  { %2893 = vmatpush.bf16.msrb.mxu3 %v10795_v58 }
 0x37d   :  { %v2521_v17 = vpop.f32.mrf.mxu2  ;;  %2894 = vmatpush.bf16.msrb.mxu3 %v10794_v2  ;;  %v10784_v2 = vld [vmem:[%s17492_s0 + $0xc0] sm:$0xff] }
 0x37e   :  { %v13335_v57 = vadd.f32 %v2521_v17, %v13243_v18  ;;  %v10787_v18 = vld [vmem:[%s17492_s0 + $0xd8] sm:$0xff] }
 0x37f   :  { %v2172_v60 = vpop.f32.mrf.mxu3  ;;  %v2066_v41 = vpop.f32.mrf.mxu1  ;;  %2784 = vmatpush.bf16.msrb.mxu1 %v10787_v18  ;;  %v10785_v18 = vld [vmem:[%s17492_s0 + $0xc8] sm:$0xff] }
 0x380   :  { %v13340_v48 = vadd.f32 %v2172_v60, %v2063_v34  ;;  %v13354_v34 = vpop.f32.mrf.mxu0 }
 0x382   :  { %2105 = vmatmul.bf16.gmra.mxu1 %v18182_v33  ;;  %9303 = vmatmul.msk.bf16.gmra.mxu2 %vm415_vm0, %v18183_v5  ;;  %v18192_v5 = vld [vmem:[#allocation66_spill] sm:$0xff] }
 0x383   :  { %2479 = vmatmul.bf16.gmra.mxu0 %v18176_v62  ;;  %v10786_v62 = vld [vmem:[%s17492_s0 + $0xd0] sm:$0xff] }
 0x384   :  { %9242 = vmatmul.msk.bf16.gmra.mxu3 %vm415_vm0, %v18184_v9  ;;  %2785 = vmatpush.bf16.msrb.mxu1 %v10786_v62  ;;  %v10792_v62 = vld [vmem:[%s17492_s0 + $0x100] sm:$0xff] }
 0x385   :  { %v2524_v45 = vpop.f32.mrf.mxu2 }
 0x386   :  { %v13357_v60 = vadd.f32 %v2524_v45, %v13253_v6  ;;  %v10793_v6 = vld [vmem:[%s17492_s0 + $0x108] sm:$0xff] }
 0x387   :  { %v2175_v17 = vpop.f32.mrf.mxu3  ;;  %v2068_v40 = vpop.f32.mrf.mxu1  ;;  %2895 = vmatpush.bf16.msrb.mxu3 %v10793_v6  ;;  %v18190_v6 = vld [vmem:[#allocation5_spill] sm:$0xff] }
 0x388   :  { %18185 = vst [vmem:[#allocation69_spill] sm:$0xff] %v13357_v60  ;;  %v13365_v49 = vadd.f32 %v2175_v17, %v2066_v41  ;;  %v13373_v58 = vpop.f32.mrf.mxu0  ;;  %2786 = vmatpush.bf16.msrb.mxu1 %v10785_v18  ;;  %v18189_v18 = vld [vmem:[#allocation64_spill] sm:$0xff] }
 0x389   :  { %v18201_v60 = vld [vmem:[#allocation8_spill] sm:$0xff] }
 0x38a   :  { %18186 = vst [vmem:[#allocation16_spill] sm:$0xff] %v13365_v49 }
 0x38b   :  { %2896 = vmatpush.bf16.msrb.mxu3 %v10792_v62 }
 0x38c   :  { %2787 = vmatpush.bf16.msrb.mxu1 %v10784_v2 }
 0x38d   :  { %v2526_v45 = vpop.f32.mrf.mxu2 }
 0x38e   :  { %v13376_v16 = vadd.f32 %v2526_v45, %v13269_v14  ;;  %v10803_v14 = vld [vmem:[%s17492_s0 + $0x118] sm:$0xff] }
 0x38f   :  { %v2177_v43 = vpop.f32.mrf.mxu3  ;;  %v2071_v41 = vpop.f32.mrf.mxu1  ;;  %3164 = vmatpush.bf16.msrb.mxu0 %v10803_v14  ;;  %v10801_v14 = vld [vmem:[%s17492_s0 + $0x108] sm:$0xff] }
 0x390   :  { %18187 = vst [vmem:[#allocation37_spill] sm:$0xff] %v13376_v16  ;;  %v13384_v17 = vadd.f32 %v2177_v43, %v2068_v40  ;;  %v13395_v45 = vpop.f32.mrf.mxu0  ;;  %v18200_v16 = vld [vmem:[#allocation68_spill] sm:$0xff] }
 0x392   :  { %18188 = vst [vmem:[#allocation70_spill] sm:$0xff] %v13384_v17  ;;  %2110 = vmatmul.bf16.gmra.mxu1 %v18189_v18  ;;  %9304 = vmatmul.msk.bf16.gmra.mxu2 %vm415_vm0, %v18155_v29 }
 0x393   :  { %2484 = vmatmul.bf16.gmra.mxu0 %v18179_v28  ;;  %v10802_v28 = vld [vmem:[%s17492_s0 + $0x110] sm:$0xff] }
 0x394   :  { %9243 = vmatmul.msk.bf16.gmra.mxu3 %vm415_vm0, %v18190_v6  ;;  %3165 = vmatpush.bf16.msrb.mxu0 %v10802_v28  ;;  %v10800_v28 = vld [vmem:[%s17492_s0 + $0x100] sm:$0xff] }
 0x395   :  { %v2529_v43 = vpop.f32.mrf.mxu2 }
 0x396   :  { %v13398_v2 = vadd.f32 %v2529_v43, %v13279_v47 }
 0x397   :  { %v2180_v40 = vpop.f32.mrf.mxu3  ;;  %v2073_v62 = vpop.f32.mrf.mxu1 }
 0x398   :  { %18191 = vst [vmem:[#allocation38_spill] sm:$0xff] %v13398_v2  ;;  %v13403_v29 = vadd.f32 %v2180_v40, %v2071_v41  ;;  %v13410_v61 = vpop.f32.mrf.mxu0  ;;  %3166 = vmatpush.bf16.msrb.mxu0 %v10801_v14  ;;  %v18194_v40 = vld [vmem:[#allocation14_spill] sm:$0xff]  ;;  %v18196_v14 = vld [vmem:[#allocation9_spill] sm:$0xff] }
 0x39c   :  { %3167 = vmatpush.bf16.msrb.mxu0 %v10800_v28 }
 0x39d   :  { %v2531_v47 = vpop.f32.mrf.mxu2 }
 0x39e   :  { %v13413_v2 = vadd.f32 %v2531_v47, %v13295_v10  ;;  %v10799_v10 = vld [vmem:[%s17492_s0 + $0xf8] sm:$0xff] }
 0x39f   :  { %v2182_v43 = vpop.f32.mrf.mxu3  ;;  %v2076_v53 = vpop.f32.mrf.mxu1 }
 0x3a0   :  { %18193 = vst [vmem:[#allocation71_spill] sm:$0xff] %v13413_v2  ;;  %v13418_v41 = vadd.f32 %v2182_v43, %v2073_v62  ;;  %v13431_v62 = vpop.f32.mrf.mxu0  ;;  %3168 = vmatpush.bf16.msrb.mxu0 %v10799_v10  ;;  %v18198_v2 = vld [vmem:[#allocation33_spill] sm:$0xff] }
 0x3a1   :  { %v10797_v10 = vld [vmem:[%s17492_s0 + $0xe8] sm:$0xff] }
 0x3a2   :  { %2115 = vmatmul.bf16.gmra.mxu1 %v18195_v19  ;;  %9305 = vmatmul.msk.bf16.gmra.mxu2 %vm415_vm0, %v18161_v26 }
 0x3a3   :  { %2489 = vmatmul.bf16.gmra.mxu0 %v18182_v33  ;;  %v10798_v33 = vld [vmem:[%s17492_s0 + $0xf0] sm:$0xff] }
 0x3a4   :  { %9244 = vmatmul.msk.bf16.gmra.mxu3 %vm415_vm0, %v18196_v14  ;;  %3169 = vmatpush.bf16.msrb.mxu0 %v10798_v33 }
 0x3a5   :  { %v2534_v47 = vpop.f32.mrf.mxu2 }
 0x3a6   :  { %v13434_v28 = vadd.f32 %v2534_v47, %v13303_v22  ;;  %v10807_v22 = vld [vmem:[%s17492_s0 + $0x138] sm:$0xff] }
 0x3a7   :  { %v2185_v43 = vpop.f32.mrf.mxu3  ;;  %v2078_v36 = vpop.f32.mrf.mxu1  ;;  %3277 = vmatpush.bf16.msra.mxu2 %v10807_v22 }
 0x3a8   :  { %18197 = vst [vmem:[#allocation56_spill] sm:$0xff] %v13434_v28  ;;  %v13439_v26 = vadd.f32 %v2185_v43, %v2076_v53  ;;  %v13449_v47 = vpop.f32.mrf.mxu0  ;;  %3170 = vmatpush.bf16.msrb.mxu0 %v10797_v10  ;;  %v10796_v43 = vld [vmem:[%s17492_s0 + $0xe0] sm:$0xff] }
 0x3ac   :  { %3171 = vmatpush.bf16.msrb.mxu0 %v10796_v43 }
 0x3ad   :  { %v2536_v28 = vpop.f32.mrf.mxu2 }
 0x3ae   :  { %v13452_v53 = vadd.f32 %v2536_v28, %v13319_v63  ;;  %v18202_v63 = vld [vmem:[#allocation4_spill] sm:$0xff] }
 0x3af   :  { %v2187_v17 = vpop.f32.mrf.mxu3  ;;  %v2081_v33 = vpop.f32.mrf.mxu1 }
 0x3b0   :  { %18199 = vst [vmem:[#allocation26_spill] sm:$0xff] %v13452_v53  ;;  %v13457_v31 = vadd.f32 %v2187_v17, %v2078_v36  ;;  %v13467_v28 = vpop.f32.mrf.mxu0 }
 0x3b2   :  { %2788 = vmatmul.bf16.vlgmr.msrb.gmra.mxu1 %v18201_v60  ;;  %9306 = vmatmul.msk.bf16.gmra.mxu2 %vm415_vm0, %v18168_v38 }
 0x3b3   :  { %2494 = vmatmul.bf16.gmra.mxu0 %v18189_v18 }
 0x3b4   :  { %9361 = vmatmul.msk.bf16.vlgmr.msrb.gmra.mxu3 %vm415_vm0, %v18202_v63 }
 0x3b5   :  { %v2539_v10 = vpop.f32.mrf.mxu2 }
 0x3b6   :  { %v13470_v36 = vadd.f32 %v2539_v10, %v13332_v11  ;;  %v18205_v10 = vld [vmem:[#allocation11_spill] sm:$0xff] }
 0x3b7   :  { %v2190_v22 = vpop.f32.mrf.mxu3  ;;  %v2083_v17 = vpop.f32.mrf.mxu1 }
 0x3b8   :  { %18203 = vst [vmem:[#allocation57_spill] sm:$0xff] %v13470_v36  ;;  %v13472_v43 = vadd.f32 %v2190_v22, %v2081_v33  ;;  %v13476_v18 = vpop.f32.mrf.mxu0  ;;  %v18206_v33 = vld [vmem:[#allocation7_spill] sm:$0xff] }
 0x3bd   :  { %v2541_v53 = vpop.f32.mrf.mxu2 }
 0x3be   :  { %v13479_v4 = vadd.f32 %v2541_v53, %v13354_v34 }
 0x3bf   :  { %v2192_v38 = vpop.f32.mrf.mxu3  ;;  %v2086_v21 = vpop.f32.mrf.mxu1 }
 0x3c0   :  { %18204 = vst [vmem:[#allocation58_spill] sm:$0xff] %v13479_v4  ;;  %v13481_v32 = vadd.f32 %v2192_v38, %v2083_v17  ;;  %v13491_v22 = vpop.f32.mrf.mxu0 }
 0x3c2   :  { %2793 = vmatmul.bf16.gmra.mxu1 %v18205_v10  ;;  %9307 = vmatmul.msk.bf16.gmra.mxu2 %vm415_vm0, %v18172_v15 }
 0x3c3   :  { %2499 = vmatmul.bf16.gmra.mxu0 %v18195_v19 }
 0x3c4   :  { %9362 = vmatmul.msk.bf16.gmra.mxu3 %vm415_vm0, %v18206_v33 }
 0x3c5   :  { %v2544_v34 = vpop.f32.mrf.mxu2 }
 0x3c6   :  { %v13494_v38 = vadd.f32 %v2544_v34, %v13373_v58  ;;  %v18210_v34 = vld [vmem:[#allocation13_spill] sm:$0xff] }
 0x3c7   :  { %v2195_v53 = vpop.f32.mrf.mxu3  ;;  %v2088_v17 = vpop.f32.mrf.mxu1 }
 0x3c8   :  { %18207 = vst [vmem:[#allocation29_spill] sm:$0xff] %v13494_v38  ;;  %v13496_v49 = vadd.f32 %v2195_v53, %v2086_v21  ;;  %v13500_v19 = vpop.f32.mrf.mxu0  ;;  %v18211_v21 = vld [vmem:[#allocation6_spill] sm:$0xff] }
 0x3cd   :  { %v2546_v4 = vpop.f32.mrf.mxu2 }
 0x3ce   :  { %v13503_v36 = vadd.f32 %v2546_v4, %v13395_v45 }
 0x3cf   :  { %v2197_v15 = vpop.f32.mrf.mxu3  ;;  %v2091_v33 = vpop.f32.mrf.mxu1 }
 0x3d0   :  { %18208 = vst [vmem:[#allocation72_spill] sm:$0xff] %v13503_v36  ;;  %v13505_v63 = vadd.f32 %v2197_v15, %v2088_v17  ;;  %v13515_v53 = vpop.f32.mrf.mxu0 }
 0x3d2   :  { %18209 = vst [vmem:[#allocation53_spill] sm:$0xff] %v13505_v63  ;;  %2798 = vmatmul.bf16.gmra.mxu1 %v18210_v34  ;;  %9308 = vmatmul.msk.bf16.gmra.mxu2 %vm415_vm0, %v18178_v24 }
 0x3d3   :  { %3172 = vmatmul.bf16.vlgmr.msrb.gmra.mxu0 %v18201_v60 }
 0x3d4   :  { %9363 = vmatmul.msk.bf16.gmra.mxu3 %vm415_vm0, %v18211_v21 }
 0x3d5   :  { %v2549_v4 = vpop.f32.mrf.mxu2 }
 0x3d6   :  { %v13518_v15 = vadd.f32 %v2549_v4, %v13410_v61  ;;  %v18216_v4 = vld [vmem:[#allocation15_spill] sm:$0xff] }
 0x3d7   :  { %v2200_v45 = vpop.f32.mrf.mxu3  ;;  %v2093_v17 = vpop.f32.mrf.mxu1 }
 0x3d8   :  { %18212 = vst [vmem:[#allocation65_spill] sm:$0xff] %v13518_v15  ;;  %v13520_v11 = vadd.f32 %v2200_v45, %v2091_v33  ;;  %v13524_v36 = vpop.f32.mrf.mxu0  ;;  %v18217_v33 = vld [vmem:[#allocation10_spill] sm:$0xff] }
 0x3da   :  { %18213 = vst [vmem:[#allocation60_spill] sm:$0xff] %v13520_v11 }
 0x3dd   :  { %v2551_v24 = vpop.f32.mrf.mxu2 }
 0x3de   :  { %v13527_v38 = vadd.f32 %v2551_v24, %v13431_v62 }
 0x3df   :  { %v2202_v60 = vpop.f32.mrf.mxu3  ;;  %v2096_v21 = vpop.f32.mrf.mxu1 }
 0x3e0   :  { %18214 = vst [vmem:[#allocation43_spill] sm:$0xff] %v13527_v38  ;;  %v13529_v63 = vadd.f32 %v2202_v60, %v2093_v17  ;;  %v13539_v45 = vpop.f32.mrf.mxu0  ;;  %v18218_v38 = vmax.f32 %v18192_v5, %v13403_v29 }
 0x3e2   :  { %18215 = vst [vmem:[#allocation73_spill] sm:$0xff] %v13529_v63  ;;  %2803 = vmatmul.bf16.gmra.mxu1 %v18216_v4  ;;  %9309 = vmatmul.msk.bf16.gmra.mxu2 %vm415_vm0, %v18181_v44 }
 0x3e3   :  { %3177 = vmatmul.bf16.gmra.mxu0 %v18205_v10 }
 0x3e4   :  { %9364 = vmatmul.msk.bf16.gmra.mxu3 %vm415_vm0, %v18217_v33 }
 0x3e5   :  { %v2554_v24 = vpop.f32.mrf.mxu2 }
 0x3e6   :  { %v13542_v60 = vadd.f32 %v2554_v24, %v13449_v47  ;;  %v18219_v24 = vld [vmem:[#allocation17_spill] sm:$0xff] }
 0x3e7   :  { %v2205_v62 = vpop.f32.mrf.mxu3  ;;  %v2098_v17 = vpop.f32.mrf.mxu1 }
 0x3e8   :  { %v2206_v58 = vadd.f32 %v2205_v62, %v2096_v21  ;;  %v13548_v15 = vpop.f32.mrf.mxu0 }
 0x3ea   :  { %v2240_v61 = vmax.f32 %v13247_v3, %v2206_v58  ;;  %v18220_v3 = vmax.f32 %v18194_v40, %v13418_v41 }
 0x3ec   :  { %v2250_v44 = vmax.f32 %v18218_v38, %v2240_v61 }
 0x3ed   :  { %v2556_v10 = vpop.f32.mrf.mxu2 }
 0x3ee   :  { %v13551_v33 = vadd.f32 %v2556_v10, %v13467_v28  ;;  %v2260_v29 = vadd.f32 %v2250_v44, %v12501_v50  ;;  %v10806_v44 = vld [vmem:[%s17492_s0 + $0x130] sm:$0xff] }
 0x3ef   :  { %v2207_v63 = vpop.f32.mrf.mxu3  ;;  %v2101_v7 = vpop.f32.mrf.mxu1  ;;  %3278 = vmatpush.bf16.msra.mxu2 %v10806_v44  ;;  %v18223_v44 = vld [vmem:[#allocation19_spill] sm:$0xff] }
 0x3f0   :  { %v2208_v11 = vadd.f32 %v2207_v63, %v2098_v17  ;;  %v13564_v28 = vpop.f32.mrf.mxu0  ;;  %v18221_v63 = vld [vmem:[#allocation76_spill] sm:$0xff]  ;;  %v2270_v21 = vmax.f32 %v2260_v29, 0.0  ;;  %v10805_v17 = vld [vmem:[%s17492_s0 + $0x128] sm:$0xff] }
 0x3f2   :  { %v2241_v47 = vmax.f32 %v13256_v46, %v2208_v11  ;;  %2808 = vmatmul.bf16.gmra.mxu1 %v18219_v24  ;;  %9310 = vmatmul.msk.bf16.gmra.mxu2 %vm415_vm0, %v18184_v9 }
 0x3f3   :  { %3182 = vmatmul.bf16.gmra.mxu0 %v18210_v34  ;;  %3279 = vmatpush.bf16.msra.mxu2 %v10805_v17 }
 0x3f4   :  { %v2251_v5 = vmax.f32 %v18220_v3, %v2241_v47  ;;  %9365 = vmatmul.msk.bf16.gmra.mxu3 %vm415_vm0, %v18042_v55 }
 0x3f5   :  { %v2559_v11 = vpop.f32.mrf.mxu2 }
 0x3f6   :  { %v2261_v46 = vadd.f32 %v2251_v5, %v18221_v63  ;;  %v13568_v38 = vadd.f32 %v2559_v11, %v13476_v18  ;;  %v18222_v18 = vmax.f32 %v18198_v2, %v13439_v26  ;;  %v18224_v2 = vmax.f32 %v18200_v16, %v13457_v31 }
 0x3f7   :  { %v2210_v10 = vpop.f32.mrf.mxu3  ;;  %v2103_v58 = vpop.f32.mrf.mxu1 }
 0x3f8   :  { %v2271_v41 = vmax.f32 %v2261_v46, 0.0  ;;  %v2211_v40 = vadd.f32 %v2210_v10, %v2101_v7  ;;  %v13580_v3 = vpop.f32.mrf.mxu0 }
 0x3fa   :  { %v11179_v61 = vpack.c.bf16 %v2271_v41, %v2270_v21  ;;  %v2242_v62 = vmax.f32 %v13273_v23, %v2211_v40  ;;  %v10804_v23 = vld [vmem:[%s17492_s0 + $0x120] sm:$0xff] }
 0x3fb   :  { %3280 = vmatpush.bf16.msra.mxu2 %v10804_v23 }
 0x3fc   :  { %11475 = vst [vmem:[#allocation2 + $0x80] sm:$0xff] %v11179_v61   ;;  %v2252_v47 = vmax.f32 %v18222_v18, %v2242_v62 }
 0x3fd   :  { %v2561_v5 = vpop.f32.mrf.mxu2 }
 0x3fe   :  { %v13583_v7 = vadd.f32 %v2561_v5, %v13491_v22  ;;  %v2262_v26 = vadd.f32 %v2252_v47, %v12564_v35  ;;  %v18225_v5 = vmax.f32 %v13173_v59, %v13472_v43  ;;  %v18227_v43 = vmax.f32 %v13181_v13, %v13481_v32 }
 0x3ff   :  { %v2212_v29 = vpop.f32.mrf.mxu3  ;;  %v2106_v46 = vpop.f32.mrf.mxu1 }
 0x400   :  { %v2213_v11 = vadd.f32 %v2212_v29, %v2103_v58  ;;  %v13599_v58 = vpop.f32.mrf.mxu0  ;;  %v2272_v62 = vmax.f32 %v2262_v26, 0.0 }
 0x402   :  { %v2243_v10 = vmax.f32 %v13282_v25, %v2213_v11  ;;  %2813 = vmatmul.bf16.gmra.mxu1 %v18223_v44  ;;  %9311 = vmatmul.msk.bf16.gmra.mxu2 %vm415_vm0, %v18190_v6 }
 0x403   :  { %3187 = vmatmul.bf16.gmra.mxu0 %v18216_v4 }
 0x404   :  { %v2253_v22 = vmax.f32 %v18224_v2, %v2243_v10  ;;  %9366 = vmatmul.msk.bf16.gmra.mxu3 %vm415_vm0, %v18049_v30 }
 0x405   :  { %v2564_v21 = vpop.f32.mrf.mxu2 }
 0x406   :  { %v2263_v25 = vadd.f32 %v2253_v22, %v12567_v12  ;;  %v13603_v40 = vadd.f32 %v2564_v21, %v13500_v19 }
 0x407   :  { %v2215_v41 = vpop.f32.mrf.mxu3  ;;  %v2108_v61 = vpop.f32.mrf.mxu1 }
 0x408   :  { %v2273_v17 = vmax.f32 %v2263_v25, 0.0  ;;  %v2216_v18 = vadd.f32 %v2215_v41, %v2106_v46  ;;  %v13611_v23 = vpop.f32.mrf.mxu0 }
 0x40a   :  { %v11184_v16 = vpack.c.bf16 %v2273_v17, %v2272_v62  ;;  %v2244_v47 = vmax.f32 %v13301_v39, %v2216_v18  ;;  %v18226_v39 = vld [vmem:[#allocation21_spill] sm:$0xff] }
 0x40c   :  { %11476 = vst [vmem:[#allocation2 + $0x1a8] sm:$0xff] %v11184_v16   ;;  %v2254_v29 = vmax.f32 %v18225_v5, %v2244_v47  ;;  %v18228_v5 = vmax.f32 %v13197_v56, %v13496_v49  ;;  %v18230_v56 = vld [vmem:[#allocation4_spill] sm:$0xff]  ;;  %v18231_v49 = vld [vmem:[#allocation77_spill] sm:$0xff] }
 0x40d   :  { %v2566_v11 = vpop.f32.mrf.mxu2 }
 0x40e   :  { %v13614_v10 = vadd.f32 %v2566_v11, %v13515_v53  ;;  %v2264_v59 = vadd.f32 %v2254_v29, %v12519_v37 }
 0x40f   :  { %v2217_v19 = vpop.f32.mrf.mxu3  ;;  %v2111_v26 = vpop.f32.mrf.mxu1 }
 0x410   :  { %v2218_v46 = vadd.f32 %v2217_v19, %v2108_v61  ;;  %v13629_v25 = vpop.f32.mrf.mxu0  ;;  %v2274_v17 = vmax.f32 %v2264_v59, 0.0 }
 0x412   :  { %v2245_v22 = vmax.f32 %v13308_v52, %v2218_v46  ;;  %2818 = vmatmul.bf16.gmra.mxu1 %v18226_v39  ;;  %9312 = vmatmul.msk.bf16.gmra.mxu2 %vm415_vm0, %v18196_v14 }
 0x413   :  { %3192 = vmatmul.bf16.gmra.mxu0 %v18219_v24 }
 0x414   :  { %v2255_v53 = vmax.f32 %v18227_v43, %v2245_v22  ;;  %9367 = vmatmul.msk.bf16.gmra.mxu3 %vm415_vm0, %v18059_v1 }
 0x415   :  { %v2569_v21 = vpop.f32.mrf.mxu2 }
 0x416   :  { %v2265_v52 = vadd.f32 %v2255_v53, %v12541_v42  ;;  %v13633_v61 = vadd.f32 %v2569_v21, %v13524_v36 }
 0x417   :  { %v2220_v41 = vpop.f32.mrf.mxu3  ;;  %v2113_v62 = vpop.f32.mrf.mxu1 }
 0x418   :  { %v2275_v18 = vmax.f32 %v2265_v52, 0.0  ;;  %v2221_v16 = vadd.f32 %v2220_v41, %v2111_v26  ;;  %v13641_v11 = vpop.f32.mrf.mxu0  ;;  %v18232_v52 = vld [vmem:[#allocation53_spill] sm:$0xff]  ;;  %v18234_v41 = vld [vmem:[#allocation18_spill] sm:$0xff] }
 0x41a   :  { %v11189_v13 = vpack.c.bf16 %v2275_v18, %v2274_v17  ;;  %v2246_v47 = vmax.f32 %v13327_v54, %v2221_v16  ;;  %v18229_v54 = vld [vmem:[#allocation23_spill] sm:$0xff]  ;;  %v18235_v17 = vld [vmem:[#allocation52_spill] sm:$0xff] }
 0x41c   :  { %11477 = vst [vmem:[#allocation2 + $0x1b8] sm:$0xff] %v11189_v13   ;;  %v2256_v29 = vmax.f32 %v18228_v5, %v2246_v47 }
 0x41d   :  { %v2571_v19 = vpop.f32.mrf.mxu2 }
 0x41e   :  { %v13644_v46 = vadd.f32 %v2571_v19, %v13539_v45  ;;  %v2266_v53 = vadd.f32 %v2256_v29, %v18231_v49  ;;  %v18233_v45 = vmax.f32 %v13205_v0, %v18232_v52 }
 0x41f   :  { %v2222_v36 = vpop.f32.mrf.mxu3  ;;  %v2116_v22 = vpop.f32.mrf.mxu1 }
 0x420   :  { %v2223_v26 = vadd.f32 %v2222_v36, %v2113_v62  ;;  %v13659_v62 = vpop.f32.mrf.mxu0  ;;  %v2276_v5 = vmax.f32 %v2266_v53, 0.0  ;;  %v18236_v36 = vld [vmem:[#allocation69_spill] sm:$0xff] }
 0x422   :  { %v2247_v43 = vmax.f32 %v13340_v48, %v2223_v26  ;;  %2823 = vmatmul.bf16.gmra.mxu1 %v18229_v54  ;;  %9429 = vmatmul.msk.bf16.vlgmr.msra.gmra.mxu2 %vm415_vm0, %v18230_v56 }
 0x423   :  { %3197 = vmatmul.bf16.gmra.mxu0 %v18223_v44 }
 0x424   :  { %v2257_v21 = vmax.f32 %v18233_v45, %v2247_v43  ;;  %9368 = vmatmul.msk.bf16.gmra.mxu3 %vm415_vm0, %v18234_v41  ;;  %v18237_v43 = vld [vmem:[#allocation16_spill] sm:$0xff] }
 0x425   :  { %v2574_v18 = vpop.f32.mrf.mxu2  ;;  %v18238_v45 = vld [vmem:[#allocation60_spill] sm:$0xff] }
 0x426   :  { %v2267_v48 = vadd.f32 %v2257_v21, %v18235_v17  ;;  %v13663_v13 = vadd.f32 %v2574_v18, %v13548_v15  ;;  %v18239_v59 = vmax.f32 %v13222_v27, %v18238_v45  ;;  %v18243_v27 = vld [vmem:[#allocation7_spill] sm:$0xff]  ;;  %v18248_v45 = vld [vmem:[#allocation20_spill] sm:$0xff] }
 0x427   :  { %v2225_v16 = vpop.f32.mrf.mxu3  ;;  %v2118_v47 = vpop.f32.mrf.mxu1 }
 0x428   :  { %v2277_v19 = vmax.f32 %v2267_v48, 0.0  ;;  %v2226_v29 = vadd.f32 %v2225_v16, %v2116_v22  ;;  %v13671_v32 = vpop.f32.mrf.mxu0  ;;  %v18240_v48 = vld [vmem:[#allocation37_spill] sm:$0xff] }
 0x42a   :  { %v11194_v26 = vpack.c.bf16 %v2277_v19, %v2276_v5  ;;  %v2248_v52 = vmax.f32 %v18237_v43, %v2226_v29  ;;  %v18241_v5 = vld [vmem:[#allocation70_spill] sm:$0xff]  ;;  %v18242_v29 = vld [vmem:[#allocation27_spill] sm:$0xff] }
 0x42b   :  { %v18245_v43 = vld [vmem:[#allocation34_spill] sm:$0xff] }
 0x42c   :  { %11478 = vst [vmem:[#allocation2 + $0x28] sm:$0xff] %v11194_v26   ;;  %v2258_v21 = vmax.f32 %v18239_v59, %v2248_v52  ;;  %v18244_v59 = vld [vmem:[#allocation50_spill] sm:$0xff]  ;;  %v18246_v52 = vld [vmem:[#allocation73_spill] sm:$0xff] }
 0x42d   :  { %v2576_v2 = vpop.f32.mrf.mxu2 }
 0x42e   :  { %v13674_v18 = vadd.f32 %v2576_v2, %v13564_v28  ;;  %v2268_v26 = vadd.f32 %v2258_v21, %v18244_v59  ;;  %v18247_v28 = vmax.f32 %v18245_v43, %v18246_v52  ;;  %v18251_v43 = vld [vmem:[#allocation38_spill] sm:$0xff] }
 0x42f   :  { %v2227_v15 = vpop.f32.mrf.mxu3  ;;  %v2789_v53 = vpop.f32.mrf.mxu1 }
 0x430   :  { %v2228_v22 = vadd.f32 %v2227_v15, %v2118_v47  ;;  %v13689_v47 = vpop.f32.mrf.mxu0  ;;  %v18249_v15 = vld [vmem:[#allocation51_spill] sm:$0xff] }
 0x432   :  { %v2249_v19 = vmax.f32 %v18241_v5, %v2228_v22  ;;  %2828 = vmatmul.bf16.gmra.mxu1 %v18242_v29  ;;  %9430 = vmatmul.msk.bf16.gmra.mxu2 %vm415_vm0, %v18243_v27 }
 0x433   :  { %3202 = vmatmul.bf16.gmra.mxu0 %v18226_v39  ;;  %v2278_v39 = vmax.f32 %v2268_v26, 0.0  ;;  %v18253_v26 = vld [vmem:[#allocation71_spill] sm:$0xff] }
 0x434   :  { %v2259_v2 = vmax.f32 %v18247_v28, %v2249_v19  ;;  %9369 = vmatmul.msk.bf16.gmra.mxu3 %vm415_vm0, %v18248_v45  ;;  %v18267_v45 = vld [vmem:[#allocation39_spill] sm:$0xff] }
 0x435   :  { %v2579_v5 = vpop.f32.mrf.mxu2 }
 0x436   :  { %v2269_v22 = vadd.f32 %v2259_v2, %v18249_v15  ;;  %v13693_v16 = vadd.f32 %v2579_v5, %v13580_v3 }
 0x437   :  { %v2898_v0 = vpop.f32.mrf.mxu3  ;;  %v2791_v31 = vpop.f32.mrf.mxu1 }
 0x438   :  { %v2279_v44 = vmax.f32 %v2269_v22, 0.0  ;;  %v13695_v21 = vadd.f32 %v2898_v0, %v2789_v53  ;;  %v13699_v28 = vpop.f32.mrf.mxu0  ;;  %v18254_v0 = vld [vmem:[#allocation31_spill] sm:$0xff]  ;;  %v18255_v53 = vld [vmem:[#allocation6_spill] sm:$0xff]  ;;  %v18258_v22 = vld [vmem:[#allocation56_spill] sm:$0xff] }
 0x43a   :  { %18250 = vst [vmem:[#allocation61_spill] sm:$0xff] %v13695_v21  ;;  %v11199_v52 = vpack.c.bf16 %v2279_v44, %v2278_v39  ;;  %v18256_v44 = vld [vmem:[#allocation22_spill] sm:$0xff] }
 0x43c   :  { %11479 = vst [vmem:[#allocation2 + $0xf0] sm:$0xff] %v11199_v52  }
 0x43d   :  { %v2581_v24 = vpop.f32.mrf.mxu2 }
 0x43e   :  { %v13702_v2 = vadd.f32 %v2581_v24, %v13599_v58 }
 0x43f   :  { %v2900_v4 = vpop.f32.mrf.mxu3  ;;  %v2794_v3 = vpop.f32.mrf.mxu1 }
 0x440   :  { %v13704_v5 = vadd.f32 %v2900_v4, %v2791_v31  ;;  %v13714_v39 = vpop.f32.mrf.mxu0 }
 0x442   :  { %18252 = vst [vmem:[#allocation30_spill] sm:$0xff] %v13704_v5  ;;  %2833 = vmatmul.bf16.gmra.mxu1 %v18254_v0  ;;  %9431 = vmatmul.msk.bf16.gmra.mxu2 %vm415_vm0, %v18255_v53  ;;  %v18261_v5 = vld [vmem:[#allocation35_spill] sm:$0xff] }
 0x443   :  { %3207 = vmatmul.bf16.gmra.mxu0 %v18229_v54 }
 0x444   :  { %9370 = vmatmul.msk.bf16.gmra.mxu3 %vm415_vm0, %v18256_v44 }
 0x445   :  { %v2584_v24 = vpop.f32.mrf.mxu2 }
 0x446   :  { %v13717_v58 = vadd.f32 %v2584_v24, %v13611_v23  ;;  %v18260_v23 = vld [vmem:[#allocation26_spill] sm:$0xff]  ;;  %v18264_v24 = vld [vmem:[#allocation57_spill] sm:$0xff] }
 0x447   :  { %v2903_v4 = vpop.f32.mrf.mxu3  ;;  %v2796_v31 = vpop.f32.mrf.mxu1 }
 0x448   :  { %v13719_v52 = vadd.f32 %v2903_v4, %v2794_v3  ;;  %v13723_v54 = vpop.f32.mrf.mxu0  ;;  %v18262_v3 = vld [vmem:[#allocation10_spill] sm:$0xff]  ;;  %v18263_v4 = vld [vmem:[#allocation24_spill] sm:$0xff] }
 0x44a   :  { %18257 = vst [vmem:[#allocation62_spill] sm:$0xff] %v13719_v52 }
 0x44d   :  { %v2586_v34 = vpop.f32.mrf.mxu2 }
 0x44e   :  { %v13726_v53 = vadd.f32 %v2586_v34, %v13629_v25 }
 0x44f   :  { %v2905_v27 = vpop.f32.mrf.mxu3  ;;  %v2799_v56 = vpop.f32.mrf.mxu1 }
 0x450   :  { %v13728_v14 = vadd.f32 %v2905_v27, %v2796_v31  ;;  %v13738_v19 = vpop.f32.mrf.mxu0 }
 0x452   :  { %18259 = vst [vmem:[#allocation63_spill] sm:$0xff] %v13728_v14  ;;  %2838 = vmatmul.bf16.gmra.mxu1 %v18261_v5  ;;  %9432 = vmatmul.msk.bf16.gmra.mxu2 %vm415_vm0, %v18262_v3 }
 0x453   :  { %3212 = vmatmul.bf16.gmra.mxu0 %v18242_v29  ;;  %v18265_v29 = vmax.f32 %v13299_v8, %v13603_v40  ;;  %v18269_v40 = vld [vmem:[#allocation28_spill] sm:$0xff] }
 0x454   :  { %9371 = vmatmul.msk.bf16.gmra.mxu3 %vm415_vm0, %v18263_v4 }
 0x455   :  { %v2589_v34 = vpop.f32.mrf.mxu2 }
 0x456   :  { %v2590_v25 = vadd.f32 %v2589_v34, %v13641_v11  ;;  %v18266_v11 = vld [vmem:[#allocation58_spill] sm:$0xff] }
 0x457   :  { %v2908_v27 = vpop.f32.mrf.mxu3  ;;  %v2801_v31 = vpop.f32.mrf.mxu1 }
 0x458   :  { %v13741_v14 = vadd.f32 %v2908_v27, %v2799_v56  ;;  %v2624_v52 = vmax.f32 %v18264_v24, %v2590_v25  ;;  %v13747_v6 = vpop.f32.mrf.mxu0  ;;  %v18268_v24 = vmax.f32 %v13306_v51, %v13614_v10  ;;  %v18270_v27 = vld [vmem:[#allocation29_spill] sm:$0xff] }
 0x45a   :  { %v2634_v21 = vmax.f32 %v18265_v29, %v2624_v52 }
 0x45c   :  { %v2644_v56 = vadd.f32 %v2634_v21, %v12501_v50 }
 0x45d   :  { %v2591_v3 = vpop.f32.mrf.mxu2 }
 0x45e   :  { %v2592_v9 = vadd.f32 %v2591_v3, %v13659_v62  ;;  %v2654_v52 = vmax.f32 %v2644_v56, 0.0 }
 0x45f   :  { %v2910_v4 = vpop.f32.mrf.mxu3  ;;  %v2804_v44 = vpop.f32.mrf.mxu1 }
 0x460   :  { %v13750_v15 = vadd.f32 %v2910_v4, %v2801_v31  ;;  %v2625_v34 = vmax.f32 %v18266_v11, %v2592_v9  ;;  %v13763_v62 = vpop.f32.mrf.mxu0  ;;  %v18271_v11 = vmax.f32 %v13322_v20, %v13633_v61  ;;  %v18275_v61 = vld [vmem:[#allocation32_spill] sm:$0xff] }
 0x462   :  { %2843 = vmatmul.bf16.gmra.mxu1 %v18267_v45  ;;  %v2635_v8 = vmax.f32 %v18268_v24, %v2625_v34  ;;  %9433 = vmatmul.msk.bf16.gmra.mxu2 %vm415_vm0, %v18042_v55 }
 0x463   :  { %3217 = vmatmul.bf16.gmra.mxu0 %v18254_v0 }
 0x464   :  { %9372 = vmatmul.msk.bf16.gmra.mxu3 %vm415_vm0, %v18269_v40  ;;  %v2645_v9 = vadd.f32 %v2635_v8, %v18221_v63 }
 0x465   :  { %v2594_v29 = vpop.f32.mrf.mxu2 }
 0x466   :  { %v2655_v3 = vmax.f32 %v2645_v9, 0.0  ;;  %v2595_v21 = vadd.f32 %v2594_v29, %v13671_v32  ;;  %v18272_v29 = vld [vmem:[#allocation72_spill] sm:$0xff] }
 0x467   :  { %v2913_v4 = vpop.f32.mrf.mxu3  ;;  %v2806_v51 = vpop.f32.mrf.mxu1 }
 0x468   :  { %v13767_v10 = vadd.f32 %v2913_v4, %v2804_v44  ;;  %v11204_v25 = vpack.c.bf16 %v2655_v3, %v2654_v52  ;;  %v2626_v31 = vmax.f32 %v18270_v27, %v2595_v21  ;;  %v13773_v24 = vpop.f32.mrf.mxu0  ;;  %v18273_v4 = vld [vmem:[#allocation41_spill] sm:$0xff]  ;;  %v18274_v3 = vmax.f32 %v13335_v57, %v13644_v46 }
 0x46a   :  { %11480 = vst [vmem:[#allocation2 + $0x158] sm:$0xff] %v11204_v25   ;;  %v2636_v34 = vmax.f32 %v18271_v11, %v2626_v31 }
 0x46c   :  { %v2646_v52 = vadd.f32 %v2636_v34, %v12564_v35 }
 0x46d   :  { %v2596_v8 = vpop.f32.mrf.mxu2 }
 0x46e   :  { %v2597_v56 = vadd.f32 %v2596_v8, %v13689_v47  ;;  %v2656_v25 = vmax.f32 %v2646_v52, 0.0  ;;  %v18276_v8 = vld [vmem:[#allocation65_spill] sm:$0xff] }
 0x46f   :  { %v2915_v9 = vpop.f32.mrf.mxu3  ;;  %v2809_v0 = vpop.f32.mrf.mxu1 }
 0x470   :  { %v13776_v32 = vadd.f32 %v2915_v9, %v2806_v51  ;;  %v2627_v44 = vmax.f32 %v18272_v29, %v2597_v56  ;;  %v13789_v47 = vpop.f32.mrf.mxu0  ;;  %v18277_v9 = vmax.f32 %v18236_v36, %v13663_v13  ;;  %v18281_v36 = vld [vmem:[#allocation36_spill] sm:$0xff] }
 0x472   :  { %2848 = vmatmul.bf16.gmra.mxu1 %v18273_v4  ;;  %v2637_v20 = vmax.f32 %v18274_v3, %v2627_v44  ;;  %9434 = vmatmul.msk.bf16.gmra.mxu2 %vm415_vm0, %v18049_v30 }
 0x473   :  { %3222 = vmatmul.bf16.gmra.mxu0 %v18261_v5  ;;  %v10832_v5 = vld [vmem:[%s17492_s0 + $0x140] sm:$0xff] }
 0x474   :  { %9373 = vmatmul.msk.bf16.gmra.mxu3 %vm415_vm0, %v18275_v61  ;;  %v2647_v21 = vadd.f32 %v2637_v20, %v12567_v12 }
 0x475   :  { %v2599_v51 = vpop.f32.mrf.mxu2 }
 0x476   :  { %v2657_v27 = vmax.f32 %v2647_v21, 0.0  ;;  %v2600_v31 = vadd.f32 %v2599_v51, %v13699_v28  ;;  %v18278_v51 = vld [vmem:[#allocation43_spill] sm:$0xff] }
 0x477   :  { %v2918_v11 = vpop.f32.mrf.mxu3  ;;  %v2811_v57 = vpop.f32.mrf.mxu1 }
 0x478   :  { %v13793_v46 = vadd.f32 %v2918_v11, %v2809_v0  ;;  %v11209_v34 = vpack.c.bf16 %v2657_v27, %v2656_v25  ;;  %v2628_v56 = vmax.f32 %v18276_v8, %v2600_v31  ;;  %v13799_v44 = vpop.f32.mrf.mxu0  ;;  %v18279_v11 = vld [vmem:[#allocation45_spill] sm:$0xff]  ;;  %v18280_v27 = vmax.f32 %v18240_v48, %v13674_v18 }
 0x47a   :  { %11481 = vst [vmem:[#allocation2 + $0x128] sm:$0xff] %v11209_v34   ;;  %v2638_v29 = vmax.f32 %v18277_v9, %v2628_v56 }
 0x47c   :  { %v2648_v25 = vadd.f32 %v2638_v29, %v12519_v37 }
 0x47d   :  { %v2601_v3 = vpop.f32.mrf.mxu2 }
 0x47e   :  { %v2602_v52 = vadd.f32 %v2601_v3, %v13714_v39  ;;  %v2658_v34 = vmax.f32 %v2648_v25, 0.0 }
 0x47f   :  { %v2920_v20 = vpop.f32.mrf.mxu3  ;;  %v2814_v21 = vpop.f32.mrf.mxu1 }
 0x480   :  { %v13802_v28 = vadd.f32 %v2920_v20, %v2811_v57  ;;  %v2629_v0 = vmax.f32 %v18278_v51, %v2602_v52  ;;  %v13815_v39 = vpop.f32.mrf.mxu0  ;;  %v18282_v52 = vmax.f32 %v18251_v43, %v13693_v16  ;;  %v18285_v43 = vld [vmem:[#allocation40_spill] sm:$0xff] }
 0x482   :  { %2853 = vmatmul.bf16.gmra.mxu1 %v18279_v11  ;;  %v2639_v13 = vmax.f32 %v18280_v27, %v2629_v0  ;;  %9435 = vmatmul.msk.bf16.gmra.mxu2 %vm415_vm0, %v18059_v1 }
 0x483   :  { %3227 = vmatmul.bf16.gmra.mxu0 %v18267_v45 }
 0x484   :  { %9374 = vmatmul.msk.bf16.gmra.mxu3 %vm415_vm0, %v18281_v36  ;;  %v2649_v31 = vadd.f32 %v2639_v13, %v12541_v42 }
 0x485   :  { %v2604_v57 = vpop.f32.mrf.mxu2 }
 0x486   :  { %v2659_v8 = vmax.f32 %v2649_v31, 0.0  ;;  %v2605_v56 = vadd.f32 %v2604_v57, %v13723_v54  ;;  %v18283_v31 = vld [vmem:[#allocation47_spill] sm:$0xff]  ;;  %v18284_v57 = vmax.f32 %v18253_v26, %v13702_v2 }
 0x487   :  { %v2923_v9 = vpop.f32.mrf.mxu3  ;;  %v2816_v18 = vpop.f32.mrf.mxu1 }
 0x488   :  { %v13819_v48 = vadd.f32 %v2923_v9, %v2814_v21  ;;  %v11214_v29 = vpack.c.bf16 %v2659_v8, %v2658_v34  ;;  %v2630_v3 = vmax.f32 %v13542_v60, %v2605_v56  ;;  %v13825_v51 = vpop.f32.mrf.mxu0 }
 0x48a   :  { %11482 = vst [vmem:[#allocation2 + $0x1d8] sm:$0xff] %v11214_v29   ;;  %v2640_v20 = vmax.f32 %v18282_v52, %v2630_v3  ;;  %v10815_v29 = vld [vmem:[%s17492_s0 + $0x138] sm:$0xff] }
 0x48b   :  { %3548 = vmatpush.bf16.msra.mxu1 %v10815_v29 }
 0x48c   :  { %v2650_v60 = vadd.f32 %v2640_v20, %v18231_v49  ;;  %v10814_v20 = vld [vmem:[%s17492_s0 + $0x130] sm:$0xff] }
 0x48d   :  { %v2606_v0 = vpop.f32.mrf.mxu2 }
 0x48e   :  { %v2607_v25 = vadd.f32 %v2606_v0, %v13738_v19  ;;  %v2660_v8 = vmax.f32 %v2650_v60, 0.0 }
 0x48f   :  { %v2925_v27 = vpop.f32.mrf.mxu3  ;;  %v2819_v13 = vpop.f32.mrf.mxu1  ;;  %3549 = vmatpush.bf16.msra.mxu1 %v10814_v20 }
 0x490   :  { %v13828_v54 = vadd.f32 %v2925_v27, %v2816_v18  ;;  %v2631_v21 = vmax.f32 %v13551_v33, %v2607_v25  ;;  %v13841_v19 = vpop.f32.mrf.mxu0 }
 0x492   :  { %2858 = vmatmul.bf16.gmra.mxu1 %v18283_v31  ;;  %v2641_v16 = vmax.f32 %v18284_v57, %v2631_v21  ;;  %9436 = vmatmul.msk.bf16.gmra.mxu2 %vm415_vm0, %v18234_v41  ;;  %v10844_v41 = vld [vmem:[%s17492_s0 + $0x160] sm:$0xff] }
 0x493   :  { %3232 = vmatmul.bf16.gmra.mxu0 %v18273_v4 }
 0x494   :  { %9375 = vmatmul.msk.bf16.gmra.mxu3 %vm415_vm0, %v18285_v43  ;;  %v2651_v33 = vadd.f32 %v2641_v16, %v18235_v17  ;;  %v10927_v17 = vld [vmem:[#allocation2 + $0x48] sm:$0xff] }
 0x495   :  { %v2609_v34 = vpop.f32.mrf.mxu2 }
 0x496   :  { %v2661_v56 = vmax.f32 %v2651_v33, 0.0  ;;  %v2610_v9 = vadd.f32 %v2609_v34, %v13747_v6  ;;  %v18286_v6 = vmax.f32 %v18258_v22, %v13717_v58  ;;  %v18287_v33 = vld [vmem:[#allocation49_spill] sm:$0xff]  ;;  %v18288_v58 = vmax.f32 %v18260_v23, %v13726_v53 }
 0x497   :  { %v2928_v18 = vpop.f32.mrf.mxu3  ;;  %v2821_v2 = vpop.f32.mrf.mxu1 }
 0x498   :  { %v13845_v26 = vadd.f32 %v2928_v18, %v2819_v13  ;;  %v11219_v3 = vpack.c.bf16 %v2661_v56, %v2660_v8  ;;  %v2632_v52 = vmax.f32 %v13568_v38, %v2610_v9  ;;  %v13857_v25 = vpop.f32.mrf.mxu0  ;;  %v10813_v38 = vld [vmem:[%s17492_s0 + $0x128] sm:$0xff]  ;;  %v18290_v8 = vld [vmem:[#allocation42_spill] sm:$0xff]  ;;  %v18291_v9 = vld [vmem:[#allocation51_spill] sm:$0xff] }
 0x499   :  { %3550 = vmatpush.bf16.msra.mxu1 %v10813_v38 }
 0x49a   :  { %11483 = vst [vmem:[#allocation2 + $0x8] sm:$0xff] %v11219_v3   ;;  %v2642_v0 = vmax.f32 %v18286_v6, %v2632_v52  ;;  %v10811_v6 = vld [vmem:[%s17492_s0 + $0x118] sm:$0xff] }
 0x49c   :  { %v2652_v22 = vadd.f32 %v2642_v0, %v18244_v59 }
 0x49d   :  { %v2611_v27 = vpop.f32.mrf.mxu2 }
 0x49e   :  { %v2612_v13 = vadd.f32 %v2611_v27, %v13763_v62  ;;  %v18289_v62 = vld [vmem:[#allocation20_spill] sm:$0xff]  ;;  %v2662_v53 = vmax.f32 %v2652_v22, 0.0  ;;  %v10809_v22 = vld [vmem:[%s17492_s0 + $0x108] sm:$0xff] }
 0x49f   :  { %v2930_v21 = vpop.f32.mrf.mxu3  ;;  %v2824_v60 = vpop.f32.mrf.mxu1 }
 0x4a0   :  { %v13860_v57 = vadd.f32 %v2930_v21, %v2821_v2  ;;  %v2633_v16 = vmax.f32 %v13583_v7, %v2612_v13  ;;  %v13876_v56 = vpop.f32.mrf.mxu0  ;;  %v10812_v7 = vld [vmem:[%s17492_s0 + $0x120] sm:$0xff]  ;;  %v10810_v13 = vld [vmem:[%s17492_s0 + $0x110] sm:$0xff] }
 0x4a1   :  { %3551 = vmatpush.bf16.msra.mxu1 %v10812_v7  ;;  %v18294_v7 = vld [vmem:[#allocation46_spill] sm:$0xff] }
 0x4a2   :  { %2863 = vmatmul.bf16.gmra.mxu1 %v18287_v33  ;;  %v2643_v34 = vmax.f32 %v18288_v58, %v2633_v16  ;;  %9437 = vmatmul.msk.bf16.gmra.mxu2 %vm415_vm0, %v18289_v62  ;;  %v18292_v58 = vld [vmem:[#allocation54_spill] sm:$0xff] }
 0x4a3   :  { %3237 = vmatmul.bf16.gmra.mxu0 %v18279_v11 }
 0x4a4   :  { %9376 = vmatmul.msk.bf16.gmra.mxu3 %vm415_vm0, %v18290_v8  ;;  %v2653_v18 = vadd.f32 %v2643_v34, %v18291_v9  ;;  %v18293_v34 = vld [vmem:[#allocation22_spill] sm:$0xff] }
 0x4a5   :  { %v3282_v2 = vpop.f32.mrf.mxu2  ;;  %3552 = vmatpush.bf16.msra.mxu1 %v10811_v6 }
 0x4a6   :  { %v2663_v23 = vmax.f32 %v2653_v18, 0.0  ;;  %v13883_v3 = vadd.f32 %v3282_v2, %v13773_v24  ;;  %v10808_v18 = vld [vmem:[%s17492_s0 + $0x100] sm:$0xff]  ;;  %v10839_v2 = vld [vmem:[%s17492_s0 + $0x178] sm:$0xff] }
 0x4a7   :  { %v2933_v29 = vpop.f32.mrf.mxu3  ;;  %v2826_v52 = vpop.f32.mrf.mxu1 }
 0x4a8   :  { %v13885_v20 = vadd.f32 %v2933_v29, %v2824_v60  ;;  %v11224_v0 = vpack.c.bf16 %v2663_v23, %v2662_v53  ;;  %v13890_v27 = vpop.f32.mrf.mxu0 }
 0x4a9   :  { %3553 = vmatpush.bf16.msra.mxu1 %v10810_v13  ;;  %v10827_v13 = vld [vmem:[%s17492_s0 + $0x158] sm:$0xff] }
 0x4aa   :  { %11484 = vst [vmem:[#allocation2 + $0x170] sm:$0xff] %v11224_v0   ;;  %v10819_v0 = vld [vmem:[%s17492_s0 + $0x158] sm:$0xff]  ;;  %3932 = vmatpush.bf16.msra.mxu0 %v10827_v13  ;;  %v10817_v13 = vld [vmem:[%s17492_s0 + $0x148] sm:$0xff] }
 0x4ab   :  { %3661 = vmatpush.bf16.msra.mxu3 %v10819_v0 }
 0x4ad   :  { %v3284_v21 = vpop.f32.mrf.mxu2  ;;  %3554 = vmatpush.bf16.msra.mxu1 %v10809_v22  ;;  %v10837_v22 = vld [vmem:[%s17492_s0 + $0x168] sm:$0xff] }
 0x4ae   :  { %v13896_v38 = vadd.f32 %v3284_v21, %v13789_v47  ;;  %v10838_v21 = vld [vmem:[%s17492_s0 + $0x170] sm:$0xff] }
 0x4af   :  { %v2935_v24 = vpop.f32.mrf.mxu3  ;;  %v2829_v60 = vpop.f32.mrf.mxu1 }
 0x4b0   :  { %v13898_v16 = vadd.f32 %v2935_v24, %v2826_v52  ;;  %v13909_v47 = vpop.f32.mrf.mxu0  ;;  %v10826_v24 = vld [vmem:[%s17492_s0 + $0x150] sm:$0xff] }
 0x4b1   :  { %3555 = vmatpush.bf16.msra.mxu1 %v10808_v18  ;;  %3933 = vmatpush.bf16.msra.mxu0 %v10826_v24  ;;  %v18298_v24 = vld [vmem:[#allocation59_spill] sm:$0xff] }
 0x4b2   :  { %2868 = vmatmul.bf16.gmra.mxu1 %v18292_v58  ;;  %9438 = vmatmul.msk.bf16.gmra.mxu2 %vm415_vm0, %v18293_v34  ;;  %v10840_v34 = vld [vmem:[%s17492_s0 + $0x180] sm:$0xff] }
 0x4b3   :  { %3242 = vmatmul.bf16.gmra.mxu0 %v18283_v31 }
 0x4b4   :  { %9377 = vmatmul.msk.bf16.gmra.mxu3 %vm415_vm0, %v18294_v7 }
 0x4b5   :  { %v3287_v53 = vpop.f32.mrf.mxu2  ;;  %4316 = vmatpush.bf16.msrb.mxu1 %v10839_v2 }
 0x4b6   :  { %v13918_v29 = vadd.f32 %v3287_v53, %v13799_v44  ;;  %v10818_v44 = vld [vmem:[%s17492_s0 + $0x150] sm:$0xff] }
 0x4b7   :  { %v2938_v23 = vpop.f32.mrf.mxu3  ;;  %v2831_v52 = vpop.f32.mrf.mxu1  ;;  %3662 = vmatpush.bf16.msra.mxu3 %v10818_v44  ;;  %v10836_v44 = vld [vmem:[%s17492_s0 + $0x160] sm:$0xff] }
 0x4b8   :  { %v13920_v6 = vadd.f32 %v2938_v23, %v2829_v60  ;;  %v13937_v60 = vpop.f32.mrf.mxu0 }
 0x4b9   :  { %4317 = vmatpush.bf16.msrb.mxu1 %v10838_v21  ;;  %v10825_v21 = vld [vmem:[%s17492_s0 + $0x148] sm:$0xff] }
 0x4ba   :  { %18295 = vst [vmem:[#allocation44_spill] sm:$0xff] %v13920_v6  ;;  %3934 = vmatpush.bf16.msra.mxu0 %v10825_v21 }
 0x4bb   :  { %3663 = vmatpush.bf16.msra.mxu3 %v10817_v13  ;;  %v10835_v13 = vld [vmem:[%s17492_s0 + $0x158] sm:$0xff] }
 0x4bd   :  { %v3289_v18 = vpop.f32.mrf.mxu2  ;;  %4318 = vmatpush.bf16.msrb.mxu1 %v10837_v22  ;;  %v10816_v22 = vld [vmem:[%s17492_s0 + $0x140] sm:$0xff] }
 0x4be   :  { %v13943_v53 = vadd.f32 %v3289_v18, %v13815_v39  ;;  %v18299_v39 = vld [vmem:[#allocation24_spill] sm:$0xff] }
 0x4bf   :  { %v2940_v2 = vpop.f32.mrf.mxu3  ;;  %v2834_v23 = vpop.f32.mrf.mxu1  ;;  %3664 = vmatpush.bf16.msra.mxu3 %v10816_v22  ;;  %v10842_v22 = vld [vmem:[%s17492_s0 + $0x190] sm:$0xff] }
 0x4c0   :  { %18296 = vst [vmem:[#allocation75_spill] sm:$0xff] %v13943_v53  ;;  %v13945_v0 = vadd.f32 %v2940_v2, %v2831_v52  ;;  %v18300_v52 = vld [vmem:[#allocation48_spill] sm:$0xff]  ;;  %v13962_v18 = vpop.f32.mrf.mxu0 }
 0x4c1   :  { %v10824_v2 = vld [vmem:[%s17492_s0 + $0x140] sm:$0xff]  ;;  %4319 = vmatpush.bf16.msrb.mxu1 %v10836_v44  ;;  %v10823_v44 = vld [vmem:[%s17492_s0 + $0x138] sm:$0xff] }
 0x4c2   :  { %18297 = vst [vmem:[#allocation12_spill] sm:$0xff] %v13945_v0  ;;  %2873 = vmatmul.bf16.gmra.mxu1 %v18298_v24  ;;  %9439 = vmatmul.msk.bf16.gmra.mxu2 %vm415_vm0, %v18299_v39  ;;  %v10834_v39 = vld [vmem:[%s17492_s0 + $0x150] sm:$0xff] }
 0x4c3   :  { %3247 = vmatmul.bf16.gmra.mxu0 %v18287_v33  ;;  %v10843_v33 = vld [vmem:[%s17492_s0 + $0x198] sm:$0xff]  ;;  %v10924_v0 = vld [vmem:[#allocation2 + $0x50] sm:$0xff] }
 0x4c4   :  { %9378 = vmatmul.msk.bf16.gmra.mxu3 %vm415_vm0, %v18300_v52  ;;  %3935 = vmatpush.bf16.msra.mxu0 %v10824_v2 }
 0x4c5   :  { %v3292_v21 = vpop.f32.mrf.mxu2  ;;  %4429 = vmatpush.bf16.msrb.mxu3 %v10843_v33  ;;  %4320 = vmatpush.bf16.msrb.mxu1 %v10835_v13  ;;  %v10833_v33 = vld [vmem:[%s17492_s0 + $0x148] sm:$0xff] }
 0x4c6   :  { %v13977_v11 = vadd.f32 %v3292_v21, %v13825_v51 }
 0x4c7   :  { %v2943_v31 = vpop.f32.mrf.mxu3  ;;  %v2836_v4 = vpop.f32.mrf.mxu1 }
 0x4c8   :  { %18301 = vst [vmem:[#allocation25_spill] sm:$0xff] %v13977_v11  ;;  %v13979_v45 = vadd.f32 %v2943_v31, %v2834_v23  ;;  %3936 = vmatpush.bf16.msra.mxu0 %v10823_v44  ;;  %v13990_v51 = vpop.f32.mrf.mxu0  ;;  %v10822_v31 = vld [vmem:[%s17492_s0 + $0x130] sm:$0xff]  ;;  %v10841_v23 = vld [vmem:[%s17492_s0 + $0x188] sm:$0xff]  ;;  %v18317_v11 = vld [vmem:[#allocation8_spill] sm:$0xff] }
 0x4c9   :  { %4430 = vmatpush.bf16.msrb.mxu3 %v10842_v22  ;;  %4321 = vmatpush.bf16.msrb.mxu1 %v10834_v39  ;;  %v10821_v39 = vld [vmem:[%s17492_s0 + $0x128] sm:$0xff] }
 0x4ca   :  { %18302 = vst [vmem:[#allocation55_spill] sm:$0xff] %v13979_v45  ;;  %v10831_v45 = vld [vmem:[%s17492_s0 + $0x178] sm:$0xff] }
 0x4cb   :  { %4045 = vmatpush.bf16.msrb.mxu2 %v10831_v45  ;;  %v18318_v45 = vld [vmem:[#allocation4_spill] sm:$0xff] }
 0x4cc   :  { %3937 = vmatpush.bf16.msra.mxu0 %v10822_v31 }
 0x4cd   :  { %v3294_v2 = vpop.f32.mrf.mxu2  ;;  %4431 = vmatpush.bf16.msrb.mxu3 %v10841_v23  ;;  %4322 = vmatpush.bf16.msrb.mxu1 %v10833_v33  ;;  %v10820_v33 = vld [vmem:[%s17492_s0 + $0x120] sm:$0xff] }
 0x4ce   :  { %v14002_v21 = vadd.f32 %v3294_v2, %v13841_v19  ;;  %v18305_v19 = vld [vmem:[#allocation64_spill] sm:$0xff]  ;;  %v10851_v2 = vld [vmem:[%s17492_s0 + $0x198] sm:$0xff] }
 0x4cf   :  { %v2945_v13 = vpop.f32.mrf.mxu3  ;;  %v2839_v44 = vpop.f32.mrf.mxu1 }
 0x4d0   :  { %18303 = vst [vmem:[#allocation66_spill] sm:$0xff] %v14002_v21  ;;  %v14004_v22 = vadd.f32 %v2945_v13, %v2836_v4  ;;  %v18306_v4 = vld [vmem:[#allocation5_spill] sm:$0xff]  ;;  %3938 = vmatpush.bf16.msra.mxu0 %v10821_v39  ;;  %v14021_v31 = vpop.f32.mrf.mxu0  ;;  %v10850_v39 = vld [vmem:[%s17492_s0 + $0x190] sm:$0xff] }
 0x4d1   :  { %4323 = vmatpush.bf16.msrb.mxu1 %v10832_v5  ;;  %4432 = vmatpush.bf16.msrb.mxu3 %v10840_v34  ;;  %v18308_v5 = vld [vmem:[#allocation61_spill] sm:$0xff] }
 0x4d2   :  { %18304 = vst [vmem:[#allocation14_spill] sm:$0xff] %v14004_v22  ;;  %2878 = vmatmul.bf16.gmra.mxu1 %v18305_v19  ;;  %9440 = vmatmul.msk.bf16.gmra.mxu2 %vm415_vm0, %v18269_v40 }
 0x4d3   :  { %3252 = vmatmul.bf16.gmra.mxu0 %v18292_v58 }
 0x4d4   :  { %9379 = vmatmul.msk.bf16.gmra.mxu3 %vm415_vm0, %v18306_v4  ;;  %3939 = vmatpush.bf16.msra.mxu0 %v10820_v33 }
 0x4d5   :  { %v3297_v23 = vpop.f32.mrf.mxu2 }
 0x4d6   :  { %v14030_v58 = vadd.f32 %v3297_v23, %v13857_v25  ;;  %v10849_v25 = vld [vmem:[%s17492_s0 + $0x188] sm:$0xff] }
 0x4d7   :  { %v2948_v13 = vpop.f32.mrf.mxu3  ;;  %v2841_v40 = vpop.f32.mrf.mxu1 }
 0x4d8   :  { %18307 = vst [vmem:[#allocation33_spill] sm:$0xff] %v14030_v58  ;;  %v14032_v9 = vadd.f32 %v2948_v13, %v2839_v44  ;;  %4700 = vmatpush.bf16.msrb.mxu0 %v10851_v2  ;;  %v14039_v62 = vpop.f32.mrf.mxu0  ;;  %v18310_v13 = vld [vmem:[#allocation30_spill] sm:$0xff]  ;;  %v18311_v58 = vld [vmem:[#allocation67_spill] sm:$0xff] }
 0x4dc   :  { %4701 = vmatpush.bf16.msrb.mxu0 %v10850_v39  ;;  %v10848_v39 = vld [vmem:[%s17492_s0 + $0x180] sm:$0xff] }
 0x4dd   :  { %v3299_v59 = vpop.f32.mrf.mxu2 }
 0x4de   :  { %v14045_v44 = vadd.f32 %v3299_v59, %v13876_v56  ;;  %v18312_v59 = vld [vmem:[#allocation9_spill] sm:$0xff] }
 0x4df   :  { %v2950_v23 = vpop.f32.mrf.mxu3  ;;  %v2844_v33 = vpop.f32.mrf.mxu1 }
 0x4e0   :  { %18309 = vst [vmem:[#allocation68_spill] sm:$0xff] %v14045_v44  ;;  %v14047_v2 = vadd.f32 %v2950_v23, %v2841_v40  ;;  %4702 = vmatpush.bf16.msrb.mxu0 %v10849_v25  ;;  %v14060_v40 = vpop.f32.mrf.mxu0  ;;  %v10847_v25 = vld [vmem:[%s17492_s0 + $0x178] sm:$0xff] }
 0x4e2   :  { %2883 = vmatmul.bf16.gmra.mxu1 %v18311_v58  ;;  %9441 = vmatmul.msk.bf16.gmra.mxu2 %vm415_vm0, %v18275_v61  ;;  %v18314_v61 = vld [vmem:[#allocation62_spill] sm:$0xff] }
 0x4e3   :  { %3257 = vmatmul.bf16.gmra.mxu0 %v18298_v24 }
 0x4e4   :  { %9380 = vmatmul.msk.bf16.gmra.mxu3 %vm415_vm0, %v18312_v59  ;;  %4703 = vmatpush.bf16.msrb.mxu0 %v10848_v39  ;;  %v10846_v39 = vld [vmem:[%s17492_s0 + $0x170] sm:$0xff] }
 0x4e5   :  { %v3302_v56 = vpop.f32.mrf.mxu2 }
 0x4e6   :  { %v14066_v34 = vadd.f32 %v3302_v56, %v13890_v27 }
 0x4e7   :  { %v2953_v23 = vpop.f32.mrf.mxu3  ;;  %v2846_v44 = vpop.f32.mrf.mxu1 }
 0x4e8   :  { %18313 = vst [vmem:[#allocation76_spill] sm:$0xff] %v14066_v34  ;;  %v14068_v24 = vadd.f32 %v2953_v23, %v2844_v33  ;;  %4704 = vmatpush.bf16.msrb.mxu0 %v10847_v25  ;;  %v14075_v21 = vpop.f32.mrf.mxu0  ;;  %v10845_v33 = vld [vmem:[%s17492_s0 + $0x168] sm:$0xff] }
 0x4ec   :  { %4705 = vmatpush.bf16.msrb.mxu0 %v10846_v39  ;;  %v18316_v39 = vld [vmem:[#allocation63_spill] sm:$0xff] }
 0x4ed   :  { %v3304_v27 = vpop.f32.mrf.mxu2 }
 0x4ee   :  { %v14084_v25 = vadd.f32 %v3304_v27, %v13909_v47  ;;  %v10935_v47 = vld [vmem:[#allocation2 + $0x60] sm:$0xff] }
 0x4ef   :  { %v2955_v56 = vpop.f32.mrf.mxu3  ;;  %v2849_v23 = vpop.f32.mrf.mxu1 }
 0x4f0   :  { %18315 = vst [vmem:[#allocation53_spill] sm:$0xff] %v14084_v25  ;;  %v14086_v22 = vadd.f32 %v2955_v56, %v2846_v44  ;;  %4706 = vmatpush.bf16.msrb.mxu0 %v10845_v33  ;;  %v14099_v44 = vpop.f32.mrf.mxu0  ;;  %v10926_v33 = vld [vmem:[#allocation2 + $0x130] sm:$0xff]  ;;  %v10934_v25 = vld [vmem:[#allocation2 + $0x108] sm:$0xff] }
 0x4f2   :  { %3556 = vmatmul.bf16.vlgmr.msra.gmra.mxu1 %v18317_v11  ;;  %9442 = vmatmul.msk.bf16.gmra.mxu2 %vm415_vm0, %v18281_v36 }
 0x4f3   :  { %3262 = vmatmul.bf16.gmra.mxu0 %v18305_v19  ;;  %5693 = vmatpush.bf16.msra.mxu1 %v10927_v17  ;;  %v10925_v17 = vld [vmem:[#allocation2 + $0x168] sm:$0xff] }
 0x4f4   :  { %9497 = vmatmul.msk.bf16.vlgmr.msra.gmra.mxu3 %vm415_vm0, %v18318_v45  ;;  %4707 = vmatpush.bf16.msrb.mxu0 %v10844_v41  ;;  %v10933_v45 = vld [vmem:[#allocation2 + $0x150] sm:$0xff] }
 0x4f5   :  { %5782 = vmatpush.bf16.msra.mxu3 %v10935_v47  ;;  %v3307_v27 = vpop.f32.mrf.mxu2 }
 0x4f6   :  { %v14102_v34 = vadd.f32 %v3307_v27, %v13937_v60  ;;  %v10932_v27 = vld [vmem:[#allocation2 + $0x120] sm:$0xff] }
 0x4f7   :  { %v2958_v56 = vpop.f32.mrf.mxu3  ;;  %v2851_v19 = vpop.f32.mrf.mxu1  ;;  %5694 = vmatpush.bf16.msra.mxu1 %v10926_v33  ;;  %v18321_v33 = vld [vmem:[#allocation11_spill] sm:$0xff] }
 0x4f8   :  { %18319 = vst [vmem:[#allocation69_spill] sm:$0xff] %v14102_v34  ;;  %v14104_v49 = vadd.f32 %v2958_v56, %v2849_v23  ;;  %v14108_v47 = vpop.f32.mrf.mxu0 }
 0x4f9   :  { %5783 = vmatpush.bf16.msra.mxu3 %v10934_v25  ;;  %v10930_v25 = vld [vmem:[#allocation2 + $0x118] sm:$0xff] }
 0x4fb   :  { %5695 = vmatpush.bf16.msra.mxu1 %v10925_v17  ;;  %v10923_v17 = vld [vmem:[#allocation2 + $0x18] sm:$0xff] }
 0x4fd   :  { %5784 = vmatpush.bf16.msra.mxu3 %v10933_v45  ;;  %v3309_v41 = vpop.f32.mrf.mxu2  ;;  %v10931_v45 = vld [vmem:[#allocation2 + $0x98] sm:$0xff] }
 0x4fe   :  { %v14111_v60 = vadd.f32 %v3309_v41, %v13962_v18  ;;  %v18322_v18 = vld [vmem:[#allocation7_spill] sm:$0xff] }
 0x4ff   :  { %v2960_v53 = vpop.f32.mrf.mxu3  ;;  %v2854_v23 = vpop.f32.mrf.mxu1  ;;  %5696 = vmatpush.bf16.msra.mxu1 %v10924_v0 }
 0x500   :  { %18320 = vst [vmem:[#allocation16_spill] sm:$0xff] %v14111_v60  ;;  %v14113_v56 = vadd.f32 %v2960_v53, %v2851_v19  ;;  %v14123_v53 = vpop.f32.mrf.mxu0  ;;  %v10922_v19 = vld [vmem:[#allocation2 + $0xd8] sm:$0xff]  ;;  %v10921_v60 = vld [vmem:[#allocation2 + $0x1b0] sm:$0xff] }
 0x501   :  { %5785 = vmatpush.bf16.msra.mxu3 %v10932_v27 }
 0x502   :  { %3561 = vmatmul.bf16.gmra.mxu1 %v18321_v33  ;;  %9443 = vmatmul.msk.bf16.gmra.mxu2 %vm415_vm0, %v18285_v43 }
 0x503   :  { %3267 = vmatmul.bf16.gmra.mxu0 %v18311_v58  ;;  %5697 = vmatpush.bf16.msra.mxu1 %v10923_v17  ;;  %v10929_v17 = vld [vmem:[#allocation2 + $0x110] sm:$0xff] }
 0x504   :  { %9498 = vmatmul.msk.bf16.gmra.mxu3 %vm415_vm0, %v18322_v18  ;;  %v10920_v18 = vld [vmem:[#allocation2 + $0xb0] sm:$0xff] }
 0x505   :  { %5786 = vmatpush.bf16.msra.mxu3 %v10931_v45  ;;  %v3312_v0 = vpop.f32.mrf.mxu2 }
 0x506   :  { %v14126_v27 = vadd.f32 %v3312_v0, %v13990_v51  ;;  %v10928_v0 = vld [vmem:[#allocation2 + $0x180] sm:$0xff] }
 0x507   :  { %v2963_v41 = vpop.f32.mrf.mxu3  ;;  %v2856_v36 = vpop.f32.mrf.mxu1  ;;  %5698 = vmatpush.bf16.msra.mxu1 %v10922_v19  ;;  %v18326_v19 = vld [vmem:[#allocation13_spill] sm:$0xff] }
 0x508   :  { %18323 = vst [vmem:[#allocation60_spill] sm:$0xff] %v14126_v27  ;;  %v14128_v58 = vadd.f32 %v2963_v41, %v2854_v23  ;;  %v14132_v45 = vpop.f32.mrf.mxu0 }
 0x509   :  { %5787 = vmatpush.bf16.msra.mxu3 %v10930_v25 }
 0x50b   :  { %5699 = vmatpush.bf16.msra.mxu1 %v10921_v60  ;;  %v10943_v60 = vld [vmem:[#allocation2 + $0x28] sm:$0xff] }
 0x50d   :  { %5788 = vmatpush.bf16.msra.mxu3 %v10929_v17  ;;  %v3314_v34 = vpop.f32.mrf.mxu2  ;;  %v18327_v17 = vld [vmem:[#allocation6_spill] sm:$0xff] }
 0x50e   :  { %v14135_v51 = vadd.f32 %v3314_v34, %v14021_v31 }
 0x50f   :  { %v2965_v6 = vpop.f32.mrf.mxu3  ;;  %v2859_v23 = vpop.f32.mrf.mxu1  ;;  %5700 = vmatpush.bf16.msra.mxu1 %v10920_v18 }
 0x510   :  { %18324 = vst [vmem:[#allocation37_spill] sm:$0xff] %v14135_v51  ;;  %v14137_v41 = vadd.f32 %v2965_v6, %v2856_v36  ;;  %v14147_v31 = vpop.f32.mrf.mxu0  ;;  %v10942_v6 = vld [vmem:[#allocation2 + $0x1b8] sm:$0xff]  ;;  %v10940_v51 = vld [vmem:[#allocation2 + $0x80] sm:$0xff] }
 0x511   :  { %5789 = vmatpush.bf16.msra.mxu3 %v10928_v0 }
 0x512   :  { %18325 = vst [vmem:[#allocation70_spill] sm:$0xff] %v14137_v41  ;;  %3566 = vmatmul.bf16.gmra.mxu1 %v18326_v19  ;;  %9444 = vmatmul.msk.bf16.gmra.mxu2 %vm415_vm0, %v18290_v8 }
 0x513   :  { %3940 = vmatmul.bf16.vlgmr.msra.gmra.mxu0 %v18317_v11  ;;  %v10941_v11 = vld [vmem:[#allocation2 + $0x1a8] sm:$0xff] }
 0x514   :  { %9499 = vmatmul.msk.bf16.gmra.mxu3 %vm415_vm0, %v18327_v17  ;;  %5871 = vmatpush.bf16.msra.mxu0 %v10943_v60 }
 0x515   :  { %v3317_v36 = vpop.f32.mrf.mxu2 }
 0x516   :  { %v14150_v18 = vadd.f32 %v3317_v36, %v14039_v62  ;;  %v18330_v36 = vld [vmem:[#allocation15_spill] sm:$0xff] }
 0x517   :  { %v2968_v34 = vpop.f32.mrf.mxu3  ;;  %v2861_v0 = vpop.f32.mrf.mxu1 }
 0x518   :  { %18328 = vst [vmem:[#allocation34_spill] sm:$0xff] %v14150_v18  ;;  %v14152_v25 = vadd.f32 %v2968_v34, %v2859_v23  ;;  %5872 = vmatpush.bf16.msra.mxu0 %v10942_v6  ;;  %v14156_v8 = vpop.f32.mrf.mxu0  ;;  %v10939_v6 = vld [vmem:[#allocation2 + $0x140] sm:$0xff]  ;;  %v10938_v34 = vld [vmem:[#allocation2 + $0x138] sm:$0xff]  ;;  %v10830_v18 = vld [vmem:[%s17492_s0 + $0x170] sm:$0xff] }
 0x519   :  { %4046 = vmatpush.bf16.msrb.mxu2 %v10830_v18 }
 0x51c   :  { %5873 = vmatpush.bf16.msra.mxu0 %v10941_v11  ;;  %v18331_v11 = vld [vmem:[#allocation10_spill] sm:$0xff] }
 0x51d   :  { %v3319_v60 = vpop.f32.mrf.mxu2 }
 0x51e   :  { %v14159_v17 = vadd.f32 %v3319_v60, %v14060_v40 }
 0x51f   :  { %v2970_v27 = vpop.f32.mrf.mxu3  ;;  %v2864_v41 = vpop.f32.mrf.mxu1 }
 0x520   :  { %18329 = vst [vmem:[#allocation73_spill] sm:$0xff] %v14159_v17  ;;  %v14161_v62 = vadd.f32 %v2970_v27, %v2861_v0  ;;  %5874 = vmatpush.bf16.msra.mxu0 %v10940_v51  ;;  %v14171_v40 = vpop.f32.mrf.mxu0 }
 0x522   :  { %3571 = vmatmul.bf16.gmra.mxu1 %v18330_v36  ;;  %9445 = vmatmul.msk.bf16.gmra.mxu2 %vm415_vm0, %v18294_v7  ;;  %v10937_v7 = vld [vmem:[#allocation2 + $0x188] sm:$0xff] }
 0x523   :  { %3945 = vmatmul.bf16.gmra.mxu0 %v18321_v33  ;;  %v18332_v33 = vmax.f32 %v18308_v5, %v14032_v9 }
 0x524   :  { %9500 = vmatmul.msk.bf16.gmra.mxu3 %vm415_vm0, %v18331_v11  ;;  %5875 = vmatpush.bf16.msra.mxu0 %v10939_v6 }
 0x525   :  { %v3322_v27 = vpop.f32.mrf.mxu2 }
 0x526   :  { %v14174_v0 = vadd.f32 %v3322_v27, %v14075_v21  ;;  %v10936_v21 = vld [vmem:[#allocation2 + $0xe0] sm:$0xff] }
 0x527   :  { %v2973_v51 = vpop.f32.mrf.mxu3  ;;  %v2866_v60 = vpop.f32.mrf.mxu1 }
 0x528   :  { %v2974_v23 = vadd.f32 %v2973_v51, %v2864_v41  ;;  %5876 = vmatpush.bf16.msra.mxu0 %v10938_v34  ;;  %v14180_v6 = vpop.f32.mrf.mxu0 }
 0x52a   :  { %v3008_v43 = vmax.f32 %v13819_v48, %v2974_v23 }
 0x52c   :  { %v3018_v17 = vmax.f32 %v18332_v33, %v3008_v43  ;;  %5877 = vmatpush.bf16.msra.mxu0 %v10937_v7  ;;  %v10829_v43 = vld [vmem:[%s17492_s0 + $0x168] sm:$0xff] }
 0x52d   :  { %v3324_v11 = vpop.f32.mrf.mxu2  ;;  %v18333_v7 = vld [vmem:[#allocation17_spill] sm:$0xff]  ;;  %4047 = vmatpush.bf16.msrb.mxu2 %v10829_v43 }
 0x52e   :  { %v14186_v41 = vadd.f32 %v3324_v11, %v14099_v44  ;;  %v3028_v5 = vadd.f32 %v3018_v17, %v12501_v50  ;;  %v18334_v44 = vmax.f32 %v18310_v13, %v14047_v2  ;;  %v10855_v17 = vld [vmem:[%s17492_s0 + $0x1b8] sm:$0xff] }
 0x52f   :  { %v2975_v27 = vpop.f32.mrf.mxu3  ;;  %v2869_v34 = vpop.f32.mrf.mxu1 }
 0x530   :  { %v2976_v48 = vadd.f32 %v2975_v27, %v2866_v60  ;;  %5878 = vmatpush.bf16.msra.mxu0 %v10936_v21  ;;  %v14202_v18 = vpop.f32.mrf.mxu0  ;;  %v3038_v60 = vmax.f32 %v3028_v5, 0.0 }
 0x532   :  { %v3009_v9 = vmax.f32 %v13828_v54, %v2976_v48  ;;  %3576 = vmatmul.bf16.gmra.mxu1 %v18333_v7  ;;  %9446 = vmatmul.msk.bf16.gmra.mxu2 %vm415_vm0, %v18300_v52  ;;  %v10828_v54 = vld [vmem:[%s17492_s0 + $0x160] sm:$0xff] }
 0x533   :  { %3950 = vmatmul.bf16.gmra.mxu0 %v18326_v19  ;;  %4048 = vmatpush.bf16.msrb.mxu2 %v10828_v54 }
 0x534   :  { %v3019_v33 = vmax.f32 %v18334_v44, %v3009_v9  ;;  %9501 = vmatmul.msk.bf16.gmra.mxu3 %vm415_vm0, %v18042_v55  ;;  %v10854_v9 = vld [vmem:[%s17492_s0 + $0x1b0] sm:$0xff]  ;;  %v18335_v44 = vmax.f32 %v18314_v61, %v14068_v24  ;;  %v10852_v61 = vld [vmem:[%s17492_s0 + $0x1a0] sm:$0xff] }
 0x535   :  { %v3327_v11 = vpop.f32.mrf.mxu2 }
 0x536   :  { %v3029_v23 = vadd.f32 %v3019_v33, %v18221_v63  ;;  %v14212_v2 = vadd.f32 %v3327_v11, %v14108_v47 }
 0x537   :  { %v2978_v51 = vpop.f32.mrf.mxu3  ;;  %v2871_v13 = vpop.f32.mrf.mxu1  ;;  %4813 = vmatpush.bf16.msra.mxu2 %v10855_v17 }
 0x538   :  { %v3039_v21 = vmax.f32 %v3029_v23, 0.0  ;;  %v2979_v27 = vadd.f32 %v2978_v51, %v2869_v34  ;;  %v14221_v47 = vpop.f32.mrf.mxu0  ;;  %v10853_v34 = vld [vmem:[%s17492_s0 + $0x1a8] sm:$0xff]  ;;  %v18336_v51 = vld [vmem:[#allocation19_spill] sm:$0xff] }
 0x53a   :  { %v11229_v48 = vpack.c.bf16 %v3039_v21, %v3038_v60  ;;  %v3010_v43 = vmax.f32 %v13845_v26, %v2979_v27 }
 0x53b   :  { %4814 = vmatpush.bf16.msra.mxu2 %v10854_v9 }
 0x53c   :  { %11485 = vst [vmem:[#allocation2 + $0xc0] sm:$0xff] %v11229_v48   ;;  %v3020_v33 = vmax.f32 %v18335_v44, %v3010_v43 }
 0x53d   :  { %v3329_v5 = vpop.f32.mrf.mxu2 }
 0x53e   :  { %v14227_v26 = vadd.f32 %v3329_v5, %v14123_v53  ;;  %v3030_v24 = vadd.f32 %v3020_v33, %v12564_v35  ;;  %v18337_v53 = vmax.f32 %v18316_v39, %v14086_v22  ;;  %v10947_v22 = vld [vmem:[#allocation2 + $0x1d8] sm:$0xff] }
 0x53f   :  { %v2980_v54 = vpop.f32.mrf.mxu3  ;;  %v2874_v23 = vpop.f32.mrf.mxu1  ;;  %4815 = vmatpush.bf16.msra.mxu2 %v10853_v34  ;;  %v18338_v34 = vmax.f32 %v13741_v14, %v14104_v49  ;;  %v18340_v49 = vmax.f32 %v13750_v15, %v14113_v56 }
 0x540   :  { %v2981_v11 = vadd.f32 %v2980_v54, %v2871_v13  ;;  %v3040_v9 = vmax.f32 %v3030_v24, 0.0 }
 0x542   :  { %v3011_v17 = vmax.f32 %v13860_v57, %v2981_v11  ;;  %3581 = vmatmul.bf16.gmra.mxu1 %v18336_v51  ;;  %9447 = vmatmul.msk.bf16.gmra.mxu2 %vm415_vm0, %v18306_v4  ;;  %v14243_v57 = vpop.f32.mrf.mxu0 }
 0x543   :  { %3955 = vmatmul.bf16.gmra.mxu0 %v18330_v36  ;;  %4816 = vmatpush.bf16.msra.mxu2 %v10852_v61 }
 0x544   :  { %v3021_v13 = vmax.f32 %v18337_v53, %v3011_v17  ;;  %9502 = vmatmul.msk.bf16.gmra.mxu3 %vm415_vm0, %v18049_v30 }
 0x545   :  { %v3332_v21 = vpop.f32.mrf.mxu2 }
 0x546   :  { %v3031_v60 = vadd.f32 %v3021_v13, %v12567_v12  ;;  %v14247_v48 = vadd.f32 %v3332_v21, %v14132_v45 }
 0x547   :  { %v2983_v27 = vpop.f32.mrf.mxu3  ;;  %v2876_v43 = vpop.f32.mrf.mxu1 }
 0x548   :  { %v3041_v44 = vmax.f32 %v3031_v60, 0.0  ;;  %v2984_v33 = vadd.f32 %v2983_v27, %v2874_v23 }
 0x54a   :  { %v11234_v39 = vpack.c.bf16 %v3041_v44, %v3040_v9  ;;  %v3012_v5 = vmax.f32 %v13885_v20, %v2984_v33  ;;  %v14255_v11 = vpop.f32.mrf.mxu0  ;;  %v18339_v20 = vld [vmem:[#allocation21_spill] sm:$0xff] }
 0x54c   :  { %11486 = vst [vmem:[#allocation2 + $0xa0] sm:$0xff] %v11234_v39   ;;  %v3022_v54 = vmax.f32 %v18338_v34, %v3012_v5  ;;  %v18341_v5 = vld [vmem:[#allocation44_spill] sm:$0xff] }
 0x54d   :  { %v3334_v17 = vpop.f32.mrf.mxu2 }
 0x54e   :  { %v14258_v61 = vadd.f32 %v3334_v17, %v14147_v31  ;;  %v3032_v14 = vadd.f32 %v3022_v54, %v12519_v37  ;;  %v18342_v54 = vmax.f32 %v13767_v10, %v14128_v58  ;;  %v18346_v10 = vld [vmem:[#allocation4_spill] sm:$0xff]  ;;  %v18347_v58 = vld [vmem:[#allocation77_spill] sm:$0xff] }
 0x54f   :  { %v2985_v45 = vpop.f32.mrf.mxu3  ;;  %v2879_v24 = vpop.f32.mrf.mxu1 }
 0x550   :  { %v2986_v23 = vadd.f32 %v2985_v45, %v2876_v43  ;;  %v3042_v44 = vmax.f32 %v3032_v14, 0.0 }
 0x552   :  { %v3013_v13 = vmax.f32 %v13898_v16, %v2986_v23  ;;  %3586 = vmatmul.bf16.gmra.mxu1 %v18339_v20  ;;  %9448 = vmatmul.msk.bf16.gmra.mxu2 %vm415_vm0, %v18312_v59  ;;  %v14273_v60 = vpop.f32.mrf.mxu0 }
 0x553   :  { %3960 = vmatmul.bf16.gmra.mxu0 %v18333_v7 }
 0x554   :  { %v3023_v31 = vmax.f32 %v18340_v49, %v3013_v13  ;;  %9503 = vmatmul.msk.bf16.gmra.mxu3 %vm415_vm0, %v18059_v1  ;;  %v18343_v49 = vld [vmem:[#allocation75_spill] sm:$0xff] }
 0x555   :  { %v3337_v21 = vpop.f32.mrf.mxu2 }
 0x556   :  { %v3033_v16 = vadd.f32 %v3023_v31, %v12541_v42  ;;  %v14277_v43 = vadd.f32 %v3337_v21, %v14156_v8 }
 0x557   :  { %v2988_v27 = vpop.f32.mrf.mxu3  ;;  %v2881_v9 = vpop.f32.mrf.mxu1 }
 0x558   :  { %v3043_v33 = vmax.f32 %v3033_v16, 0.0  ;;  %v2989_v39 = vadd.f32 %v2988_v27, %v2879_v24  ;;  %v18344_v16 = vld [vmem:[#allocation12_spill] sm:$0xff]  ;;  %v18345_v27 = vld [vmem:[#allocation23_spill] sm:$0xff] }
 0x55a   :  { %v11239_v56 = vpack.c.bf16 %v3043_v33, %v3042_v44  ;;  %v3014_v34 = vmax.f32 %v18341_v5, %v2989_v39  ;;  %v14285_v45 = vpop.f32.mrf.mxu0  ;;  %v10949_v44 = vld [vmem:[#allocation2 + $0x170] sm:$0xff] }
 0x55c   :  { %11487 = vst [vmem:[#allocation2 + $0x148] sm:$0xff] %v11239_v56   ;;  %v3024_v17 = vmax.f32 %v18342_v54, %v3014_v34  ;;  %v18351_v34 = vld [vmem:[#allocation52_spill] sm:$0xff] }
 0x55d   :  { %v3339_v23 = vpop.f32.mrf.mxu2 }
 0x55e   :  { %v14288_v13 = vadd.f32 %v3339_v23, %v14171_v40  ;;  %v3034_v33 = vadd.f32 %v3024_v17, %v18347_v58  ;;  %v18348_v40 = vld [vmem:[#allocation70_spill] sm:$0xff] }
 0x55f   :  { %v2990_v8 = vpop.f32.mrf.mxu3  ;;  %v2884_v14 = vpop.f32.mrf.mxu1  ;;  %v18349_v39 = vmax.f32 %v13776_v32, %v18348_v40  ;;  %v18352_v32 = vld [vmem:[#allocation25_spill] sm:$0xff] }
 0x560   :  { %v2991_v24 = vadd.f32 %v2990_v8, %v2881_v9  ;;  %v18350_v9 = vld [vmem:[#allocation18_spill] sm:$0xff]  ;;  %v10948_v8 = vld [vmem:[#allocation2 + $0x8] sm:$0xff]  ;;  %v3044_v17 = vmax.f32 %v3034_v33, 0.0 }
 0x561   :  { %v10946_v33 = vld [vmem:[#allocation2 + $0x128] sm:$0xff] }
 0x562   :  { %v3015_v21 = vmax.f32 %v18344_v16, %v2991_v24  ;;  %3591 = vmatmul.bf16.gmra.mxu1 %v18345_v27  ;;  %9565 = vmatmul.msk.bf16.vlgmr.msrb.gmra.mxu2 %vm415_vm0, %v18346_v10  ;;  %v14303_v5 = vpop.f32.mrf.mxu0 }
 0x563   :  { %3965 = vmatmul.bf16.gmra.mxu0 %v18336_v51  ;;  %5962 = vmatpush.bf16.msrb.mxu2 %v10949_v44  ;;  %v18353_v44 = vld [vmem:[#allocation55_spill] sm:$0xff] }
 0x564   :  { %v3025_v56 = vmax.f32 %v18349_v39, %v3015_v21  ;;  %9504 = vmatmul.msk.bf16.gmra.mxu3 %vm415_vm0, %v18350_v9 }
 0x565   :  { %v3342_v23 = vpop.f32.mrf.mxu2 }
 0x566   :  { %v3035_v54 = vadd.f32 %v3025_v56, %v18351_v34  ;;  %v14307_v16 = vadd.f32 %v3342_v23, %v14180_v6  ;;  %v18354_v56 = vmax.f32 %v13793_v46, %v14152_v25  ;;  %v10945_v46 = vld [vmem:[#allocation2 + $0x158] sm:$0xff] }
 0x567   :  { %v2993_v24 = vpop.f32.mrf.mxu3  ;;  %v2886_v31 = vpop.f32.mrf.mxu1  ;;  %5963 = vmatpush.bf16.msrb.mxu2 %v10948_v8  ;;  %v18358_v25 = vld [vmem:[#allocation7_spill] sm:$0xff] }
 0x568   :  { %v3045_v15 = vmax.f32 %v3035_v54, 0.0  ;;  %v2994_v53 = vadd.f32 %v2993_v24, %v2884_v14 }
 0x56a   :  { %v11244_v40 = vpack.c.bf16 %v3045_v15, %v3044_v17  ;;  %v3016_v39 = vmax.f32 %v18353_v44, %v2994_v53  ;;  %v14315_v6 = vpop.f32.mrf.mxu0  ;;  %v18355_v53 = vld [vmem:[#allocation66_spill] sm:$0xff]  ;;  %v18357_v44 = vld [vmem:[#allocation27_spill] sm:$0xff] }
 0x56b   :  { %5964 = vmatpush.bf16.msrb.mxu2 %v10947_v22  ;;  %v18356_v17 = vld [vmem:[#allocation14_spill] sm:$0xff] }
 0x56c   :  { %11488 = vst [vmem:[#allocation2 + $0x1d0] sm:$0xff] %v11244_v40   ;;  %v3026_v51 = vmax.f32 %v18354_v56, %v3016_v39  ;;  %v18359_v22 = vld [vmem:[#allocation50_spill] sm:$0xff]  ;;  %v18361_v56 = vld [vmem:[#allocation20_spill] sm:$0xff] }
 0x56d   :  { %v3344_v23 = vpop.f32.mrf.mxu2 }
 0x56e   :  { %v14318_v14 = vadd.f32 %v3344_v23, %v14202_v18  ;;  %v3036_v39 = vadd.f32 %v3026_v51, %v18359_v22  ;;  %v18360_v18 = vmax.f32 %v13802_v28, %v14161_v62  ;;  %v18364_v28 = vld [vmem:[#allocation33_spill] sm:$0xff] }
 0x56f   :  { %v2995_v54 = vpop.f32.mrf.mxu3  ;;  %v3557_v8 = vpop.f32.mrf.mxu1  ;;  %5965 = vmatpush.bf16.msrb.mxu2 %v10946_v33  ;;  %v18362_v33 = vld [vmem:[#allocation51_spill] sm:$0xff] }
 0x570   :  { %v2996_v24 = vadd.f32 %v2995_v54, %v2886_v31  ;;  %v3046_v51 = vmax.f32 %v3036_v39, 0.0  ;;  %v18366_v39 = vld [vmem:[#allocation68_spill] sm:$0xff] }
 0x572   :  { %v3017_v40 = vmax.f32 %v18356_v17, %v2996_v24  ;;  %3596 = vmatmul.bf16.gmra.mxu1 %v18357_v44  ;;  %9566 = vmatmul.msk.bf16.gmra.mxu2 %vm415_vm0, %v18358_v25  ;;  %v14333_v23 = vpop.f32.mrf.mxu0  ;;  %v10944_v17 = vld [vmem:[#allocation2 + $0xf0] sm:$0xff] }
 0x573   :  { %3970 = vmatmul.bf16.gmra.mxu0 %v18339_v20  ;;  %5966 = vmatpush.bf16.msrb.mxu2 %v10945_v46 }
 0x574   :  { %v3027_v31 = vmax.f32 %v18360_v18, %v3017_v40  ;;  %9505 = vmatmul.msk.bf16.gmra.mxu3 %vm415_vm0, %v18361_v56  ;;  %v18380_v56 = vld [vmem:[#allocation39_spill] sm:$0xff] }
 0x575   :  { %v3347_v24 = vpop.f32.mrf.mxu2 }
 0x576   :  { %v3037_v54 = vadd.f32 %v3027_v31, %v18362_v33  ;;  %v14337_v15 = vadd.f32 %v3347_v24, %v14221_v47 }
 0x577   :  { %v3666_v21 = vpop.f32.mrf.mxu3  ;;  %v3559_v20 = vpop.f32.mrf.mxu1  ;;  %5967 = vmatpush.bf16.msrb.mxu2 %v10944_v17 }
 0x578   :  { %v3047_v7 = vmax.f32 %v3037_v54, 0.0  ;;  %v14339_v36 = vadd.f32 %v3666_v21, %v3557_v8  ;;  %v18367_v8 = vld [vmem:[#allocation31_spill] sm:$0xff]  ;;  %v18368_v54 = vld [vmem:[#allocation6_spill] sm:$0xff] }
 0x57a   :  { %18363 = vst [vmem:[#allocation38_spill] sm:$0xff] %v14339_v36  ;;  %v11249_v40 = vpack.c.bf16 %v3047_v7, %v3046_v51  ;;  %v14343_v46 = vpop.f32.mrf.mxu0  ;;  %v18369_v7 = vld [vmem:[#allocation22_spill] sm:$0xff] }
 0x57c   :  { %11489 = vst [vmem:[#allocation2 + $0x100] sm:$0xff] %v11249_v40  }
 0x57d   :  { %v3349_v18 = vpop.f32.mrf.mxu2 }
 0x57e   :  { %v14346_v31 = vadd.f32 %v3349_v18, %v14243_v57 }
 0x57f   :  { %v3668_v47 = vpop.f32.mrf.mxu3  ;;  %v3562_v24 = vpop.f32.mrf.mxu1 }
 0x580   :  { %v14348_v19 = vadd.f32 %v3668_v47, %v3559_v20  ;;  %v18371_v47 = vld [vmem:[#allocation76_spill] sm:$0xff] }
 0x582   :  { %18365 = vst [vmem:[#allocation71_spill] sm:$0xff] %v14348_v19  ;;  %3601 = vmatmul.bf16.gmra.mxu1 %v18367_v8  ;;  %9567 = vmatmul.msk.bf16.gmra.mxu2 %vm415_vm0, %v18368_v54  ;;  %v14358_v17 = vpop.f32.mrf.mxu0  ;;  %v18374_v19 = vld [vmem:[#allocation35_spill] sm:$0xff] }
 0x583   :  { %3975 = vmatmul.bf16.gmra.mxu0 %v18345_v27 }
 0x584   :  { %9506 = vmatmul.msk.bf16.gmra.mxu3 %vm415_vm0, %v18369_v7 }
 0x585   :  { %v3352_v57 = vpop.f32.mrf.mxu2 }
 0x586   :  { %v14361_v51 = vadd.f32 %v3352_v57, %v14255_v11  ;;  %v18373_v11 = vld [vmem:[#allocation53_spill] sm:$0xff] }
 0x587   :  { %v3671_v20 = vpop.f32.mrf.mxu3  ;;  %v3564_v40 = vpop.f32.mrf.mxu1  ;;  %v18377_v57 = vld [vmem:[#allocation69_spill] sm:$0xff] }
 0x588   :  { %v14363_v18 = vadd.f32 %v3671_v20, %v3562_v24  ;;  %v18375_v24 = vld [vmem:[#allocation10_spill] sm:$0xff]  ;;  %v18376_v20 = vld [vmem:[#allocation24_spill] sm:$0xff] }
 0x58a   :  { %18370 = vst [vmem:[#allocation56_spill] sm:$0xff] %v14363_v18  ;;  %v14367_v62 = vpop.f32.mrf.mxu0 }
 0x58d   :  { %v3354_v27 = vpop.f32.mrf.mxu2 }
 0x58e   :  { %v14370_v54 = vadd.f32 %v3354_v27, %v14273_v60 }
 0x58f   :  { %v3673_v25 = vpop.f32.mrf.mxu3  ;;  %v3567_v10 = vpop.f32.mrf.mxu1 }
 0x590   :  { %v14372_v59 = vadd.f32 %v3673_v25, %v3564_v40 }
 0x592   :  { %18372 = vst [vmem:[#allocation26_spill] sm:$0xff] %v14372_v59  ;;  %3606 = vmatmul.bf16.gmra.mxu1 %v18374_v19  ;;  %9568 = vmatmul.msk.bf16.gmra.mxu2 %vm415_vm0, %v18375_v24  ;;  %v14382_v21 = vpop.f32.mrf.mxu0 }
 0x593   :  { %3980 = vmatmul.bf16.gmra.mxu0 %v18357_v44  ;;  %v18378_v44 = vmax.f32 %v13883_v3, %v14247_v48  ;;  %v18382_v48 = vld [vmem:[#allocation28_spill] sm:$0xff] }
 0x594   :  { %9507 = vmatmul.msk.bf16.gmra.mxu3 %vm415_vm0, %v18376_v20 }
 0x595   :  { %v3357_v60 = vpop.f32.mrf.mxu2 }
 0x596   :  { %v3358_v27 = vadd.f32 %v3357_v60, %v14285_v45  ;;  %v18379_v45 = vld [vmem:[#allocation16_spill] sm:$0xff] }
 0x597   :  { %v3676_v25 = vpop.f32.mrf.mxu3  ;;  %v3569_v40 = vpop.f32.mrf.mxu1 }
 0x598   :  { %v14385_v59 = vadd.f32 %v3676_v25, %v3567_v10  ;;  %v3392_v18 = vmax.f32 %v18377_v57, %v3358_v27  ;;  %v18381_v57 = vmax.f32 %v13896_v38, %v14258_v61  ;;  %v18383_v25 = vld [vmem:[#allocation60_spill] sm:$0xff] }
 0x59a   :  { %v3402_v36 = vmax.f32 %v18378_v44, %v3392_v18  ;;  %v14391_v4 = vpop.f32.mrf.mxu0 }
 0x59c   :  { %v3412_v10 = vadd.f32 %v3402_v36, %v12501_v50 }
 0x59d   :  { %v3359_v24 = vpop.f32.mrf.mxu2 }
 0x59e   :  { %v3360_v52 = vadd.f32 %v3359_v24, %v14303_v5  ;;  %v3422_v18 = vmax.f32 %v3412_v10, 0.0 }
 0x59f   :  { %v3678_v20 = vpop.f32.mrf.mxu3  ;;  %v3572_v7 = vpop.f32.mrf.mxu1 }
 0x5a0   :  { %v14394_v33 = vadd.f32 %v3678_v20, %v3569_v40  ;;  %v3393_v60 = vmax.f32 %v18379_v45, %v3360_v52  ;;  %v18384_v45 = vmax.f32 %v13918_v29, %v14277_v43  ;;  %v18388_v43 = vld [vmem:[#allocation32_spill] sm:$0xff] }
 0x5a2   :  { %3611 = vmatmul.bf16.gmra.mxu1 %v18380_v56  ;;  %v3403_v3 = vmax.f32 %v18381_v57, %v3393_v60  ;;  %9569 = vmatmul.msk.bf16.gmra.mxu2 %vm415_vm0, %v18042_v55  ;;  %v14408_v44 = vpop.f32.mrf.mxu0 }
 0x5a3   :  { %3985 = vmatmul.bf16.gmra.mxu0 %v18367_v8 }
 0x5a4   :  { %9508 = vmatmul.msk.bf16.gmra.mxu3 %vm415_vm0, %v18382_v48  ;;  %v3413_v5 = vadd.f32 %v3403_v3, %v18221_v63 }
 0x5a5   :  { %v3362_v52 = vpop.f32.mrf.mxu2 }
 0x5a6   :  { %v3423_v24 = vmax.f32 %v3413_v5, 0.0  ;;  %v3363_v36 = vadd.f32 %v3362_v52, %v14315_v6  ;;  %v18385_v52 = vld [vmem:[#allocation37_spill] sm:$0xff] }
 0x5a7   :  { %v3681_v20 = vpop.f32.mrf.mxu3  ;;  %v3574_v38 = vpop.f32.mrf.mxu1 }
 0x5a8   :  { %v14411_v61 = vadd.f32 %v3681_v20, %v3572_v7  ;;  %v11254_v27 = vpack.c.bf16 %v3423_v24, %v3422_v18  ;;  %v3394_v40 = vmax.f32 %v18383_v25, %v3363_v36  ;;  %v18386_v20 = vld [vmem:[#allocation41_spill] sm:$0xff]  ;;  %v18387_v24 = vmax.f32 %v18343_v49, %v14288_v13 }
 0x5aa   :  { %11490 = vst [vmem:[#allocation2 + $0xf8] sm:$0xff] %v11254_v27   ;;  %v3404_v60 = vmax.f32 %v18384_v45, %v3394_v40  ;;  %v14417_v57 = vpop.f32.mrf.mxu0 }
 0x5ac   :  { %v3414_v18 = vadd.f32 %v3404_v60, %v12564_v35 }
 0x5ad   :  { %v3364_v3 = vpop.f32.mrf.mxu2 }
 0x5ae   :  { %v3365_v10 = vadd.f32 %v3364_v3, %v14333_v23  ;;  %v3424_v27 = vmax.f32 %v3414_v18, 0.0  ;;  %v18389_v3 = vld [vmem:[#allocation34_spill] sm:$0xff] }
 0x5af   :  { %v3683_v5 = vpop.f32.mrf.mxu3  ;;  %v3577_v8 = vpop.f32.mrf.mxu1 }
 0x5b0   :  { %v14420_v6 = vadd.f32 %v3683_v5, %v3574_v38  ;;  %v3395_v7 = vmax.f32 %v18385_v52, %v3365_v10  ;;  %v18390_v5 = vmax.f32 %v18352_v32, %v14307_v16  ;;  %v18395_v32 = vld [vmem:[#allocation36_spill] sm:$0xff] }
 0x5b2   :  { %3616 = vmatmul.bf16.gmra.mxu1 %v18386_v20  ;;  %v3405_v29 = vmax.f32 %v18387_v24, %v3395_v7  ;;  %9570 = vmatmul.msk.bf16.gmra.mxu2 %vm415_vm0, %v18049_v30  ;;  %v14434_v36 = vpop.f32.mrf.mxu0 }
 0x5b3   :  { %3990 = vmatmul.bf16.gmra.mxu0 %v18374_v19  ;;  %v18419_v19 = vld [vmem:[#allocation64_spill] sm:$0xff] }
 0x5b4   :  { %9509 = vmatmul.msk.bf16.gmra.mxu3 %vm415_vm0, %v18388_v43  ;;  %v3415_v23 = vadd.f32 %v3405_v29, %v12567_v12 }
 0x5b5   :  { %v3367_v38 = vpop.f32.mrf.mxu2 }
 0x5b6   :  { %v3425_v25 = vmax.f32 %v3415_v23, 0.0  ;;  %v3368_v40 = vadd.f32 %v3367_v38, %v14343_v46  ;;  %v18392_v38 = vld [vmem:[#allocation73_spill] sm:$0xff] }
 0x5b7   :  { %v3686_v45 = vpop.f32.mrf.mxu3  ;;  %v3579_v13 = vpop.f32.mrf.mxu1 }
 0x5b8   :  { %v14437_v49 = vadd.f32 %v3686_v45, %v3577_v8  ;;  %v11259_v60 = vpack.c.bf16 %v3425_v25, %v3424_v27  ;;  %v3396_v10 = vmax.f32 %v18389_v3, %v3368_v40  ;;  %v18393_v45 = vld [vmem:[#allocation45_spill] sm:$0xff]  ;;  %v18394_v25 = vmax.f32 %v18355_v53, %v14318_v14 }
 0x5ba   :  { %11491 = vst [vmem:[#allocation2 + $0x40] sm:$0xff] %v11259_v60   ;;  %v3406_v52 = vmax.f32 %v18390_v5, %v3396_v10  ;;  %v14443_v7 = vpop.f32.mrf.mxu0 }
 0x5bc   :  { %v3416_v27 = vadd.f32 %v3406_v52, %v12519_v37 }
 0x5bd   :  { %v3369_v24 = vpop.f32.mrf.mxu2 }
 0x5be   :  { %v3370_v18 = vadd.f32 %v3369_v24, %v14358_v17  ;;  %v3426_v60 = vmax.f32 %v3416_v27, 0.0 }
 0x5bf   :  { %v3688_v29 = vpop.f32.mrf.mxu3  ;;  %v3582_v23 = vpop.f32.mrf.mxu1 }
 0x5c0   :  { %v14446_v46 = vadd.f32 %v3688_v29, %v3579_v13  ;;  %v3397_v8 = vmax.f32 %v18392_v38, %v3370_v18  ;;  %v18396_v18 = vmax.f32 %v18364_v28, %v14337_v15  ;;  %v18399_v28 = vld [vmem:[#allocation40_spill] sm:$0xff] }
 0x5c2   :  { %18391 = vst [vmem:[#allocation57_spill] sm:$0xff] %v14446_v46  ;;  %3621 = vmatmul.bf16.gmra.mxu1 %v18393_v45  ;;  %v3407_v16 = vmax.f32 %v18394_v25, %v3397_v8  ;;  %9571 = vmatmul.msk.bf16.gmra.mxu2 %vm415_vm0, %v18059_v1  ;;  %v14460_v40 = vpop.f32.mrf.mxu0 }
 0x5c3   :  { %3995 = vmatmul.bf16.gmra.mxu0 %v18380_v56 }
 0x5c4   :  { %9510 = vmatmul.msk.bf16.gmra.mxu3 %vm415_vm0, %v18395_v32  ;;  %v3417_v17 = vadd.f32 %v3407_v16, %v12541_v42 }
 0x5c5   :  { %v3372_v13 = vpop.f32.mrf.mxu2 }
 0x5c6   :  { %v3427_v3 = vmax.f32 %v3417_v17, 0.0  ;;  %v3373_v10 = vadd.f32 %v3372_v13, %v14367_v62  ;;  %v18397_v17 = vld [vmem:[#allocation47_spill] sm:$0xff]  ;;  %v18398_v13 = vmax.f32 %v18366_v39, %v14346_v31 }
 0x5c7   :  { %v3691_v5 = vpop.f32.mrf.mxu3  ;;  %v3584_v14 = vpop.f32.mrf.mxu1 }
 0x5c8   :  { %v14463_v53 = vadd.f32 %v3691_v5, %v3582_v23  ;;  %v11264_v52 = vpack.c.bf16 %v3427_v3, %v3426_v60  ;;  %v3398_v24 = vmax.f32 %v14174_v0, %v3373_v10 }
 0x5ca   :  { %11492 = vst [vmem:[#allocation2 + $0xa8] sm:$0xff] %v11264_v52   ;;  %v3408_v29 = vmax.f32 %v18396_v18, %v3398_v24  ;;  %v14469_v38 = vpop.f32.mrf.mxu0  ;;  %v18400_v18 = vmax.f32 %v18371_v47, %v14361_v51  ;;  %v18403_v47 = vld [vmem:[#allocation20_spill] sm:$0xff] }
 0x5cc   :  { %v3418_v0 = vadd.f32 %v3408_v29, %v18347_v58 }
 0x5cd   :  { %v3374_v8 = vpop.f32.mrf.mxu2 }
 0x5ce   :  { %v3375_v27 = vadd.f32 %v3374_v8, %v14382_v21  ;;  %v3428_v3 = vmax.f32 %v3418_v0, 0.0 }
 0x5cf   :  { %v3693_v25 = vpop.f32.mrf.mxu3  ;;  %v3587_v16 = vpop.f32.mrf.mxu1 }
 0x5d0   :  { %v14472_v62 = vadd.f32 %v3693_v25, %v3584_v14  ;;  %v3399_v23 = vmax.f32 %v14186_v41, %v3375_v27 }
 0x5d2   :  { %3626 = vmatmul.bf16.gmra.mxu1 %v18397_v17  ;;  %v3409_v15 = vmax.f32 %v18398_v13, %v3399_v23  ;;  %9572 = vmatmul.msk.bf16.gmra.mxu2 %vm415_vm0, %v18350_v9  ;;  %v14486_v60 = vpop.f32.mrf.mxu0  ;;  %v18401_v13 = vld [vmem:[#allocation49_spill] sm:$0xff]  ;;  %v18430_v9 = vld [vmem:[#allocation26_spill] sm:$0xff] }
 0x5d3   :  { %4000 = vmatmul.bf16.gmra.mxu0 %v18386_v20 }
 0x5d4   :  { %9511 = vmatmul.msk.bf16.gmra.mxu3 %vm415_vm0, %v18399_v28  ;;  %v3419_v21 = vadd.f32 %v3409_v15, %v18351_v34  ;;  %v18402_v15 = vmax.f32 %v18373_v11, %v14370_v54 }
 0x5d5   :  { %v3377_v41 = vpop.f32.mrf.mxu2 }
 0x5d6   :  { %v3429_v10 = vmax.f32 %v3419_v21, 0.0  ;;  %v3378_v5 = vadd.f32 %v3377_v41, %v14391_v4  ;;  %v18405_v21 = vld [vmem:[#allocation51_spill] sm:$0xff] }
 0x5d7   :  { %v3696_v14 = vpop.f32.mrf.mxu3  ;;  %v3589_v31 = vpop.f32.mrf.mxu1 }
 0x5d8   :  { %v14489_v39 = vadd.f32 %v3696_v14, %v3587_v16  ;;  %v11269_v52 = vpack.c.bf16 %v3429_v10, %v3428_v3  ;;  %v3400_v24 = vmax.f32 %v14212_v2, %v3378_v5 }
 0x5da   :  { %11493 = vst [vmem:[#allocation2 + $0x190] sm:$0xff] %v11269_v52   ;;  %v3410_v29 = vmax.f32 %v18400_v18, %v3400_v24  ;;  %v14495_v8 = vpop.f32.mrf.mxu0 }
 0x5dc   :  { %v3420_v2 = vadd.f32 %v3410_v29, %v18359_v22 }
 0x5dd   :  { %v3379_v27 = vpop.f32.mrf.mxu2 }
 0x5de   :  { %v3380_v25 = vadd.f32 %v3379_v27, %v14408_v44  ;;  %v18404_v44 = vld [vmem:[#allocation42_spill] sm:$0xff]  ;;  %v3430_v10 = vmax.f32 %v3420_v2, 0.0 }
 0x5df   :  { %v3698_v23 = vpop.f32.mrf.mxu3  ;;  %v3592_v0 = vpop.f32.mrf.mxu1 }
 0x5e0   :  { %v14498_v4 = vadd.f32 %v3698_v23, %v3589_v31  ;;  %v3401_v16 = vmax.f32 %v14227_v26, %v3380_v25 }
 0x5e2   :  { %3631 = vmatmul.bf16.gmra.mxu1 %v18401_v13  ;;  %v3411_v51 = vmax.f32 %v18402_v15, %v3401_v16  ;;  %9573 = vmatmul.msk.bf16.gmra.mxu2 %vm415_vm0, %v18403_v47  ;;  %v3958_v3 = vpop.f32.mrf.mxu0  ;;  %v18406_v16 = vld [vmem:[#allocation54_spill] sm:$0xff] }
 0x5e3   :  { %4005 = vmatmul.bf16.gmra.mxu0 %v18393_v45 }
 0x5e4   :  { %9512 = vmatmul.msk.bf16.gmra.mxu3 %vm415_vm0, %v18404_v44  ;;  %v3421_v41 = vadd.f32 %v3411_v51, %v18405_v21 }
 0x5e5   :  { %v4050_v26 = vpop.f32.mrf.mxu2 }
 0x5e6   :  { %v3431_v5 = vmax.f32 %v3421_v41, 0.0  ;;  %v14513_v31 = vadd.f32 %v4050_v26, %v14417_v57  ;;  %v18407_v57 = vld [vmem:[#allocation22_spill] sm:$0xff] }
 0x5e7   :  { %v3701_v14 = vpop.f32.mrf.mxu3  ;;  %v3594_v54 = vpop.f32.mrf.mxu1 }
 0x5e8   :  { %v14515_v11 = vadd.f32 %v3701_v14, %v3592_v0  ;;  %v11274_v52 = vpack.c.bf16 %v3431_v5, %v3430_v10  ;;  %v18408_v0 = vld [vmem:[#allocation46_spill] sm:$0xff] }
 0x5ea   :  { %11494 = vst [vmem:[#allocation2 + $0x1a0] sm:$0xff] %v11274_v52   ;;  %v14517_v24 = vpop.f32.mrf.mxu0 }
 0x5ed   :  { %v4052_v18 = vpop.f32.mrf.mxu2 }
 0x5ee   :  { %v14520_v27 = vadd.f32 %v4052_v18, %v14434_v36 }
 0x5ef   :  { %v3703_v29 = vpop.f32.mrf.mxu3  ;;  %v3597_v25 = vpop.f32.mrf.mxu1 }
 0x5f0   :  { %v14522_v23 = vadd.f32 %v3703_v29, %v3594_v54  ;;  %v18412_v29 = vld [vmem:[#allocation59_spill] sm:$0xff] }
 0x5f2   :  { %3636 = vmatmul.bf16.gmra.mxu1 %v18406_v16  ;;  %9574 = vmatmul.msk.bf16.gmra.mxu2 %vm415_vm0, %v18407_v57  ;;  %v3963_v2 = vpop.f32.mrf.mxu0  ;;  %v10964_v57 = vld [vmem:[#allocation2 + $0xf0] sm:$0xff] }
 0x5f3   :  { %4010 = vmatmul.bf16.gmra.mxu0 %v18397_v17  ;;  %v18413_v17 = vld [vmem:[#allocation24_spill] sm:$0xff] }
 0x5f4   :  { %9513 = vmatmul.msk.bf16.gmra.mxu3 %vm415_vm0, %v18408_v0 }
 0x5f5   :  { %v4055_v15 = vpop.f32.mrf.mxu2 }
 0x5f6   :  { %v14531_v41 = vadd.f32 %v4055_v15, %v14443_v7  ;;  %v18414_v7 = vld [vmem:[#allocation48_spill] sm:$0xff] }
 0x5f7   :  { %v3706_v51 = vpop.f32.mrf.mxu3  ;;  %v3599_v36 = vpop.f32.mrf.mxu1 }
 0x5f8   :  { %v14533_v26 = vadd.f32 %v3706_v51, %v3597_v25 }
 0x5fa   :  { %18409 = vst [vmem:[#allocation58_spill] sm:$0xff] %v14533_v26  ;;  %v14535_v10 = vpop.f32.mrf.mxu0 }
 0x5fd   :  { %v4057_v5 = vpop.f32.mrf.mxu2 }
 0x5fe   :  { %v14538_v54 = vadd.f32 %v4057_v5, %v14460_v40 }
 0x5ff   :  { %v3708_v14 = vpop.f32.mrf.mxu3  ;;  %v3602_v52 = vpop.f32.mrf.mxu1 }
 0x600   :  { %18410 = vst [vmem:[#allocation29_spill] sm:$0xff] %v14538_v54  ;;  %v14540_v18 = vadd.f32 %v3708_v14, %v3599_v36 }
 0x602   :  { %18411 = vst [vmem:[#allocation72_spill] sm:$0xff] %v14540_v18  ;;  %3641 = vmatmul.bf16.gmra.mxu1 %v18412_v29  ;;  %9575 = vmatmul.msk.bf16.gmra.mxu2 %vm415_vm0, %v18413_v17  ;;  %v14548_v25 = vpop.f32.mrf.mxu0  ;;  %v10954_v18 = vld [vmem:[#allocation2 + $0x108] sm:$0xff] }
 0x603   :  { %4015 = vmatmul.bf16.gmra.mxu0 %v18401_v13 }
 0x604   :  { %9514 = vmatmul.msk.bf16.gmra.mxu3 %vm415_vm0, %v18414_v7 }
 0x605   :  { %v4060_v15 = vpop.f32.mrf.mxu2 }
 0x606   :  { %v14551_v40 = vadd.f32 %v4060_v15, %v14469_v38  ;;  %v18420_v38 = vld [vmem:[#allocation5_spill] sm:$0xff] }
 0x607   :  { %v3711_v51 = vpop.f32.mrf.mxu3  ;;  %v3604_v5 = vpop.f32.mrf.mxu1 }
 0x608   :  { %18415 = vst [vmem:[#allocation65_spill] sm:$0xff] %v14551_v40  ;;  %v14553_v36 = vadd.f32 %v3711_v51, %v3602_v52 }
 0x60a   :  { %18416 = vst [vmem:[#allocation43_spill] sm:$0xff] %v14553_v36  ;;  %v14555_v14 = vpop.f32.mrf.mxu0  ;;  %v18428_v36 = vld [vmem:[#allocation56_spill] sm:$0xff] }
 0x60d   :  { %v4062_v45 = vpop.f32.mrf.mxu2 }
 0x60e   :  { %v14558_v20 = vadd.f32 %v4062_v45, %v14486_v60 }
 0x60f   :  { %v3713_v13 = vpop.f32.mrf.mxu3  ;;  %v3607_v56 = vpop.f32.mrf.mxu1 }
 0x610   :  { %18417 = vst [vmem:[#allocation61_spill] sm:$0xff] %v14558_v20  ;;  %v14560_v17 = vadd.f32 %v3713_v13, %v3604_v5  ;;  %v18422_v5 = vld [vmem:[#allocation38_spill] sm:$0xff]  ;;  %v18424_v20 = vld [vmem:[#allocation71_spill] sm:$0xff] }
 0x612   :  { %18418 = vst [vmem:[#allocation30_spill] sm:$0xff] %v14560_v17  ;;  %3646 = vmatmul.bf16.gmra.mxu1 %v18419_v19  ;;  %9576 = vmatmul.msk.bf16.gmra.mxu2 %vm415_vm0, %v18382_v48  ;;  %v14568_v52 = vpop.f32.mrf.mxu0 }
 0x613   :  { %4020 = vmatmul.bf16.gmra.mxu0 %v18406_v16 }
 0x614   :  { %9515 = vmatmul.msk.bf16.gmra.mxu3 %vm415_vm0, %v18420_v38 }
 0x615   :  { %v4065_v15 = vpop.f32.mrf.mxu2 }
 0x616   :  { %v14571_v45 = vadd.f32 %v4065_v15, %v14495_v8  ;;  %v18425_v8 = vld [vmem:[#allocation67_spill] sm:$0xff] }
 0x617   :  { %v3716_v51 = vpop.f32.mrf.mxu3  ;;  %v3609_v60 = vpop.f32.mrf.mxu1 }
 0x618   :  { %18421 = vst [vmem:[#allocation62_spill] sm:$0xff] %v14571_v45  ;;  %v14573_v13 = vadd.f32 %v3716_v51, %v3607_v56  ;;  %v18426_v56 = vld [vmem:[#allocation9_spill] sm:$0xff] }
 0x61a   :  { %v14577_v16 = vpop.f32.mrf.mxu0 }
 0x61d   :  { %v4067_v21 = vpop.f32.mrf.mxu2 }
 0x61e   :  { %v14579_v47 = vadd.f32 %v4067_v21, %v3958_v3 }
 0x61f   :  { %v3718_v48 = vpop.f32.mrf.mxu3  ;;  %v3612_v22 = vpop.f32.mrf.mxu1 }
 0x620   :  { %18423 = vst [vmem:[#allocation63_spill] sm:$0xff] %v14579_v47  ;;  %v14581_v17 = vadd.f32 %v3718_v48, %v3609_v60 }
 0x622   :  { %3651 = vmatmul.bf16.gmra.mxu1 %v18425_v8  ;;  %9577 = vmatmul.msk.bf16.gmra.mxu2 %vm415_vm0, %v18388_v43  ;;  %v14591_v15 = vpop.f32.mrf.mxu0 }
 0x623   :  { %4025 = vmatmul.bf16.gmra.mxu0 %v18412_v29 }
 0x624   :  { %9516 = vmatmul.msk.bf16.gmra.mxu3 %vm415_vm0, %v18426_v56 }
 0x625   :  { %v4070_v21 = vpop.f32.mrf.mxu2 }
 0x626   :  { %v14594_v48 = vadd.f32 %v4070_v21, %v14517_v24  ;;  %v18431_v24 = vld [vmem:[#allocation8_spill] sm:$0xff]  ;;  %v10957_v21 = vld [vmem:[#allocation2 + $0x188] sm:$0xff] }
 0x627   :  { %v3721_v3 = vpop.f32.mrf.mxu3  ;;  %v3614_v51 = vpop.f32.mrf.mxu1 }
 0x628   :  { %18427 = vst [vmem:[#allocation44_spill] sm:$0xff] %v14594_v48  ;;  %v14596_v60 = vadd.f32 %v3721_v3, %v3612_v22  ;;  %v10965_v22 = vld [vmem:[#allocation2 + $0x158] sm:$0xff]  ;;  %v18432_v3 = vld [vmem:[#allocation4_spill] sm:$0xff] }
 0x629   :  { %v10955_v48 = vld [vmem:[#allocation2 + $0x60] sm:$0xff] }
 0x62a   :  { %v14600_v29 = vpop.f32.mrf.mxu0 }
 0x62d   :  { %v4072_v47 = vpop.f32.mrf.mxu2 }
 0x62e   :  { %v14602_v45 = vadd.f32 %v4072_v47, %v3963_v2  ;;  %v10956_v2 = vld [vmem:[#allocation2 + $0xe0] sm:$0xff] }
 0x62f   :  { %v3723_v43 = vpop.f32.mrf.mxu3  ;;  %v3617_v40 = vpop.f32.mrf.mxu1 }
 0x630   :  { %18429 = vst [vmem:[#allocation75_spill] sm:$0xff] %v14602_v45  ;;  %v14604_v34 = vadd.f32 %v3723_v43, %v3614_v51 }
 0x632   :  { %4324 = vmatmul.bf16.vlgmr.msrb.gmra.mxu1 %v18431_v24  ;;  %9578 = vmatmul.msk.bf16.gmra.mxu2 %vm415_vm0, %v18395_v32  ;;  %v14614_v47 = vpop.f32.mrf.mxu0 }
 0x633   :  { %4030 = vmatmul.bf16.gmra.mxu0 %v18419_v19  ;;  %6345 = vmatpush.bf16.msrb.mxu1 %v10957_v21  ;;  %v10963_v21 = vld [vmem:[#allocation2 + $0x28] sm:$0xff] }
 0x634   :  { %9633 = vmatmul.msk.bf16.vlgmr.msrb.gmra.mxu3 %vm415_vm0, %v18432_v3 }
 0x635   :  { %6434 = vmatpush.bf16.msrb.mxu3 %v10965_v22  ;;  %v4075_v43 = vpop.f32.mrf.mxu2 }
 0x636   :  { %v14617_v58 = vadd.f32 %v4075_v43, %v14535_v10  ;;  %v10962_v43 = vld [vmem:[#allocation2 + $0x1b8] sm:$0xff] }
 0x637   :  { %v3726_v51 = vpop.f32.mrf.mxu3  ;;  %v3619_v45 = vpop.f32.mrf.mxu1  ;;  %6346 = vmatpush.bf16.msrb.mxu1 %v10956_v2  ;;  %v18435_v2 = vld [vmem:[#allocation11_spill] sm:$0xff] }
 0x638   :  { %18433 = vst [vmem:[#allocation12_spill] sm:$0xff] %v14617_v58  ;;  %v14619_v19 = vadd.f32 %v3726_v51, %v3617_v40 }
 0x639   :  { %6435 = vmatpush.bf16.msrb.mxu3 %v10964_v57  ;;  %v10960_v57 = vld [vmem:[#allocation2 + $0x80] sm:$0xff] }
 0x63a   :  { %v14623_v22 = vpop.f32.mrf.mxu0 }
 0x63b   :  { %6347 = vmatpush.bf16.msrb.mxu1 %v10955_v48  ;;  %v10953_v48 = vld [vmem:[#allocation2 + $0x150] sm:$0xff] }
 0x63d   :  { %6436 = vmatpush.bf16.msrb.mxu3 %v10963_v21  ;;  %v4077_v3 = vpop.f32.mrf.mxu2  ;;  %v10961_v21 = vld [vmem:[#allocation2 + $0x1a8] sm:$0xff] }
 0x63e   :  { %v14626_v10 = vadd.f32 %v4077_v3, %v14548_v25  ;;  %v18436_v25 = vld [vmem:[#allocation7_spill] sm:$0xff] }
 0x63f   :  { %v3728_v54 = vpop.f32.mrf.mxu3  ;;  %v3622_v40 = vpop.f32.mrf.mxu1  ;;  %6348 = vmatpush.bf16.msrb.mxu1 %v10954_v18 }
 0x640   :  { %18434 = vst [vmem:[#allocation70_spill] sm:$0xff] %v14626_v10  ;;  %v14628_v51 = vadd.f32 %v3728_v54, %v3619_v45  ;;  %v10952_v45 = vld [vmem:[#allocation2 + $0x120] sm:$0xff]  ;;  %v10951_v10 = vld [vmem:[#allocation2 + $0x98] sm:$0xff] }
 0x641   :  { %6437 = vmatpush.bf16.msrb.mxu3 %v10962_v43 }
 0x642   :  { %4329 = vmatmul.bf16.gmra.mxu1 %v18435_v2  ;;  %9579 = vmatmul.msk.bf16.gmra.mxu2 %vm415_vm0, %v18399_v28  ;;  %v14638_v54 = vpop.f32.mrf.mxu0 }
 0x643   :  { %4035 = vmatmul.bf16.gmra.mxu0 %v18425_v8  ;;  %6349 = vmatpush.bf16.msrb.mxu1 %v10953_v48  ;;  %v10959_v48 = vld [vmem:[#allocation2 + $0x140] sm:$0xff] }
 0x644   :  { %9634 = vmatmul.msk.bf16.gmra.mxu3 %vm415_vm0, %v18436_v25  ;;  %v10950_v25 = vld [vmem:[#allocation2 + $0x118] sm:$0xff] }
 0x645   :  { %6438 = vmatpush.bf16.msrb.mxu3 %v10961_v21  ;;  %v4080_v18 = vpop.f32.mrf.mxu2 }
 0x646   :  { %v14641_v43 = vadd.f32 %v4080_v18, %v14555_v14  ;;  %v10958_v18 = vld [vmem:[#allocation2 + $0x138] sm:$0xff] }
 0x647   :  { %v3731_v3 = vpop.f32.mrf.mxu3  ;;  %v3624_v32 = vpop.f32.mrf.mxu1  ;;  %6350 = vmatpush.bf16.msrb.mxu1 %v10952_v45  ;;  %v18440_v45 = vld [vmem:[#allocation13_spill] sm:$0xff] }
 0x648   :  { %18437 = vst [vmem:[#allocation25_spill] sm:$0xff] %v14641_v43  ;;  %v14643_v8 = vadd.f32 %v3731_v3, %v3622_v40 }
 0x649   :  { %6439 = vmatpush.bf16.msrb.mxu3 %v10960_v57 }
 0x64a   :  { %v14647_v21 = vpop.f32.mrf.mxu0 }
 0x64b   :  { %6351 = vmatpush.bf16.msrb.mxu1 %v10951_v10  ;;  %v10973_v10 = vld [vmem:[#allocation2 + $0x1d0] sm:$0xff] }
 0x64d   :  { %6440 = vmatpush.bf16.msrb.mxu3 %v10959_v48  ;;  %v4082_v58 = vpop.f32.mrf.mxu2  ;;  %v18441_v48 = vld [vmem:[#allocation6_spill] sm:$0xff] }
 0x64e   :  { %v14650_v14 = vadd.f32 %v4082_v58, %v14568_v52 }
 0x64f   :  { %v3733_v26 = vpop.f32.mrf.mxu3  ;;  %v3627_v40 = vpop.f32.mrf.mxu1  ;;  %6352 = vmatpush.bf16.msrb.mxu1 %v10950_v25 }
 0x650   :  { %18438 = vst [vmem:[#allocation55_spill] sm:$0xff] %v14650_v14  ;;  %v14652_v3 = vadd.f32 %v3733_v26, %v3624_v32  ;;  %v10972_v26 = vld [vmem:[#allocation2 + $0x148] sm:$0xff]  ;;  %v10970_v14 = vld [vmem:[#allocation2 + $0xc0] sm:$0xff] }
 0x651   :  { %6441 = vmatpush.bf16.msrb.mxu3 %v10958_v18 }
 0x652   :  { %18439 = vst [vmem:[#allocation66_spill] sm:$0xff] %v14652_v3  ;;  %4334 = vmatmul.bf16.gmra.mxu1 %v18440_v45  ;;  %9580 = vmatmul.msk.bf16.gmra.mxu2 %vm415_vm0, %v18404_v44  ;;  %v14662_v58 = vpop.f32.mrf.mxu0 }
 0x653   :  { %4708 = vmatmul.bf16.vlgmr.msrb.gmra.mxu0 %v18431_v24  ;;  %v10971_v24 = vld [vmem:[#allocation2 + $0xa0] sm:$0xff] }
 0x654   :  { %9635 = vmatmul.msk.bf16.gmra.mxu3 %vm415_vm0, %v18441_v48  ;;  %6523 = vmatpush.bf16.msrb.mxu0 %v10973_v10 }
 0x655   :  { %v4085_v32 = vpop.f32.mrf.mxu2 }
 0x656   :  { %v14665_v25 = vadd.f32 %v4085_v32, %v14577_v16  ;;  %v18445_v32 = vld [vmem:[#allocation15_spill] sm:$0xff] }
 0x657   :  { %v3736_v52 = vpop.f32.mrf.mxu3  ;;  %v3629_v18 = vpop.f32.mrf.mxu1 }
 0x658   :  { %18442 = vst [vmem:[#allocation14_spill] sm:$0xff] %v14665_v25  ;;  %v14667_v57 = vadd.f32 %v3736_v52, %v3627_v40  ;;  %6524 = vmatpush.bf16.msrb.mxu0 %v10972_v26  ;;  %v10969_v26 = vld [vmem:[#allocation2 + $0x170] sm:$0xff] }
 0x659   :  { %v18446_v52 = vld [vmem:[#allocation10_spill] sm:$0xff] }
 0x65a   :  { %v14671_v44 = vpop.f32.mrf.mxu0 }
 0x65c   :  { %6525 = vmatpush.bf16.msrb.mxu0 %v10971_v24 }
 0x65d   :  { %v4087_v10 = vpop.f32.mrf.mxu2 }
 0x65e   :  { %v14674_v48 = vadd.f32 %v4087_v10, %v14591_v15 }
 0x65f   :  { %v3738_v43 = vpop.f32.mrf.mxu3  ;;  %v3632_v3 = vpop.f32.mrf.mxu1 }
 0x660   :  { %18443 = vst [vmem:[#allocation33_spill] sm:$0xff] %v14674_v48  ;;  %v14676_v16 = vadd.f32 %v3738_v43, %v3629_v18  ;;  %6526 = vmatpush.bf16.msrb.mxu0 %v10970_v14  ;;  %v10968_v18 = vld [vmem:[#allocation2 + $0x8] sm:$0xff] }
 0x662   :  { %18444 = vst [vmem:[#allocation68_spill] sm:$0xff] %v14676_v16  ;;  %4339 = vmatmul.bf16.gmra.mxu1 %v18445_v32  ;;  %9581 = vmatmul.msk.bf16.gmra.mxu2 %vm415_vm0, %v18408_v0  ;;  %v14686_v15 = vpop.f32.mrf.mxu0  ;;  %v10967_v0 = vld [vmem:[#allocation2 + $0x1d8] sm:$0xff] }
 0x663   :  { %4713 = vmatmul.bf16.gmra.mxu0 %v18435_v2  ;;  %v18447_v2 = vmax.f32 %v18422_v5, %v14573_v13 }
 0x664   :  { %9636 = vmatmul.msk.bf16.gmra.mxu3 %vm415_vm0, %v18446_v52  ;;  %6527 = vmatpush.bf16.msrb.mxu0 %v10969_v26  ;;  %v10966_v52 = vld [vmem:[#allocation2 + $0x128] sm:$0xff] }
 0x665   :  { %v4090_v43 = vpop.f32.mrf.mxu2 }
 0x666   :  { %v14689_v24 = vadd.f32 %v4090_v43, %v14600_v29 }
 0x667   :  { %v3741_v14 = vpop.f32.mrf.mxu3  ;;  %v3634_v10 = vpop.f32.mrf.mxu1 }
 0x668   :  { %v3742_v40 = vadd.f32 %v3741_v14, %v3632_v3  ;;  %6528 = vmatpush.bf16.msrb.mxu0 %v10968_v18 }
 0x66a   :  { %v3776_v28 = vmax.f32 %v14463_v53, %v3742_v40  ;;  %v14695_v26 = vpop.f32.mrf.mxu0  ;;  %v18448_v53 = vld [vmem:[#allocation17_spill] sm:$0xff] }
 0x66c   :  { %v3786_v48 = vmax.f32 %v18447_v2, %v3776_v28  ;;  %6529 = vmatpush.bf16.msrb.mxu0 %v10967_v0  ;;  %v18449_v0 = vmax.f32 %v18424_v20, %v14581_v17  ;;  %v18450_v17 = vmax.f32 %v18428_v36, %v14596_v60  ;;  %v18452_v36 = vmax.f32 %v18430_v9, %v14604_v34  ;;  %v18490_v9 = vld [vmem:[#allocation75_spill] sm:$0xff] }
 0x66d   :  { %v4092_v25 = vpop.f32.mrf.mxu2 }
 0x66e   :  { %v14698_v46 = vadd.f32 %v4092_v25, %v14614_v47  ;;  %v3796_v28 = vadd.f32 %v3786_v48, %v12501_v50 }
 0x66f   :  { %v3743_v16 = vpop.f32.mrf.mxu3  ;;  %v3637_v29 = vpop.f32.mrf.mxu1 }
 0x670   :  { %v3744_v43 = vadd.f32 %v3743_v16, %v3634_v10  ;;  %6530 = vmatpush.bf16.msrb.mxu0 %v10966_v52 }
 0x672   :  { %v3777_v3 = vmax.f32 %v14472_v62, %v3744_v43  ;;  %4344 = vmatmul.bf16.gmra.mxu1 %v18448_v53  ;;  %9582 = vmatmul.msk.bf16.gmra.mxu2 %vm415_vm0, %v18414_v7  ;;  %v14711_v5 = vpop.f32.mrf.mxu0 }
 0x673   :  { %4718 = vmatmul.bf16.gmra.mxu0 %v18440_v45  ;;  %v3806_v45 = vmax.f32 %v3796_v28, 0.0 }
 0x674   :  { %v3787_v13 = vmax.f32 %v18449_v0, %v3777_v3  ;;  %9637 = vmatmul.msk.bf16.gmra.mxu3 %vm415_vm0, %v18042_v55 }
 0x675   :  { %v4095_v47 = vpop.f32.mrf.mxu2 }
 0x676   :  { %v3797_v62 = vadd.f32 %v3787_v13, %v18221_v63  ;;  %v14715_v16 = vadd.f32 %v4095_v47, %v14623_v22 }
 0x677   :  { %v3746_v25 = vpop.f32.mrf.mxu3  ;;  %v3639_v40 = vpop.f32.mrf.mxu1 }
 0x678   :  { %v3807_v52 = vmax.f32 %v3797_v62, 0.0  ;;  %v3747_v48 = vadd.f32 %v3746_v25, %v3637_v29  ;;  %v18451_v29 = vld [vmem:[#allocation19_spill] sm:$0xff] }
 0x67a   :  { %v11279_v18 = vpack.c.bf16 %v3807_v52, %v3806_v45  ;;  %v3778_v20 = vmax.f32 %v14489_v39, %v3747_v48  ;;  %v14721_v10 = vpop.f32.mrf.mxu0  ;;  %v18453_v48 = vmax.f32 %v14385_v59, %v14619_v19 }
 0x67c   :  { %11495 = vst [vmem:[#allocation2 + $0xb8] sm:$0xff] %v11279_v18   ;;  %v3788_v14 = vmax.f32 %v18450_v17, %v3778_v20  ;;  %v5056_v20 = vld [vmem:[%s17495_s4 + $0x20] sm:$0xff] }
 0x67d   :  { %v4097_v2 = vpop.f32.mrf.mxu2  ;;  %5082 = vperm.xlu0 %11547, %v5056_v20  }
 0x67e   :  { %v14724_v3 = vadd.f32 %v4097_v2, %v14638_v54  ;;  %v3798_v39 = vadd.f32 %v3788_v14, %v12564_v35 }
 0x67f   :  { %v3748_v43 = vpop.f32.mrf.mxu3  ;;  %v3642_v22 = vpop.f32.mrf.mxu1 }
 0x680   :  { %v3749_v0 = vadd.f32 %v3748_v43, %v3639_v40 }
 0x682   :  { %v3779_v28 = vmax.f32 %v14498_v4, %v3749_v0  ;;  %4349 = vmatmul.bf16.gmra.mxu1 %v18451_v29  ;;  %9583 = vmatmul.msk.bf16.gmra.mxu2 %vm415_vm0, %v18420_v38  ;;  %v14737_v54 = vpop.f32.mrf.mxu0  ;;  %v18454_v0 = vld [vmem:[#allocation21_spill] sm:$0xff]  ;;  %v18494_v38 = vld [vmem:[#allocation12_spill] sm:$0xff] }
 0x683   :  { %4723 = vmatmul.bf16.gmra.mxu0 %v18445_v32  ;;  %v3808_v32 = vmax.f32 %v3798_v39, 0.0  ;;  %v5055_v39 = vld [vmem:[%s17495_s4 + $0x18] sm:$0xff] }
 0x684   :  { %v3789_v60 = vmax.f32 %v18452_v36, %v3779_v28  ;;  %9638 = vmatmul.msk.bf16.gmra.mxu3 %vm415_vm0, %v18049_v30  ;;  %v5057_v28 = vld [vmem:[%s17495_s4 + $0x28] sm:$0xff] }
 0x685   :  { %v4100_v13 = vpop.f32.mrf.mxu2  ;;  %5077 = vperm.xlu0 %11547, %v5055_v39   ;;  %v18459_v39 = vld [vmem:[#allocation72_spill] sm:$0xff] }
 0x686   :  { %v3799_v4 = vadd.f32 %v3789_v60, %v12567_v12  ;;  %v14741_v47 = vadd.f32 %v4100_v13, %v14647_v21  ;;  %v5058_v21 = vld [vmem:[%s17495_s4 + $0x30] sm:$0xff] }
 0x687   :  { %v3751_v62 = vpop.f32.mrf.mxu3  ;;  %v3644_v25 = vpop.f32.mrf.mxu1  ;;  %5092 = vperm.xlu1 %11548, %v5058_v21   ;;  %v8122_v21 = vld [vmem:[%s17496_s6 + $0x70] sm:$0xff] }
 0x688   :  { %v3809_v40 = vmax.f32 %v3799_v4, 0.0  ;;  %v3752_v45 = vadd.f32 %v3751_v62, %v3642_v22 }
 0x68a   :  { %v11284_v34 = vpack.c.bf16 %v3809_v40, %v3808_v32  ;;  %v3780_v52 = vmax.f32 %v14515_v11, %v3752_v45  ;;  %v14755_v17 = vpop.f32.mrf.mxu0 }
 0x68c   :  { %11496 = vst [vmem:[#allocation2] sm:$0xff] %v11284_v34   ;;  %v3790_v18 = vmax.f32 %v18453_v48, %v3780_v52  ;;  %v18456_v34 = vld [vmem:[#allocation58_spill] sm:$0xff]  ;;  %v18457_v48 = vmax.f32 %v14411_v61, %v14643_v8  ;;  %v18458_v8 = vld [vmem:[#allocation29_spill] sm:$0xff] }
 0x68d   :  { %v4102_v14 = vpop.f32.mrf.mxu2  ;;  %8195 = vperm.xlu0 %11547, %v8122_v21  }
 0x68e   :  { %v14758_v11 = vadd.f32 %v4102_v14, %v14662_v58  ;;  %v3800_v58 = vadd.f32 %v3790_v18, %v12519_v37 }
 0x68f   :  { %v3753_v2 = vpop.f32.mrf.mxu3  ;;  %v3647_v43 = vpop.f32.mrf.mxu1  ;;  %5087 = vperm.xlu1 %11548, %v5057_v28   ;;  %v5059_v28 = vld [vmem:[%s17495_s4 + $0x38] sm:$0xff] }
 0x690   :  { %v3754_v59 = vadd.f32 %v3753_v2, %v3644_v25  ;;  %v3810_v32 = vmax.f32 %v3800_v58, 0.0  ;;  %5097 = vperm.xlu2 %11549, %v5059_v28   ;;  %v18467_v28 = vld [vmem:[#allocation65_spill] sm:$0xff] }
 0x692   :  { %v3781_v22 = vmax.f32 %v14522_v23, %v3754_v59  ;;  %4354 = vmatmul.bf16.gmra.mxu1 %v18454_v0  ;;  %9584 = vmatmul.msk.bf16.gmra.mxu2 %vm415_vm0, %v18426_v56  ;;  %v18455_v23 = vmax.f32 %v14394_v33, %v14628_v51  ;;  %v14779_v60 = vpop.f32.mrf.mxu0  ;;  %v8115_v56 = vld [vmem:[%s17496_s6 + $0x38] sm:$0xff] }
 0x693   :  { %4728 = vmatmul.bf16.gmra.mxu0 %v18448_v53 }
 0x694   :  { %v3791_v36 = vmax.f32 %v18455_v23, %v3781_v22  ;;  %9639 = vmatmul.msk.bf16.gmra.mxu3 %vm415_vm0, %v18059_v1  ;;  %v18460_v23 = vld [vmem:[#allocation23_spill] sm:$0xff] }
 0x695   :  { %v4105_v13 = vpop.f32.mrf.mxu2 }
 0x696   :  { %v3801_v4 = vadd.f32 %v3791_v36, %v12541_v42  ;;  %v14783_v25 = vadd.f32 %v4105_v13, %v14671_v44  ;;  %v5052_v44 = vld [vmem:[%s17495_s4] sm:$0xff] }
 0x697   :  { %v3756_v62 = vpop.f32.mrf.mxu3  ;;  %v3649_v53 = vpop.f32.mrf.mxu1  ;;  %5062 = vperm.xlu1 %11548, %v5052_v44   ;;  %v10979_v36 = vld [vmem:[#allocation2 + $0x1a0] sm:$0xff]  ;;  %v10978_v44 = vld [vmem:[#allocation2 + $0x190] sm:$0xff] }
 0x698   :  { %v3811_v40 = vmax.f32 %v3801_v4, 0.0  ;;  %v3757_v45 = vadd.f32 %v3756_v62, %v3647_v43  ;;  %v8120_v4 = vld [vmem:[%s17496_s6 + $0x60] sm:$0xff]  ;;  %v18462_v62 = vld [vmem:[#allocation77_spill] sm:$0xff] }
 0x699   :  { %v18461_v13 = vld [vmem:[#allocation4_spill] sm:$0xff] }
 0x69a   :  { %v11289_v51 = vpack.c.bf16 %v3811_v40, %v3810_v32  ;;  %v3782_v52 = vmax.f32 %v18456_v34, %v3757_v45  ;;  %v14797_v20 = vpop.f32.mrf.mxu0  ;;  %v18463_v32 = vld [vmem:[#allocation66_spill] sm:$0xff] }
 0x69b   :  { %v18464_v40 = vmax.f32 %v14420_v6, %v18463_v32 }
 0x69c   :  { %11497 = vst [vmem:[#allocation2 + $0x38] sm:$0xff] %v11289_v51   ;;  %v3792_v18 = vmax.f32 %v18457_v48, %v3782_v52  ;;  %v18465_v51 = vld [vmem:[#allocation18_spill] sm:$0xff]  ;;  %v18466_v52 = vld [vmem:[#allocation52_spill] sm:$0xff] }
 0x69d   :  { %v4107_v14 = vpop.f32.mrf.mxu2 }
 0x69e   :  { %v14800_v43 = vadd.f32 %v4107_v14, %v14686_v15  ;;  %v8118_v15 = vld [vmem:[%s17496_s6 + $0x50] sm:$0xff] }
 0x69f   :  { %v3758_v2 = vpop.f32.mrf.mxu3  ;;  %v3652_v59 = vpop.f32.mrf.mxu1  ;;  %8185 = vperm.xlu1 %11548, %v8120_v4   ;;  %8175 = vperm.xlu0 %11547, %v8118_v15   ;;  %v18468_v4 = vld [vmem:[#allocation43_spill] sm:$0xff] }
 0x6a0   :  { %v3759_v61 = vadd.f32 %v3758_v2, %v3649_v53  ;;  %v3802_v53 = vadd.f32 %v3792_v18, %v18462_v62 }
 0x6a2   :  { %v3783_v58 = vmax.f32 %v18459_v39, %v3759_v61  ;;  %4359 = vmatmul.bf16.gmra.mxu1 %v18460_v23  ;;  %9701 = vmatmul.msk.bf16.vlgmr.msra.gmra.mxu2 %vm415_vm0, %v18461_v13  ;;  %v14824_v34 = vpop.f32.mrf.mxu0  ;;  %v3812_v2 = vmax.f32 %v3802_v53, 0.0  ;;  %v10977_v13 = vld [vmem:[#allocation2 + $0xa8] sm:$0xff]  ;;  %v18469_v53 = vmax.f32 %v14437_v49, %v14667_v57  ;;  %v18471_v57 = vld [vmem:[#allocation30_spill] sm:$0xff] }
 0x6a3   :  { %4733 = vmatmul.bf16.gmra.mxu0 %v18451_v29  ;;  %6614 = vmatpush.bf16.msra.mxu2 %v10979_v36  ;;  %v5053_v49 = vld [vmem:[%s17495_s4 + $0x8] sm:$0xff] }
 0x6a4   :  { %v3793_v45 = vmax.f32 %v18464_v40, %v3783_v58  ;;  %9640 = vmatmul.msk.bf16.gmra.mxu3 %vm415_vm0, %v18465_v51  ;;  %v5054_v58 = vld [vmem:[%s17495_s4 + $0x10] sm:$0xff] }
 0x6a5   :  { %v4110_v29 = vpop.f32.mrf.mxu2  ;;  %5072 = vperm.xlu2 %11549, %v5054_v58  }
 0x6a6   :  { %v3803_v48 = vadd.f32 %v3793_v45, %v18466_v52  ;;  %v14828_v14 = vadd.f32 %v4110_v29, %v14695_v26  ;;  %v8119_v26 = vld [vmem:[%s17496_s6 + $0x58] sm:$0xff] }
 0x6a7   :  { %v3761_v21 = vpop.f32.mrf.mxu3  ;;  %v3654_v18 = vpop.f32.mrf.mxu1  ;;  %6615 = vmatpush.bf16.msra.mxu2 %v10978_v44  ;;  %8180 = vperm.xlu1 %11548, %v8119_v26  }
 0x6a8   :  { %v3813_v6 = vmax.f32 %v3803_v48, 0.0  ;;  %v3762_v61 = vadd.f32 %v3761_v21, %v3652_v59  ;;  %v8117_v59 = vld [vmem:[%s17496_s6 + $0x48] sm:$0xff]  ;;  %v10976_v48 = vld [vmem:[#allocation2 + $0x40] sm:$0xff] }
 0x6a9   :  { %8170 = vperm.xlu0 %11547, %v8117_v59   ;;  %v18475_v59 = vld [vmem:[#allocation57_spill] sm:$0xff] }
 0x6aa   :  { %v11294_v36 = vpack.c.bf16 %v3813_v6, %v3812_v2  ;;  %v3784_v15 = vmax.f32 %v18468_v4, %v3762_v61  ;;  %v14845_v40 = vpop.f32.mrf.mxu0  ;;  %v18470_v6 = vld [vmem:[#allocation61_spill] sm:$0xff]  ;;  %v10975_v4 = vld [vmem:[#allocation2 + $0xf8] sm:$0xff]  ;;  %v10974_v61 = vld [vmem:[#allocation2 + $0x100] sm:$0xff] }
 0x6ab   :  { %6616 = vmatpush.bf16.msra.mxu2 %v10977_v13  ;;  %v18474_v13 = vld [vmem:[#allocation50_spill] sm:$0xff] }
 0x6ac   :  { %11498 = vst [vmem:[#allocation2 + $0x20] sm:$0xff] %v11294_v36   ;;  %v3794_v32 = vmax.f32 %v18469_v53, %v3784_v15  ;;  %v18472_v36 = vld [vmem:[#allocation27_spill] sm:$0xff]  ;;  %v18476_v53 = vld [vmem:[#allocation68_spill] sm:$0xff] }
 0x6ad   :  { %v4112_v45 = vpop.f32.mrf.mxu2  ;;  %5067 = vperm.xlu2 %11549, %v5053_v49   ;;  %v18473_v15 = vld [vmem:[#allocation7_spill] sm:$0xff] }
 0x6ae   :  { %v14848_v44 = vadd.f32 %v4112_v45, %v14711_v5  ;;  %v8114_v5 = vld [vmem:[%s17496_s6 + $0x30] sm:$0xff]  ;;  %v3804_v26 = vadd.f32 %v3794_v32, %v18474_v13  ;;  %v18477_v45 = vmax.f32 %v18475_v59, %v18476_v53  ;;  %v18479_v49 = vld [vmem:[#allocation51_spill] sm:$0xff]  ;;  %v8113_v53 = vld [vmem:[%s17496_s6 + $0x28] sm:$0xff] }
 0x6af   :  { %v3763_v29 = vpop.f32.mrf.mxu3  ;;  %v4325_v21 = vpop.f32.mrf.mxu1  ;;  %6617 = vmatpush.bf16.msra.mxu2 %v10976_v48  ;;  %8155 = vperm.xlu1 %11548, %v8114_v5  }
 0x6b0   :  { %v3764_v2 = vadd.f32 %v3763_v29, %v3654_v18  ;;  %v8112_v18 = vld [vmem:[%s17496_s6 + $0x20] sm:$0xff]  ;;  %v3814_v22 = vmax.f32 %v3804_v26, 0.0 }
 0x6b1   :  { %v18478_v29 = vld [vmem:[#allocation20_spill] sm:$0xff]  ;;  %8145 = vperm.xlu0 %11547, %v8112_v18  }
 0x6b2   :  { %v3785_v58 = vmax.f32 %v18471_v57, %v3764_v2  ;;  %4364 = vmatmul.bf16.gmra.mxu1 %v18472_v36  ;;  %9702 = vmatmul.msk.bf16.gmra.mxu2 %vm415_vm0, %v18473_v15  ;;  %v14872_v2 = vpop.f32.mrf.mxu0 }
 0x6b3   :  { %4738 = vmatmul.bf16.gmra.mxu0 %v18454_v0  ;;  %6618 = vmatpush.bf16.msra.mxu2 %v10975_v4  ;;  %v18481_v4 = vld [vmem:[#allocation62_spill] sm:$0xff] }
 0x6b4   :  { %v3795_v48 = vmax.f32 %v18477_v45, %v3785_v58  ;;  %9641 = vmatmul.msk.bf16.gmra.mxu3 %vm415_vm0, %v18478_v29 }
 0x6b5   :  { %v4115_v0 = vpop.f32.mrf.mxu2 }
 0x6b6   :  { %v3805_v57 = vadd.f32 %v3795_v48, %v18479_v49  ;;  %v14876_v15 = vadd.f32 %v4115_v0, %v14721_v10  ;;  %v8111_v10 = vld [vmem:[%s17496_s6 + $0x18] sm:$0xff] }
 0x6b7   :  { %v4434_v32 = vpop.f32.mrf.mxu3  ;;  %v4327_v39 = vpop.f32.mrf.mxu1  ;;  %6619 = vmatpush.bf16.msra.mxu2 %v10974_v61  ;;  %8150 = vperm.xlu1 %11548, %v8113_v53   ;;  %v18483_v0 = vld [vmem:[#allocation63_spill] sm:$0xff]  ;;  %v18485_v53 = vld [vmem:[#allocation6_spill] sm:$0xff] }
 0x6b8   :  { %v3815_v59 = vmax.f32 %v3805_v57, 0.0  ;;  %v14878_v58 = vadd.f32 %v4434_v32, %v4325_v21 }
 0x6b9   :  { %8140 = vperm.xlu0 %11547, %v8111_v10  }
 0x6ba   :  { %18480 = vst [vmem:[#allocation76_spill] sm:$0xff] %v14878_v58  ;;  %v11299_v18 = vpack.c.bf16 %v3815_v59, %v3814_v22  ;;  %v14888_v26 = vpop.f32.mrf.mxu0  ;;  %v8121_v22 = vld [vmem:[%s17496_s6 + $0x68] sm:$0xff]  ;;  %v18484_v59 = vld [vmem:[#allocation31_spill] sm:$0xff] }
 0x6bb   :  { %8190 = vperm.xlu2 %11549, %v8121_v22  }
 0x6bc   :  { %11499 = vst [vmem:[#allocation2 + $0x10] sm:$0xff] %v11299_v18   ;;  %v8108_v18 = vld [vmem:[%s17496_s6] sm:$0xff] }
 0x6bd   :  { %v4117_v21 = vpop.f32.mrf.mxu2 }
 0x6be   :  { %v14891_v61 = vadd.f32 %v4117_v21, %v14737_v54  ;;  %v8511_v54 = vld [vmem:[%s17497_s8 + $0x50] sm:$0xf] }
 0x6bf   :  { %v4436_v45 = vpop.f32.mrf.mxu3  ;;  %v4330_v48 = vpop.f32.mrf.mxu1  ;;  %8125 = vperm.xlu1 %11548, %v8108_v18   ;;  %v8509_v18 = vld [vmem:[%s17497_s8 + $0x40] sm:$0xff] }
 0x6c0   :  { %v14896_v57 = vadd.f32 %v4436_v45, %v4327_v39  ;;  %v18486_v39 = vld [vmem:[#allocation22_spill] sm:$0xff] }
 0x6c1   :  { %8564 = vperm.xlu0 %11547, %v8511_v54  }
 0x6c2   :  { %18482 = vst [vmem:[#allocation53_spill] sm:$0xff] %v14896_v57  ;;  %4369 = vmatmul.bf16.gmra.mxu1 %v18484_v59  ;;  %9703 = vmatmul.msk.bf16.gmra.mxu2 %vm415_vm0, %v18485_v53  ;;  %v14912_v10 = vpop.f32.mrf.mxu0  ;;  %v8116_v53 = vld [vmem:[%s17496_s6 + $0x40] sm:$0xff] }
 0x6c3   :  { %4743 = vmatmul.bf16.gmra.mxu0 %v18460_v23  ;;  %v18488_v23 = vld [vmem:[#allocation44_spill] sm:$0xff]  ;;  %8165 = vperm.xlu2 %11549, %v8116_v53   ;;  %v18491_v53 = vld [vmem:[#allocation35_spill] sm:$0xff] }
 0x6c4   :  { %9642 = vmatmul.msk.bf16.gmra.mxu3 %vm415_vm0, %v18486_v39 }
 0x6c5   :  { %v4120_v21 = vpop.f32.mrf.mxu2 }
 0x6c6   :  { %v14915_v45 = vadd.f32 %v4120_v21, %v14755_v17  ;;  %v8507_v17 = vld [vmem:[%s17497_s8 + $0x30] sm:$0xff] }
 0x6c7   :  { %v4439_v22 = vpop.f32.mrf.mxu3  ;;  %v4332_v32 = vpop.f32.mrf.mxu1  ;;  %8554 = vperm.xlu1 %11548, %v8509_v18   ;;  %v8508_v18 = vld [vmem:[%s17497_s8 + $0x38] sm:$0xff] }
 0x6c8   :  { %v14917_v5 = vadd.f32 %v4439_v22, %v4330_v48 }
 0x6c9   :  { %8544 = vperm.xlu0 %11547, %v8507_v17   ;;  %v18493_v17 = vld [vmem:[#allocation24_spill] sm:$0xff] }
 0x6ca   :  { %18487 = vst [vmem:[#allocation69_spill] sm:$0xff] %v14917_v5  ;;  %v14930_v48 = vpop.f32.mrf.mxu0 }
 0x6cb   :  { %8160 = vperm.xlu2 %11549, %v8115_v56   ;;  %v8110_v56 = vld [vmem:[%s17496_s6 + $0x10] sm:$0xff] }
 0x6cd   :  { %v4122_v54 = vpop.f32.mrf.mxu2 }
 0x6ce   :  { %v14933_v21 = vadd.f32 %v4122_v54, %v14779_v60  ;;  %v8506_v60 = vld [vmem:[%s17497_s8 + $0x28] sm:$0xff] }
 0x6cf   :  { %v4441_v22 = vpop.f32.mrf.mxu3  ;;  %v4335_v33 = vpop.f32.mrf.mxu1  ;;  %8549 = vperm.xlu1 %11548, %v8508_v18   ;;  %v8503_v18 = vld [vmem:[%s17497_s8 + $0x10] sm:$0xff] }
 0x6d0   :  { %v14935_v19 = vadd.f32 %v4441_v22, %v4332_v32  ;;  %v18492_v32 = vld [vmem:[#allocation10_spill] sm:$0xff] }
 0x6d1   :  { %8539 = vperm.xlu0 %11547, %v8506_v60   ;;  %v18497_v60 = vld [vmem:[#allocation70_spill] sm:$0xff] }
 0x6d2   :  { %18489 = vst [vmem:[#allocation16_spill] sm:$0xff] %v14935_v19  ;;  %4374 = vmatmul.bf16.gmra.mxu1 %v18491_v53  ;;  %9704 = vmatmul.msk.bf16.gmra.mxu2 %vm415_vm0, %v18492_v32  ;;  %v14954_v54 = vpop.f32.mrf.mxu0  ;;  %v18495_v32 = vmax.f32 %v14513_v31, %v14741_v47 }
 0x6d3   :  { %4748 = vmatmul.bf16.gmra.mxu0 %v18472_v36  ;;  %8135 = vperm.xlu2 %11549, %v8110_v56   ;;  %v8502_v56 = vld [vmem:[%s17497_s8 + $0x8] sm:$0xff] }
 0x6d4   :  { %9643 = vmatmul.msk.bf16.gmra.mxu3 %vm415_vm0, %v18493_v17 }
 0x6d5   :  { %v4125_v22 = vpop.f32.mrf.mxu2 }
 0x6d6   :  { %v4126_v5 = vadd.f32 %v4125_v22, %v14797_v20  ;;  %v8501_v20 = vld [vmem:[%s17497_s8] sm:$0xff] }
 0x6d7   :  { %v4444_v19 = vpop.f32.mrf.mxu3  ;;  %v4337_v57 = vpop.f32.mrf.mxu1  ;;  %8524 = vperm.xlu1 %11548, %v8503_v18  }
 0x6d8   :  { %v14957_v58 = vadd.f32 %v4444_v19, %v4335_v33  ;;  %v4160_v36 = vmax.f32 %v18494_v38, %v4126_v5 }
 0x6d9   :  { %8514 = vperm.xlu0 %11547, %v8501_v20  }
 0x6da   :  { %v4170_v7 = vmax.f32 %v18495_v32, %v4160_v36  ;;  %v14972_v38 = vpop.f32.mrf.mxu0  ;;  %v8109_v36 = vld [vmem:[%s17496_s6 + $0x8] sm:$0xff]  ;;  %v18498_v32 = vld [vmem:[#allocation39_spill] sm:$0xff] }
 0x6db   :  { %8130 = vperm.xlu2 %11549, %v8109_v36   ;;  %v18502_v36 = vmax.f32 %v14531_v41, %v14783_v25  ;;  %v8505_v41 = vld [vmem:[%s17497_s8 + $0x20] sm:$0xff]  ;;  %v18504_v25 = vld [vmem:[#allocation41_spill] sm:$0xff] }
 0x6dc   :  { %v4180_v18 = vadd.f32 %v4170_v7, %v12501_v50 }
 0x6dd   :  { %v4127_v19 = vpop.f32.mrf.mxu2 }
 0x6de   :  { %v4128_v31 = vadd.f32 %v4127_v19, %v14824_v34  ;;  %v8675_v34 = vld [vmem:[%s17498_s10] sm:$0xff] }
 0x6df   :  { %v4446_v47 = vpop.f32.mrf.mxu3  ;;  %v4340_v33 = vpop.f32.mrf.mxu1  ;;  %v18500_v19 = vld [vmem:[#allocation28_spill] sm:$0xff]  ;;  %8519 = vperm.xlu1 %11548, %v8502_v56  }
 0x6e0   :  { %v14975_v5 = vadd.f32 %v4446_v47, %v4337_v57  ;;  %v4161_v22 = vmax.f32 %v18497_v60, %v4128_v31  ;;  %v18499_v57 = vmax.f32 %v14520_v27, %v14758_v11  ;;  %v4190_v60 = vmax.f32 %v4180_v18, 0.0 }
 0x6e1   :  { %8679 = vperm.xlu0 %11547, %v8675_v34   ;;  %v8510_v34 = vld [vmem:[%s17497_s8 + $0x48] sm:$0xff] }
 0x6e2   :  { %18496 = vst [vmem:[#allocation60_spill] sm:$0xff] %v14975_v5  ;;  %4379 = vmatmul.bf16.gmra.mxu1 %v18498_v32  ;;  %v4171_v20 = vmax.f32 %v18499_v57, %v4161_v22  ;;  %9705 = vmatmul.msk.bf16.gmra.mxu2 %vm415_vm0, %v18042_v55  ;;  %v14998_v47 = vpop.f32.mrf.mxu0  ;;  %v18501_v57 = vld [vmem:[#allocation25_spill] sm:$0xff] }
 0x6e3   :  { %4753 = vmatmul.bf16.gmra.mxu0 %v18484_v59  ;;  %8559 = vperm.xlu2 %11549, %v8510_v34  }
 0x6e4   :  { %9644 = vmatmul.msk.bf16.gmra.mxu3 %vm415_vm0, %v18500_v19  ;;  %v4181_v31 = vadd.f32 %v4171_v20, %v18221_v63 }
 0x6e5   :  { %v4130_v7 = vpop.f32.mrf.mxu2 }
 0x6e6   :  { %v4191_v50 = vmax.f32 %v4181_v31, 0.0  ;;  %v4131_v27 = vadd.f32 %v4130_v7, %v14845_v40  ;;  %v18503_v7 = vld [vmem:[#allocation55_spill] sm:$0xff] }
 0x6e7   :  { %v4449_v11 = vpop.f32.mrf.mxu3  ;;  %v4342_v59 = vpop.f32.mrf.mxu1 }
 0x6e8   :  { %v15001_v22 = vadd.f32 %v4449_v11, %v4340_v33  ;;  %v11304_v55 = vpack.c.bf16 %v4191_v50, %v4190_v60  ;;  %v4162_v5 = vmax.f32 %v18501_v57, %v4131_v27  ;;  %v18505_v27 = vmax.f32 %v18458_v8, %v14800_v43 }
 0x6ea   :  { %11500 = vst [vmem:[#allocation2 + $0x58] sm:$0xff] %v11304_v55   ;;  %v4172_v56 = vmax.f32 %v18502_v36, %v4162_v5  ;;  %v15010_v18 = vpop.f32.mrf.mxu0 }
 0x6eb   :  { %8534 = vperm.xlu2 %11549, %v8505_v41  }
 0x6ec   :  { %v4182_v5 = vadd.f32 %v4172_v56, %v12564_v35 }
 0x6ed   :  { %v4132_v40 = vpop.f32.mrf.mxu2 }
 0x6ee   :  { %v4133_v20 = vadd.f32 %v4132_v40, %v14872_v2  ;;  %v18506_v2 = vld [vmem:[#allocation32_spill] sm:$0xff]  ;;  %v4192_v36 = vmax.f32 %v4182_v5, 0.0 }
 0x6ef   :  { %v4451_v33 = vpop.f32.mrf.mxu3  ;;  %v4345_v31 = vpop.f32.mrf.mxu1 }
 0x6f0   :  { %v15013_v50 = vadd.f32 %v4451_v33, %v4342_v59  ;;  %v4163_v60 = vmax.f32 %v18503_v7, %v4133_v20  ;;  %v18507_v20 = vld [vmem:[#allocation14_spill] sm:$0xff]  ;;  %v18508_v33 = vmax.f32 %v18467_v28, %v14828_v14  ;;  %v8676_v14 = vld [vmem:[%s17498_s10 + $0x8] sm:$0x3] }
 0x6f1   :  { %v18510_v28 = vld [vmem:[#allocation45_spill] sm:$0xff] }
 0x6f2   :  { %4384 = vmatmul.bf16.gmra.mxu1 %v18504_v25  ;;  %v4173_v11 = vmax.f32 %v18505_v27, %v4163_v60  ;;  %9706 = vmatmul.msk.bf16.gmra.mxu2 %vm415_vm0, %v18049_v30  ;;  %v15030_v55 = vpop.f32.mrf.mxu0  ;;  %v8504_v60 = vld [vmem:[%s17497_s8 + $0x18] sm:$0xff] }
 0x6f3   :  { %4758 = vmatmul.bf16.gmra.mxu0 %v18491_v53  ;;  %8529 = vperm.xlu2 %11549, %v8504_v60   ;;  %v18513_v60 = vmax.f32 %v18481_v4, %v14876_v15  ;;  %v18516_v4 = vld [vmem:[#allocation40_spill] sm:$0xff] }
 0x6f4   :  { %9645 = vmatmul.msk.bf16.gmra.mxu3 %vm415_vm0, %v18506_v2  ;;  %v4183_v59 = vadd.f32 %v4173_v11, %v12567_v12 }
 0x6f5   :  { %v4135_v57 = vpop.f32.mrf.mxu2 }
 0x6f6   :  { %v4193_v56 = vmax.f32 %v4183_v59, 0.0  ;;  %v4136_v34 = vadd.f32 %v4135_v57, %v14888_v26  ;;  %v18509_v59 = vld [vmem:[#allocation33_spill] sm:$0xff] }
 0x6f7   :  { %v4454_v43 = vpop.f32.mrf.mxu3  ;;  %v4347_v8 = vpop.f32.mrf.mxu1 }
 0x6f8   :  { %v15033_v40 = vadd.f32 %v4454_v43, %v4345_v31  ;;  %v11309_v53 = vpack.c.bf16 %v4193_v56, %v4192_v36  ;;  %v4164_v30 = vmax.f32 %v18507_v20, %v4136_v34  ;;  %v18511_v56 = vmax.f32 %v18470_v6, %v14848_v44 }
 0x6fa   :  { %11501 = vst [vmem:[#allocation2 + $0x88] sm:$0xff] %v11309_v53   ;;  %v4174_v7 = vmax.f32 %v18508_v33, %v4164_v30  ;;  %v15042_v41 = vpop.f32.mrf.mxu0 }
 0x6fb   :  { %8684 = vperm.xlu2 %11549, %v8676_v14  }
 0x6fc   :  { %v4184_v36 = vadd.f32 %v4174_v7, %v12519_v37 }
 0x6fd   :  { %v4137_v26 = vpop.f32.mrf.mxu2 }
 0x6fe   :  { %v4138_v5 = vadd.f32 %v4137_v26, %v14912_v10  ;;  %v18512_v10 = vld [vmem:[#allocation36_spill] sm:$0xff]  ;;  %v4194_v20 = vmax.f32 %v4184_v36, 0.0  ;;  %v18514_v36 = vld [vmem:[#allocation47_spill] sm:$0xff] }
 0x6ff   :  { %v4456_v31 = vpop.f32.mrf.mxu3  ;;  %v4350_v27 = vpop.f32.mrf.mxu1 }
 0x700   :  { %v15045_v11 = vadd.f32 %v4456_v31, %v4347_v8  ;;  %v4165_v57 = vmax.f32 %v18509_v59, %v4138_v5 }
 0x702   :  { %4389 = vmatmul.bf16.gmra.mxu1 %v18510_v28  ;;  %v4175_v34 = vmax.f32 %v18511_v56, %v4165_v57  ;;  %9707 = vmatmul.msk.bf16.gmra.mxu2 %vm415_vm0, %v18059_v1  ;;  %v15062_v8 = vpop.f32.mrf.mxu0  ;;  %v18515_v56 = vmax.f32 %v18483_v0, %v14891_v61 }
 0x703   :  { %4763 = vmatmul.bf16.gmra.mxu0 %v18498_v32 }
 0x704   :  { %9646 = vmatmul.msk.bf16.gmra.mxu3 %vm415_vm0, %v18512_v10  ;;  %v4185_v43 = vadd.f32 %v4175_v34, %v12541_v42 }
 0x705   :  { %v4140_v53 = vpop.f32.mrf.mxu2 }
 0x706   :  { %v4195_v30 = vmax.f32 %v4185_v43, 0.0  ;;  %v4141_v33 = vadd.f32 %v4140_v53, %v14930_v48 }
 0x707   :  { %v4459_v44 = vpop.f32.mrf.mxu3  ;;  %v4352_v6 = vpop.f32.mrf.mxu1 }
 0x708   :  { %v15065_v7 = vadd.f32 %v4459_v44, %v4350_v27  ;;  %v11314_v32 = vpack.c.bf16 %v4195_v30, %v4194_v20  ;;  %v4166_v1 = vmax.f32 %v14689_v24, %v4141_v33 }
 0x70a   :  { %11502 = vst [vmem:[#allocation2 + $0xd0] sm:$0xff] %v11314_v32   ;;  %v4176_v26 = vmax.f32 %v18513_v60, %v4166_v1  ;;  %v15071_v5 = vpop.f32.mrf.mxu0 }
 0x70c   :  { %v4186_v24 = vadd.f32 %v4176_v26, %v18462_v62 }
 0x70d   :  { %v4142_v31 = vpop.f32.mrf.mxu2 }
 0x70e   :  { %v4143_v59 = vadd.f32 %v4142_v31, %v14954_v54  ;;  %v4196_v43 = vmax.f32 %v4186_v24, 0.0 }
 0x70f   :  { %v4461_v57 = vpop.f32.mrf.mxu3  ;;  %v4355_v14 = vpop.f32.mrf.mxu1 }
 0x710   :  { %v15074_v48 = vadd.f32 %v4461_v57, %v4352_v6  ;;  %v4167_v27 = vmax.f32 %v14698_v46, %v4143_v59  ;;  %v18518_v59 = vld [vmem:[#allocation49_spill] sm:$0xff]  ;;  %v18519_v57 = vmax.f32 %v18490_v9, %v14933_v21 }
 0x712   :  { %4394 = vmatmul.bf16.gmra.mxu1 %v18514_v36  ;;  %v4177_v15 = vmax.f32 %v18515_v56, %v4167_v27  ;;  %9708 = vmatmul.msk.bf16.gmra.mxu2 %vm415_vm0, %v18465_v51  ;;  %v15088_v34 = vpop.f32.mrf.mxu0  ;;  %v18517_v51 = vmax.f32 %v18488_v23, %v14915_v45  ;;  %v18520_v23 = vld [vmem:[#allocation42_spill] sm:$0xff] }
 0x713   :  { %4768 = vmatmul.bf16.gmra.mxu0 %v18504_v25 }
 0x714   :  { %9647 = vmatmul.msk.bf16.gmra.mxu3 %vm415_vm0, %v18516_v4  ;;  %v4187_v54 = vadd.f32 %v4177_v15, %v18466_v52  ;;  %v10983_v52 = vld [vmem:[#allocation2 + $0x28] sm:$0xff] }
 0x715   :  { %v4145_v46 = vpop.f32.mrf.mxu2 }
 0x716   :  { %v4197_v53 = vmax.f32 %v4187_v54, 0.0  ;;  %v4146_v20 = vadd.f32 %v4145_v46, %v14972_v38 }
 0x717   :  { %v4464_v30 = vpop.f32.mrf.mxu3  ;;  %v4357_v61 = vpop.f32.mrf.mxu1 }
 0x718   :  { %v15091_v0 = vadd.f32 %v4464_v30, %v4355_v14  ;;  %v11319_v25 = vpack.c.bf16 %v4197_v53, %v4196_v43  ;;  %v4168_v33 = vmax.f32 %v14715_v16, %v4146_v20  ;;  %v18521_v30 = vld [vmem:[#allocation54_spill] sm:$0xff] }
 0x71a   :  { %11503 = vst [vmem:[#allocation2 + $0x68] sm:$0xff] %v11319_v25   ;;  %v4178_v44 = vmax.f32 %v18517_v51, %v4168_v33  ;;  %v15097_v6 = vpop.f32.mrf.mxu0 }
 0x71c   :  { %v4188_v16 = vadd.f32 %v4178_v44, %v18474_v13  ;;  %v18543_v13 = vld [vmem:[#allocation16_spill] sm:$0xff] }
 0x71d   :  { %v4147_v32 = vpop.f32.mrf.mxu2 }
 0x71e   :  { %v4148_v1 = vadd.f32 %v4147_v32, %v14998_v47  ;;  %v4198_v27 = vmax.f32 %v4188_v16, 0.0 }
 0x71f   :  { %v4466_v60 = vpop.f32.mrf.mxu3  ;;  %v4360_v26 = vpop.f32.mrf.mxu1 }
 0x720   :  { %v15100_v38 = vadd.f32 %v4466_v60, %v4357_v61  ;;  %v4169_v31 = vmax.f32 %v14724_v3, %v4148_v1 }
 0x722   :  { %4399 = vmatmul.bf16.gmra.mxu1 %v18518_v59  ;;  %v4179_v45 = vmax.f32 %v18519_v57, %v4169_v31  ;;  %9709 = vmatmul.msk.bf16.gmra.mxu2 %vm415_vm0, %v18478_v29  ;;  %v4726_v14 = vpop.f32.mrf.mxu0  ;;  %v18524_v31 = vld [vmem:[#allocation59_spill] sm:$0xff] }
 0x723   :  { %4773 = vmatmul.bf16.gmra.mxu0 %v18510_v28 }
 0x724   :  { %9648 = vmatmul.msk.bf16.gmra.mxu3 %vm415_vm0, %v18520_v23  ;;  %v4189_v47 = vadd.f32 %v4179_v45, %v18479_v49 }
 0x725   :  { %v4818_v3 = vpop.f32.mrf.mxu2 }
 0x726   :  { %v4199_v24 = vmax.f32 %v4189_v47, 0.0  ;;  %v15115_v15 = vadd.f32 %v4818_v3, %v15010_v18  ;;  %v18522_v18 = vld [vmem:[#allocation46_spill] sm:$0xff] }
 0x727   :  { %v4469_v56 = vpop.f32.mrf.mxu3  ;;  %v4362_v9 = vpop.f32.mrf.mxu1 }
 0x728   :  { %v15117_v21 = vadd.f32 %v4469_v56, %v4360_v26  ;;  %v11324_v28 = vpack.c.bf16 %v4199_v24, %v4198_v27 }
 0x72a   :  { %11504 = vst [vmem:[#allocation2 + $0xc8] sm:$0xff] %v11324_v28   ;;  %v15119_v54 = vpop.f32.mrf.mxu0  ;;  %v18530_v28 = vld [vmem:[#allocation64_spill] sm:$0xff] }
 0x72d   :  { %v4820_v29 = vpop.f32.mrf.mxu2 }
 0x72e   :  { %v15122_v43 = vadd.f32 %v4820_v29, %v15030_v55 }
 0x72f   :  { %v4471_v46 = vpop.f32.mrf.mxu3  ;;  %v4365_v53 = vpop.f32.mrf.mxu1 }
 0x730   :  { %v15124_v20 = vadd.f32 %v4471_v46, %v4362_v9 }
 0x732   :  { %4404 = vmatmul.bf16.gmra.mxu1 %v18521_v30  ;;  %9710 = vmatmul.msk.bf16.gmra.mxu2 %vm415_vm0, %v18486_v39  ;;  %v15132_v61 = vpop.f32.mrf.mxu0 }
 0x733   :  { %4778 = vmatmul.bf16.gmra.mxu0 %v18514_v36 }
 0x734   :  { %9649 = vmatmul.msk.bf16.gmra.mxu3 %vm415_vm0, %v18522_v18 }
 0x735   :  { %v4823_v25 = vpop.f32.mrf.mxu2 }
 0x736   :  { %v15135_v55 = vadd.f32 %v4823_v25, %v15042_v41  ;;  %v18525_v41 = vld [vmem:[#allocation48_spill] sm:$0xff] }
 0x737   :  { %v4474_v33 = vpop.f32.mrf.mxu3  ;;  %v4367_v51 = vpop.f32.mrf.mxu1 }
 0x738   :  { %v15137_v44 = vadd.f32 %v4474_v33, %v4365_v53 }
 0x73a   :  { %v15139_v32 = vpop.f32.mrf.mxu0 }
 0x73d   :  { %v4825_v1 = vpop.f32.mrf.mxu2 }
 0x73e   :  { %v15142_v60 = vadd.f32 %v4825_v1, %v15062_v8  ;;  %v10856_v1 = vld [vmem:[%s17499_s3 + $0x4] sm:$0xf] }
 0x73f   :  { %v4476_v36 = vpop.f32.mrf.mxu3  ;;  %v4370_v39 = vpop.f32.mrf.mxu1 }
 0x740   :  { %v15144_v26 = vadd.f32 %v4476_v36, %v4367_v51  ;;  %v18533_v51 = vld [vmem:[#allocation76_spill] sm:$0xff] }
 0x742   :  { %18523 = vst [vmem:[#allocation37_spill] sm:$0xff] %v15144_v26  ;;  %4409 = vmatmul.bf16.gmra.mxu1 %v18524_v31  ;;  %9711 = vmatmul.msk.bf16.gmra.mxu2 %vm415_vm0, %v18493_v17  ;;  %v15152_v16 = vpop.f32.mrf.mxu0 }
 0x743   :  { %4783 = vmatmul.bf16.gmra.mxu0 %v18518_v59 }
 0x744   :  { %9650 = vmatmul.msk.bf16.gmra.mxu3 %vm415_vm0, %v18525_v41 }
 0x745   :  { %v4828_v57 = vpop.f32.mrf.mxu2 }
 0x746   :  { %v15155_v8 = vadd.f32 %v4828_v57, %v15071_v5  ;;  %v18531_v5 = vld [vmem:[#allocation5_spill] sm:$0xff] }
 0x747   :  { %v4479_v45 = vpop.f32.mrf.mxu3  ;;  %v4372_v47 = vpop.f32.mrf.mxu1 }
 0x748   :  { %18526 = vst [vmem:[#allocation34_spill] sm:$0xff] %v15155_v8  ;;  %v15157_v3 = vadd.f32 %v4479_v45, %v4370_v39 }
 0x74a   :  { %18527 = vst [vmem:[#allocation73_spill] sm:$0xff] %v15157_v3  ;;  %v15159_v27 = vpop.f32.mrf.mxu0  ;;  %v18548_v3 = vld [vmem:[#allocation60_spill] sm:$0xff] }
 0x74d   :  { %v4830_v24 = vpop.f32.mrf.mxu2 }
 0x74e   :  { %v15162_v56 = vadd.f32 %v4830_v24, %v15088_v34 }
 0x74f   :  { %v4481_v59 = vpop.f32.mrf.mxu3  ;;  %v4375_v17 = vpop.f32.mrf.mxu1 }
 0x750   :  { %18528 = vst [vmem:[#allocation38_spill] sm:$0xff] %v15162_v56  ;;  %v15164_v9 = vadd.f32 %v4481_v59, %v4372_v47  ;;  %v18535_v47 = vld [vmem:[#allocation53_spill] sm:$0xff]  ;;  %v10987_v56 = vld [vmem:[#allocation2 + $0x1d8] sm:$0xff] }
 0x751   :  { %v18537_v59 = vld [vmem:[#allocation9_spill] sm:$0xff] }
 0x752   :  { %18529 = vst [vmem:[#allocation71_spill] sm:$0xff] %v15164_v9  ;;  %4414 = vmatmul.bf16.gmra.mxu1 %v18530_v28  ;;  %9712 = vmatmul.msk.bf16.gmra.mxu2 %vm415_vm0, %v18500_v19  ;;  %v15172_v29 = vpop.f32.mrf.mxu0 }
 0x753   :  { %4788 = vmatmul.bf16.gmra.mxu0 %v18521_v30 }
 0x754   :  { %9651 = vmatmul.msk.bf16.gmra.mxu3 %vm415_vm0, %v18531_v5 }
 0x755   :  { %v4833_v46 = vpop.f32.mrf.mxu2 }
 0x756   :  { %v15175_v34 = vadd.f32 %v4833_v46, %v15097_v6  ;;  %v18536_v6 = vld [vmem:[#allocation67_spill] sm:$0xff] }
 0x757   :  { %v4484_v53 = vpop.f32.mrf.mxu3  ;;  %v4377_v25 = vpop.f32.mrf.mxu1 }
 0x758   :  { %18532 = vst [vmem:[#allocation56_spill] sm:$0xff] %v15175_v34  ;;  %v15177_v33 = vadd.f32 %v4484_v53, %v4375_v17 }
 0x75a   :  { %v15181_v30 = vpop.f32.mrf.mxu0 }
 0x75d   :  { %v4835_v36 = vpop.f32.mrf.mxu2 }
 0x75e   :  { %v15183_v39 = vadd.f32 %v4835_v36, %v4726_v14 }
 0x75f   :  { %v4486_v19 = vpop.f32.mrf.mxu3  ;;  %v4380_v57 = vpop.f32.mrf.mxu1 }
 0x760   :  { %18534 = vst [vmem:[#allocation26_spill] sm:$0xff] %v15183_v39  ;;  %v15185_v45 = vadd.f32 %v4486_v19, %v4377_v25  ;;  %v18539_v19 = vld [vmem:[#allocation69_spill] sm:$0xff] }
 0x762   :  { %4419 = vmatmul.bf16.gmra.mxu1 %v18536_v6  ;;  %9713 = vmatmul.msk.bf16.gmra.mxu2 %vm415_vm0, %v18506_v2  ;;  %v15195_v17 = vpop.f32.mrf.mxu0  ;;  %v9723_v2 = vld [vmem:[%s17499_s3] sm:$0xf] }
 0x763   :  { %4793 = vmatmul.bf16.gmra.mxu0 %v18524_v31  ;;  %v10858_v31 = vld [vmem:[%s17499_s3 + $0xc] sm:$0xf0] }
 0x764   :  { %9652 = vmatmul.msk.bf16.gmra.mxu3 %vm415_vm0, %v18537_v59 }
 0x765   :  { %v4838_v14 = vpop.f32.mrf.mxu2 }
 0x766   :  { %v15198_v53 = vadd.f32 %v4838_v14, %v15119_v54  ;;  %v9725_v54 = vld [vmem:[%s17499_s3 + $0x10] sm:$0xf0] }
 0x767   :  { %v4489_v46 = vpop.f32.mrf.mxu3  ;;  %v4382_v25 = vpop.f32.mrf.mxu1  ;;  %v15225_v49 = vor.u32 %v10856_v1, %v9725_v54  ;;  %v10994_v54 = vld [vmem:[#allocation2 + $0x100] sm:$0xff] }
 0x768   :  { %18538 = vst [vmem:[#allocation8_spill] sm:$0xff] %v15198_v53  ;;  %v15200_v36 = vadd.f32 %v4489_v46, %v4380_v57  ;;  %v15218_v46 = vor.u32 %v10858_v31, %v9723_v2  ;;  %v10995_v2 = vld [vmem:[#allocation2 + $0xf8] sm:$0xff] }
 0x769   :  { %18542 = vst [vmem:[#allocation15_spill] sm:$0xff] %v15225_v49 }
 0x76a   :  { %v15216_v57 = vpop.f32.mrf.mxu0  ;;  %18540 = vst [vmem:[#allocation11_spill] sm:$0xff] %v15218_v46 }
 0x76d   :  { %v4840_v14 = vpop.f32.mrf.mxu2 }
 0x76e   :  { %v15221_v53 = vadd.f32 %v4840_v14, %v15132_v61 }
 0x76f   :  { %v4491_v24 = vpop.f32.mrf.mxu3  ;;  %v4385_v39 = vpop.f32.mrf.mxu1 }
 0x770   :  { %18541 = vst [vmem:[#allocation13_spill] sm:$0xff] %v15221_v53  ;;  %v15223_v34 = vadd.f32 %v4491_v24, %v4382_v25  ;;  %v10986_v24 = vld [vmem:[#allocation2 + $0x128] sm:$0xff] }
 0x772   :  { %5701 = vmatmul.bf16.vlgmr.msra.gmra.mxu1 %v15218_v46  ;;  %9714 = vmatmul.msk.bf16.gmra.mxu2 %vm415_vm0, %v18512_v10  ;;  %v15234_v61 = vpop.f32.mrf.mxu0 }
 0x773   :  { %4798 = vmatmul.bf16.gmra.mxu0 %v18530_v28  ;;  %6997 = vmatpush.bf16.msra.mxu1 %v10987_v56  ;;  %v10985_v28 = vld [vmem:[#allocation2 + $0x158] sm:$0xff]  ;;  %v10993_v56 = vld [vmem:[#allocation2 + $0x1d0] sm:$0xff] }
 0x774   :  { %5790 = vmatmul.bf16.vlgmr.msra.gmra.mxu3 %v15225_v49 }
 0x775   :  { %7086 = vmatpush.bf16.msra.mxu3 %v10995_v2  ;;  %v4843_v1 = vpop.f32.mrf.mxu2  ;;  %v9739_v2 = vld [vmem:[%s17499_s3 + $0x20] sm:$0xf] }
 0x776   :  { %v15237_v31 = vadd.f32 %v4843_v1, %v15139_v32  ;;  %v10862_v32 = vld [vmem:[%s17499_s3 + $0x2c] sm:$0xf0]  ;;  %v9741_v1 = vld [vmem:[%s17499_s3 + $0x30] sm:$0xf0] }
 0x777   :  { %v4494_v25 = vpop.f32.mrf.mxu3  ;;  %v4387_v14 = vpop.f32.mrf.mxu1  ;;  %6998 = vmatpush.bf16.msra.mxu1 %v10986_v24  ;;  %v15257_v10 = vor.u32 %v10862_v32, %v9739_v2  ;;  %v10982_v2 = vld [vmem:[#allocation2 + $0x1b8] sm:$0xff] }
 0x778   :  { %18544 = vst [vmem:[#allocation17_spill] sm:$0xff] %v15237_v31  ;;  %v15239_v9 = vadd.f32 %v4494_v25, %v4385_v39  ;;  %v10860_v39 = vld [vmem:[%s17499_s3 + $0x24] sm:$0xf] }
 0x779   :  { %7087 = vmatpush.bf16.msra.mxu3 %v10994_v54  ;;  %v10984_v54 = vld [vmem:[#allocation2 + $0xf0] sm:$0xff]  ;;  %18545 = vst [vmem:[#allocation19_spill] sm:$0xff] %v15257_v10  ;;  %v15264_v53 = vor.u32 %v10860_v39, %v9741_v1  ;;  %v10990_v1 = vld [vmem:[#allocation2 + $0xc0] sm:$0xff] }
 0x77a   :  { %v15255_v24 = vpop.f32.mrf.mxu0 }
 0x77b   :  { %6999 = vmatpush.bf16.msra.mxu1 %v10985_v28  ;;  %v10992_v28 = vld [vmem:[#allocation2 + $0x148] sm:$0xff]  ;;  %18547 = vst [vmem:[#allocation58_spill] sm:$0xff] %v15264_v53 }
 0x77d   :  { %7088 = vmatpush.bf16.msra.mxu3 %v10993_v56  ;;  %v4845_v25 = vpop.f32.mrf.mxu2 }
 0x77e   :  { %v15260_v46 = vadd.f32 %v4845_v25, %v15152_v16  ;;  %v10991_v16 = vld [vmem:[#allocation2 + $0xa0] sm:$0xff] }
 0x77f   :  { %v4496_v49 = vpop.f32.mrf.mxu3  ;;  %v4390_v56 = vpop.f32.mrf.mxu1  ;;  %7000 = vmatpush.bf16.msra.mxu1 %v10984_v54 }
 0x780   :  { %18546 = vst [vmem:[#allocation21_spill] sm:$0xff] %v15260_v46  ;;  %v15262_v31 = vadd.f32 %v4496_v49, %v4387_v14 }
 0x781   :  { %7089 = vmatpush.bf16.msra.mxu3 %v10992_v28  ;;  %v9755_v28 = vld [vmem:[%s17499_s3 + $0x40] sm:$0xf] }
 0x782   :  { %5706 = vmatmul.bf16.gmra.mxu1 %v15257_v10  ;;  %9715 = vmatmul.msk.bf16.gmra.mxu2 %vm415_vm0, %v18516_v4  ;;  %v15273_v49 = vpop.f32.mrf.mxu0  ;;  %v10988_v10 = vld [vmem:[#allocation2 + $0x8] sm:$0xff] }
 0x783   :  { %4803 = vmatmul.bf16.gmra.mxu0 %v18536_v6  ;;  %7001 = vmatpush.bf16.msra.mxu1 %v10983_v52  ;;  %v10981_v6 = vld [vmem:[#allocation2 + $0x1a8] sm:$0xff]  ;;  %v10989_v52 = vld [vmem:[#allocation2 + $0x170] sm:$0xff] }
 0x784   :  { %5795 = vmatmul.bf16.gmra.mxu3 %v15264_v53 }
 0x785   :  { %7090 = vmatpush.bf16.msra.mxu3 %v10991_v16  ;;  %v4848_v14 = vpop.f32.mrf.mxu2  ;;  %v10859_v16 = vld [vmem:[%s17499_s3 + $0x14] sm:$0xf0] }
 0x786   :  { %v15276_v39 = vadd.f32 %v4848_v14, %v15159_v27  ;;  %v10866_v27 = vld [vmem:[%s17499_s3 + $0x4c] sm:$0xf0]  ;;  %v10864_v14 = vld [vmem:[%s17499_s3 + $0x44] sm:$0xf] }
 0x787   :  { %v4499_v32 = vpop.f32.mrf.mxu3  ;;  %v4392_v25 = vpop.f32.mrf.mxu1  ;;  %7002 = vmatpush.bf16.msra.mxu1 %v10982_v2  ;;  %v9757_v2 = vld [vmem:[%s17499_s3 + $0x50] sm:$0xf0]  ;;  %v15302_v4 = vor.u32 %v10866_v27, %v9755_v28  ;;  %v11003_v28 = vld [vmem:[#allocation2 + $0x20] sm:$0xff] }
 0x788   :  { %18549 = vst [vmem:[#allocation29_spill] sm:$0xff] %v15276_v39  ;;  %v15278_v54 = vadd.f32 %v4499_v32, %v4390_v56  ;;  %v9731_v56 = vld [vmem:[%s17499_s3 + $0x8] sm:$0xf]  ;;  %v15311_v62 = vor.u32 %v10864_v14, %v9757_v2  ;;  %v11001_v14 = vld [vmem:[#allocation2] sm:$0xff] }
 0x789   :  { %7091 = vmatpush.bf16.msra.mxu3 %v10990_v1  ;;  %18550 = vst [vmem:[#allocation72_spill] sm:$0xff] %v15302_v4  ;;  %v15307_v39 = vor.u32 %v10859_v16, %v9731_v56  ;;  %v9771_v2 = vld [vmem:[%s17499_s3 + $0x60] sm:$0xf] }
 0x78a   :  { %v15300_v32 = vpop.f32.mrf.mxu0  ;;  %18553 = vst [vmem:[#allocation66_spill] sm:$0xff] %v15311_v62 }
 0x78b   :  { %7003 = vmatpush.bf16.msra.mxu1 %v10981_v6  ;;  %v10980_v6 = vld [vmem:[#allocation2 + $0x80] sm:$0xff]  ;;  %18552 = vst [vmem:[#allocation4_spill] sm:$0xff] %v15307_v39 }
 0x78d   :  { %7092 = vmatpush.bf16.msra.mxu3 %v10989_v52  ;;  %v4850_v1 = vpop.f32.mrf.mxu2 }
 0x78e   :  { %v15305_v53 = vadd.f32 %v4850_v1, %v15172_v29  ;;  %v10870_v1 = vld [vmem:[%s17499_s3 + $0x6c] sm:$0xf0] }
 0x78f   :  { %v4501_v8 = vpop.f32.mrf.mxu3  ;;  %v4395_v52 = vpop.f32.mrf.mxu1  ;;  %7004 = vmatpush.bf16.msra.mxu1 %v10980_v6  ;;  %v10863_v6 = vld [vmem:[%s17499_s3 + $0x34] sm:$0xf0] }
 0x790   :  { %18551 = vst [vmem:[#allocation23_spill] sm:$0xff] %v15305_v53  ;;  %v15309_v46 = vadd.f32 %v4501_v8, %v4392_v25  ;;  %v11002_v25 = vld [vmem:[#allocation2 + $0x38] sm:$0xff] }
 0x791   :  { %7093 = vmatpush.bf16.msra.mxu3 %v10988_v10 }
 0x792   :  { %5711 = vmatmul.bf16.gmra.mxu1 %v15302_v4  ;;  %9716 = vmatmul.msk.bf16.gmra.mxu2 %vm415_vm0, %v18520_v23  ;;  %v15320_v8 = vpop.f32.mrf.mxu0 }
 0x793   :  { %5879 = vmatmul.bf16.vlgmr.msra.gmra.mxu0 %v15307_v39 }
 0x794   :  { %5800 = vmatmul.bf16.gmra.mxu3 %v15311_v62  ;;  %7175 = vmatpush.bf16.msra.mxu0 %v11003_v28  ;;  %v9773_v28 = vld [vmem:[%s17499_s3 + $0x70] sm:$0xf0] }
 0x795   :  { %v4853_v29 = vpop.f32.mrf.mxu2 }
 0x796   :  { %v15323_v10 = vadd.f32 %v4853_v29, %v15181_v30  ;;  %v9747_v30 = vld [vmem:[%s17499_s3 + $0x28] sm:$0xf] }
 0x797   :  { %v4504_v27 = vpop.f32.mrf.mxu3  ;;  %v4397_v56 = vpop.f32.mrf.mxu1  ;;  %v15354_v39 = vor.u32 %v10863_v6, %v9747_v30 }
 0x798   :  { %18554 = vst [vmem:[#allocation18_spill] sm:$0xff] %v15323_v10  ;;  %v15325_v16 = vadd.f32 %v4504_v27, %v4395_v52  ;;  %7176 = vmatpush.bf16.msra.mxu0 %v11002_v25  ;;  %v10868_v52 = vld [vmem:[%s17499_s3 + $0x64] sm:$0xf]  ;;  %v11000_v27 = vld [vmem:[#allocation2 + $0xb8] sm:$0xff] }
 0x799   :  { %18557 = vst [vmem:[#allocation61_spill] sm:$0xff] %v15354_v39  ;;  %v15358_v10 = vor.u32 %v10868_v52, %v9773_v28  ;;  %v10997_v28 = vld [vmem:[#allocation2 + $0xa8] sm:$0xff] }
 0x79a   :  { %18555 = vst [vmem:[#allocation65_spill] sm:$0xff] %v15325_v16  ;;  %v15347_v29 = vpop.f32.mrf.mxu0  ;;  %v10999_v16 = vld [vmem:[#allocation2 + $0x1a0] sm:$0xff] }
 0x79b   :  { %18558 = vst [vmem:[#allocation30_spill] sm:$0xff] %v15358_v10 }
 0x79c   :  { %7177 = vmatpush.bf16.msra.mxu0 %v11001_v14  ;;  %v15349_v14 = vor.u32 %v10870_v1, %v9771_v2 }
 0x79d   :  { %v4855_v25 = vpop.f32.mrf.mxu2 }
 0x79e   :  { %18556 = vst [vmem:[#allocation43_spill] sm:$0xff] %v15349_v14  ;;  %v15352_v26 = vadd.f32 %v4855_v25, %v15195_v17  ;;  %v18559_v25 = vmax.f32 %v18533_v51, %v15177_v33  ;;  %v10996_v51 = vld [vmem:[#allocation2 + $0x40] sm:$0xff] }
 0x79f   :  { %v4506_v23 = vpop.f32.mrf.mxu3  ;;  %v4400_v62 = vpop.f32.mrf.mxu1 }
 0x7a0   :  { %v15356_v4 = vadd.f32 %v4506_v23, %v4397_v56  ;;  %7178 = vmatpush.bf16.msra.mxu0 %v11000_v27  ;;  %v10998_v23 = vld [vmem:[#allocation2 + $0x190] sm:$0xff] }
 0x7a2   :  { %5716 = vmatmul.bf16.gmra.mxu1 %v15349_v14  ;;  %9717 = vmatmul.msk.bf16.gmra.mxu2 %vm415_vm0, %v18522_v18  ;;  %v15367_v17 = vpop.f32.mrf.mxu0  ;;  %v9787_v18 = vld [vmem:[%s17499_s3 + $0x80] sm:$0xf] }
 0x7a3   :  { %5884 = vmatmul.bf16.gmra.mxu0 %v15354_v39 }
 0x7a4   :  { %5805 = vmatmul.bf16.gmra.mxu3 %v15358_v10  ;;  %7179 = vmatpush.bf16.msra.mxu0 %v10999_v16  ;;  %v10874_v16 = vld [vmem:[%s17499_s3 + $0x8c] sm:$0xf0] }
 0x7a5   :  { %v4858_v56 = vpop.f32.mrf.mxu2 }
 0x7a6   :  { %v15370_v1 = vadd.f32 %v4858_v56, %v15216_v57  ;;  %v10872_v57 = vld [vmem:[%s17499_s3 + $0x84] sm:$0xf]  ;;  %v9789_v56 = vld [vmem:[%s17499_s3 + $0x90] sm:$0xf0] }
 0x7a7   :  { %v4509_v2 = vpop.f32.mrf.mxu3  ;;  %v4402_v30 = vpop.f32.mrf.mxu1  ;;  %v15403_v10 = vor.u32 %v10872_v57, %v9789_v56 }
 0x7a8   :  { %v4510_v6 = vadd.f32 %v4509_v2, %v4400_v62  ;;  %7180 = vmatpush.bf16.msra.mxu0 %v10998_v23  ;;  %v9763_v62 = vld [vmem:[%s17499_s3 + $0x48] sm:$0xf]  ;;  %v15396_v2 = vor.u32 %v10874_v16, %v9787_v18  ;;  %v18563_v18 = vld [vmem:[#allocation74_spill] sm:$0xff] }
 0x7a9   :  { %18562 = vst [vmem:[#allocation57_spill] sm:$0xff] %v15403_v10 }
 0x7aa   :  { %v4544_v52 = vmax.f32 %v15065_v7, %v4510_v6  ;;  %v10867_v7 = vld [vmem:[%s17499_s3 + $0x54] sm:$0xf0]  ;;  %v15394_v23 = vpop.f32.mrf.mxu0  ;;  %18560 = vst [vmem:[#allocation27_spill] sm:$0xff] %v15396_v2 }
 0x7ac   :  { %v4554_v27 = vmax.f32 %v18559_v25, %v4544_v52  ;;  %7181 = vmatpush.bf16.msra.mxu0 %v10997_v28  ;;  %v15401_v25 = vor.u32 %v10867_v7, %v9763_v62 }
 0x7ad   :  { %v4860_v33 = vpop.f32.mrf.mxu2 }
 0x7ae   :  { %v15399_v52 = vadd.f32 %v4860_v33, %v15234_v61  ;;  %18561 = vst [vmem:[#allocation7_spill] sm:$0xff] %v15401_v25  ;;  %v4564_v16 = vadd.f32 %v4554_v27, %v18563_v18  ;;  %v18564_v61 = vmax.f32 %v18535_v47, %v15185_v45  ;;  %v9803_v45 = vld [vmem:[%s17499_s3 + $0xa0] sm:$0xf]  ;;  %v10878_v47 = vld [vmem:[%s17499_s3 + $0xac] sm:$0xf0] }
 0x7af   :  { %v4511_v6 = vpop.f32.mrf.mxu3  ;;  %v4405_v28 = vpop.f32.mrf.mxu1 }
 0x7b0   :  { %v4512_v53 = vadd.f32 %v4511_v6, %v4402_v30  ;;  %7182 = vmatpush.bf16.msra.mxu0 %v10996_v51  ;;  %v4574_v56 = vmax.f32 %v4564_v16, 0.0  ;;  %v10876_v16 = vld [vmem:[%s17499_s3 + $0xa4] sm:$0xf] }
 0x7b2   :  { %v4545_v39 = vmax.f32 %v15074_v48, %v4512_v53  ;;  %5721 = vmatmul.bf16.gmra.mxu1 %v15396_v2  ;;  %9718 = vmatmul.msk.bf16.gmra.mxu2 %vm415_vm0, %v18525_v41  ;;  %v15415_v30 = vpop.f32.mrf.mxu0 }
 0x7b3   :  { %5889 = vmatmul.bf16.gmra.mxu0 %v15401_v25 }
 0x7b4   :  { %v4555_v62 = vmax.f32 %v18564_v61, %v4545_v39  ;;  %5810 = vmatmul.bf16.gmra.mxu3 %v15403_v10  ;;  %v9805_v61 = vld [vmem:[%s17499_s3 + $0xb0] sm:$0xf0] }
 0x7b5   :  { %v4863_v48 = vpop.f32.mrf.mxu2 }
 0x7b6   :  { %v4565_v7 = vadd.f32 %v4555_v62, %v18221_v63  ;;  %v15419_v57 = vadd.f32 %v4863_v48, %v15255_v24  ;;  %v18565_v24 = vmax.f32 %v18539_v19, %v15200_v36  ;;  %v15445_v19 = vor.u32 %v10878_v47, %v9803_v45 }
 0x7b7   :  { %v4514_v53 = vpop.f32.mrf.mxu3  ;;  %v4407_v41 = vpop.f32.mrf.mxu1 }
 0x7b8   :  { %v4575_v33 = vmax.f32 %v4565_v7, 0.0  ;;  %v4515_v51 = vadd.f32 %v4514_v53, %v4405_v28  ;;  %v9779_v28 = vld [vmem:[%s17499_s3 + $0x68] sm:$0xf]  ;;  %18566 = vst [vmem:[#allocation68_spill] sm:$0xff] %v15445_v19 }
 0x7ba   :  { %v11329_v27 = vpack.c.bf16 %v4575_v33, %v4574_v56  ;;  %v4546_v6 = vmax.f32 %v15091_v0, %v4515_v51  ;;  %v10871_v0 = vld [vmem:[%s17499_s3 + $0x74] sm:$0xf0]  ;;  %v15443_v62 = vpop.f32.mrf.mxu0  ;;  %v15452_v51 = vor.u32 %v10876_v16, %v9805_v61 }
 0x7bb   :  { %v15450_v56 = vor.u32 %v10871_v0, %v9779_v28 }
 0x7bc   :  { %11505 = vst [vmem:[#allocation2 + $0x198] sm:$0xff] %v11329_v27   ;;  %v4556_v39 = vmax.f32 %v18565_v24, %v4546_v6 }
 0x7bd   :  { %v4865_v36 = vpop.f32.mrf.mxu2  ;;  %18567 = vst [vmem:[#allocation20_spill] sm:$0xff] %v15450_v56 }
 0x7be   :  { %v15448_v48 = vadd.f32 %v4865_v36, %v15273_v49  ;;  %18568 = vst [vmem:[#allocation62_spill] sm:$0xff] %v15452_v51  ;;  %v4566_v6 = vadd.f32 %v4556_v39, %v12564_v35  ;;  %v18569_v49 = vmax.f32 %v18543_v13, %v15223_v34  ;;  %v9819_v36 = vld [vmem:[%s17499_s3 + $0xc0] sm:$0xf]  ;;  %v11007_v39 = vld [vmem:[#allocation2 + $0xd0] sm:$0xff] }
 0x7bf   :  { %v4516_v7 = vpop.f32.mrf.mxu3  ;;  %v4410_v53 = vpop.f32.mrf.mxu1 }
 0x7c0   :  { %v4517_v33 = vadd.f32 %v4516_v7, %v4407_v41  ;;  %v4576_v0 = vmax.f32 %v4566_v6, 0.0  ;;  %v10882_v7 = vld [vmem:[%s17499_s3 + $0xcc] sm:$0xf0]  ;;  %v9821_v6 = vld [vmem:[%s17499_s3 + $0xd0] sm:$0xf0] }
 0x7c2   :  { %v4547_v27 = vmax.f32 %v15100_v38, %v4517_v33  ;;  %5726 = vmatmul.bf16.gmra.mxu1 %v15445_v19  ;;  %9719 = vmatmul.msk.bf16.gmra.mxu2 %vm415_vm0, %v18531_v5  ;;  %v15464_v41 = vpop.f32.mrf.mxu0 }
 0x7c3   :  { %5894 = vmatmul.bf16.gmra.mxu0 %v15450_v56 }
 0x7c4   :  { %v4557_v45 = vmax.f32 %v18569_v49, %v4547_v27  ;;  %5815 = vmatmul.bf16.gmra.mxu3 %v15452_v51  ;;  %v10880_v27 = vld [vmem:[%s17499_s3 + $0xc4] sm:$0xf] }
 0x7c5   :  { %v4868_v38 = vpop.f32.mrf.mxu2 }
 0x7c6   :  { %v4567_v47 = vadd.f32 %v4557_v45, %v12567_v12  ;;  %v15468_v28 = vadd.f32 %v4868_v38, %v15300_v32  ;;  %v18570_v32 = vmax.f32 %v14957_v58, %v15239_v9  ;;  %v15496_v9 = vor.u32 %v10882_v7, %v9819_v36 }
 0x7c7   :  { %v4519_v24 = vpop.f32.mrf.mxu3  ;;  %v4412_v5 = vpop.f32.mrf.mxu1 }
 0x7c8   :  { %v4577_v16 = vmax.f32 %v4567_v47, 0.0  ;;  %v4520_v61 = vadd.f32 %v4519_v24, %v4410_v53  ;;  %v9795_v53 = vld [vmem:[%s17499_s3 + $0x88] sm:$0xf]  ;;  %18571 = vst [vmem:[#allocation63_spill] sm:$0xff] %v15496_v9 }
 0x7ca   :  { %v11334_v13 = vpack.c.bf16 %v4577_v16, %v4576_v0  ;;  %v4548_v34 = vmax.f32 %v15117_v21, %v4520_v61  ;;  %v10875_v21 = vld [vmem:[%s17499_s3 + $0x94] sm:$0xf0]  ;;  %v15494_v49 = vpop.f32.mrf.mxu0  ;;  %v15503_v16 = vor.u32 %v10880_v27, %v9821_v6 }
 0x7cb   :  { %v15501_v24 = vor.u32 %v10875_v21, %v9795_v53 }
 0x7cc   :  { %11506 = vst [vmem:[#allocation2 + $0xe8] sm:$0xff] %v11334_v13   ;;  %v4558_v33 = vmax.f32 %v18570_v32, %v4548_v34  ;;  %v18574_v34 = vmax.f32 %v18548_v3, %v15262_v31 }
 0x7cd   :  { %v4870_v58 = vpop.f32.mrf.mxu2  ;;  %18572 = vst [vmem:[#allocation31_spill] sm:$0xff] %v15501_v24 }
 0x7ce   :  { %v15499_v47 = vadd.f32 %v4870_v58, %v15320_v8  ;;  %18573 = vst [vmem:[#allocation6_spill] sm:$0xff] %v15503_v16  ;;  %v4568_v8 = vadd.f32 %v4558_v33, %v12519_v37  ;;  %v9835_v58 = vld [vmem:[%s17499_s3 + $0xe0] sm:$0xf]  ;;  %v18580_v33 = vld [vmem:[#allocation37_spill] sm:$0xff] }
 0x7cf   :  { %v4521_v45 = vpop.f32.mrf.mxu3  ;;  %v4415_v38 = vpop.f32.mrf.mxu1 }
 0x7d0   :  { %v4522_v0 = vadd.f32 %v4521_v45, %v4412_v5  ;;  %v4578_v21 = vmax.f32 %v4568_v8, 0.0  ;;  %v10886_v45 = vld [vmem:[%s17499_s3 + $0xec] sm:$0xf0]  ;;  %v9733_v8 = vld [vmem:[%s17499_s3 + $0x18] sm:$0xf0] }
 0x7d2   :  { %v4549_v13 = vmax.f32 %v15124_v20, %v4522_v0  ;;  %5731 = vmatmul.bf16.gmra.mxu1 %v15496_v9  ;;  %9720 = vmatmul.msk.bf16.gmra.mxu2 %vm415_vm0, %v18537_v59  ;;  %v15517_v36 = vpop.f32.mrf.mxu0 }
 0x7d3   :  { %5899 = vmatmul.bf16.gmra.mxu0 %v15501_v24  ;;  %v18593_v24 = vld [vmem:[#allocation71_spill] sm:$0xff] }
 0x7d4   :  { %v4559_v5 = vmax.f32 %v18574_v34, %v4549_v13  ;;  %5820 = vmatmul.bf16.gmra.mxu3 %v15503_v16  ;;  %v10857_v13 = vld [vmem:[%s17499_s3 + $0xc] sm:$0xf]  ;;  %v10884_v34 = vld [vmem:[%s17499_s3 + $0xe4] sm:$0xf] }
 0x7d5   :  { %v4873_v20 = vpop.f32.mrf.mxu2 }
 0x7d6   :  { %v4569_v7 = vadd.f32 %v4559_v5, %v12541_v42  ;;  %v15521_v53 = vadd.f32 %v4873_v20, %v15347_v29  ;;  %v9811_v29 = vld [vmem:[%s17499_s3 + $0xa8] sm:$0xf]  ;;  %v9837_v5 = vld [vmem:[%s17499_s3 + $0xf0] sm:$0xf0] }
 0x7d7   :  { %v4524_v32 = vpop.f32.mrf.mxu3  ;;  %v4417_v59 = vpop.f32.mrf.mxu1 }
 0x7d8   :  { %v4579_v27 = vmax.f32 %v4569_v7, 0.0  ;;  %v4525_v6 = vadd.f32 %v4524_v32, %v4415_v38  ;;  %v10879_v38 = vld [vmem:[%s17499_s3 + $0xb4] sm:$0xf0] }
 0x7da   :  { %v11339_v3 = vpack.c.bf16 %v4579_v27, %v4578_v21  ;;  %v4550_v31 = vmax.f32 %v15137_v44, %v4525_v6  ;;  %v18575_v44 = vmax.f32 %v15001_v22, %v15278_v54  ;;  %v15553_v7 = vpop.f32.mrf.mxu0  ;;  %v15555_v54 = vor.u32 %v10886_v45, %v9835_v58  ;;  %v11009_v58 = vld [vmem:[#allocation2 + $0xc8] sm:$0xff] }
 0x7db   :  { %v15560_v27 = vor.u32 %v10879_v38, %v9811_v29  ;;  %v15562_v6 = vor.u32 %v10857_v13, %v9733_v8 }
 0x7dc   :  { %11507 = vst [vmem:[#allocation2 + $0x178] sm:$0xff] %v11339_v3   ;;  %v4560_v0 = vmax.f32 %v18575_v44, %v4550_v31  ;;  %v15564_v31 = vor.u32 %v10884_v34, %v9837_v5  ;;  %v11008_v34 = vld [vmem:[#allocation2 + $0x68] sm:$0xff] }
 0x7dd   :  { %v4875_v22 = vpop.f32.mrf.mxu2  ;;  %18576 = vst [vmem:[#allocation22_spill] sm:$0xff] %v15555_v54 }
 0x7de   :  { %v15558_v32 = vadd.f32 %v4875_v22, %v15367_v17  ;;  %18577 = vst [vmem:[#allocation44_spill] sm:$0xff] %v15560_v27  ;;  %v18581_v17 = vld [vmem:[#allocation77_spill] sm:$0xff] }
 0x7df   :  { %v4526_v20 = vpop.f32.mrf.mxu3  ;;  %v4420_v21 = vpop.f32.mrf.mxu1  ;;  %18578 = vst [vmem:[#allocation75_spill] sm:$0xff] %v15562_v6  ;;  %v4570_v45 = vadd.f32 %v4560_v0, %v18581_v17 }
 0x7e0   :  { %v4527_v3 = vadd.f32 %v4526_v20, %v4417_v59  ;;  %18579 = vst [vmem:[#allocation35_spill] sm:$0xff] %v15564_v31  ;;  %v18582_v59 = vmax.f32 %v15013_v50, %v15309_v46  ;;  %v18584_v50 = vld [vmem:[#allocation34_spill] sm:$0xff] }
 0x7e2   :  { %v4551_v61 = vmax.f32 %v18580_v33, %v4527_v3  ;;  %5736 = vmatmul.bf16.gmra.mxu1 %v15555_v54  ;;  %10097 = vmatmul.msk.bf16.vlgmr.msrb.gmra.mxu2 %vm5644_vm1, %v15562_v6  ;;  %v15578_v38 = vpop.f32.mrf.mxu0  ;;  %v18583_v33 = vld [vmem:[#allocation52_spill] sm:$0xff]  ;;  %v4580_v3 = vmax.f32 %v4570_v45, 0.0  ;;  %v10883_v45 = vld [vmem:[%s17499_s3 + $0xd4] sm:$0xf0]  ;;  %v18592_v54 = vld [vmem:[#allocation38_spill] sm:$0xff] }
 0x7e3   :  { %5904 = vmatmul.bf16.gmra.mxu0 %v15560_v27  ;;  %7266 = vmatpush.bf16.msrb.mxu2 %v11009_v58  ;;  %v18585_v58 = vld [vmem:[#allocation73_spill] sm:$0xff] }
 0x7e4   :  { %v4561_v29 = vmax.f32 %v18582_v59, %v4551_v61  ;;  %5825 = vmatmul.bf16.gmra.mxu3 %v15564_v31 }
 0x7e5   :  { %v4878_v8 = vpop.f32.mrf.mxu2 }
 0x7e6   :  { %v4571_v13 = vadd.f32 %v4561_v29, %v18583_v33  ;;  %v15582_v22 = vadd.f32 %v4878_v8, %v15394_v23  ;;  %v9851_v29 = vld [vmem:[%s17499_s3 + $0x100] sm:$0xf]  ;;  %v10890_v23 = vld [vmem:[%s17499_s3 + $0x10c] sm:$0xf0] }
 0x7e7   :  { %v4529_v5 = vpop.f32.mrf.mxu3  ;;  %v4422_v20 = vpop.f32.mrf.mxu1  ;;  %7267 = vmatpush.bf16.msrb.mxu2 %v11008_v34  ;;  %v10861_v34 = vld [vmem:[%s17499_s3 + $0x2c] sm:$0xf] }
 0x7e8   :  { %v4581_v0 = vmax.f32 %v4571_v13, 0.0  ;;  %v4530_v44 = vadd.f32 %v4529_v5, %v4420_v21  ;;  %v9827_v21 = vld [vmem:[%s17499_s3 + $0xc8] sm:$0xf]  ;;  %v9749_v5 = vld [vmem:[%s17499_s3 + $0x38] sm:$0xf0] }
 0x7e9   :  { %v15623_v46 = vor.u32 %v10883_v45, %v9827_v21  ;;  %v15625_v31 = vor.u32 %v10861_v34, %v9749_v5 }
 0x7ea   :  { %v11344_v61 = vpack.c.bf16 %v4581_v0, %v4580_v3  ;;  %v4552_v59 = vmax.f32 %v18585_v58, %v4530_v44  ;;  %v18586_v44 = vld [vmem:[#allocation65_spill] sm:$0xff]  ;;  %v10888_v3 = vld [vmem:[%s17499_s3 + $0x104] sm:$0xf]  ;;  %v9853_v0 = vld [vmem:[%s17499_s3 + $0x110] sm:$0xf0]  ;;  %v15616_v58 = vor.u32 %v10890_v23, %v9851_v29 }
 0x7eb   :  { %v18587_v13 = vmax.f32 %v15033_v40, %v18586_v44  ;;  %7268 = vmatpush.bf16.msrb.mxu2 %v11007_v39  ;;  %v11006_v39 = vld [vmem:[#allocation2 + $0x88] sm:$0xff]  ;;  %18589 = vst [vmem:[#allocation24_spill] sm:$0xff] %v15623_v46  ;;  %v15627_v6 = vor.u32 %v10888_v3, %v9853_v0  ;;  %v11005_v23 = vld [vmem:[#allocation2 + $0x58] sm:$0xff]  ;;  %v11004_v3 = vld [vmem:[#allocation2 + $0x10] sm:$0xff] }
 0x7ec   :  { %11508 = vst [vmem:[#allocation2 + $0x70] sm:$0xff] %v11344_v61   ;;  %v15614_v61 = vpop.f32.mrf.mxu0 }
 0x7ed   :  { %v4562_v8 = vmax.f32 %v18587_v13, %v4552_v59  ;;  %v4880_v40 = vpop.f32.mrf.mxu2  ;;  %18588 = vst [vmem:[#allocation10_spill] sm:$0xff] %v15616_v58 }
 0x7ee   :  { %v15619_v44 = vadd.f32 %v4880_v40, %v15415_v30  ;;  %18590 = vst [vmem:[#allocation12_spill] sm:$0xff] %v15625_v31  ;;  %v18594_v30 = vld [vmem:[#allocation50_spill] sm:$0xff] }
 0x7ef   :  { %v4531_v59 = vpop.f32.mrf.mxu3  ;;  %v15621_v13 = vpop.f32.mrf.mxu1  ;;  %7269 = vmatpush.bf16.msrb.mxu2 %v11006_v39  ;;  %18591 = vst [vmem:[#allocation70_spill] sm:$0xff] %v15627_v6  ;;  %v4572_v21 = vadd.f32 %v4562_v8, %v18594_v30 }
 0x7f0   :  { %v4532_v27 = vadd.f32 %v4531_v59, %v4422_v20  ;;  %v18595_v20 = vmax.f32 %v15045_v11, %v15356_v4  ;;  %v18597_v11 = vld [vmem:[#allocation56_spill] sm:$0xff] }
 0x7f1   :  { %v4582_v39 = vmax.f32 %v4572_v21, 0.0  ;;  %v10887_v21 = vld [vmem:[%s17499_s3 + $0xf4] sm:$0xf0] }
 0x7f2   :  { %v4553_v29 = vmax.f32 %v18593_v24, %v4532_v27  ;;  %5741 = vmatmul.bf16.gmra.mxu1 %v15616_v58  ;;  %10098 = vmatmul.msk.bf16.gmra.mxu2 %vm5644_vm1, %v15625_v31  ;;  %v18596_v24 = vld [vmem:[#allocation51_spill] sm:$0xff]  ;;  %v18602_v31 = vld [vmem:[#allocation26_spill] sm:$0xff] }
 0x7f3   :  { %5909 = vmatmul.bf16.gmra.mxu0 %v15623_v46  ;;  %7270 = vmatpush.bf16.msrb.mxu2 %v11005_v23  ;;  %v10894_v23 = vld [vmem:[%s17499_s3 + $0x12c] sm:$0xf0]  ;;  %v9885_v58 = vld [vmem:[%s17499_s3 + $0x150] sm:$0xf0] }
 0x7f4   :  { %v4563_v45 = vmax.f32 %v18595_v20, %v4553_v29  ;;  %5830 = vmatmul.bf16.gmra.mxu3 %v15627_v6  ;;  %v15641_v34 = vpop.f32.mrf.mxu0  ;;  %v9867_v29 = vld [vmem:[%s17499_s3 + $0x120] sm:$0xf]  ;;  %v10865_v20 = vld [vmem:[%s17499_s3 + $0x4c] sm:$0xf] }
 0x7f5   :  { %v4883_v5 = vpop.f32.mrf.mxu2 }
 0x7f6   :  { %v4573_v27 = vadd.f32 %v4563_v45, %v18596_v24  ;;  %v15645_v0 = vadd.f32 %v4883_v5, %v15443_v62  ;;  %v9843_v62 = vld [vmem:[%s17499_s3 + $0xe8] sm:$0xf]  ;;  %v9765_v45 = vld [vmem:[%s17499_s3 + $0x58] sm:$0xf0]  ;;  %v9869_v5 = vld [vmem:[%s17499_s3 + $0x130] sm:$0xf0] }
 0x7f7   :  { %v15647_v40 = vpop.f32.mrf.mxu1  ;;  %7271 = vmatpush.bf16.msrb.mxu2 %v11004_v3  ;;  %v15682_v16 = vor.u32 %v10887_v21, %v9843_v62  ;;  %v15684_v6 = vor.u32 %v10865_v20, %v9765_v45  ;;  %v18603_v21 = vld [vmem:[#allocation8_spill] sm:$0xff] }
 0x7f8   :  { %v4583_v8 = vmax.f32 %v4573_v27, 0.0  ;;  %v10892_v27 = vld [vmem:[%s17499_s3 + $0x124] sm:$0xf]  ;;  %v9883_v45 = vld [vmem:[%s17499_s3 + $0x140] sm:$0xf] }
 0x7f9   :  { %18599 = vst [vmem:[#allocation28_spill] sm:$0xff] %v15682_v16  ;;  %v15686_v46 = vor.u32 %v10892_v27, %v9869_v5  ;;  %v10898_v27 = vld [vmem:[%s17499_s3 + $0x14c] sm:$0xf0]  ;;  %v9859_v5 = vld [vmem:[%s17499_s3 + $0x108] sm:$0xf] }
 0x7fa   :  { %v11349_v59 = vpack.c.bf16 %v4583_v8, %v4582_v39  ;;  %v15677_v8 = vor.u32 %v10894_v23, %v9867_v29  ;;  %18600 = vst [vmem:[#allocation25_spill] sm:$0xff] %v15684_v6  ;;  %v10896_v20 = vld [vmem:[%s17499_s3 + $0x144] sm:$0xf] }
 0x7fb   :  { %18601 = vst [vmem:[#allocation55_spill] sm:$0xff] %v15686_v46  ;;  %v15744_v25 = vor.u32 %v10896_v20, %v9885_v58 }
 0x7fc   :  { %11509 = vst [vmem:[#allocation2 + $0x1c8] sm:$0xff] %v11349_v59   ;;  %v15675_v3 = vpop.f32.mrf.mxu0 }
 0x7fd   :  { %v4885_v39 = vpop.f32.mrf.mxu2  ;;  %18598 = vst [vmem:[#allocation39_spill] sm:$0xff] %v15677_v8 }
 0x7fe   :  { %v15680_v59 = vadd.f32 %v4885_v39, %v15464_v41  ;;  %v10869_v39 = vld [vmem:[%s17499_s3 + $0x6c] sm:$0xf]  ;;  %18608 = vst [vmem:[#allocation45_spill] sm:$0xff] %v15744_v25 }
 0x7ff   :  { %v5707_v4 = vpop.f32.mrf.mxu1 }
 0x802   :  { %5746 = vmatmul.bf16.gmra.mxu1 %v15677_v8  ;;  %10099 = vmatmul.msk.bf16.gmra.mxu2 %vm5644_vm1, %v15684_v6  ;;  %v15730_v8 = vor.u32 %v10898_v27, %v9883_v45  ;;  %v18611_v27 = vmax.f32 %v15115_v15, %v15468_v28  ;;  %v10895_v15 = vld [vmem:[%s17499_s3 + $0x134] sm:$0xf0]  ;;  %v10873_v28 = vld [vmem:[%s17499_s3 + $0x8c] sm:$0xf] }
 0x803   :  { %5914 = vmatmul.bf16.gmra.mxu0 %v15682_v16  ;;  %v5791_v16 = vpop.f32.mrf.mxu3 }
 0x804   :  { %5835 = vmatmul.bf16.gmra.mxu3 %v15686_v46  ;;  %v15695_v41 = vpop.f32.mrf.mxu0  ;;  %18604 = vst [vmem:[#allocation41_spill] sm:$0xff] %v15730_v8  ;;  %v15742_v10 = vadd.f32 %v5791_v16, %v15621_v13  ;;  %v18610_v13 = vld [vmem:[#allocation17_spill] sm:$0xff] }
 0x805   :  { %v4888_v29 = vpop.f32.mrf.mxu2 }
 0x806   :  { %v15698_v23 = vadd.f32 %v4888_v29, %v15494_v49  ;;  %v10891_v49 = vld [vmem:[%s17499_s3 + $0x114] sm:$0xf0]  ;;  %v9781_v29 = vld [vmem:[%s17499_s3 + $0x78] sm:$0xf0] }
 0x807   :  { %v15700_v62 = vpop.f32.mrf.mxu1  ;;  %v15737_v56 = vor.u32 %v10891_v49, %v9859_v5  ;;  %v15739_v19 = vor.u32 %v10869_v39, %v9781_v29  ;;  %v9899_v49 = vld [vmem:[%s17499_s3 + $0x160] sm:$0xf]  ;;  %v10902_v39 = vld [vmem:[%s17499_s3 + $0x16c] sm:$0xf0] }
 0x809   :  { %18606 = vst [vmem:[#allocation14_spill] sm:$0xff] %v15737_v56 }
 0x80a   :  { %18607 = vst [vmem:[#allocation33_spill] sm:$0xff] %v15739_v19 }
 0x80c   :  { %v15728_v46 = vpop.f32.mrf.mxu0 }
 0x80d   :  { %v4890_v6 = vpop.f32.mrf.mxu2 }
 0x80e   :  { %v15733_v9 = vadd.f32 %v4890_v6, %v15517_v36  ;;  %v5793_v6 = vpop.f32.mrf.mxu3 }
 0x80f   :  { %v15735_v51 = vpop.f32.mrf.mxu1  ;;  %v15772_v29 = vadd.f32 %v5793_v6, %v15647_v40  ;;  %v9901_v40 = vld [vmem:[%s17499_s3 + $0x170] sm:$0xf0] }
 0x810   :  { %18605 = vst [vmem:[#allocation32_spill] sm:$0xff] %v15733_v9  ;;  %v18615_v9 = vld [vmem:[#allocation21_spill] sm:$0xff] }
 0x812   :  { %5751 = vmatmul.bf16.gmra.mxu1 %v15730_v8  ;;  %10100 = vmatmul.msk.bf16.gmra.mxu2 %vm5644_vm1, %v15739_v19 }
 0x813   :  { %5919 = vmatmul.bf16.gmra.mxu0 %v15737_v56 }
 0x814   :  { %5840 = vmatmul.bf16.gmra.mxu3 %v15744_v25  ;;  %v15753_v36 = vpop.f32.mrf.mxu0 }
 0x815   :  { %v4893_v45 = vpop.f32.mrf.mxu2 }
 0x816   :  { %v4894_v16 = vadd.f32 %v4893_v45, %v15553_v7  ;;  %v9875_v7 = vld [vmem:[%s17499_s3 + $0x128] sm:$0xf]  ;;  %v9797_v45 = vld [vmem:[%s17499_s3 + $0x98] sm:$0xf0] }
 0x817   :  { %v15756_v58 = vpop.f32.mrf.mxu1  ;;  %v15796_v56 = vor.u32 %v10895_v15, %v9875_v7  ;;  %v15798_v19 = vor.u32 %v10873_v28, %v9797_v45  ;;  %v9915_v28 = vld [vmem:[%s17499_s3 + $0x180] sm:$0xf] }
 0x818   :  { %v4928_v20 = vmax.f32 %v18610_v13, %v4894_v16  ;;  %v10900_v16 = vld [vmem:[%s17499_s3 + $0x164] sm:$0xf]  ;;  %v5796_v13 = vpop.f32.mrf.mxu3 }
 0x819   :  { %18613 = vst [vmem:[#allocation47_spill] sm:$0xff] %v15796_v56  ;;  %v15800_v8 = vadd.f32 %v5796_v13, %v5707_v4  ;;  %v15802_v24 = vor.u32 %v10900_v16, %v9901_v40  ;;  %v10899_v16 = vld [vmem:[%s17499_s3 + $0x154] sm:$0xf0]  ;;  %v10877_v13 = vld [vmem:[%s17499_s3 + $0xac] sm:$0xf] }
 0x81a   :  { %v4938_v5 = vmax.f32 %v18611_v27, %v4928_v20  ;;  %v15791_v27 = vor.u32 %v10902_v39, %v9899_v49  ;;  %18614 = vst [vmem:[#allocation40_spill] sm:$0xff] %v15798_v19  ;;  %v18616_v49 = vmax.f32 %v15122_v43, %v15499_v47 }
 0x81c   :  { %v15789_v6 = vpop.f32.mrf.mxu0  ;;  %18612 = vst [vmem:[#allocation36_spill] sm:$0xff] %v15791_v27  ;;  %v4948_v30 = vadd.f32 %v4938_v5, %v18563_v18 }
 0x81d   :  { %v4895_v20 = vpop.f32.mrf.mxu2 }
 0x81e   :  { %v4896_v14 = vadd.f32 %v4895_v20, %v15578_v38  ;;  %v4958_v7 = vmax.f32 %v4948_v30, 0.0  ;;  %v18618_v30 = vmax.f32 %v15135_v55, %v15521_v53  ;;  %v9813_v55 = vld [vmem:[%s17499_s3 + $0xb8] sm:$0xf0]  ;;  %v10904_v53 = vld [vmem:[%s17499_s3 + $0x184] sm:$0xf] }
 0x81f   :  { %v15794_v25 = vpop.f32.mrf.mxu1  ;;  %v9917_v20 = vld [vmem:[%s17499_s3 + $0x190] sm:$0xf0] }
 0x820   :  { %v4929_v2 = vmax.f32 %v18615_v9, %v4896_v14  ;;  %v5798_v14 = vpop.f32.mrf.mxu3 }
 0x821   :  { %v15837_v40 = vadd.f32 %v5798_v14, %v15700_v62 }
 0x822   :  { %5756 = vmatmul.bf16.gmra.mxu1 %v15791_v27  ;;  %v4939_v38 = vmax.f32 %v18616_v49, %v4929_v2  ;;  %10101 = vmatmul.msk.bf16.gmra.mxu2 %vm5644_vm1, %v15798_v19  ;;  %v18617_v2 = vld [vmem:[#allocation29_spill] sm:$0xff] }
 0x823   :  { %5924 = vmatmul.bf16.gmra.mxu0 %v15796_v56 }
 0x824   :  { %5845 = vmatmul.bf16.gmra.mxu3 %v15802_v24  ;;  %v4949_v4 = vadd.f32 %v4939_v38, %v18221_v63  ;;  %v15815_v39 = vpop.f32.mrf.mxu0  ;;  %v10906_v63 = vld [vmem:[%s17499_s3 + $0x18c] sm:$0xf0] }
 0x825   :  { %v4898_v9 = vpop.f32.mrf.mxu2 }
 0x826   :  { %v4959_v15 = vmax.f32 %v4949_v4, 0.0  ;;  %v4899_v18 = vadd.f32 %v4898_v9, %v15614_v61  ;;  %v9891_v61 = vld [vmem:[%s17499_s3 + $0x148] sm:$0xf]  ;;  %v15851_v4 = vor.u32 %v10906_v63, %v9915_v28 }
 0x827   :  { %v15818_v5 = vpop.f32.mrf.mxu1  ;;  %v15853_v14 = vor.u32 %v10899_v16, %v9891_v61 }
 0x828   :  { %v11354_v43 = vpack.c.bf16 %v4959_v15, %v4958_v7  ;;  %v4930_v47 = vmax.f32 %v18617_v2, %v4899_v18  ;;  %v5801_v49 = vpop.f32.mrf.mxu3  ;;  %v15858_v15 = vor.u32 %v10877_v13, %v9813_v55  ;;  %v15866_v2 = vor.u32 %v10904_v53, %v9917_v20  ;;  %v9931_v20 = vld [vmem:[%s17499_s3 + $0x1a0] sm:$0xf] }
 0x829   :  { %v15861_v18 = vadd.f32 %v5801_v49, %v15735_v51  ;;  %v18622_v49 = vmax.f32 %v18584_v50, %v15582_v22  ;;  %v9829_v22 = vld [vmem:[%s17499_s3 + $0xd8] sm:$0xf0]  ;;  %v10908_v50 = vld [vmem:[%s17499_s3 + $0x1a4] sm:$0xf] }
 0x82a   :  { %11510 = vst [vmem:[#allocation2 + $0x90] sm:$0xff] %v11354_v43   ;;  %v4940_v45 = vmax.f32 %v18618_v30, %v4930_v47  ;;  %v18619_v47 = vld [vmem:[#allocation23_spill] sm:$0xff] }
 0x82c   :  { %v5880_v38 = vpop.f32.mrf.mxu0  ;;  %v4950_v28 = vadd.f32 %v4940_v45, %v12564_v35 }
 0x82d   :  { %v4900_v62 = vpop.f32.mrf.mxu2  ;;  %v15864_v43 = vadd.f32 %v5880_v38, %v15742_v10 }
 0x82e   :  { %v4901_v9 = vadd.f32 %v4900_v62, %v15641_v34  ;;  %v18620_v34 = vmax.f32 %v15142_v60, %v15558_v32  ;;  %v4960_v13 = vmax.f32 %v4950_v28, 0.0  ;;  %v18621_v32 = vld [vmem:[#allocation18_spill] sm:$0xff]  ;;  %v10903_v62 = vld [vmem:[%s17499_s3 + $0x174] sm:$0xf0] }
 0x82f   :  { %v15856_v7 = vpop.f32.mrf.mxu1 }
 0x830   :  { %v4931_v30 = vmax.f32 %v18619_v47, %v4901_v9  ;;  %v5803_v51 = vpop.f32.mrf.mxu3 }
 0x831   :  { %v15899_v9 = vadd.f32 %v5803_v51, %v15756_v58  ;;  %v9933_v58 = vld [vmem:[%s17499_s3 + $0x1b0] sm:$0xf0] }
 0x832   :  { %5761 = vmatmul.bf16.gmra.mxu1 %v15851_v4  ;;  %v4941_v63 = vmax.f32 %v18620_v34, %v4931_v30  ;;  %10102 = vmatmul.msk.bf16.gmra.mxu2 %vm5644_vm1, %v15858_v15  ;;  %v10881_v30 = vld [vmem:[%s17499_s3 + $0xcc] sm:$0xf] }
 0x833   :  { %5929 = vmatmul.bf16.gmra.mxu0 %v15853_v14 }
 0x834   :  { %5850 = vmatmul.bf16.gmra.mxu3 %v15866_v2  ;;  %v4951_v10 = vadd.f32 %v4941_v63, %v12567_v12  ;;  %v5882_v61 = vpop.f32.mrf.mxu0  ;;  %v10910_v12 = vld [vmem:[%s17499_s3 + $0x1ac] sm:$0xf0] }
 0x835   :  { %v4903_v16 = vpop.f32.mrf.mxu2  ;;  %v15902_v47 = vadd.f32 %v5882_v61, %v15772_v29  ;;  %v15916_v63 = vor.u32 %v10910_v12, %v9931_v20 }
 0x836   :  { %v4961_v55 = vmax.f32 %v4951_v10, 0.0  ;;  %v4904_v35 = vadd.f32 %v4903_v16, %v15675_v3  ;;  %v9907_v3 = vld [vmem:[%s17499_s3 + $0x168] sm:$0xf]  ;;  %v15923_v16 = vor.u32 %v10881_v30, %v9829_v22  ;;  %v10914_v30 = vld [vmem:[%s17499_s3 + $0x1cc] sm:$0xf0] }
 0x837   :  { %v15880_v45 = vpop.f32.mrf.mxu1  ;;  %v15918_v10 = vor.u32 %v10903_v62, %v9907_v3  ;;  %v9947_v3 = vld [vmem:[%s17499_s3 + $0x1c0] sm:$0xf] }
 0x838   :  { %v11359_v60 = vpack.c.bf16 %v4961_v55, %v4960_v13  ;;  %v4932_v53 = vmax.f32 %v18621_v32, %v4904_v35  ;;  %v5806_v28 = vpop.f32.mrf.mxu3  ;;  %v15931_v35 = vor.u32 %v10908_v50, %v9933_v58  ;;  %v10907_v50 = vld [vmem:[%s17499_s3 + $0x194] sm:$0xf0] }
 0x839   :  { %v15926_v13 = vadd.f32 %v5806_v28, %v15794_v25 }
 0x83a   :  { %11511 = vst [vmem:[#allocation2 + $0x160] sm:$0xff] %v11359_v60   ;;  %v4942_v38 = vmax.f32 %v18622_v49, %v4932_v53 }
 0x83b   :  { %18623 = vst [vmem:[#allocation49_spill] sm:$0xff] %v15931_v35 }
 0x83c   :  { %v5885_v34 = vpop.f32.mrf.mxu0  ;;  %v4952_v32 = vadd.f32 %v4942_v38, %v12519_v37 }
 0x83d   :  { %v4905_v29 = vpop.f32.mrf.mxu2  ;;  %v15929_v55 = vadd.f32 %v5885_v34, %v15800_v8 }
 0x83e   :  { %v4906_v51 = vadd.f32 %v4905_v29, %v15695_v41  ;;  %v18624_v41 = vmax.f32 %v18592_v54, %v15619_v44  ;;  %v4962_v12 = vmax.f32 %v4952_v32, 0.0  ;;  %v15981_v29 = vor.u32 %v10914_v30, %v9947_v3  ;;  %v10889_v30 = vld [vmem:[%s17499_s3 + $0x10c] sm:$0xf] }
 0x83f   :  { %v15921_v61 = vpop.f32.mrf.mxu1 }
 0x840   :  { %v4933_v60 = vmax.f32 %v15352_v26, %v4906_v51  ;;  %v5808_v8 = vpop.f32.mrf.mxu3 }
 0x841   :  { %v15961_v22 = vadd.f32 %v5808_v8, %v15818_v5  ;;  %v10912_v5 = vld [vmem:[%s17499_s3 + $0x1c4] sm:$0xf] }
 0x842   :  { %5766 = vmatmul.bf16.gmra.mxu1 %v15916_v63  ;;  %v4943_v53 = vmax.f32 %v18624_v41, %v4933_v60  ;;  %10103 = vmatmul.msk.bf16.gmra.mxu2 %vm5644_vm1, %v15923_v16 }
 0x843   :  { %5934 = vmatmul.bf16.gmra.mxu0 %v15918_v10 }
 0x844   :  { %5855 = vmatmul.bf16.gmra.mxu3 %v15931_v35  ;;  %v4953_v25 = vadd.f32 %v4943_v53, %v12541_v42  ;;  %v5887_v20 = vpop.f32.mrf.mxu0  ;;  %v18625_v42 = vmax.f32 %v18597_v11, %v15645_v0  ;;  %v10885_v0 = vld [vmem:[%s17499_s3 + $0xec] sm:$0xf]  ;;  %v9845_v11 = vld [vmem:[%s17499_s3 + $0xf8] sm:$0xf0] }
 0x845   :  { %v4908_v26 = vpop.f32.mrf.mxu2 }
 0x846   :  { %v4963_v49 = vmax.f32 %v4953_v25, 0.0  ;;  %v4909_v37 = vadd.f32 %v4908_v26, %v15728_v46  ;;  %v9923_v46 = vld [vmem:[%s17499_s3 + $0x188] sm:$0xf]  ;;  %v15994_v25 = vor.u32 %v10885_v0, %v9845_v11 }
 0x847   :  { %v15945_v38 = vpop.f32.mrf.mxu1  ;;  %v15992_v53 = vor.u32 %v10907_v50, %v9923_v46  ;;  %v9965_v46 = vld [vmem:[%s17499_s3 + $0x1f0] sm:$0xf0] }
 0x848   :  { %v11364_v54 = vpack.c.bf16 %v4963_v49, %v4962_v12  ;;  %v4934_v44 = vmax.f32 %v15370_v1, %v4909_v37  ;;  %v15964_v1 = vadd.f32 %v5887_v20, %v15837_v40  ;;  %v9949_v40 = vld [vmem:[%s17499_s3 + $0x1d0] sm:$0xf0]  ;;  %v5811_v58 = vpop.f32.mrf.mxu3  ;;  %18627 = vst [vmem:[#allocation54_spill] sm:$0xff] %v15994_v25 }
 0x849   :  { %v15984_v51 = vadd.f32 %v5811_v58, %v15856_v7  ;;  %18626 = vst [vmem:[#allocation42_spill] sm:$0xff] %v15992_v53  ;;  %v15996_v8 = vor.u32 %v10912_v5, %v9949_v40 }
 0x84a   :  { %11512 = vst [vmem:[#allocation2 + $0x30] sm:$0xff] %v11364_v54   ;;  %v4944_v62 = vmax.f32 %v18625_v42, %v4934_v44 }
 0x84b   :  { %18628 = vst [vmem:[#allocation46_spill] sm:$0xff] %v15996_v8 }
 0x84c   :  { %v5890_v28 = vpop.f32.mrf.mxu0  ;;  %v4954_v7 = vadd.f32 %v4944_v62, %v18581_v17 }
 0x84d   :  { %v4910_v34 = vpop.f32.mrf.mxu2  ;;  %v15987_v60 = vadd.f32 %v5890_v28, %v15861_v18  ;;  %v18629_v18 = vmax.f32 %v18602_v31, %v15680_v59 }
 0x84e   :  { %v4911_v32 = vadd.f32 %v4910_v34, %v15753_v36  ;;  %v4964_v31 = vmax.f32 %v4954_v7, 0.0  ;;  %v18635_v7 = vld [vmem:[#allocation50_spill] sm:$0xff] }
 0x84f   :  { %v15990_v41 = vpop.f32.mrf.mxu1 }
 0x850   :  { %v4935_v20 = vmax.f32 %v15399_v52, %v4911_v32  ;;  %v5813_v12 = vpop.f32.mrf.mxu3 }
 0x851   :  { %v16010_v37 = vadd.f32 %v5813_v12, %v15880_v45  ;;  %v18630_v45 = vmax.f32 %v18603_v21, %v15698_v23  ;;  %v9861_v23 = vld [vmem:[%s17499_s3 + $0x118] sm:$0xf0]  ;;  %v10916_v21 = vld [vmem:[%s17499_s3 + $0x1e4] sm:$0xf] }
 0x852   :  { %5771 = vmatmul.bf16.gmra.mxu1 %v15981_v29  ;;  %v4945_v26 = vmax.f32 %v18629_v18, %v4935_v20  ;;  %10104 = vmatmul.msk.bf16.gmra.mxu2 %vm5644_vm1, %v15994_v25  ;;  %v16056_v34 = vor.u32 %v10889_v30, %v9861_v23  ;;  %v16058_v32 = vor.u32 %v10916_v21, %v9965_v46  ;;  %v16357_v25 = vpop.permute.xlu2 %5097 }
 0x853   :  { %5939 = vmatmul.bf16.gmra.mxu0 %v15992_v53  ;;  %18692 = vst [vmem:[#allocation8_spill] sm:$0xff] %v16357_v25 }
 0x854   :  { %5860 = vmatmul.bf16.gmra.mxu3 %v15996_v8  ;;  %v4955_v36 = vadd.f32 %v4945_v26, %v18583_v33  ;;  %v5892_v49 = vpop.f32.mrf.mxu0  ;;  %v9963_v33 = vld [vmem:[%s17499_s3 + $0x1e0] sm:$0xf]  ;;  %18633 = vst [vmem:[#allocation64_spill] sm:$0xff] %v16056_v34  ;;  %v18636_v26 = vld [vmem:[#allocation13_spill] sm:$0xff]  ;;  %v11035_v8 = vld [vmem:[#allocation2 + $0x90] sm:$0xff] }
 0x855   :  { %v4913_v52 = vpop.f32.mrf.mxu2  ;;  %v16013_v17 = vadd.f32 %v5892_v49, %v15899_v9  ;;  %v10918_v9 = vld [vmem:[%s17499_s3 + $0x1ec] sm:$0xf0]  ;;  %18634 = vst [vmem:[#allocation5_spill] sm:$0xff] %v16058_v32 }
 0x856   :  { %v4965_v59 = vmax.f32 %v4955_v36, 0.0  ;;  %v4914_v54 = vadd.f32 %v4913_v52, %v15789_v6  ;;  %v9939_v6 = vld [vmem:[%s17499_s3 + $0x1a8] sm:$0xf]  ;;  %v16046_v11 = vor.u32 %v10918_v9, %v9963_v33  ;;  %v18637_v36 = vld [vmem:[#allocation32_spill] sm:$0xff] }
 0x857   :  { %v16016_v44 = vpop.f32.mrf.mxu1 }
 0x858   :  { %v11369_v3 = vpack.c.bf16 %v4965_v59, %v4964_v31  ;;  %v4936_v42 = vmax.f32 %v15419_v57, %v4914_v54  ;;  %v10911_v57 = vld [vmem:[%s17499_s3 + $0x1b4] sm:$0xf0]  ;;  %18631 = vst [vmem:[#allocation59_spill] sm:$0xff] %v16046_v11 }
 0x859   :  { %v16054_v28 = vor.u32 %v10911_v57, %v9939_v6 }
 0x85a   :  { %11513 = vst [vmem:[#allocation2 + $0x78] sm:$0xff] %v11369_v3   ;;  %v4946_v62 = vmax.f32 %v18630_v45, %v4936_v42  ;;  %v9955_v45 = vld [vmem:[%s17499_s3 + $0x1c8] sm:$0xf] }
 0x85b   :  { %18632 = vst [vmem:[#allocation48_spill] sm:$0xff] %v16054_v28 }
 0x85c   :  { %v5895_v50 = vpop.f32.mrf.mxu0  ;;  %v4956_v18 = vadd.f32 %v4946_v62, %v18635_v7  ;;  %v10915_v62 = vld [vmem:[%s17499_s3 + $0x1d4] sm:$0xf0]  ;;  %v11016_v7 = vld [vmem:[#allocation2 + $0x40] sm:$0xff] }
 0x85d   :  { %v4915_v0 = vpop.f32.mrf.mxu2  ;;  %v16049_v5 = vadd.f32 %v5895_v50, %v15926_v13  ;;  %v18638_v13 = vmax.f32 %v18636_v26, %v18637_v36  ;;  %v16099_v21 = vor.u32 %v10915_v62, %v9955_v45  ;;  %v18642_v50 = vld [vmem:[#allocation11_spill] sm:$0xff]  ;;  %v11024_v36 = vld [vmem:[#allocation2 + $0x10] sm:$0xff] }
 0x85e   :  { %v4916_v40 = vadd.f32 %v4915_v0, %v15815_v39  ;;  %v18639_v39 = vld [vmem:[#allocation51_spill] sm:$0xff]  ;;  %v4966_v59 = vmax.f32 %v4956_v18, 0.0  ;;  %v11017_v0 = vld [vmem:[#allocation2 + $0xa8] sm:$0xff] }
 0x85f   :  { %v16052_v58 = vpop.f32.mrf.mxu1  ;;  %18640 = vst [vmem:[#allocation76_spill] sm:$0xff] %v16099_v21 }
 0x860   :  { %v4937_v20 = vmax.f32 %v15448_v48, %v4916_v40  ;;  %v11025_v40 = vld [vmem:[#allocation2 + $0x58] sm:$0xff] }
 0x862   :  { %5776 = vmatmul.bf16.gmra.mxu1 %v16046_v11  ;;  %v4947_v12 = vmax.f32 %v18638_v13, %v4937_v20  ;;  %10105 = vmatmul.msk.bf16.gmra.mxu2 %vm5644_vm1, %v16056_v34 }
 0x863   :  { %5944 = vmatmul.bf16.gmra.mxu0 %v16054_v28 }
 0x864   :  { %5865 = vmatmul.bf16.gmra.mxu3 %v16058_v32  ;;  %v4957_v49 = vadd.f32 %v4947_v12, %v18639_v39  ;;  %v5897_v52 = vpop.f32.mrf.mxu0  ;;  %v11015_v12 = vld [vmem:[#allocation2 + $0xf8] sm:$0xff]  ;;  %v11023_v39 = vld [vmem:[#allocation2 + $0x20] sm:$0xff] }
 0x865   :  { %v5969_v31 = vpop.f32.mrf.mxu2  ;;  %v16072_v48 = vadd.f32 %v5897_v52, %v15961_v22  ;;  %v10893_v22 = vld [vmem:[%s17499_s3 + $0x12c] sm:$0xf]  ;;  %v9893_v52 = vld [vmem:[%s17499_s3 + $0x158] sm:$0xf0] }
 0x866   :  { %v4967_v54 = vmax.f32 %v4957_v49, 0.0  ;;  %v16075_v3 = vadd.f32 %v5969_v31, %v15864_v43  ;;  %v9877_v43 = vld [vmem:[%s17499_s3 + $0x138] sm:$0xf0]  ;;  %v9971_v49 = vld [vmem:[%s17499_s3 + $0x1e8] sm:$0xf] }
 0x867   :  { %v16077_v42 = vpop.f32.mrf.mxu1  ;;  %v16101_v46 = vor.u32 %v10893_v22, %v9877_v43  ;;  %v18646_v43 = vld [vmem:[#allocation19_spill] sm:$0xff] }
 0x868   :  { %v11374_v33 = vpack.c.bf16 %v4967_v54, %v4966_v59  ;;  %v11014_v59 = vld [vmem:[#allocation2 + $0x100] sm:$0xff] }
 0x869   :  { %18641 = vst [vmem:[#allocation53_spill] sm:$0xff] %v16101_v46 }
 0x86a   :  { %11514 = vst [vmem:[#allocation2 + $0x1c0] sm:$0xff] %v11374_v33   ;;  %v11022_v33 = vld [vmem:[#allocation2 + $0x38] sm:$0xff] }
 0x86c   :  { %v5900_v9 = vpop.f32.mrf.mxu0 }
 0x86d   :  { %v5971_v6 = vpop.f32.mrf.mxu2  ;;  %v16092_v57 = vadd.f32 %v5900_v9, %v15984_v51  ;;  %v18643_v51 = vld [vmem:[#allocation15_spill] sm:$0xff]  ;;  %v11013_v9 = vld [vmem:[#allocation2 + $0x1d0] sm:$0xff] }
 0x86e   :  { %v16095_v30 = vadd.f32 %v5971_v6, %v15902_v47  ;;  %v11021_v6 = vld [vmem:[#allocation2] sm:$0xff] }
 0x86f   :  { %v16097_v23 = vpop.f32.mrf.mxu1 }
 0x872   :  { %6353 = vmatmul.bf16.vlgmr.msrb.gmra.mxu1 %v18642_v50  ;;  %10106 = vmatmul.msk.bf16.gmra.mxu2 %vm5644_vm1, %v16101_v46  ;;  %v11036_v50 = vld [vmem:[#allocation2 + $0x160] sm:$0xff] }
 0x873   :  { %5949 = vmatmul.bf16.gmra.mxu0 %v16099_v21  ;;  %7649 = vmatpush.bf16.msrb.mxu1 %v11017_v0  ;;  %v11012_v0 = vld [vmem:[#allocation2 + $0x148] sm:$0xff] }
 0x874   :  { %6442 = vmatmul.bf16.vlgmr.msrb.gmra.mxu3 %v18643_v51  ;;  %v5902_v47 = vpop.f32.mrf.mxu0 }
 0x875   :  { %7738 = vmatpush.bf16.msrb.mxu3 %v11025_v40  ;;  %v5974_v20 = vpop.f32.mrf.mxu2  ;;  %v16109_v18 = vadd.f32 %v5902_v47, %v16010_v37  ;;  %v10919_v37 = vld [vmem:[%s17499_s3 + $0x1f4] sm:$0xf0] }
 0x876   :  { %v16112_v26 = vadd.f32 %v5974_v20, %v15929_v55  ;;  %v10897_v55 = vld [vmem:[%s17499_s3 + $0x14c] sm:$0xf]  ;;  %v16133_v62 = vor.u32 %v10919_v37, %v9971_v49  ;;  %v11020_v47 = vld [vmem:[#allocation2 + $0xb8] sm:$0xff] }
 0x877   :  { %v16114_v13 = vpop.f32.mrf.mxu1  ;;  %7650 = vmatpush.bf16.msrb.mxu1 %v11016_v7  ;;  %v16135_v22 = vor.u32 %v10897_v55, %v9893_v52  ;;  %v5816_v7 = vpop.f32.mrf.mxu3  ;;  %v10901_v49 = vld [vmem:[%s17499_s3 + $0x16c] sm:$0xf] }
 0x878   :  { %18644 = vst [vmem:[#allocation67_spill] sm:$0xff] %v16133_v62 }
 0x879   :  { %7739 = vmatpush.bf16.msrb.mxu3 %v11024_v36  ;;  %18645 = vst [vmem:[#allocation9_spill] sm:$0xff] %v16135_v22  ;;  %v5817_v36 = vadd.f32 %v5816_v7, %v15921_v61  ;;  %v11018_v61 = vld [vmem:[#allocation2 + $0x190] sm:$0xff] }
 0x87a   :  { %v11033_v7 = vld [vmem:[#allocation2 + $0x70] sm:$0xff] }
 0x87b   :  { %7651 = vmatpush.bf16.msrb.mxu1 %v11015_v12  ;;  %v11011_v12 = vld [vmem:[#allocation2 + $0xa0] sm:$0xff] }
 0x87c   :  { %v5905_v37 = vpop.f32.mrf.mxu0 }
 0x87d   :  { %7740 = vmatpush.bf16.msrb.mxu3 %v11023_v39  ;;  %v5976_v31 = vpop.f32.mrf.mxu2  ;;  %v11019_v39 = vld [vmem:[#allocation2 + $0x1a0] sm:$0xff]  ;;  %v16153_v55 = vadd.f32 %v5905_v37, %v5817_v36 }
 0x87e   :  { %v16129_v54 = vadd.f32 %v5976_v31, %v15964_v1  ;;  %v11010_v31 = vld [vmem:[#allocation2 + $0xc0] sm:$0xff] }
 0x87f   :  { %v16131_v45 = vpop.f32.mrf.mxu1  ;;  %7652 = vmatpush.bf16.msrb.mxu1 %v11014_v59 }
 0x881   :  { %7741 = vmatpush.bf16.msrb.mxu3 %v11022_v33 }
 0x882   :  { %6358 = vmatmul.bf16.gmra.mxu1 %v18646_v43  ;;  %10107 = vmatmul.msk.bf16.gmra.mxu2 %vm5644_vm1, %v16135_v22  ;;  %v18666_v43 = vld [vmem:[#allocation31_spill] sm:$0xff] }
 0x883   :  { %5954 = vmatmul.bf16.gmra.mxu0 %v16133_v62  ;;  %7653 = vmatpush.bf16.msrb.mxu1 %v11013_v9  ;;  %v18662_v62 = vld [vmem:[#allocation20_spill] sm:$0xff] }
 0x884   :  { %v5907_v36 = vpop.f32.mrf.mxu0 }
 0x885   :  { %7742 = vmatpush.bf16.msrb.mxu3 %v11021_v6  ;;  %v5979_v1 = vpop.f32.mrf.mxu2  ;;  %v5818_v6 = vpop.f32.mrf.mxu3 }
 0x886   :  { %v16142_v40 = vadd.f32 %v5979_v1, %v15987_v60  ;;  %v9909_v60 = vld [vmem:[%s17499_s3 + $0x178] sm:$0xf0]  ;;  %v18648_v1 = vld [vmem:[#allocation58_spill] sm:$0xff] }
 0x887   :  { %v16144_v20 = vpop.f32.mrf.mxu1  ;;  %7654 = vmatpush.bf16.msrb.mxu1 %v11012_v0  ;;  %v16160_v9 = vor.u32 %v10901_v49, %v9909_v60  ;;  %6447 = vmatmul.bf16.gmra.mxu3 %v18648_v1  ;;  %v5819_v0 = vadd.f32 %v5818_v6, %v15945_v38  ;;  %v11032_v49 = vld [vmem:[#allocation2 + $0x178] sm:$0xff] }
 0x888   :  { %v9925_v6 = vld [vmem:[%s17499_s3 + $0x198] sm:$0xf0] }
 0x889   :  { %7743 = vmatpush.bf16.msrb.mxu3 %v11020_v47  ;;  %18647 = vst [vmem:[#allocation69_spill] sm:$0xff] %v16160_v9  ;;  %v18649_v47 = vld [vmem:[#allocation72_spill] sm:$0xff] }
 0x88b   :  { %7655 = vmatpush.bf16.msrb.mxu1 %v11011_v12  ;;  %v16168_v12 = vadd.f32 %v5907_v36, %v5819_v0  ;;  %v11030_v36 = vld [vmem:[#allocation2 + $0x198] sm:$0xff] }
 0x88c   :  { %v5910_v0 = vpop.f32.mrf.mxu0 }
 0x88d   :  { %7744 = vmatpush.bf16.msrb.mxu3 %v11019_v39  ;;  %v5981_v52 = vpop.f32.mrf.mxu2  ;;  %v5821_v38 = vpop.f32.mrf.mxu3 }
 0x88e   :  { %v16156_v59 = vadd.f32 %v5981_v52, %v16013_v17  ;;  %v18650_v17 = vld [vmem:[#allocation4_spill] sm:$0xff]  ;;  %v5822_v52 = vadd.f32 %v5821_v38, %v15990_v41 }
 0x88f   :  { %v16158_v33 = vpop.f32.mrf.mxu1  ;;  %7656 = vmatpush.bf16.msrb.mxu1 %v11010_v31  ;;  %v11031_v31 = vld [vmem:[#allocation2 + $0xe8] sm:$0xff] }
 0x891   :  { %7745 = vmatpush.bf16.msrb.mxu3 %v11018_v61  ;;  %v10905_v61 = vld [vmem:[%s17499_s3 + $0x18c] sm:$0xf] }
 0x892   :  { %6363 = vmatmul.bf16.gmra.mxu1 %v18649_v47  ;;  %10108 = vmatmul.msk.bf16.gmra.mxu2 %vm5644_vm1, %v16160_v9  ;;  %v16189_v41 = vor.u32 %v10905_v61, %v9925_v6  ;;  %v11029_v9 = vld [vmem:[#allocation2 + $0xc8] sm:$0xff]  ;;  %v18657_v47 = vld [vmem:[#allocation27_spill] sm:$0xff] }
 0x893   :  { %6531 = vmatmul.bf16.vlgmr.msrb.gmra.mxu0 %v18650_v17  ;;  %v18653_v17 = vld [vmem:[#allocation43_spill] sm:$0xff]  ;;  %v11028_v61 = vld [vmem:[#allocation2 + $0x68] sm:$0xff] }
 0x894   :  { %7827 = vmatpush.bf16.msrb.mxu0 %v11033_v7  ;;  %v16182_v7 = vadd.f32 %v5910_v0, %v5822_v52  ;;  %18651 = vst [vmem:[#allocation16_spill] sm:$0xff] %v16189_v41  ;;  %v18654_v52 = vld [vmem:[#allocation61_spill] sm:$0xff] }
 0x895   :  { %v5984_v39 = vpop.f32.mrf.mxu2  ;;  %v5823_v38 = vpop.f32.mrf.mxu3 }
 0x896   :  { %v16171_v60 = vadd.f32 %v5984_v39, %v16049_v5  ;;  %v5824_v1 = vadd.f32 %v5823_v38, %v16016_v44 }
 0x897   :  { %v16173_v37 = vpop.f32.mrf.mxu1 }
 0x898   :  { %7828 = vmatpush.bf16.msrb.mxu0 %v11032_v49 }
 0x89c   :  { %7829 = vmatpush.bf16.msrb.mxu0 %v11031_v31  ;;  %v18652_v31 = vld [vmem:[#allocation66_spill] sm:$0xff] }
 0x89d   :  { %v5986_v5 = vpop.f32.mrf.mxu2  ;;  %6452 = vmatmul.bf16.gmra.mxu3 %v18652_v31  ;;  %v5826_v44 = vpop.f32.mrf.mxu3  ;;  %v11027_v31 = vld [vmem:[#allocation2 + $0xd0] sm:$0xff] }
 0x89e   :  { %v16185_v39 = vadd.f32 %v5986_v5, %v16072_v48  ;;  %v5912_v48 = vpop.f32.mrf.mxu0  ;;  %v5827_v38 = vadd.f32 %v5826_v44, %v16052_v58  ;;  %v18656_v44 = vld [vmem:[#allocation30_spill] sm:$0xff] }
 0x89f   :  { %v16187_v49 = vpop.f32.mrf.mxu1  ;;  %v5913_v0 = vadd.f32 %v5912_v48, %v5824_v1 }
 0x8a0   :  { %7830 = vmatpush.bf16.msrb.mxu0 %v11030_v36 }
 0x8a2   :  { %6368 = vmatmul.bf16.gmra.mxu1 %v18653_v17  ;;  %10109 = vmatmul.msk.bf16.gmra.mxu2 %vm5644_vm1, %v16189_v41 }
 0x8a3   :  { %6536 = vmatmul.bf16.gmra.mxu0 %v18654_v52  ;;  %v10909_v52 = vld [vmem:[%s17499_s3 + $0x1ac] sm:$0xf] }
 0x8a4   :  { %7831 = vmatpush.bf16.msrb.mxu0 %v11029_v9  ;;  %v9941_v9 = vld [vmem:[%s17499_s3 + $0x1b8] sm:$0xf0] }
 0x8a5   :  { %v5989_v5 = vpop.f32.mrf.mxu2  ;;  %v16214_v58 = vor.u32 %v10909_v52, %v9941_v9 }
 0x8a6   :  { %v16198_v6 = vadd.f32 %v5989_v5, %v16092_v57  ;;  %v5915_v1 = vpop.f32.mrf.mxu0  ;;  %v11026_v5 = vld [vmem:[#allocation2 + $0x88] sm:$0xff] }
 0x8a7   :  { %v16200_v36 = vpop.f32.mrf.mxu1  ;;  %v5916_v48 = vadd.f32 %v5915_v1, %v5827_v38  ;;  %18655 = vst [vmem:[#allocation60_spill] sm:$0xff] %v16214_v58  ;;  %v18658_v38 = vld [vmem:[#allocation7_spill] sm:$0xff] }
 0x8a8   :  { %7832 = vmatpush.bf16.msrb.mxu0 %v11028_v61 }
 0x8ac   :  { %7833 = vmatpush.bf16.msrb.mxu0 %v11027_v31  ;;  %v5828_v31 = vpop.f32.mrf.mxu3 }
 0x8ad   :  { %v5991_v57 = vpop.f32.mrf.mxu2  ;;  %6457 = vmatmul.bf16.gmra.mxu3 %v18656_v44  ;;  %v5829_v17 = vadd.f32 %v5828_v31, %v16077_v42  ;;  %v10913_v42 = vld [vmem:[%s17499_s3 + $0x1cc] sm:$0xf]  ;;  %v9957_v31 = vld [vmem:[%s17499_s3 + $0x1d8] sm:$0xf0] }
 0x8ae   :  { %v16210_v41 = vadd.f32 %v5991_v57, %v16109_v18  ;;  %v5917_v1 = vpop.f32.mrf.mxu0 }
 0x8af   :  { %v16212_v61 = vpop.f32.mrf.mxu1  ;;  %v5918_v18 = vadd.f32 %v5917_v1, %v5829_v17 }
 0x8b0   :  { %7834 = vmatpush.bf16.msrb.mxu0 %v11026_v5 }
 0x8b2   :  { %6373 = vmatmul.bf16.gmra.mxu1 %v18657_v47  ;;  %10110 = vmatmul.msk.bf16.gmra.mxu2 %vm5644_vm1, %v16214_v58  ;;  %v18661_v47 = vld [vmem:[#allocation68_spill] sm:$0xff] }
 0x8b3   :  { %6541 = vmatmul.bf16.gmra.mxu0 %v18658_v38 }
 0x8b4   :  { %v5831_v9 = vpop.f32.mrf.mxu3 }
 0x8b5   :  { %v5994_v57 = vpop.f32.mrf.mxu2  ;;  %v5832_v5 = vadd.f32 %v5831_v9, %v16097_v23  ;;  %v18660_v23 = vld [vmem:[#allocation57_spill] sm:$0xff] }
 0x8b6   :  { %v16223_v51 = vadd.f32 %v5994_v57, %v16153_v55  ;;  %v5920_v44 = vpop.f32.mrf.mxu0  ;;  %v16239_v57 = vor.u32 %v10913_v42, %v9957_v31 }
 0x8b7   :  { %v16225_v52 = vpop.f32.mrf.mxu1  ;;  %v5921_v38 = vadd.f32 %v5920_v44, %v5832_v5 }
 0x8b8   :  { %18659 = vst [vmem:[#allocation74_spill] sm:$0xff] %v16239_v57 }
 0x8bc   :  { %v5833_v58 = vpop.f32.mrf.mxu3 }
 0x8bd   :  { %v5996_v17 = vpop.f32.mrf.mxu2  ;;  %6462 = vmatmul.bf16.gmra.mxu3 %v18660_v23  ;;  %v5834_v9 = vadd.f32 %v5833_v58, %v16114_v13  ;;  %v10917_v13 = vld [vmem:[%s17499_s3 + $0x1ec] sm:$0xf]  ;;  %v9973_v58 = vld [vmem:[%s17499_s3 + $0x1f8] sm:$0xf0] }
 0x8be   :  { %v16235_v1 = vadd.f32 %v5996_v17, %v16168_v12  ;;  %v5922_v44 = vpop.f32.mrf.mxu0 }
 0x8bf   :  { %v16237_v55 = vpop.f32.mrf.mxu1  ;;  %v5923_v5 = vadd.f32 %v5922_v44, %v5834_v9 }
 0x8c2   :  { %6378 = vmatmul.bf16.gmra.mxu1 %v18661_v47  ;;  %10111 = vmatmul.msk.bf16.gmra.mxu2 %vm5644_vm1, %v16239_v57 }
 0x8c3   :  { %6546 = vmatmul.bf16.gmra.mxu0 %v18662_v62 }
 0x8c4   :  { %v5836_v31 = vpop.f32.mrf.mxu3 }
 0x8c5   :  { %v5999_v12 = vpop.f32.mrf.mxu2  ;;  %v5837_v23 = vadd.f32 %v5836_v31, %v16131_v45  ;;  %v18664_v45 = vld [vmem:[#allocation62_spill] sm:$0xff]  ;;  %v18665_v31 = vld [vmem:[#allocation63_spill] sm:$0xff] }
 0x8c6   :  { %v16248_v17 = vadd.f32 %v5999_v12, %v16182_v7  ;;  %v5925_v62 = vpop.f32.mrf.mxu0  ;;  %v16265_v12 = vor.u32 %v10917_v13, %v9973_v58 }
 0x8c7   :  { %v16250_v42 = vpop.f32.mrf.mxu1  ;;  %v16259_v57 = vadd.f32 %v5925_v62, %v5837_v23 }
 0x8c8   :  { %18663 = vst [vmem:[#allocation37_spill] sm:$0xff] %v16265_v12 }
 0x8cc   :  { %v5838_v47 = vpop.f32.mrf.mxu3 }
 0x8cd   :  { %v6001_v9 = vpop.f32.mrf.mxu2  ;;  %6467 = vmatmul.bf16.gmra.mxu3 %v18664_v45  ;;  %v5839_v22 = vadd.f32 %v5838_v47, %v16144_v20 }
 0x8ce   :  { %v16261_v44 = vadd.f32 %v6001_v9, %v5913_v0  ;;  %v5927_v62 = vpop.f32.mrf.mxu0 }
 0x8cf   :  { %v16263_v7 = vpop.f32.mrf.mxu1  ;;  %v5928_v23 = vadd.f32 %v5927_v62, %v5839_v22  ;;  %v11039_v22 = vld [vmem:[#allocation2 + $0x1c0] sm:$0xff]  ;;  %v18671_v62 = vld [vmem:[#allocation75_spill] sm:$0xff] }
 0x8d2   :  { %6383 = vmatmul.bf16.gmra.mxu1 %v18665_v31  ;;  %10112 = vmatmul.msk.bf16.gmra.mxu2 %vm5644_vm1, %v16265_v12  ;;  %v18669_v12 = vld [vmem:[#allocation6_spill] sm:$0xff] }
 0x8d3   :  { %6551 = vmatmul.bf16.gmra.mxu0 %v18666_v43  ;;  %v18670_v43 = vld [vmem:[#allocation22_spill] sm:$0xff] }
 0x8d4   :  { %v5841_v13 = vpop.f32.mrf.mxu3 }
 0x8d5   :  { %v6004_v0 = vpop.f32.mrf.mxu2  ;;  %v5842_v58 = vadd.f32 %v5841_v13, %v16158_v33 }
 0x8d6   :  { %v16273_v9 = vadd.f32 %v6004_v0, %v5916_v48  ;;  %v5930_v45 = vpop.f32.mrf.mxu0  ;;  %v18672_v0 = vld [vmem:[#allocation44_spill] sm:$0xff] }
 0x8d7   :  { %v16275_v32 = vpop.f32.mrf.mxu1  ;;  %v5931_v21 = vadd.f32 %v5930_v45, %v5842_v58 }
 0x8d8   :  { %18667 = vst [vmem:[#allocation77_spill] sm:$0xff] %v16273_v9  ;;  %v18685_v9 = vld [vmem:[#allocation33_spill] sm:$0xff] }
 0x8dc   :  { %v5843_v47 = vpop.f32.mrf.mxu3 }
 0x8dd   :  { %v6006_v31 = vpop.f32.mrf.mxu2  ;;  %6472 = vmatmul.bf16.gmra.mxu3 %v18669_v12  ;;  %v5844_v48 = vadd.f32 %v5843_v47, %v16173_v37  ;;  %v11037_v37 = vld [vmem:[#allocation2 + $0x30] sm:$0xff] }
 0x8de   :  { %v16278_v46 = vadd.f32 %v6006_v31, %v5918_v18  ;;  %v5932_v33 = vpop.f32.mrf.mxu0  ;;  %v11038_v31 = vld [vmem:[#allocation2 + $0x78] sm:$0xff]  ;;  %v18675_v12 = vld [vmem:[#allocation10_spill] sm:$0xff] }
 0x8df   :  { %v16280_v20 = vpop.f32.mrf.mxu1  ;;  %v5933_v45 = vadd.f32 %v5932_v33, %v5844_v48 }
 0x8e0   :  { %18668 = vst [vmem:[#allocation52_spill] sm:$0xff] %v16278_v46 }
 0x8e2   :  { %6388 = vmatmul.bf16.gmra.mxu1 %v18670_v43  ;;  %10233 = vmatmul.msk.bf16.vlgmr.msra.gmra.mxu2 %vm5644_vm1, %v18671_v62 }
 0x8e3   :  { %6556 = vmatmul.bf16.gmra.mxu0 %v18672_v0  ;;  %7918 = vmatpush.bf16.msra.mxu2 %v11039_v22 }
 0x8e4   :  { %v5846_v43 = vpop.f32.mrf.mxu3 }
 0x8e5   :  { %v6009_v18 = vpop.f32.mrf.mxu2  ;;  %v5847_v47 = vadd.f32 %v5846_v43, %v16187_v49  ;;  %v18676_v49 = vld [vmem:[#allocation12_spill] sm:$0xff] }
 0x8e6   :  { %v16288_v13 = vadd.f32 %v6009_v18, %v5921_v38  ;;  %v5935_v62 = vpop.f32.mrf.mxu0 }
 0x8e7   :  { %v16290_v58 = vpop.f32.mrf.mxu1  ;;  %7919 = vmatpush.bf16.msra.mxu2 %v11038_v31  ;;  %v5936_v0 = vadd.f32 %v5935_v62, %v5847_v47  ;;  %v18674_v31 = vld [vmem:[#allocation35_spill] sm:$0xff]  ;;  %v18677_v62 = vld [vmem:[#allocation24_spill] sm:$0xff]  ;;  %v11034_v47 = vld [vmem:[#allocation2 + $0x1c8] sm:$0xff] }
 0x8e8   :  { %18673 = vst [vmem:[#allocation34_spill] sm:$0xff] %v16290_v58  ;;  %v18687_v58 = vld [vmem:[#allocation55_spill] sm:$0xff] }
 0x8eb   :  { %7920 = vmatpush.bf16.msra.mxu2 %v11037_v37 }
 0x8ec   :  { %v5848_v18 = vpop.f32.mrf.mxu3 }
 0x8ed   :  { %v6011_v22 = vpop.f32.mrf.mxu2  ;;  %6477 = vmatmul.bf16.gmra.mxu3 %v18674_v31  ;;  %v5849_v43 = vadd.f32 %v5848_v18, %v16200_v36 }
 0x8ee   :  { %v16295_v48 = vadd.f32 %v6011_v22, %v5923_v5  ;;  %v5937_v5 = vpop.f32.mrf.mxu0 }
 0x8ef   :  { %v16297_v33 = vpop.f32.mrf.mxu1  ;;  %7921 = vmatpush.bf16.msra.mxu2 %v11036_v50  ;;  %v5938_v37 = vadd.f32 %v5937_v5, %v5849_v43  ;;  %v18678_v5 = vld [vmem:[#allocation70_spill] sm:$0xff] }
 0x8f2   :  { %6393 = vmatmul.bf16.gmra.mxu1 %v18675_v12  ;;  %10234 = vmatmul.msk.bf16.gmra.mxu2 %vm5644_vm1, %v18676_v49 }
 0x8f3   :  { %6561 = vmatmul.bf16.gmra.mxu0 %v18677_v62  ;;  %7922 = vmatpush.bf16.msra.mxu2 %v11035_v8 }
 0x8f4   :  { %v5851_v36 = vpop.f32.mrf.mxu3 }
 0x8f5   :  { %v6014_v50 = vpop.f32.mrf.mxu2 }
 0x8f6   :  { %v16308_v22 = vadd.f32 %v6014_v50, %v16259_v57  ;;  %v5940_v18 = vpop.f32.mrf.mxu0  ;;  %v18679_v57 = vld [vmem:[#allocation39_spill] sm:$0xff]  ;;  %v18680_v50 = vld [vmem:[#allocation25_spill] sm:$0xff] }
 0x8f7   :  { %v16310_v38 = vpop.f32.mrf.mxu1  ;;  %7923 = vmatpush.bf16.msra.mxu2 %v11034_v47  ;;  %v18681_v47 = vld [vmem:[#allocation28_spill] sm:$0xff] }
 0x8fc   :  { %v5853_v43 = vpop.f32.mrf.mxu3 }
 0x8fd   :  { %v6016_v12 = vpop.f32.mrf.mxu2  ;;  %6482 = vmatmul.bf16.gmra.mxu3 %v18678_v5 }
 0x8fe   :  { %v16314_v49 = vadd.f32 %v6016_v12, %v5928_v23  ;;  %v5942_v31 = vpop.f32.mrf.mxu0 }
 0x8ff   :  { %v16316_v62 = vpop.f32.mrf.mxu1 }
 0x902   :  { %6398 = vmatmul.bf16.gmra.mxu1 %v18679_v57  ;;  %10235 = vmatmul.msk.bf16.gmra.mxu2 %vm5644_vm1, %v18680_v50 }
 0x903   :  { %6566 = vmatmul.bf16.gmra.mxu0 %v18681_v47  ;;  %v18684_v47 = vld [vmem:[#allocation41_spill] sm:$0xff] }
 0x904   :  { %v5856_v8 = vpop.f32.mrf.mxu3 }
 0x905   :  { %v6019_v28 = vpop.f32.mrf.mxu2 }
 0x906   :  { %v16325_v34 = vadd.f32 %v6019_v28, %v5931_v21  ;;  %v5945_v46 = vpop.f32.mrf.mxu0  ;;  %v18686_v28 = vld [vmem:[#allocation14_spill] sm:$0xff] }
 0x907   :  { %v16327_v12 = vpop.f32.mrf.mxu1 }
 0x908   :  { %18682 = vst [vmem:[#allocation73_spill] sm:$0xff] %v16327_v12 }
 0x90c   :  { %v5858_v21 = vpop.f32.mrf.mxu3 }
 0x90d   :  { %v6021_v11 = vpop.f32.mrf.mxu2  ;;  %6487 = vmatmul.bf16.gmra.mxu3 %v18687_v58 }
 0x90e   :  { %v16331_v5 = vadd.f32 %v6021_v11, %v5933_v45  ;;  %v5947_v12 = vpop.f32.mrf.mxu0 }
 0x90f   :  { %v16333_v57 = vpop.f32.mrf.mxu1 }
 0x910   :  { %18683 = vst [vmem:[#allocation65_spill] sm:$0xff] %v16333_v57  ;;  %v16348_v57 = vpop.permute.xlu1 %5092 }
 0x911   :  { %18689 = vst [vmem:[#allocation71_spill] sm:$0xff] %v16348_v57 }
 0x912   :  { %6403 = vmatmul.bf16.gmra.mxu1 %v18684_v47  ;;  %10236 = vmatmul.msk.bf16.gmra.mxu2 %vm5644_vm1, %v18685_v9 }
 0x913   :  { %6571 = vmatmul.bf16.gmra.mxu0 %v18686_v28  ;;  %v5852_v28 = vadd.f32 %v5851_v36, %v16212_v61  ;;  %v18693_v61 = vld [vmem:[#allocation45_spill] sm:$0xff] }
 0x914   :  { %v5861_v50 = vpop.f32.mrf.mxu3 }
 0x915   :  { %v6024_v23 = vpop.f32.mrf.mxu2 }
 0x916   :  { %v16342_v35 = vadd.f32 %v6024_v23, %v5936_v0  ;;  %v16350_v53 = vpop.f32.mrf.mxu0  ;;  %v5941_v23 = vadd.f32 %v5940_v18, %v5852_v28  ;;  %v5854_v0 = vadd.f32 %v5853_v43, %v16225_v52  ;;  %v16376_v28 = vpop.permute.xlu2 %5072 }
 0x917   :  { %v16344_v11 = vpop.f32.mrf.mxu1 }
 0x918   :  { %18688 = vst [vmem:[#allocation38_spill] sm:$0xff] %v16344_v11  ;;  %v16372_v11 = vpop.permute.xlu1 %5087 }
 0x919   :  { %18695 = vst [vmem:[#allocation21_spill] sm:$0xff] %v16372_v11 }
 0x91c   :  { %v16365_v45 = vpop.f32.mrf.mxu3 }
 0x91d   :  { %v6026_v47 = vpop.f32.mrf.mxu2  ;;  %6492 = vmatmul.bf16.gmra.mxu3 %v18693_v61  ;;  %v5943_v61 = vadd.f32 %v5942_v31, %v5854_v0 }
 0x91e   :  { %v16353_v9 = vadd.f32 %v6026_v47, %v5938_v37  ;;  %v16368_v36 = vpop.f32.mrf.mxu0 }
 0x91f   :  { %v16355_v58 = vpop.f32.mrf.mxu1 }
 0x920   :  { %18690 = vst [vmem:[#allocation56_spill] sm:$0xff] %v16353_v9 }
 0x921   :  { %18691 = vst [vmem:[#allocation26_spill] sm:$0xff] %v16355_v58 }
 0x922   :  { %6408 = vmatmul.bf16.gmra.mxu1 %v15791_v27  ;;  %10237 = vmatmul.msk.bf16.gmra.mxu2 %vm5644_vm1, %v15798_v19 }
 0x923   :  { %6576 = vmatmul.bf16.gmra.mxu0 %v15796_v56  ;;  %v18696_v56 = vmax.f32 %v16075_v3, %v16288_v13  ;;  %v18697_v13 = vmax.f32 %v16095_v30, %v16295_v48 }
 0x924   :  { %v16381_v27 = vpop.f32.mrf.mxu3 }
 0x925   :  { %v6029_v37 = vpop.f32.mrf.mxu2 }
 0x926   :  { %v6030_v47 = vadd.f32 %v6029_v37, %v5941_v23  ;;  %v16383_v9 = vpop.f32.mrf.mxu0  ;;  %v5857_v23 = vadd.f32 %v5856_v8, %v16237_v55 }
 0x927   :  { %v16370_v58 = vpop.f32.mrf.mxu1 }
 0x928   :  { %18694 = vst [vmem:[#allocation17_spill] sm:$0xff] %v16370_v58  ;;  %v6057_v18 = vmax.f32 %v16198_v6, %v6030_v47  ;;  %v16389_v6 = vpop.permute.xlu1 %5062 }
 0x92a   :  { %v6065_v19 = vmax.f32 %v18696_v56, %v6057_v18  ;;  %v5946_v56 = vadd.f32 %v5945_v46, %v5857_v23  ;;  %v16411_v18 = vpop.permute.xlu0 %5082  ;;  %v18698_v23 = vmax.f32 %v16112_v26, %v16308_v22 }
 0x92c   :  { %v6073_v3 = vadd.f32 %v6065_v19, %v16389_v6  ;;  %v16401_v55 = vpop.f32.mrf.mxu3 }
 0x92d   :  { %v6031_v25 = vpop.f32.mrf.mxu2  ;;  %6497 = vmatmul.bf16.gmra.mxu3 %v15802_v24 }
 0x92e   :  { %v6032_v37 = vadd.f32 %v6031_v25, %v5943_v61  ;;  %v16399_v25 = vpop.permute.xlu2 %5067  ;;  %v16405_v19 = vpop.f32.mrf.mxu0  ;;  %v6081_v46 = vmax.f32 %v6073_v3, 0.0  ;;  %v5859_v61 = vadd.f32 %v5858_v21, %v16250_v42 }
 0x92f   :  { %v16386_v58 = vpop.f32.mrf.mxu1 }
 0x930   :  { %v6058_v52 = vmax.f32 %v16210_v41, %v6032_v37 }
 0x932   :  { %6413 = vmatmul.bf16.gmra.mxu1 %v15851_v4  ;;  %v6066_v31 = vmax.f32 %v18697_v13, %v6058_v52  ;;  %10238 = vmatmul.msk.bf16.gmra.mxu2 %vm5644_vm1, %v15858_v15  ;;  %v5948_v13 = vadd.f32 %v5947_v12, %v5859_v61  ;;  %v18699_v12 = vmax.f32 %v16129_v54, %v16314_v49 }
 0x933   :  { %6581 = vmatmul.bf16.gmra.mxu0 %v15853_v14 }
 0x934   :  { %v6074_v41 = vadd.f32 %v6066_v31, %v16399_v25  ;;  %v6443_v52 = vpop.f32.mrf.mxu3 }
 0x935   :  { %v6034_v8 = vpop.f32.mrf.mxu2  ;;  %v6444_v42 = vadd.f32 %v6443_v52, %v16297_v33  ;;  %v18700_v52 = vmax.f32 %v16142_v40, %v16325_v34 }
 0x936   :  { %v6082_v43 = vmax.f32 %v6074_v41, 0.0  ;;  %v6035_v30 = vadd.f32 %v6034_v8, %v5946_v56  ;;  %v6532_v3 = vpop.f32.mrf.mxu0  ;;  %v5862_v56 = vadd.f32 %v5861_v50, %v16263_v7  ;;  %v16432_v7 = vpop.permute.xlu0 %5077 }
 0x937   :  { %v16407_v48 = vpop.f32.mrf.mxu1  ;;  %v16421_v21 = vadd.f32 %v6532_v3, %v6444_v42  ;;  %v5867_v42 = vadd.f32 %v16381_v27, %v16280_v20  ;;  %v18703_v27 = vld [vmem:[#allocation42_spill] sm:$0xff] }
 0x938   :  { %v11379_v0 = vpack.c.bf16 %v6082_v43, %v6081_v46  ;;  %v6059_v47 = vmax.f32 %v16223_v51, %v6035_v30  ;;  %v5951_v22 = vadd.f32 %v16350_v53, %v5862_v56 }
 0x939   :  { %v5956_v40 = vadd.f32 %v16383_v9, %v5867_v42 }
 0x93a   :  { %11380 = vst [vmem:[#allocation3 + $0x68] sm:$0xff] %v11379_v0   ;;  %v6067_v37 = vmax.f32 %v18698_v23, %v6059_v47  ;;  %v5864_v23 = vadd.f32 %v16365_v45, %v16275_v32 }
 0x93c   :  { %v6075_v26 = vadd.f32 %v6067_v37, %v16376_v28 }
 0x93d   :  { %v6036_v31 = vpop.f32.mrf.mxu2 }
 0x93e   :  { %v6037_v41 = vadd.f32 %v6036_v31, %v5948_v13  ;;  %v6534_v53 = vpop.f32.mrf.mxu0  ;;  %v6083_v30 = vmax.f32 %v6075_v26, 0.0  ;;  %v5953_v31 = vadd.f32 %v16368_v36, %v5864_v23  ;;  %v18702_v36 = vld [vmem:[#allocation54_spill] sm:$0xff]  ;;  %v18708_v23 = vmax.f32 %v16171_v60, %v16342_v35  ;;  %v18712_v35 = vld [vmem:[#allocation56_spill] sm:$0xff] }
 0x93f   :  { %v16417_v8 = vpop.f32.mrf.mxu1  ;;  %v18713_v60 = vmax.f32 %v16185_v39, %v18712_v35 }
 0x940   :  { %v6060_v51 = vmax.f32 %v16235_v1, %v6037_v41  ;;  %v6445_v1 = vpop.f32.mrf.mxu3  ;;  %6502 = vmatmul.bf16.gmra.mxu3 %v15866_v2 }
 0x941   :  { %v6446_v50 = vadd.f32 %v6445_v1, %v16310_v38 }
 0x942   :  { %6418 = vmatmul.bf16.gmra.mxu1 %v15916_v63  ;;  %v6068_v46 = vmax.f32 %v18699_v12, %v6060_v51  ;;  %10239 = vmatmul.msk.bf16.gmra.mxu2 %vm5644_vm1, %v15923_v16  ;;  %v18705_v12 = vld [vmem:[#allocation73_spill] sm:$0xff] }
 0x943   :  { %6586 = vmatmul.bf16.gmra.mxu0 %v15918_v10  ;;  %v16439_v61 = vadd.f32 %v6534_v53, %v6446_v50 }
 0x944   :  { %v6076_v33 = vadd.f32 %v6068_v46, %v16432_v7 }
 0x945   :  { %v6039_v43 = vpop.f32.mrf.mxu2 }
 0x946   :  { %v6084_v0 = vmax.f32 %v6076_v33, 0.0  ;;  %v6040_v54 = vadd.f32 %v6039_v43, %v5951_v22  ;;  %v6537_v41 = vpop.f32.mrf.mxu0  ;;  %v18704_v22 = vld [vmem:[#allocation49_spill] sm:$0xff] }
 0x947   :  { %v16437_v49 = vpop.f32.mrf.mxu1 }
 0x948   :  { %v11384_v47 = vpack.c.bf16 %v6084_v0, %v6083_v30  ;;  %v6061_v37 = vmax.f32 %v16248_v17, %v6040_v54  ;;  %v6448_v13 = vpop.f32.mrf.mxu3  ;;  %v18706_v30 = vld [vmem:[#allocation34_spill] sm:$0xff]  ;;  %v18707_v54 = vld [vmem:[#allocation77_spill] sm:$0xff] }
 0x949   :  { %v6449_v3 = vadd.f32 %v6448_v13, %v16316_v62  ;;  %v18701_v62 = vmax.f32 %v16156_v59, %v16331_v5  ;;  %v5869_v0 = vadd.f32 %v16401_v55, %v18706_v30  ;;  %v18709_v13 = vld [vmem:[#allocation65_spill] sm:$0xff] }
 0x94a   :  { %11515 = vst [vmem:[#allocation3 + $0x50] sm:$0xff] %v11384_v47   ;;  %v6069_v38 = vmax.f32 %v18700_v52, %v6061_v37 }
 0x94b   :  { %v16453_v32 = vadd.f32 %v6537_v41, %v6449_v3 }
 0x94c   :  { %v6077_v34 = vadd.f32 %v6069_v38, %v16411_v18  ;;  %v5958_v38 = vadd.f32 %v16405_v19, %v5869_v0  ;;  %v18715_v19 = vld [vmem:[#allocation48_spill] sm:$0xff] }
 0x94d   :  { %v6041_v56 = vpop.f32.mrf.mxu2 }
 0x94e   :  { %v6042_v51 = vadd.f32 %v6041_v56, %v5953_v31  ;;  %v6539_v33 = vpop.f32.mrf.mxu0  ;;  %v6085_v50 = vmax.f32 %v6077_v34, 0.0  ;;  %v18711_v34 = vld [vmem:[#allocation59_spill] sm:$0xff] }
 0x94f   :  { %v16451_v26 = vpop.f32.mrf.mxu1 }
 0x950   :  { %v6062_v17 = vmax.f32 %v16261_v44, %v6042_v51  ;;  %v6450_v20 = vpop.f32.mrf.mxu3  ;;  %6507 = vmatmul.bf16.gmra.mxu3 %v18704_v22  ;;  %v18770_v22 = vld [vmem:[#allocation33_spill] sm:$0xff] }
 0x951   :  { %v6451_v46 = vadd.f32 %v6450_v20, %v18705_v12  ;;  %v18717_v12 = vld [vmem:[#allocation8_spill] sm:$0xff] }
 0x952   :  { %6423 = vmatmul.bf16.gmra.mxu1 %v15981_v29  ;;  %v6070_v45 = vmax.f32 %v18701_v62, %v6062_v17  ;;  %10240 = vmatmul.msk.bf16.gmra.mxu2 %vm5644_vm1, %v18702_v36  ;;  %v18710_v17 = vld [vmem:[#allocation52_spill] sm:$0xff] }
 0x953   :  { %6591 = vmatmul.bf16.gmra.mxu0 %v18703_v27  ;;  %v6540_v59 = vadd.f32 %v6539_v33, %v6451_v46 }
 0x954   :  { %v6078_v44 = vadd.f32 %v6070_v45, %v16372_v11  ;;  %v18714_v45 = vld [vmem:[#allocation64_spill] sm:$0xff] }
 0x955   :  { %v6044_v1 = vpop.f32.mrf.mxu2 }
 0x956   :  { %v6086_v9 = vmax.f32 %v6078_v44, 0.0  ;;  %v6045_v43 = vadd.f32 %v6044_v1, %v5956_v40  ;;  %v6542_v56 = vpop.f32.mrf.mxu0  ;;  %v18716_v44 = vld [vmem:[#allocation46_spill] sm:$0xff] }
 0x957   :  { %v16468_v53 = vpop.f32.mrf.mxu1  ;;  %v18718_v1 = vld [vmem:[#allocation38_spill] sm:$0xff] }
 0x958   :  { %v11389_v5 = vpack.c.bf16 %v6086_v9, %v6085_v50  ;;  %v6063_v47 = vmax.f32 %v18707_v54, %v6045_v43  ;;  %v6453_v52 = vpop.f32.mrf.mxu3 }
 0x959   :  { %v6454_v31 = vadd.f32 %v6453_v52, %v18709_v13 }
 0x95a   :  { %11516 = vst [vmem:[#allocation3 + $0x70] sm:$0xff] %v11389_v5   ;;  %v6071_v37 = vmax.f32 %v18708_v23, %v6063_v47  ;;  %v18719_v23 = vld [vmem:[#allocation26_spill] sm:$0xff] }
 0x95b   :  { %v6543_v51 = vadd.f32 %v6542_v56, %v6454_v31  ;;  %v18720_v56 = vld [vmem:[#allocation11_spill] sm:$0xff] }
 0x95c   :  { %v6079_v40 = vadd.f32 %v6071_v37, %v16348_v57 }
 0x95d   :  { %v6046_v3 = vpop.f32.mrf.mxu2 }
 0x95e   :  { %v6047_v41 = vadd.f32 %v6046_v3, %v5958_v38  ;;  %v6544_v9 = vpop.f32.mrf.mxu0  ;;  %v6087_v43 = vmax.f32 %v6079_v40, 0.0  ;;  %v18724_v40 = vld [vmem:[#allocation17_spill] sm:$0xff] }
 0x95f   :  { %v16478_v42 = vpop.f32.mrf.mxu1 }
 0x960   :  { %v6064_v55 = vmax.f32 %v18710_v17, %v6047_v41  ;;  %v6455_v20 = vpop.f32.mrf.mxu3  ;;  %6512 = vmatmul.bf16.gmra.mxu3 %v18716_v44  ;;  %v18722_v41 = vld [vmem:[#allocation76_spill] sm:$0xff] }
 0x961   :  { %v6456_v33 = vadd.f32 %v6455_v20, %v18718_v1 }
 0x962   :  { %6428 = vmatmul.bf16.gmra.mxu1 %v18711_v34  ;;  %v6072_v62 = vmax.f32 %v18713_v60, %v6064_v55  ;;  %10241 = vmatmul.msk.bf16.gmra.mxu2 %vm5644_vm1, %v18714_v45  ;;  %v18723_v55 = vld [vmem:[#allocation5_spill] sm:$0xff] }
 0x963   :  { %6596 = vmatmul.bf16.gmra.mxu0 %v18715_v19  ;;  %v6545_v0 = vadd.f32 %v6544_v9, %v6456_v33 }
 0x964   :  { %v6080_v46 = vadd.f32 %v6072_v62, %v18717_v12 }
 0x965   :  { %v6621_v50 = vpop.f32.mrf.mxu2 }
 0x966   :  { %v6088_v5 = vmax.f32 %v6080_v46, 0.0  ;;  %v16493_v30 = vadd.f32 %v6621_v50, %v16421_v21  ;;  %v6547_v38 = vpop.f32.mrf.mxu0  ;;  %v18721_v21 = vld [vmem:[#allocation53_spill] sm:$0xff] }
 0x967   :  { %v16495_v39 = vpop.f32.mrf.mxu1 }
 0x968   :  { %v11394_v54 = vpack.c.bf16 %v6088_v5, %v6087_v43  ;;  %v6458_v47 = vpop.f32.mrf.mxu3 }
 0x969   :  { %v6459_v37 = vadd.f32 %v6458_v47, %v18719_v23  ;;  %v18725_v47 = vld [vmem:[#allocation19_spill] sm:$0xff]  ;;  %v18726_v23 = vld [vmem:[#allocation9_spill] sm:$0xff] }
 0x96a   :  { %11517 = vst [vmem:[#allocation3 + $0x60] sm:$0xff] %v11394_v54  }
 0x96b   :  { %v6548_v3 = vadd.f32 %v6547_v38, %v6459_v37 }
 0x96d   :  { %v6623_v52 = vpop.f32.mrf.mxu2 }
 0x96e   :  { %v16499_v13 = vadd.f32 %v6623_v52, %v16439_v61  ;;  %v6549_v62 = vpop.f32.mrf.mxu0  ;;  %v18728_v52 = vld [vmem:[#allocation15_spill] sm:$0xff] }
 0x96f   :  { %v16501_v31 = vpop.f32.mrf.mxu1 }
 0x970   :  { %v6460_v17 = vpop.f32.mrf.mxu3  ;;  %6517 = vmatmul.bf16.gmra.mxu3 %v18723_v55 }
 0x971   :  { %v6461_v35 = vadd.f32 %v6460_v17, %v18724_v40 }
 0x972   :  { %7005 = vmatmul.bf16.vlgmr.msra.gmra.mxu1 %v18720_v56  ;;  %10242 = vmatmul.msk.bf16.gmra.mxu2 %vm5644_vm1, %v18721_v21 }
 0x973   :  { %6601 = vmatmul.bf16.gmra.mxu0 %v18722_v41  ;;  %v6550_v46 = vadd.f32 %v6549_v62, %v6461_v35 }
 0x975   :  { %v6626_v60 = vpop.f32.mrf.mxu2 }
 0x976   :  { %v16510_v61 = vadd.f32 %v6626_v60, %v16453_v32  ;;  %v6552_v9 = vpop.f32.mrf.mxu0  ;;  %v18727_v32 = vld [vmem:[#allocation67_spill] sm:$0xff] }
 0x977   :  { %v16512_v20 = vpop.f32.mrf.mxu1 }
 0x978   :  { %v6463_v1 = vpop.f32.mrf.mxu3 }
 0x979   :  { %v6464_v33 = vadd.f32 %v6463_v1, %v16386_v58 }
 0x97b   :  { %v6553_v54 = vadd.f32 %v6552_v9, %v6464_v33 }
 0x97d   :  { %v6628_v50 = vpop.f32.mrf.mxu2 }
 0x97e   :  { %v16515_v43 = vadd.f32 %v6628_v50, %v6540_v59  ;;  %v6554_v17 = vpop.f32.mrf.mxu0 }
 0x97f   :  { %v16517_v5 = vpop.f32.mrf.mxu1 }
 0x980   :  { %v6465_v37 = vpop.f32.mrf.mxu3  ;;  %7094 = vmatmul.bf16.vlgmr.msra.gmra.mxu3 %v18728_v52  ;;  %v18730_v52 = vld [vmem:[#allocation72_spill] sm:$0xff] }
 0x981   :  { %v6466_v38 = vadd.f32 %v6465_v37, %v16407_v48  ;;  %v18731_v48 = vld [vmem:[#allocation69_spill] sm:$0xff] }
 0x982   :  { %7010 = vmatmul.bf16.gmra.mxu1 %v18725_v47  ;;  %10243 = vmatmul.msk.bf16.gmra.mxu2 %vm5644_vm1, %v18726_v23 }
 0x983   :  { %6606 = vmatmul.bf16.gmra.mxu0 %v18727_v32  ;;  %v6555_v35 = vadd.f32 %v6554_v17, %v6466_v38 }
 0x985   :  { %v6631_v58 = vpop.f32.mrf.mxu2 }
 0x986   :  { %v16525_v40 = vadd.f32 %v6631_v58, %v6543_v51  ;;  %v6557_v33 = vpop.f32.mrf.mxu0  ;;  %v18732_v51 = vld [vmem:[#allocation4_spill] sm:$0xff]  ;;  %v18733_v58 = vld [vmem:[#allocation58_spill] sm:$0xff] }
 0x987   :  { %v16527_v59 = vpop.f32.mrf.mxu1 }
 0x988   :  { %v6468_v60 = vpop.f32.mrf.mxu3 }
 0x989   :  { %v6469_v62 = vadd.f32 %v6468_v60, %v16417_v8 }
 0x98b   :  { %v6558_v32 = vadd.f32 %v6557_v33, %v6469_v62 }
 0x98d   :  { %v6633_v1 = vpop.f32.mrf.mxu2 }
 0x98e   :  { %v16530_v50 = vadd.f32 %v6633_v1, %v6545_v0  ;;  %v6559_v17 = vpop.f32.mrf.mxu0 }
 0x98f   :  { %v16532_v9 = vpop.f32.mrf.mxu1 }
 0x990   :  { %18729 = vst [vmem:[#allocation29_spill] sm:$0xff] %v16530_v50  ;;  %v6470_v37 = vpop.f32.mrf.mxu3  ;;  %7099 = vmatmul.bf16.gmra.mxu3 %v18733_v58  ;;  %v18735_v58 = vld [vmem:[#allocation43_spill] sm:$0xff]  ;;  %v18777_v50 = vld [vmem:[#allocation36_spill] sm:$0xff] }
 0x991   :  { %v6471_v38 = vadd.f32 %v6470_v37, %v16437_v49  ;;  %v18736_v49 = vld [vmem:[#allocation16_spill] sm:$0xff] }
 0x992   :  { %7015 = vmatmul.bf16.gmra.mxu1 %v18730_v52  ;;  %10244 = vmatmul.msk.bf16.gmra.mxu2 %vm5644_vm1, %v18731_v48 }
 0x993   :  { %7183 = vmatmul.bf16.vlgmr.msra.gmra.mxu0 %v18732_v51  ;;  %v6560_v1 = vadd.f32 %v6559_v17, %v6471_v38 }
 0x995   :  { %v6636_v8 = vpop.f32.mrf.mxu2 }
 0x996   :  { %v16540_v60 = vadd.f32 %v6636_v8, %v6548_v3  ;;  %v6562_v23 = vpop.f32.mrf.mxu0  ;;  %v18737_v3 = vld [vmem:[#allocation61_spill] sm:$0xff]  ;;  %v18738_v8 = vld [vmem:[#allocation66_spill] sm:$0xff] }
 0x997   :  { %v16542_v0 = vpop.f32.mrf.mxu1 }
 0x998   :  { %v6473_v62 = vpop.f32.mrf.mxu3 }
 0x999   :  { %v6474_v33 = vadd.f32 %v6473_v62, %v16451_v26 }
 0x99b   :  { %v6563_v47 = vadd.f32 %v6562_v23, %v6474_v33 }
 0x99d   :  { %v6638_v52 = vpop.f32.mrf.mxu2 }
 0x99e   :  { %v16545_v48 = vadd.f32 %v6638_v52, %v6550_v46  ;;  %v6564_v17 = vpop.f32.mrf.mxu0 }
 0x99f   :  { %v16547_v51 = vpop.f32.mrf.mxu1 }
 0x9a0   :  { %18734 = vst [vmem:[#allocation23_spill] sm:$0xff] %v16545_v48  ;;  %v6475_v37 = vpop.f32.mrf.mxu3  ;;  %7104 = vmatmul.bf16.gmra.mxu3 %v18738_v8  ;;  %v18739_v8 = vld [vmem:[#allocation27_spill] sm:$0xff] }
 0x9a1   :  { %v6476_v38 = vadd.f32 %v6475_v37, %v16468_v53  ;;  %v18740_v53 = vld [vmem:[#allocation60_spill] sm:$0xff] }
 0x9a2   :  { %7020 = vmatmul.bf16.gmra.mxu1 %v18735_v58  ;;  %10245 = vmatmul.msk.bf16.gmra.mxu2 %vm5644_vm1, %v18736_v49 }
 0x9a3   :  { %7188 = vmatmul.bf16.gmra.mxu0 %v18737_v3  ;;  %v6565_v52 = vadd.f32 %v6564_v17, %v6476_v38 }
 0x9a5   :  { %v6641_v26 = vpop.f32.mrf.mxu2 }
 0x9a6   :  { %v16555_v62 = vadd.f32 %v6641_v26, %v6553_v54  ;;  %v6567_v55 = vpop.f32.mrf.mxu0  ;;  %v18741_v54 = vld [vmem:[#allocation7_spill] sm:$0xff]  ;;  %v18742_v26 = vld [vmem:[#allocation30_spill] sm:$0xff] }
 0x9a7   :  { %v16557_v46 = vpop.f32.mrf.mxu1 }
 0x9a8   :  { %v6478_v23 = vpop.f32.mrf.mxu3 }
 0x9a9   :  { %v6479_v33 = vadd.f32 %v6478_v23, %v16478_v42 }
 0x9ab   :  { %v6568_v41 = vadd.f32 %v6567_v55, %v6479_v33 }
 0x9ad   :  { %v6643_v58 = vpop.f32.mrf.mxu2 }
 0x9ae   :  { %v16560_v49 = vadd.f32 %v6643_v58, %v6555_v35  ;;  %v6569_v17 = vpop.f32.mrf.mxu0 }
 0x9af   :  { %v16562_v3 = vpop.f32.mrf.mxu1 }
 0x9b0   :  { %v6480_v37 = vpop.f32.mrf.mxu3  ;;  %7109 = vmatmul.bf16.gmra.mxu3 %v18742_v26  ;;  %v18743_v26 = vld [vmem:[#allocation68_spill] sm:$0xff] }
 0x9b1   :  { %v6481_v38 = vadd.f32 %v6480_v37, %v16495_v39  ;;  %v18744_v39 = vld [vmem:[#allocation74_spill] sm:$0xff] }
 0x9b2   :  { %7025 = vmatmul.bf16.gmra.mxu1 %v18739_v8  ;;  %10246 = vmatmul.msk.bf16.gmra.mxu2 %vm5644_vm1, %v18740_v53 }
 0x9b3   :  { %7193 = vmatmul.bf16.gmra.mxu0 %v18741_v54  ;;  %v6570_v58 = vadd.f32 %v6569_v17, %v6481_v38 }
 0x9b5   :  { %v6646_v42 = vpop.f32.mrf.mxu2 }
 0x9b6   :  { %v16570_v23 = vadd.f32 %v6646_v42, %v6558_v32  ;;  %v6572_v21 = vpop.f32.mrf.mxu0  ;;  %v18745_v32 = vld [vmem:[#allocation20_spill] sm:$0xff]  ;;  %v18746_v42 = vld [vmem:[#allocation57_spill] sm:$0xff] }
 0x9b7   :  { %v16572_v35 = vpop.f32.mrf.mxu1 }
 0x9b8   :  { %v6483_v55 = vpop.f32.mrf.mxu3 }
 0x9b9   :  { %v6484_v33 = vadd.f32 %v6483_v55, %v16501_v31 }
 0x9bb   :  { %v6573_v56 = vadd.f32 %v6572_v21, %v6484_v33 }
 0x9bd   :  { %v6648_v8 = vpop.f32.mrf.mxu2 }
 0x9be   :  { %v16575_v53 = vadd.f32 %v6648_v8, %v6560_v1  ;;  %v6574_v17 = vpop.f32.mrf.mxu0 }
 0x9bf   :  { %v16577_v54 = vpop.f32.mrf.mxu1 }
 0x9c0   :  { %v6485_v37 = vpop.f32.mrf.mxu3  ;;  %7114 = vmatmul.bf16.gmra.mxu3 %v18746_v42  ;;  %v18747_v42 = vld [vmem:[#allocation63_spill] sm:$0xff] }
 0x9c1   :  { %v6486_v38 = vadd.f32 %v6485_v37, %v16512_v20  ;;  %v18748_v20 = vld [vmem:[#allocation37_spill] sm:$0xff] }
 0x9c2   :  { %7030 = vmatmul.bf16.gmra.mxu1 %v18743_v26  ;;  %10247 = vmatmul.msk.bf16.gmra.mxu2 %vm5644_vm1, %v18744_v39 }
 0x9c3   :  { %7198 = vmatmul.bf16.gmra.mxu0 %v18745_v32  ;;  %v6575_v8 = vadd.f32 %v6574_v17, %v6486_v38 }
 0x9c5   :  { %v6651_v31 = vpop.f32.mrf.mxu2 }
 0x9c6   :  { %v16585_v55 = vadd.f32 %v6651_v31, %v6563_v47  ;;  %v6577_v12 = vpop.f32.mrf.mxu0  ;;  %v18749_v47 = vld [vmem:[#allocation31_spill] sm:$0xff]  ;;  %v18750_v31 = vld [vmem:[#allocation62_spill] sm:$0xff] }
 0x9c7   :  { %v16587_v1 = vpop.f32.mrf.mxu1 }
 0x9c8   :  { %v6488_v21 = vpop.f32.mrf.mxu3 }
 0x9c9   :  { %v6489_v33 = vadd.f32 %v6488_v21, %v16517_v5 }
 0x9cb   :  { %v6578_v44 = vadd.f32 %v6577_v12, %v6489_v33 }
 0x9cd   :  { %v6653_v26 = vpop.f32.mrf.mxu2 }
 0x9ce   :  { %v16590_v39 = vadd.f32 %v6653_v26, %v6565_v52  ;;  %v6579_v17 = vpop.f32.mrf.mxu0 }
 0x9cf   :  { %v16592_v32 = vpop.f32.mrf.mxu1 }
 0x9d0   :  { %v6490_v37 = vpop.f32.mrf.mxu3  ;;  %7119 = vmatmul.bf16.gmra.mxu3 %v18750_v31  ;;  %v18753_v31 = vld [vmem:[#allocation22_spill] sm:$0xff] }
 0x9d1   :  { %v6491_v38 = vadd.f32 %v6490_v37, %v16527_v59  ;;  %v18754_v59 = vld [vmem:[#allocation75_spill] sm:$0xff] }
 0x9d2   :  { %7035 = vmatmul.bf16.gmra.mxu1 %v18747_v42  ;;  %10248 = vmatmul.msk.bf16.gmra.mxu2 %vm5644_vm1, %v18748_v20 }
 0x9d3   :  { %7203 = vmatmul.bf16.gmra.mxu0 %v18749_v47  ;;  %v6580_v26 = vadd.f32 %v6579_v17, %v6491_v38 }
 0x9d5   :  { %v6656_v5 = vpop.f32.mrf.mxu2 }
 0x9d6   :  { %v16600_v21 = vadd.f32 %v6656_v5, %v6568_v41  ;;  %v6582_v19 = vpop.f32.mrf.mxu0  ;;  %v18755_v41 = vld [vmem:[#allocation44_spill] sm:$0xff]  ;;  %v18756_v5 = vld [vmem:[#allocation6_spill] sm:$0xff] }
 0x9d7   :  { %v16602_v52 = vpop.f32.mrf.mxu1 }
 0x9d8   :  { %18751 = vst [vmem:[#allocation18_spill] sm:$0xff] %v16600_v21  ;;  %v6493_v12 = vpop.f32.mrf.mxu3 }
 0x9d9   :  { %v6494_v33 = vadd.f32 %v6493_v12, %v16532_v9 }
 0x9db   :  { %v6583_v45 = vadd.f32 %v6582_v19, %v6494_v33  ;;  %v18761_v19 = vld [vmem:[#allocation35_spill] sm:$0xff] }
 0x9dd   :  { %v6658_v42 = vpop.f32.mrf.mxu2 }
 0x9de   :  { %v16605_v20 = vadd.f32 %v6658_v42, %v6570_v58  ;;  %v6584_v17 = vpop.f32.mrf.mxu0 }
 0x9df   :  { %v16607_v47 = vpop.f32.mrf.mxu1 }
 0x9e0   :  { %18752 = vst [vmem:[#allocation50_spill] sm:$0xff] %v16605_v20  ;;  %v6495_v37 = vpop.f32.mrf.mxu3  ;;  %7124 = vmatmul.bf16.gmra.mxu3 %v18756_v5 }
 0x9e1   :  { %v6496_v38 = vadd.f32 %v6495_v37, %v16542_v0  ;;  %v18758_v37 = vld [vmem:[#allocation10_spill] sm:$0xff] }
 0x9e2   :  { %7040 = vmatmul.bf16.gmra.mxu1 %v18753_v31  ;;  %10369 = vmatmul.msk.bf16.vlgmr.msrb.gmra.mxu2 %vm5644_vm1, %v18754_v59 }
 0x9e3   :  { %7208 = vmatmul.bf16.gmra.mxu0 %v18755_v41  ;;  %v6585_v42 = vadd.f32 %v6584_v17, %v6496_v38  ;;  %v18760_v38 = vld [vmem:[#allocation24_spill] sm:$0xff] }
 0x9e5   :  { %v6661_v9 = vpop.f32.mrf.mxu2 }
 0x9e6   :  { %v16615_v12 = vadd.f32 %v6661_v9, %v6573_v56  ;;  %v6587_v41 = vpop.f32.mrf.mxu0  ;;  %v18759_v9 = vld [vmem:[#allocation12_spill] sm:$0xff] }
 0x9e7   :  { %v16617_v58 = vpop.f32.mrf.mxu1 }
 0x9e8   :  { %18757 = vst [vmem:[#allocation13_spill] sm:$0xff] %v16617_v58  ;;  %v6498_v33 = vpop.f32.mrf.mxu3 }
 0x9e9   :  { %v6499_v59 = vadd.f32 %v6498_v33, %v16547_v51 }
 0x9eb   :  { %v6588_v0 = vadd.f32 %v6587_v41, %v6499_v59 }
 0x9ed   :  { %v6663_v31 = vpop.f32.mrf.mxu2 }
 0x9ee   :  { %v16622_v57 = vadd.f32 %v6663_v31, %v6575_v8  ;;  %v6589_v31 = vpop.f32.mrf.mxu0 }
 0x9ef   :  { %v16624_v5 = vpop.f32.mrf.mxu1 }
 0x9f0   :  { %v6500_v17 = vpop.f32.mrf.mxu3  ;;  %7129 = vmatmul.bf16.gmra.mxu3 %v18761_v19 }
 0x9f1   :  { %v6501_v51 = vadd.f32 %v6500_v17, %v16557_v46  ;;  %v18762_v17 = vld [vmem:[#allocation39_spill] sm:$0xff] }
 0x9f2   :  { %7045 = vmatmul.bf16.gmra.mxu1 %v18758_v37  ;;  %10370 = vmatmul.msk.bf16.gmra.mxu2 %vm5644_vm1, %v18759_v9 }
 0x9f3   :  { %7213 = vmatmul.bf16.gmra.mxu0 %v18760_v38  ;;  %v6590_v41 = vadd.f32 %v6589_v31, %v6501_v51  ;;  %v18765_v31 = vld [vmem:[#allocation70_spill] sm:$0xff] }
 0x9f5   :  { %v6666_v8 = vpop.f32.mrf.mxu2 }
 0x9f6   :  { %v16634_v33 = vadd.f32 %v6666_v8, %v6578_v44  ;;  %v6592_v9 = vpop.f32.mrf.mxu0  ;;  %v18763_v44 = vld [vmem:[#allocation25_spill] sm:$0xff]  ;;  %v18764_v8 = vld [vmem:[#allocation28_spill] sm:$0xff] }
 0x9f7   :  { %v16636_v59 = vpop.f32.mrf.mxu1 }
 0x9f8   :  { %v6503_v37 = vpop.f32.mrf.mxu3 }
 0x9fd   :  { %v6668_v34 = vpop.f32.mrf.mxu2 }
 0x9fe   :  { %v16640_v20 = vadd.f32 %v6668_v34, %v6580_v26  ;;  %v6594_v19 = vpop.f32.mrf.mxu0 }
 0x9ff   :  { %v16642_v38 = vpop.f32.mrf.mxu1 }
 0xa00   :  { %v6505_v51 = vpop.f32.mrf.mxu3  ;;  %7134 = vmatmul.bf16.gmra.mxu3 %v18765_v31  ;;  %v18769_v31 = vld [vmem:[#allocation41_spill] sm:$0xff] }
 0xa02   :  { %7050 = vmatmul.bf16.gmra.mxu1 %v18762_v17  ;;  %10371 = vmatmul.msk.bf16.gmra.mxu2 %vm5644_vm1, %v18763_v44 }
 0xa03   :  { %7218 = vmatmul.bf16.gmra.mxu0 %v18764_v8 }
 0xa05   :  { %v6671_v56 = vpop.f32.mrf.mxu2 }
 0xa06   :  { %v16651_v21 = vadd.f32 %v6671_v56, %v6583_v45  ;;  %v6597_v17 = vpop.f32.mrf.mxu0  ;;  %v18771_v45 = vld [vmem:[#allocation14_spill] sm:$0xff] }
 0xa07   :  { %v16653_v34 = vpop.f32.mrf.mxu1 }
 0xa08   :  { %18766 = vst [vmem:[#allocation32_spill] sm:$0xff] %v16653_v34  ;;  %v6508_v46 = vpop.f32.mrf.mxu3  ;;  %v18772_v34 = vld [vmem:[#allocation55_spill] sm:$0xff] }
 0xa0d   :  { %v6673_v58 = vpop.f32.mrf.mxu2 }
 0xa0e   :  { %v16657_v11 = vadd.f32 %v6673_v58, %v6585_v42  ;;  %v6599_v27 = vpop.f32.mrf.mxu0 }
 0xa0f   :  { %v16659_v44 = vpop.f32.mrf.mxu1 }
 0xa10   :  { %18767 = vst [vmem:[#allocation51_spill] sm:$0xff] %v16657_v11  ;;  %v6510_v56 = vpop.f32.mrf.mxu3  ;;  %7139 = vmatmul.bf16.gmra.mxu3 %v18772_v34  ;;  %v6504_v11 = vadd.f32 %v6503_v37, %v16562_v3  ;;  %v6506_v34 = vadd.f32 %v6505_v51, %v16572_v35 }
 0xa11   :  { %18768 = vst [vmem:[#allocation73_spill] sm:$0xff] %v16659_v44 }
 0xa12   :  { %7055 = vmatmul.bf16.gmra.mxu1 %v18769_v31  ;;  %10372 = vmatmul.msk.bf16.gmra.mxu2 %vm5644_vm1, %v18770_v22 }
 0xa13   :  { %7223 = vmatmul.bf16.gmra.mxu0 %v18771_v45 }
 0xa15   :  { %v6676_v26 = vpop.f32.mrf.mxu2 }
 0xa16   :  { %v16668_v36 = vadd.f32 %v6676_v26, %v6588_v0  ;;  %v6602_v31 = vpop.f32.mrf.mxu0  ;;  %v6593_v0 = vadd.f32 %v6592_v9, %v6504_v11  ;;  %v18778_v26 = vld [vmem:[#allocation40_spill] sm:$0xff]  ;;  %v18781_v11 = vmax.f32 %v16493_v30, %v16615_v12  ;;  %v18782_v30 = vmax.f32 %v16499_v13, %v16622_v57 }
 0xa17   :  { %v16670_v58 = vpop.f32.mrf.mxu1  ;;  %v6511_v13 = vadd.f32 %v6510_v56, %v16587_v1 }
 0xa18   :  { %18773 = vst [vmem:[#allocation34_spill] sm:$0xff] %v16668_v36  ;;  %v6513_v8 = vpop.f32.mrf.mxu3  ;;  %v18780_v36 = vld [vmem:[#allocation45_spill] sm:$0xff] }
 0xa19   :  { %18774 = vst [vmem:[#allocation77_spill] sm:$0xff] %v16670_v58  ;;  %v18779_v58 = vld [vmem:[#allocation47_spill] sm:$0xff] }
 0xa1d   :  { %v6678_v44 = vpop.f32.mrf.mxu2 }
 0xa1e   :  { %v16675_v22 = vadd.f32 %v6678_v44, %v6590_v41  ;;  %v16688_v37 = vpop.f32.mrf.mxu0 }
 0xa1f   :  { %v16677_v45 = vpop.f32.mrf.mxu1 }
 0xa20   :  { %18775 = vst [vmem:[#allocation65_spill] sm:$0xff] %v16675_v22  ;;  %v16685_v42 = vpop.f32.mrf.mxu3  ;;  %7144 = vmatmul.bf16.gmra.mxu3 %v18780_v36  ;;  %v6509_v36 = vadd.f32 %v6508_v46, %v16577_v54 }
 0xa21   :  { %18776 = vst [vmem:[#allocation52_spill] sm:$0xff] %v16677_v45 }
 0xa22   :  { %7060 = vmatmul.bf16.gmra.mxu1 %v18777_v50  ;;  %10373 = vmatmul.msk.bf16.gmra.mxu2 %vm5644_vm1, %v18778_v26  ;;  %v6598_v35 = vadd.f32 %v6597_v17, %v6509_v36 }
 0xa23   :  { %7228 = vmatmul.bf16.gmra.mxu0 %v18779_v58  ;;  %v6595_v58 = vadd.f32 %v6594_v19, %v6506_v34  ;;  %v18783_v34 = vmax.f32 %v16510_v61, %v16634_v33 }
 0xa25   :  { %v6681_v3 = vpop.f32.mrf.mxu2 }
 0xa26   :  { %v6682_v41 = vadd.f32 %v6681_v3, %v6593_v0  ;;  %v16699_v22 = vpop.f32.mrf.mxu0 }
 0xa27   :  { %v16690_v44 = vpop.f32.mrf.mxu1 }
 0xa28   :  { %v6709_v50 = vmax.f32 %v16555_v62, %v6682_v41  ;;  %v16697_v26 = vpop.f32.mrf.mxu3  ;;  %v6600_v41 = vadd.f32 %v6599_v27, %v6511_v13  ;;  %v18784_v27 = vmax.f32 %v16515_v43, %v16640_v20 }
 0xa2a   :  { %v6717_v9 = vmax.f32 %v18781_v11, %v6709_v50 }
 0xa2c   :  { %v6725_v62 = vadd.f32 %v6717_v9, %v16389_v6 }
 0xa2d   :  { %v6683_v45 = vpop.f32.mrf.mxu2 }
 0xa2e   :  { %v6684_v48 = vadd.f32 %v6683_v45, %v6595_v58  ;;  %v16717_v12 = vpop.f32.mrf.mxu0  ;;  %v6733_v19 = vmax.f32 %v6725_v62, 0.0 }
 0xa2f   :  { %v16702_v0 = vpop.f32.mrf.mxu1 }
 0xa30   :  { %v6710_v3 = vmax.f32 %v16560_v49, %v6684_v48  ;;  %v16713_v54 = vpop.f32.mrf.mxu3  ;;  %7149 = vmatmul.bf16.gmra.mxu3 %v15802_v24 }
 0xa32   :  { %7065 = vmatmul.bf16.gmra.mxu1 %v15851_v4  ;;  %v6718_v50 = vmax.f32 %v18782_v30, %v6710_v3  ;;  %10374 = vmatmul.msk.bf16.gmra.mxu2 %vm5644_vm1, %v15858_v15  ;;  %v6514_v3 = vadd.f32 %v6513_v8, %v16592_v32 }
 0xa33   :  { %7233 = vmatmul.bf16.gmra.mxu0 %v15853_v14 }
 0xa34   :  { %v6726_v48 = vadd.f32 %v6718_v50, %v16399_v25 }
 0xa35   :  { %v6686_v49 = vpop.f32.mrf.mxu2 }
 0xa36   :  { %v6734_v36 = vmax.f32 %v6726_v48, 0.0  ;;  %v6687_v46 = vadd.f32 %v6686_v49, %v6598_v35  ;;  %v7184_v9 = vpop.f32.mrf.mxu0 }
 0xa37   :  { %v16719_v17 = vpop.f32.mrf.mxu1 }
 0xa38   :  { %v11399_v57 = vpack.c.bf16 %v6734_v36, %v6733_v19  ;;  %v6711_v51 = vmax.f32 %v16570_v23, %v6687_v46  ;;  %v7095_v58 = vpop.f32.mrf.mxu3  ;;  %v6603_v23 = vadd.f32 %v6602_v31, %v6514_v3  ;;  %v6516_v36 = vadd.f32 %v16685_v42, %v16602_v52  ;;  %v18786_v42 = vld [vmem:[#allocation29_spill] sm:$0xff] }
 0xa39   :  { %v7096_v30 = vadd.f32 %v7095_v58, %v16624_v5 }
 0xa3a   :  { %11518 = vst [vmem:[#allocation3 + $0x8] sm:$0xff] %v11399_v57   ;;  %v6719_v45 = vmax.f32 %v18783_v34, %v6711_v51  ;;  %v18785_v57 = vmax.f32 %v16525_v40, %v16651_v21  ;;  %v6605_v51 = vadd.f32 %v16688_v37, %v6516_v36  ;;  %v18796_v36 = vld [vmem:[#allocation34_spill] sm:$0xff] }
 0xa3b   :  { %v16731_v56 = vadd.f32 %v7184_v9, %v7096_v30  ;;  %v18791_v30 = vld [vmem:[#allocation49_spill] sm:$0xff] }
 0xa3c   :  { %v6727_v61 = vadd.f32 %v6719_v45, %v16376_v28 }
 0xa3d   :  { %v6688_v11 = vpop.f32.mrf.mxu2 }
 0xa3e   :  { %v6689_v62 = vadd.f32 %v6688_v11, %v6600_v41  ;;  %v7186_v50 = vpop.f32.mrf.mxu0  ;;  %v6735_v48 = vmax.f32 %v6727_v61, 0.0  ;;  %v6519_v41 = vadd.f32 %v16697_v26, %v16607_v47  ;;  %v18790_v47 = vld [vmem:[#allocation42_spill] sm:$0xff]  ;;  %v18793_v61 = vld [vmem:[#allocation32_spill] sm:$0xff] }
 0xa3f   :  { %v16727_v35 = vpop.f32.mrf.mxu1 }
 0xa40   :  { %v6712_v1 = vmax.f32 %v16575_v53, %v6689_v62  ;;  %v7097_v32 = vpop.f32.mrf.mxu3  ;;  %7154 = vmatmul.bf16.gmra.mxu3 %v15866_v2  ;;  %v6608_v21 = vadd.f32 %v16699_v22, %v6519_v41  ;;  %v18789_v62 = vld [vmem:[#allocation54_spill] sm:$0xff] }
 0xa41   :  { %v7098_v5 = vadd.f32 %v7097_v32, %v16636_v59 }
 0xa42   :  { %7070 = vmatmul.bf16.gmra.mxu1 %v15916_v63  ;;  %v6720_v33 = vmax.f32 %v18784_v27, %v6712_v1  ;;  %10375 = vmatmul.msk.bf16.gmra.mxu2 %vm5644_vm1, %v15923_v16  ;;  %v18792_v1 = vld [vmem:[#allocation21_spill] sm:$0xff] }
 0xa43   :  { %7238 = vmatmul.bf16.gmra.mxu0 %v15918_v10  ;;  %v16746_v43 = vadd.f32 %v7186_v50, %v7098_v5 }
 0xa44   :  { %v6728_v53 = vadd.f32 %v6720_v33, %v16432_v7 }
 0xa45   :  { %v6691_v8 = vpop.f32.mrf.mxu2 }
 0xa46   :  { %v6736_v31 = vmax.f32 %v6728_v53, 0.0  ;;  %v6692_v49 = vadd.f32 %v6691_v8, %v6603_v23  ;;  %v7189_v58 = vpop.f32.mrf.mxu0 }
 0xa47   :  { %v16744_v19 = vpop.f32.mrf.mxu1 }
 0xa48   :  { %v11404_v20 = vpack.c.bf16 %v6736_v31, %v6735_v48  ;;  %v6713_v46 = vmax.f32 %v16585_v55, %v6692_v49  ;;  %v7100_v13 = vpop.f32.mrf.mxu3  ;;  %v18794_v48 = vld [vmem:[#allocation13_spill] sm:$0xff]  ;;  %v18795_v49 = vld [vmem:[#allocation18_spill] sm:$0xff] }
 0xa49   :  { %v7101_v34 = vadd.f32 %v7100_v13, %v16642_v38  ;;  %v18787_v38 = vld [vmem:[#allocation51_spill] sm:$0xff]  ;;  %v6521_v31 = vadd.f32 %v16713_v54, %v18794_v48  ;;  %v18799_v54 = vld [vmem:[#allocation50_spill] sm:$0xff] }
 0xa4a   :  { %11519 = vst [vmem:[#allocation3 + $0x58] sm:$0xff] %v11404_v20   ;;  %v6721_v59 = vmax.f32 %v18785_v57, %v6713_v46  ;;  %v18788_v37 = vmax.f32 %v18786_v42, %v18787_v38  ;;  %v18797_v46 = vmax.f32 %v16540_v60, %v18796_v36  ;;  %v18801_v42 = vld [vmem:[#allocation71_spill] sm:$0xff] }
 0xa4b   :  { %v16760_v52 = vadd.f32 %v7189_v58, %v7101_v34  ;;  %v6610_v13 = vadd.f32 %v16717_v12, %v6521_v31  ;;  %v18802_v60 = vld [vmem:[#allocation23_spill] sm:$0xff]  ;;  %v18805_v12 = vld [vmem:[#allocation64_spill] sm:$0xff] }
 0xa4c   :  { %v6729_v40 = vadd.f32 %v6721_v59, %v16411_v18 }
 0xa4d   :  { %v6693_v45 = vpop.f32.mrf.mxu2 }
 0xa4e   :  { %v6694_v11 = vadd.f32 %v6693_v45, %v6605_v51  ;;  %v7191_v33 = vpop.f32.mrf.mxu0  ;;  %v6737_v32 = vmax.f32 %v6729_v40, 0.0  ;;  %v18798_v51 = vld [vmem:[#allocation73_spill] sm:$0xff] }
 0xa4f   :  { %v16758_v9 = vpop.f32.mrf.mxu1 }
 0xa50   :  { %v6714_v55 = vmax.f32 %v16590_v39, %v6694_v11  ;;  %v7102_v26 = vpop.f32.mrf.mxu3  ;;  %7159 = vmatmul.bf16.gmra.mxu3 %v18791_v30  ;;  %v18860_v30 = vld [vmem:[#allocation33_spill] sm:$0xff] }
 0xa51   :  { %v7103_v23 = vadd.f32 %v7102_v26, %v18793_v61 }
 0xa52   :  { %7075 = vmatmul.bf16.gmra.mxu1 %v15981_v29  ;;  %v6722_v3 = vmax.f32 %v18788_v37, %v6714_v55  ;;  %10376 = vmatmul.msk.bf16.gmra.mxu2 %vm5644_vm1, %v18789_v62  ;;  %v18803_v37 = vld [vmem:[#allocation65_spill] sm:$0xff] }
 0xa53   :  { %7243 = vmatmul.bf16.gmra.mxu0 %v18790_v47  ;;  %v7192_v8 = vadd.f32 %v7191_v33, %v7103_v23  ;;  %v18807_v23 = vld [vmem:[#allocation46_spill] sm:$0xff] }
 0xa54   :  { %v6730_v39 = vadd.f32 %v6722_v3, %v18792_v1  ;;  %v18804_v3 = vmax.f32 %v18802_v60, %v18803_v37  ;;  %v18814_v37 = vld [vmem:[#allocation5_spill] sm:$0xff] }
 0xa55   :  { %v6696_v27 = vpop.f32.mrf.mxu2 }
 0xa56   :  { %v6738_v22 = vmax.f32 %v6730_v39, 0.0  ;;  %v6697_v53 = vadd.f32 %v6696_v27, %v6608_v21  ;;  %v7194_v58 = vpop.f32.mrf.mxu0  ;;  %v18800_v21 = vld [vmem:[#allocation59_spill] sm:$0xff]  ;;  %v18806_v39 = vld [vmem:[#allocation48_spill] sm:$0xff] }
 0xa57   :  { %v16775_v5 = vpop.f32.mrf.mxu1  ;;  %v18808_v27 = vld [vmem:[#allocation8_spill] sm:$0xff] }
 0xa58   :  { %v11409_v50 = vpack.c.bf16 %v6738_v22, %v6737_v32  ;;  %v6715_v20 = vmax.f32 %v18795_v49, %v6697_v53  ;;  %v7105_v59 = vpop.f32.mrf.mxu3  ;;  %v18809_v32 = vld [vmem:[#allocation77_spill] sm:$0xff] }
 0xa59   :  { %v7106_v34 = vadd.f32 %v7105_v59, %v18798_v51  ;;  %v18810_v59 = vld [vmem:[#allocation52_spill] sm:$0xff] }
 0xa5a   :  { %11520 = vst [vmem:[#allocation3 + $0x18] sm:$0xff] %v11409_v50   ;;  %v6723_v57 = vmax.f32 %v18797_v46, %v6715_v20 }
 0xa5b   :  { %v16787_v55 = vadd.f32 %v7194_v58, %v7106_v34 }
 0xa5c   :  { %v6731_v38 = vadd.f32 %v6723_v57, %v18801_v42 }
 0xa5d   :  { %v6698_v45 = vpop.f32.mrf.mxu2 }
 0xa5e   :  { %v6699_v41 = vadd.f32 %v6698_v45, %v6610_v13  ;;  %v7196_v50 = vpop.f32.mrf.mxu0  ;;  %v6739_v48 = vmax.f32 %v6731_v38, 0.0  ;;  %v18813_v38 = vld [vmem:[#allocation76_spill] sm:$0xff] }
 0xa5f   :  { %v16785_v11 = vpop.f32.mrf.mxu1 }
 0xa60   :  { %v6716_v40 = vmax.f32 %v18799_v54, %v6699_v41  ;;  %v7107_v61 = vpop.f32.mrf.mxu3  ;;  %7164 = vmatmul.bf16.gmra.mxu3 %v18807_v23  ;;  %v18811_v54 = vld [vmem:[#allocation11_spill] sm:$0xff] }
 0xa61   :  { %v7108_v22 = vadd.f32 %v7107_v61, %v18809_v32 }
 0xa62   :  { %7080 = vmatmul.bf16.gmra.mxu1 %v18800_v21  ;;  %v6724_v26 = vmax.f32 %v18804_v3, %v6716_v40  ;;  %10377 = vmatmul.msk.bf16.gmra.mxu2 %vm5644_vm1, %v18805_v12  ;;  %v18812_v40 = vld [vmem:[#allocation53_spill] sm:$0xff] }
 0xa63   :  { %7248 = vmatmul.bf16.gmra.mxu0 %v18806_v39  ;;  %v7197_v36 = vadd.f32 %v7196_v50, %v7108_v22 }
 0xa64   :  { %v6732_v33 = vadd.f32 %v6724_v26, %v18808_v27 }
 0xa65   :  { %v7273_v53 = vpop.f32.mrf.mxu2 }
 0xa66   :  { %v6740_v31 = vmax.f32 %v6732_v33, 0.0  ;;  %v16802_v49 = vadd.f32 %v7273_v53, %v16731_v56  ;;  %v7199_v34 = vpop.f32.mrf.mxu0  ;;  %v11059_v53 = vld [vmem:[#allocation3 + $0x58] sm:$0xff] }
 0xa67   :  { %v16804_v20 = vpop.f32.mrf.mxu1 }
 0xa68   :  { %v11414_v46 = vpack.c.bf16 %v6740_v31, %v6739_v48  ;;  %v7110_v57 = vpop.f32.mrf.mxu3 }
 0xa69   :  { %v7111_v13 = vadd.f32 %v7110_v57, %v18810_v59 }
 0xa6a   :  { %11521 = vst [vmem:[#allocation3 + $0x30] sm:$0xff] %v11414_v46   ;;  %v11058_v46 = vld [vmem:[#allocation3 + $0x8] sm:$0xff] }
 0xa6b   :  { %v7200_v41 = vadd.f32 %v7199_v34, %v7111_v13  ;;  %v18816_v34 = vld [vmem:[#allocation9_spill] sm:$0xff] }
 0xa6d   :  { %v7275_v51 = vpop.f32.mrf.mxu2 }
 0xa6e   :  { %v16808_v45 = vadd.f32 %v7275_v51, %v16746_v43  ;;  %v11060_v43 = vld [vmem:[#allocation3 + $0x18] sm:$0xff]  ;;  %v7201_v61 = vpop.f32.mrf.mxu0  ;;  %v11057_v51 = vld [vmem:[#allocation3 + $0x60] sm:$0xff] }
 0xa6f   :  { %v16810_v58 = vpop.f32.mrf.mxu1 }
 0xa70   :  { %v7112_v60 = vpop.f32.mrf.mxu3  ;;  %7169 = vmatmul.bf16.gmra.mxu3 %v18814_v37 }
 0xa71   :  { %v11061_v56 = vld [vmem:[#allocation3 + $0x30] sm:$0xff]  ;;  %v7113_v3 = vadd.f32 %v7112_v60, %v16690_v44 }
 0xa72   :  { %7657 = vmatmul.bf16.vlgmr.msrb.gmra.mxu1 %v18811_v54  ;;  %10378 = vmatmul.msk.bf16.gmra.mxu2 %vm5644_vm1, %v18812_v40  ;;  %v18817_v54 = vld [vmem:[#allocation67_spill] sm:$0xff] }
 0xa73   :  { %7253 = vmatmul.bf16.gmra.mxu0 %v18813_v38  ;;  %8371 = vmatpush.bf16.msra.mxu1 %v11061_v56  ;;  %v7202_v22 = vadd.f32 %v7201_v61, %v7113_v3  ;;  %v11056_v3 = vld [vmem:[#allocation3 + $0x70] sm:$0xff] }
 0xa75   :  { %v7278_v26 = vpop.f32.mrf.mxu2 }
 0xa76   :  { %v16819_v33 = vadd.f32 %v7278_v26, %v16760_v52  ;;  %v7204_v57 = vpop.f32.mrf.mxu0  ;;  %v18815_v52 = vld [vmem:[#allocation19_spill] sm:$0xff] }
 0xa77   :  { %v16821_v32 = vpop.f32.mrf.mxu1  ;;  %8372 = vmatpush.bf16.msra.mxu1 %v11060_v43 }
 0xa78   :  { %v7115_v50 = vpop.f32.mrf.mxu3 }
 0xa79   :  { %v7116_v48 = vadd.f32 %v7115_v50, %v16702_v0  ;;  %v18818_v0 = vld [vmem:[#allocation15_spill] sm:$0xff]  ;;  %v11055_v50 = vld [vmem:[#allocation3 + $0x50] sm:$0xff] }
 0xa7b   :  { %8373 = vmatpush.bf16.msra.mxu1 %v11059_v53  ;;  %v7205_v13 = vadd.f32 %v7204_v57, %v7116_v48  ;;  %v11054_v57 = vld [vmem:[#allocation3 + $0x68] sm:$0xff] }
 0xa7d   :  { %v7280_v31 = vpop.f32.mrf.mxu2 }
 0xa7e   :  { %v16824_v59 = vadd.f32 %v7280_v31, %v7192_v8  ;;  %v7206_v26 = vpop.f32.mrf.mxu0 }
 0xa7f   :  { %v16826_v44 = vpop.f32.mrf.mxu1  ;;  %8374 = vmatpush.bf16.msra.mxu1 %v11058_v46 }
 0xa80   :  { %v7117_v56 = vpop.f32.mrf.mxu3  ;;  %7746 = vmatmul.bf16.vlgmr.msrb.gmra.mxu3 %v18818_v0  ;;  %v18821_v0 = vld [vmem:[#allocation69_spill] sm:$0xff] }
 0xa81   :  { %v7118_v60 = vadd.f32 %v7117_v56, %v16719_v17 }
 0xa82   :  { %7662 = vmatmul.bf16.gmra.mxu1 %v18815_v52  ;;  %10379 = vmatmul.msk.bf16.gmra.mxu2 %vm5644_vm1, %v18816_v34 }
 0xa83   :  { %7258 = vmatmul.bf16.gmra.mxu0 %v18817_v54  ;;  %8375 = vmatpush.bf16.msra.mxu1 %v11057_v51  ;;  %v7207_v53 = vadd.f32 %v7206_v26, %v7118_v60  ;;  %v18822_v60 = vld [vmem:[#allocation4_spill] sm:$0xff] }
 0xa85   :  { %v7283_v8 = vpop.f32.mrf.mxu2 }
 0xa86   :  { %v16835_v43 = vadd.f32 %v7283_v8, %v16787_v55  ;;  %v7209_v52 = vpop.f32.mrf.mxu0  ;;  %v18820_v55 = vld [vmem:[#allocation72_spill] sm:$0xff] }
 0xa87   :  { %v16837_v61 = vpop.f32.mrf.mxu1  ;;  %8376 = vmatpush.bf16.msra.mxu1 %v11056_v3  ;;  %v18823_v3 = vld [vmem:[#allocation58_spill] sm:$0xff] }
 0xa88   :  { %v7120_v48 = vpop.f32.mrf.mxu3 }
 0xa89   :  { %v7121_v31 = vadd.f32 %v7120_v48, %v16727_v35 }
 0xa8b   :  { %8377 = vmatpush.bf16.msra.mxu1 %v11055_v50  ;;  %v7210_v56 = vadd.f32 %v7209_v52, %v7121_v31 }
 0xa8d   :  { %v7285_v46 = vpop.f32.mrf.mxu2 }
 0xa8e   :  { %v16840_v51 = vadd.f32 %v7285_v46, %v7197_v36  ;;  %v7211_v50 = vpop.f32.mrf.mxu0 }
 0xa8f   :  { %v16842_v17 = vpop.f32.mrf.mxu1  ;;  %8378 = vmatpush.bf16.msra.mxu1 %v11054_v57 }
 0xa90   :  { %18819 = vst [vmem:[#allocation56_spill] sm:$0xff] %v16840_v51  ;;  %v7122_v8 = vpop.f32.mrf.mxu3  ;;  %7751 = vmatmul.bf16.gmra.mxu3 %v18823_v3  ;;  %v18825_v3 = vld [vmem:[#allocation43_spill] sm:$0xff]  ;;  %v18867_v51 = vld [vmem:[#allocation36_spill] sm:$0xff] }
 0xa91   :  { %v7123_v35 = vadd.f32 %v7122_v8, %v16744_v19  ;;  %v18826_v19 = vld [vmem:[#allocation16_spill] sm:$0xff] }
 0xa92   :  { %7667 = vmatmul.bf16.gmra.mxu1 %v18820_v55  ;;  %10380 = vmatmul.msk.bf16.gmra.mxu2 %vm5644_vm1, %v18821_v0 }
 0xa93   :  { %7835 = vmatmul.bf16.vlgmr.msrb.gmra.mxu0 %v18822_v60  ;;  %v7212_v31 = vadd.f32 %v7211_v50, %v7123_v35 }
 0xa95   :  { %v7288_v26 = vpop.f32.mrf.mxu2 }
 0xa96   :  { %v16850_v36 = vadd.f32 %v7288_v26, %v7200_v41  ;;  %v7214_v55 = vpop.f32.mrf.mxu0  ;;  %v18827_v41 = vld [vmem:[#allocation61_spill] sm:$0xff]  ;;  %v18828_v26 = vld [vmem:[#allocation66_spill] sm:$0xff] }
 0xa97   :  { %v16852_v48 = vpop.f32.mrf.mxu1 }
 0xa98   :  { %v7125_v46 = vpop.f32.mrf.mxu3 }
 0xa99   :  { %v7126_v57 = vadd.f32 %v7125_v46, %v16758_v9 }
 0xa9b   :  { %v7215_v54 = vadd.f32 %v7214_v55, %v7126_v57 }
 0xa9d   :  { %v7290_v52 = vpop.f32.mrf.mxu2 }
 0xa9e   :  { %v16855_v0 = vadd.f32 %v7290_v52, %v7202_v22  ;;  %v7216_v50 = vpop.f32.mrf.mxu0 }
 0xa9f   :  { %v16857_v60 = vpop.f32.mrf.mxu1 }
 0xaa0   :  { %18824 = vst [vmem:[#allocation38_spill] sm:$0xff] %v16855_v0  ;;  %v7127_v8 = vpop.f32.mrf.mxu3  ;;  %7756 = vmatmul.bf16.gmra.mxu3 %v18828_v26  ;;  %v18829_v26 = vld [vmem:[#allocation27_spill] sm:$0xff] }
 0xaa1   :  { %v7128_v35 = vadd.f32 %v7127_v8, %v16775_v5  ;;  %v18830_v5 = vld [vmem:[#allocation60_spill] sm:$0xff] }
 0xaa2   :  { %7672 = vmatmul.bf16.gmra.mxu1 %v18825_v3  ;;  %10381 = vmatmul.msk.bf16.gmra.mxu2 %vm5644_vm1, %v18826_v19 }
 0xaa3   :  { %7840 = vmatmul.bf16.gmra.mxu0 %v18827_v41  ;;  %v7217_v52 = vadd.f32 %v7216_v50, %v7128_v35 }
 0xaa5   :  { %v7293_v9 = vpop.f32.mrf.mxu2 }
 0xaa6   :  { %v16865_v46 = vadd.f32 %v7293_v9, %v7205_v13  ;;  %v7219_v34 = vpop.f32.mrf.mxu0  ;;  %v18831_v13 = vld [vmem:[#allocation7_spill] sm:$0xff]  ;;  %v18832_v9 = vld [vmem:[#allocation30_spill] sm:$0xff] }
 0xaa7   :  { %v16867_v22 = vpop.f32.mrf.mxu1 }
 0xaa8   :  { %v7130_v57 = vpop.f32.mrf.mxu3 }
 0xaa9   :  { %v7131_v55 = vadd.f32 %v7130_v57, %v16785_v11 }
 0xaab   :  { %v7220_v37 = vadd.f32 %v7219_v34, %v7131_v55 }
 0xaad   :  { %v7295_v3 = vpop.f32.mrf.mxu2 }
 0xaae   :  { %v16870_v19 = vadd.f32 %v7295_v3, %v7207_v53  ;;  %v7221_v50 = vpop.f32.mrf.mxu0 }
 0xaaf   :  { %v16872_v41 = vpop.f32.mrf.mxu1 }
 0xab0   :  { %v7132_v8 = vpop.f32.mrf.mxu3  ;;  %7761 = vmatmul.bf16.gmra.mxu3 %v18832_v9  ;;  %v18833_v9 = vld [vmem:[#allocation68_spill] sm:$0xff] }
 0xab1   :  { %v7133_v35 = vadd.f32 %v7132_v8, %v16804_v20  ;;  %v18834_v20 = vld [vmem:[#allocation74_spill] sm:$0xff] }
 0xab2   :  { %7677 = vmatmul.bf16.gmra.mxu1 %v18829_v26  ;;  %10382 = vmatmul.msk.bf16.gmra.mxu2 %vm5644_vm1, %v18830_v5 }
 0xab3   :  { %7845 = vmatmul.bf16.gmra.mxu0 %v18831_v13  ;;  %v7222_v3 = vadd.f32 %v7221_v50, %v7133_v35 }
 0xab5   :  { %v7298_v11 = vpop.f32.mrf.mxu2 }
 0xab6   :  { %v16880_v57 = vadd.f32 %v7298_v11, %v7210_v56  ;;  %v7224_v38 = vpop.f32.mrf.mxu0  ;;  %v18835_v56 = vld [vmem:[#allocation20_spill] sm:$0xff]  ;;  %v18836_v11 = vld [vmem:[#allocation57_spill] sm:$0xff] }
 0xab7   :  { %v16882_v53 = vpop.f32.mrf.mxu1 }
 0xab8   :  { %v7135_v34 = vpop.f32.mrf.mxu3 }
 0xab9   :  { %v7136_v55 = vadd.f32 %v7135_v34, %v16810_v58 }
 0xabb   :  { %v7225_v40 = vadd.f32 %v7224_v38, %v7136_v55 }
 0xabd   :  { %v7300_v26 = vpop.f32.mrf.mxu2 }
 0xabe   :  { %v16885_v5 = vadd.f32 %v7300_v26, %v7212_v31  ;;  %v7226_v50 = vpop.f32.mrf.mxu0 }
 0xabf   :  { %v16887_v13 = vpop.f32.mrf.mxu1 }
 0xac0   :  { %v7137_v8 = vpop.f32.mrf.mxu3  ;;  %7766 = vmatmul.bf16.gmra.mxu3 %v18836_v11  ;;  %v18837_v11 = vld [vmem:[#allocation63_spill] sm:$0xff] }
 0xac1   :  { %v7138_v35 = vadd.f32 %v7137_v8, %v16821_v32  ;;  %v18838_v32 = vld [vmem:[#allocation37_spill] sm:$0xff] }
 0xac2   :  { %7682 = vmatmul.bf16.gmra.mxu1 %v18833_v9  ;;  %10383 = vmatmul.msk.bf16.gmra.mxu2 %vm5644_vm1, %v18834_v20 }
 0xac3   :  { %7850 = vmatmul.bf16.gmra.mxu0 %v18835_v56  ;;  %v7227_v26 = vadd.f32 %v7226_v50, %v7138_v35 }
 0xac5   :  { %v7303_v58 = vpop.f32.mrf.mxu2 }
 0xac6   :  { %v16895_v34 = vadd.f32 %v7303_v58, %v7215_v54  ;;  %v7229_v27 = vpop.f32.mrf.mxu0  ;;  %v18839_v54 = vld [vmem:[#allocation31_spill] sm:$0xff]  ;;  %v18840_v58 = vld [vmem:[#allocation62_spill] sm:$0xff] }
 0xac7   :  { %v16897_v31 = vpop.f32.mrf.mxu1 }
 0xac8   :  { %v7140_v38 = vpop.f32.mrf.mxu3 }
 0xac9   :  { %v7141_v55 = vadd.f32 %v7140_v38, %v16826_v44 }
 0xacb   :  { %v7230_v23 = vadd.f32 %v7229_v27, %v7141_v55 }
 0xacd   :  { %v7305_v9 = vpop.f32.mrf.mxu2 }
 0xace   :  { %v16900_v20 = vadd.f32 %v7305_v9, %v7217_v52  ;;  %v7231_v50 = vpop.f32.mrf.mxu0 }
 0xacf   :  { %v16902_v56 = vpop.f32.mrf.mxu1 }
 0xad0   :  { %v7142_v8 = vpop.f32.mrf.mxu3  ;;  %7771 = vmatmul.bf16.gmra.mxu3 %v18840_v58  ;;  %v18843_v58 = vld [vmem:[#allocation22_spill] sm:$0xff] }
 0xad1   :  { %v7143_v35 = vadd.f32 %v7142_v8, %v16837_v61  ;;  %v18844_v61 = vld [vmem:[#allocation75_spill] sm:$0xff] }
 0xad2   :  { %7687 = vmatmul.bf16.gmra.mxu1 %v18837_v11  ;;  %10384 = vmatmul.msk.bf16.gmra.mxu2 %vm5644_vm1, %v18838_v32 }
 0xad3   :  { %7855 = vmatmul.bf16.gmra.mxu0 %v18839_v54  ;;  %v7232_v9 = vadd.f32 %v7231_v50, %v7143_v35 }
 0xad5   :  { %v7308_v44 = vpop.f32.mrf.mxu2 }
 0xad6   :  { %v16910_v38 = vadd.f32 %v7308_v44, %v7220_v37  ;;  %v7234_v39 = vpop.f32.mrf.mxu0  ;;  %v18845_v37 = vld [vmem:[#allocation44_spill] sm:$0xff]  ;;  %v18846_v44 = vld [vmem:[#allocation6_spill] sm:$0xff] }
 0xad7   :  { %v16912_v52 = vpop.f32.mrf.mxu1 }
 0xad8   :  { %18841 = vst [vmem:[#allocation26_spill] sm:$0xff] %v16910_v38  ;;  %v7145_v27 = vpop.f32.mrf.mxu3 }
 0xad9   :  { %v7146_v55 = vadd.f32 %v7145_v27, %v16842_v17 }
 0xadb   :  { %v7235_v12 = vadd.f32 %v7234_v39, %v7146_v55  ;;  %v18851_v39 = vld [vmem:[#allocation35_spill] sm:$0xff] }
 0xadd   :  { %v7310_v11 = vpop.f32.mrf.mxu2 }
 0xade   :  { %v16915_v32 = vadd.f32 %v7310_v11, %v7222_v3  ;;  %v7236_v50 = vpop.f32.mrf.mxu0 }
 0xadf   :  { %v16917_v54 = vpop.f32.mrf.mxu1 }
 0xae0   :  { %18842 = vst [vmem:[#allocation17_spill] sm:$0xff] %v16915_v32  ;;  %v7147_v8 = vpop.f32.mrf.mxu3  ;;  %7776 = vmatmul.bf16.gmra.mxu3 %v18846_v44 }
 0xae1   :  { %v7148_v35 = vadd.f32 %v7147_v8, %v16852_v48  ;;  %v18848_v8 = vld [vmem:[#allocation10_spill] sm:$0xff] }
 0xae2   :  { %7692 = vmatmul.bf16.gmra.mxu1 %v18843_v58  ;;  %10505 = vmatmul.msk.bf16.vlgmr.msra.gmra.mxu2 %vm5644_vm1, %v18844_v61 }
 0xae3   :  { %7860 = vmatmul.bf16.gmra.mxu0 %v18845_v37  ;;  %v7237_v11 = vadd.f32 %v7236_v50, %v7148_v35  ;;  %v18850_v35 = vld [vmem:[#allocation24_spill] sm:$0xff] }
 0xae5   :  { %v7313_v17 = vpop.f32.mrf.mxu2 }
 0xae6   :  { %v16925_v27 = vadd.f32 %v7313_v17, %v7225_v40  ;;  %v7239_v37 = vpop.f32.mrf.mxu0  ;;  %v18849_v17 = vld [vmem:[#allocation12_spill] sm:$0xff] }
 0xae7   :  { %v16927_v3 = vpop.f32.mrf.mxu1 }
 0xae8   :  { %18847 = vst [vmem:[#allocation29_spill] sm:$0xff] %v16927_v3  ;;  %v7150_v55 = vpop.f32.mrf.mxu3 }
 0xae9   :  { %v7151_v58 = vadd.f32 %v7150_v55, %v16857_v60 }
 0xaeb   :  { %v7240_v48 = vadd.f32 %v7239_v37, %v7151_v58 }
 0xaed   :  { %v7315_v61 = vpop.f32.mrf.mxu2 }
 0xaee   :  { %v16932_v42 = vadd.f32 %v7315_v61, %v7227_v26  ;;  %v7241_v55 = vpop.f32.mrf.mxu0 }
 0xaef   :  { %v16934_v44 = vpop.f32.mrf.mxu1 }
 0xaf0   :  { %v7152_v50 = vpop.f32.mrf.mxu3  ;;  %7781 = vmatmul.bf16.gmra.mxu3 %v18851_v39  ;;  %v18852_v39 = vld [vmem:[#allocation39_spill] sm:$0xff] }
 0xaf1   :  { %v7153_v60 = vadd.f32 %v7152_v50, %v16867_v22  ;;  %v18854_v50 = vld [vmem:[#allocation28_spill] sm:$0xff] }
 0xaf2   :  { %7697 = vmatmul.bf16.gmra.mxu1 %v18848_v8  ;;  %10506 = vmatmul.msk.bf16.gmra.mxu2 %vm5644_vm1, %v18849_v17 }
 0xaf3   :  { %7865 = vmatmul.bf16.gmra.mxu0 %v18850_v35  ;;  %v7242_v37 = vadd.f32 %v7241_v55, %v7153_v60 }
 0xaf5   :  { %v7318_v26 = vpop.f32.mrf.mxu2 }
 0xaf6   :  { %v16944_v61 = vadd.f32 %v7318_v26, %v7230_v23  ;;  %v7244_v17 = vpop.f32.mrf.mxu0  ;;  %v18853_v23 = vld [vmem:[#allocation25_spill] sm:$0xff]  ;;  %v18855_v26 = vld [vmem:[#allocation70_spill] sm:$0xff] }
 0xaf7   :  { %v16946_v58 = vpop.f32.mrf.mxu1 }
 0xaf8   :  { %v7155_v40 = vpop.f32.mrf.mxu3 }
 0xafd   :  { %v7320_v21 = vpop.f32.mrf.mxu2 }
 0xafe   :  { %v16950_v32 = vadd.f32 %v7320_v21, %v7232_v9  ;;  %v7246_v8 = vpop.f32.mrf.mxu0 }
 0xaff   :  { %v16952_v35 = vpop.f32.mrf.mxu1 }
 0xb00   :  { %v7157_v60 = vpop.f32.mrf.mxu3  ;;  %7786 = vmatmul.bf16.gmra.mxu3 %v18855_v26  ;;  %v18859_v26 = vld [vmem:[#allocation41_spill] sm:$0xff] }
 0xb02   :  { %7702 = vmatmul.bf16.gmra.mxu1 %v18852_v39  ;;  %10507 = vmatmul.msk.bf16.gmra.mxu2 %vm5644_vm1, %v18853_v23 }
 0xb03   :  { %7870 = vmatmul.bf16.gmra.mxu0 %v18854_v50 }
 0xb05   :  { %v7323_v55 = vpop.f32.mrf.mxu2 }
 0xb06   :  { %v16961_v38 = vadd.f32 %v7323_v55, %v7235_v12  ;;  %v7249_v39 = vpop.f32.mrf.mxu0  ;;  %v18861_v12 = vld [vmem:[#allocation14_spill] sm:$0xff] }
 0xb07   :  { %v16963_v21 = vpop.f32.mrf.mxu1 }
 0xb08   :  { %18856 = vst [vmem:[#allocation51_spill] sm:$0xff] %v16963_v21  ;;  %v7160_v22 = vpop.f32.mrf.mxu3  ;;  %v18862_v21 = vld [vmem:[#allocation55_spill] sm:$0xff] }
 0xb0d   :  { %v7325_v3 = vpop.f32.mrf.mxu2 }
 0xb0e   :  { %v16967_v1 = vadd.f32 %v7325_v3, %v7237_v11  ;;  %v7251_v47 = vpop.f32.mrf.mxu0 }
 0xb0f   :  { %v16969_v23 = vpop.f32.mrf.mxu1 }
 0xb10   :  { %18857 = vst [vmem:[#allocation32_spill] sm:$0xff] %v16967_v1  ;;  %v7162_v55 = vpop.f32.mrf.mxu3  ;;  %7791 = vmatmul.bf16.gmra.mxu3 %v18862_v21  ;;  %v7156_v1 = vadd.f32 %v7155_v40, %v16872_v41  ;;  %v7158_v21 = vadd.f32 %v7157_v60, %v16882_v53 }
 0xb11   :  { %18858 = vst [vmem:[#allocation13_spill] sm:$0xff] %v16969_v23 }
 0xb12   :  { %7707 = vmatmul.bf16.gmra.mxu1 %v18859_v26  ;;  %10508 = vmatmul.msk.bf16.gmra.mxu2 %vm5644_vm1, %v18860_v30 }
 0xb13   :  { %7875 = vmatmul.bf16.gmra.mxu0 %v18861_v12 }
 0xb15   :  { %v7328_v9 = vpop.f32.mrf.mxu2 }
 0xb16   :  { %v16978_v62 = vadd.f32 %v7328_v9, %v7240_v48  ;;  %v7254_v26 = vpop.f32.mrf.mxu0  ;;  %v7245_v48 = vadd.f32 %v7244_v17, %v7156_v1  ;;  %v18868_v9 = vld [vmem:[#allocation40_spill] sm:$0xff]  ;;  %v18871_v1 = vmax.f32 %v16802_v49, %v16925_v27  ;;  %v18872_v49 = vmax.f32 %v16808_v45, %v16932_v42 }
 0xb17   :  { %v16980_v3 = vpop.f32.mrf.mxu1  ;;  %v7163_v45 = vadd.f32 %v7162_v55, %v16897_v31 }
 0xb18   :  { %18863 = vst [vmem:[#allocation18_spill] sm:$0xff] %v16978_v62  ;;  %v7165_v50 = vpop.f32.mrf.mxu3  ;;  %v18870_v62 = vld [vmem:[#allocation45_spill] sm:$0xff] }
 0xb19   :  { %18864 = vst [vmem:[#allocation34_spill] sm:$0xff] %v16980_v3  ;;  %v18869_v3 = vld [vmem:[#allocation47_spill] sm:$0xff] }
 0xb1d   :  { %v7330_v23 = vpop.f32.mrf.mxu2 }
 0xb1e   :  { %v16985_v30 = vadd.f32 %v7330_v23, %v7242_v37  ;;  %v16998_v40 = vpop.f32.mrf.mxu0 }
 0xb1f   :  { %v16987_v12 = vpop.f32.mrf.mxu1 }
 0xb20   :  { %18865 = vst [vmem:[#allocation73_spill] sm:$0xff] %v16985_v30  ;;  %v16995_v11 = vpop.f32.mrf.mxu3  ;;  %7796 = vmatmul.bf16.gmra.mxu3 %v18870_v62  ;;  %v7161_v62 = vadd.f32 %v7160_v22, %v16887_v13 }
 0xb21   :  { %18866 = vst [vmem:[#allocation50_spill] sm:$0xff] %v16987_v12 }
 0xb22   :  { %7712 = vmatmul.bf16.gmra.mxu1 %v18867_v51  ;;  %10509 = vmatmul.msk.bf16.gmra.mxu2 %vm5644_vm1, %v18868_v9  ;;  %v7250_v53 = vadd.f32 %v7249_v39, %v7161_v62 }
 0xb23   :  { %7880 = vmatmul.bf16.gmra.mxu0 %v18869_v3  ;;  %v7247_v3 = vadd.f32 %v7246_v8, %v7158_v21  ;;  %v7252_v21 = vadd.f32 %v7251_v47, %v7163_v45  ;;  %v18874_v47 = vmax.f32 %v16824_v59, %v16950_v32 }
 0xb25   :  { %v7333_v41 = vpop.f32.mrf.mxu2 }
 0xb26   :  { %v7334_v37 = vadd.f32 %v7333_v41, %v7245_v48  ;;  %v17009_v30 = vpop.f32.mrf.mxu0 }
 0xb27   :  { %v17000_v23 = vpop.f32.mrf.mxu1 }
 0xb28   :  { %v7361_v51 = vmax.f32 %v16865_v46, %v7334_v37  ;;  %v17007_v9 = vpop.f32.mrf.mxu3 }
 0xb2a   :  { %v7369_v17 = vmax.f32 %v18871_v1, %v7361_v51  ;;  %v7166_v1 = vadd.f32 %v7165_v50, %v16902_v56 }
 0xb2c   :  { %v7377_v46 = vadd.f32 %v7369_v17, %v16389_v6 }
 0xb2d   :  { %v7335_v12 = vpop.f32.mrf.mxu2 }
 0xb2e   :  { %v7336_v0 = vadd.f32 %v7335_v12, %v7247_v3  ;;  %v7385_v8 = vmax.f32 %v7377_v46, 0.0 }
 0xb2f   :  { %v17012_v48 = vpop.f32.mrf.mxu1 }
 0xb30   :  { %v7362_v41 = vmax.f32 %v16870_v19, %v7336_v0  ;;  %v17023_v13 = vpop.f32.mrf.mxu3  ;;  %7801 = vmatmul.bf16.gmra.mxu3 %v15802_v24 }
 0xb32   :  { %7717 = vmatmul.bf16.gmra.mxu1 %v15851_v4  ;;  %v7370_v27 = vmax.f32 %v18872_v49, %v7362_v41  ;;  %10510 = vmatmul.msk.bf16.gmra.mxu2 %vm5644_vm1, %v15858_v15  ;;  %v17027_v4 = vpop.f32.mrf.mxu0 }
 0xb33   :  { %7885 = vmatmul.bf16.gmra.mxu0 %v15853_v14  ;;  %v18873_v14 = vmax.f32 %v16819_v33, %v16944_v61 }
 0xb34   :  { %v7378_v0 = vadd.f32 %v7370_v27, %v16399_v25 }
 0xb35   :  { %v7338_v19 = vpop.f32.mrf.mxu2 }
 0xb36   :  { %v7386_v22 = vmax.f32 %v7378_v0, 0.0  ;;  %v7339_v60 = vadd.f32 %v7338_v19, %v7250_v53 }
 0xb37   :  { %v17029_v39 = vpop.f32.mrf.mxu1 }
 0xb38   :  { %v11419_v42 = vpack.c.bf16 %v7386_v22, %v7385_v8  ;;  %v7363_v15 = vmax.f32 %v16880_v57, %v7339_v60  ;;  %v7747_v12 = vpop.f32.mrf.mxu3  ;;  %v7255_v57 = vadd.f32 %v7254_v26, %v7166_v1  ;;  %v7171_v22 = vadd.f32 %v17007_v9, %v16917_v54  ;;  %v18880_v54 = vld [vmem:[#allocation42_spill] sm:$0xff] }
 0xb39   :  { %v7748_v62 = vadd.f32 %v7747_v12, %v16934_v44  ;;  %v18883_v12 = vld [vmem:[#allocation51_spill] sm:$0xff] }
 0xb3a   :  { %11522 = vst [vmem:[#allocation3 + $0x48] sm:$0xff] %v11419_v42   ;;  %v7371_v24 = vmax.f32 %v18873_v14, %v7363_v15  ;;  %v7836_v51 = vpop.f32.mrf.mxu0  ;;  %v18879_v15 = vld [vmem:[#allocation54_spill] sm:$0xff]  ;;  %v18881_v14 = vld [vmem:[#allocation49_spill] sm:$0xff] }
 0xb3b   :  { %v17041_v55 = vadd.f32 %v7836_v51, %v7748_v62 }
 0xb3c   :  { %v7379_v33 = vadd.f32 %v7371_v24, %v16376_v28  ;;  %v18882_v24 = vld [vmem:[#allocation21_spill] sm:$0xff] }
 0xb3d   :  { %v7340_v37 = vpop.f32.mrf.mxu2 }
 0xb3e   :  { %v7341_v17 = vadd.f32 %v7340_v37, %v7252_v21  ;;  %v7387_v41 = vmax.f32 %v7379_v33, 0.0  ;;  %v18884_v33 = vld [vmem:[#allocation29_spill] sm:$0xff] }
 0xb3f   :  { %v17037_v3 = vpop.f32.mrf.mxu1 }
 0xb40   :  { %v7364_v31 = vmax.f32 %v16885_v5, %v7341_v17  ;;  %v7749_v56 = vpop.f32.mrf.mxu3  ;;  %7806 = vmatmul.bf16.gmra.mxu3 %v15866_v2  ;;  %v18875_v2 = vmax.f32 %v16835_v43, %v16961_v38  ;;  %v7260_v38 = vadd.f32 %v17009_v30, %v7171_v22 }
 0xb41   :  { %v7750_v44 = vadd.f32 %v7749_v56, %v16946_v58  ;;  %v18886_v56 = vld [vmem:[#allocation18_spill] sm:$0xff] }
 0xb42   :  { %7722 = vmatmul.bf16.gmra.mxu1 %v15916_v63  ;;  %v7372_v61 = vmax.f32 %v18874_v47, %v7364_v31  ;;  %10511 = vmatmul.msk.bf16.gmra.mxu2 %vm5644_vm1, %v15923_v16  ;;  %v7838_v50 = vpop.f32.mrf.mxu0  ;;  %v18885_v47 = vld [vmem:[#allocation26_spill] sm:$0xff] }
 0xb43   :  { %7890 = vmatmul.bf16.gmra.mxu0 %v15918_v10  ;;  %v17056_v59 = vadd.f32 %v7838_v50, %v7750_v44  ;;  %v7168_v10 = vadd.f32 %v16995_v11, %v16912_v52  ;;  %v18876_v11 = vld [vmem:[#allocation56_spill] sm:$0xff] }
 0xb44   :  { %v7380_v5 = vadd.f32 %v7372_v61, %v16432_v7 }
 0xb45   :  { %v7343_v63 = vpop.f32.mrf.mxu2  ;;  %v7257_v27 = vadd.f32 %v16998_v40, %v7168_v10 }
 0xb46   :  { %v7388_v26 = vmax.f32 %v7380_v5, 0.0  ;;  %v7344_v46 = vadd.f32 %v7343_v63, %v7255_v57  ;;  %v7173_v57 = vadd.f32 %v17023_v13, %v18884_v33  ;;  %v18887_v5 = vmax.f32 %v16850_v36, %v18886_v56  ;;  %v18893_v36 = vld [vmem:[#allocation73_spill] sm:$0xff] }
 0xb47   :  { %v17054_v53 = vpop.f32.mrf.mxu1  ;;  %v18902_v56 = vld [vmem:[#allocation53_spill] sm:$0xff] }
 0xb48   :  { %v11424_v32 = vpack.c.bf16 %v7388_v26, %v7387_v41  ;;  %v7365_v16 = vmax.f32 %v16895_v34, %v7344_v46  ;;  %v7752_v49 = vpop.f32.mrf.mxu3  ;;  %v7262_v50 = vadd.f32 %v17027_v4, %v7173_v57  ;;  %v18888_v41 = vld [vmem:[#allocation13_spill] sm:$0xff]  ;;  %v18896_v4 = vld [vmem:[#allocation48_spill] sm:$0xff] }
 0xb49   :  { %v7753_v0 = vadd.f32 %v7752_v49, %v16952_v35  ;;  %v18877_v35 = vld [vmem:[#allocation32_spill] sm:$0xff]  ;;  %v18890_v49 = vld [vmem:[#allocation59_spill] sm:$0xff] }
 0xb4a   :  { %11523 = vst [vmem:[#allocation3 + $0x20] sm:$0xff] %v11424_v32   ;;  %v7373_v58 = vmax.f32 %v18875_v2, %v7365_v16  ;;  %v7841_v8 = vpop.f32.mrf.mxu0  ;;  %v18878_v40 = vmax.f32 %v18876_v11, %v18877_v35  ;;  %v18899_v35 = vld [vmem:[#allocation34_spill] sm:$0xff] }
 0xb4b   :  { %v17070_v52 = vadd.f32 %v7841_v8, %v7753_v0 }
 0xb4c   :  { %v7381_v43 = vadd.f32 %v7373_v58, %v16411_v18  ;;  %v18889_v58 = vld [vmem:[#allocation17_spill] sm:$0xff] }
 0xb4d   :  { %v7345_v19 = vpop.f32.mrf.mxu2 }
 0xb4e   :  { %v7346_v60 = vadd.f32 %v7345_v19, %v7257_v27  ;;  %v7389_v51 = vmax.f32 %v7381_v43, 0.0  ;;  %v18891_v27 = vld [vmem:[#allocation71_spill] sm:$0xff]  ;;  %v18892_v19 = vld [vmem:[#allocation38_spill] sm:$0xff] }
 0xb4f   :  { %v17068_v42 = vpop.f32.mrf.mxu1  ;;  %v18894_v8 = vmax.f32 %v18892_v19, %v18893_v36  ;;  %v18897_v43 = vld [vmem:[#allocation46_spill] sm:$0xff] }
 0xb50   :  { %v7366_v34 = vmax.f32 %v16900_v20, %v7346_v60  ;;  %v7754_v9 = vpop.f32.mrf.mxu3  ;;  %7811 = vmatmul.bf16.gmra.mxu3 %v18881_v14  ;;  %v18895_v60 = vld [vmem:[#allocation64_spill] sm:$0xff] }
 0xb52   :  { %7727 = vmatmul.bf16.gmra.mxu1 %v15981_v29  ;;  %v7374_v45 = vmax.f32 %v18878_v40, %v7366_v34  ;;  %10512 = vmatmul.msk.bf16.gmra.mxu2 %vm5644_vm1, %v18879_v15  ;;  %v7755_v29 = vadd.f32 %v7754_v9, %v18883_v12  ;;  %v7843_v37 = vpop.f32.mrf.mxu0 }
 0xb53   :  { %7895 = vmatmul.bf16.gmra.mxu0 %v18880_v54 }
 0xb54   :  { %v7382_v20 = vadd.f32 %v7374_v45, %v18882_v24  ;;  %v7844_v62 = vadd.f32 %v7843_v37, %v7755_v29  ;;  %v11041_v37 = vld [vmem:[%s17500_s5 + $0x4] sm:$0xf0] }
 0xb55   :  { %v7348_v21 = vpop.f32.mrf.mxu2 }
 0xb56   :  { %v7390_v30 = vmax.f32 %v7382_v20, 0.0  ;;  %v7349_v1 = vadd.f32 %v7348_v21, %v7260_v38  ;;  %v18898_v38 = vld [vmem:[#allocation8_spill] sm:$0xff] }
 0xb57   :  { %v17085_v17 = vpop.f32.mrf.mxu1  ;;  %v10523_v21 = vld [vmem:[%s17500_s5] sm:$0xf] }
 0xb58   :  { %v11429_v31 = vpack.c.bf16 %v7390_v30, %v7389_v51  ;;  %v7367_v61 = vmax.f32 %v18885_v47, %v7349_v1  ;;  %v7757_v63 = vpop.f32.mrf.mxu3  ;;  %v18901_v30 = vld [vmem:[#allocation50_spill] sm:$0xff]  ;;  %v10524_v33 = vor.u32 %v11041_v37, %v10523_v21  ;;  %v18907_v37 = vld [vmem:[#allocation69_spill] sm:$0xff] }
 0xb59   :  { %v7758_v26 = vadd.f32 %v7757_v63, %v18888_v41  ;;  %v18904_v63 = vld [vmem:[#allocation5_spill] sm:$0xff] }
 0xb5a   :  { %11524 = vst [vmem:[#allocation3 + $0x10] sm:$0xff] %v11429_v31   ;;  %v7375_v44 = vmax.f32 %v18887_v5, %v7367_v61  ;;  %v7846_v32 = vpop.f32.mrf.mxu0  ;;  %v18903_v5 = vld [vmem:[#allocation76_spill] sm:$0xff] }
 0xb5b   :  { %v7847_v2 = vadd.f32 %v7846_v32, %v7758_v26 }
 0xb5c   :  { %v7383_v0 = vadd.f32 %v7375_v44, %v18891_v27 }
 0xb5d   :  { %v7350_v46 = vpop.f32.mrf.mxu2 }
 0xb5e   :  { %v7351_v10 = vadd.f32 %v7350_v46, %v7262_v50  ;;  %v7391_v54 = vmax.f32 %v7383_v0, 0.0 }
 0xb5f   :  { %v17095_v16 = vpop.f32.mrf.mxu1 }
 0xb60   :  { %v7368_v13 = vmax.f32 %v18889_v58, %v7351_v10  ;;  %v7759_v34 = vpop.f32.mrf.mxu3  ;;  %7816 = vmatmul.bf16.gmra.mxu3 %v18897_v43  ;;  %v10531_v10 = vld [vmem:[%s17500_s5 + $0x10] sm:$0xf]  ;;  %v11043_v58 = vld [vmem:[%s17500_s5 + $0x14] sm:$0xf0] }
 0xb61   :  { %v7760_v40 = vadd.f32 %v7759_v34, %v18899_v35  ;;  %v10532_v0 = vor.u32 %v11043_v58, %v10531_v10  ;;  %v11045_v35 = vld [vmem:[%s17500_s5 + $0x24] sm:$0xf0] }
 0xb62   :  { %7732 = vmatmul.bf16.gmra.mxu1 %v18890_v49  ;;  %v7376_v22 = vmax.f32 %v18894_v8, %v7368_v13  ;;  %10513 = vmatmul.msk.bf16.gmra.mxu2 %vm5644_vm1, %v18895_v60  ;;  %v7848_v15 = vpop.f32.mrf.mxu0  ;;  %v18906_v60 = vld [vmem:[#allocation67_spill] sm:$0xff] }
 0xb63   :  { %7900 = vmatmul.bf16.gmra.mxu0 %v18896_v4  ;;  %v7849_v12 = vadd.f32 %v7848_v15, %v7760_v40 }
 0xb64   :  { %v7384_v11 = vadd.f32 %v7376_v22, %v18898_v38  ;;  %v18905_v22 = vld [vmem:[#allocation9_spill] sm:$0xff] }
 0xb65   :  { %v7925_v45 = vpop.f32.mrf.mxu2 }
 0xb66   :  { %v7392_v9 = vmax.f32 %v7384_v11, 0.0  ;;  %v17110_v14 = vadd.f32 %v7925_v45, %v17041_v55 }
 0xb67   :  { %v17112_v20 = vpop.f32.mrf.mxu1 }
 0xb68   :  { %18900 = vst [vmem:[#allocation23_spill] sm:$0xff] %v17112_v20  ;;  %v11434_v29 = vpack.c.bf16 %v7392_v9, %v7391_v54  ;;  %v7762_v51 = vpop.f32.mrf.mxu3 }
 0xb69   :  { %v7763_v1 = vadd.f32 %v7762_v51, %v18901_v30 }
 0xb6a   :  { %11525 = vst [vmem:[#allocation3 + $0x40] sm:$0xff] %v11434_v29   ;;  %v7851_v55 = vpop.f32.mrf.mxu0 }
 0xb6b   :  { %v7852_v61 = vadd.f32 %v7851_v55, %v7763_v1 }
 0xb6d   :  { %v7927_v31 = vpop.f32.mrf.mxu2 }
 0xb6e   :  { %v17122_v57 = vadd.f32 %v7927_v31, %v17056_v59 }
 0xb6f   :  { %v17124_v47 = vpop.f32.mrf.mxu1 }
 0xb70   :  { %v7764_v44 = vpop.f32.mrf.mxu3  ;;  %7821 = vmatmul.bf16.gmra.mxu3 %v18904_v63 }
 0xb71   :  { %v7765_v50 = vadd.f32 %v7764_v44, %v17000_v23 }
 0xb72   :  { %8379 = vmatmul.bf16.vlgmr.msra.gmra.mxu1 %v10524_v33  ;;  %10514 = vmatmul.msk.bf16.gmra.mxu2 %vm5644_vm1, %v18902_v56  ;;  %v7853_v26 = vpop.f32.mrf.mxu0  ;;  %v11047_v33 = vld [vmem:[%s17500_s5 + $0x34] sm:$0xf0] }
 0xb73   :  { %7905 = vmatmul.bf16.gmra.mxu0 %v18903_v5  ;;  %v7854_v32 = vadd.f32 %v7853_v26, %v7765_v50  ;;  %v18908_v26 = vld [vmem:[#allocation16_spill] sm:$0xff] }
 0xb75   :  { %v7930_v41 = vpop.f32.mrf.mxu2 }
 0xb76   :  { %v17132_v46 = vadd.f32 %v7930_v41, %v17070_v52 }
 0xb77   :  { %v17134_v59 = vpop.f32.mrf.mxu1 }
 0xb78   :  { %v7767_v13 = vpop.f32.mrf.mxu3 }
 0xb79   :  { %v7768_v49 = vadd.f32 %v7767_v13, %v17012_v48 }
 0xb7a   :  { %v7856_v19 = vpop.f32.mrf.mxu0 }
 0xb7b   :  { %v7857_v8 = vadd.f32 %v7856_v19, %v7768_v49 }
 0xb7d   :  { %v7932_v23 = vpop.f32.mrf.mxu2 }
 0xb7e   :  { %v17143_v36 = vadd.f32 %v7932_v23, %v7844_v62  ;;  %v10539_v62 = vld [vmem:[%s17500_s5 + $0x20] sm:$0xf]  ;;  %v11049_v23 = vld [vmem:[%s17500_s5 + $0x44] sm:$0xf0] }
 0xb7f   :  { %v17145_v52 = vpop.f32.mrf.mxu1  ;;  %v10540_v54 = vor.u32 %v11045_v35, %v10539_v62  ;;  %v18909_v35 = vld [vmem:[#allocation60_spill] sm:$0xff] }
 0xb80   :  { %v17150_v4 = vpop.f32.mrf.mxu3 }
 0xb82   :  { %8384 = vmatmul.bf16.gmra.mxu1 %v10532_v0  ;;  %10515 = vmatmul.msk.bf16.gmra.mxu2 %vm5644_vm1, %v18905_v22  ;;  %v17152_v43 = vpop.f32.mrf.mxu0 }
 0xb83   :  { %7910 = vmatmul.bf16.gmra.mxu0 %v18906_v60 }
 0xb85   :  { %v7935_v34 = vpop.f32.mrf.mxu2 }
 0xb86   :  { %v17154_v48 = vadd.f32 %v7935_v34, %v7847_v2 }
 0xb87   :  { %v17156_v11 = vpop.f32.mrf.mxu1 }
 0xb88   :  { %v7772_v40 = vpop.f32.mrf.mxu3 }
 0xb89   :  { %v7773_v45 = vadd.f32 %v7772_v40, %v17037_v3 }
 0xb8a   :  { %v7861_v9 = vpop.f32.mrf.mxu0 }
 0xb8b   :  { %v7862_v21 = vadd.f32 %v7861_v9, %v7773_v45 }
 0xb8d   :  { %v7937_v15 = vpop.f32.mrf.mxu2 }
 0xb8e   :  { %v17165_v29 = vadd.f32 %v7937_v15, %v7849_v12  ;;  %v10547_v12 = vld [vmem:[%s17500_s5 + $0x30] sm:$0xf] }
 0xb8f   :  { %v17167_v2 = vpop.f32.mrf.mxu1  ;;  %v10548_v44 = vor.u32 %v11047_v33, %v10547_v12 }
 0xb90   :  { %v17171_v51 = vpop.f32.mrf.mxu3 }
 0xb92   :  { %8389 = vmatmul.bf16.gmra.mxu1 %v10540_v54  ;;  %10516 = vmatmul.msk.bf16.gmra.mxu2 %vm5644_vm1, %v18907_v37  ;;  %v17173_v1 = vpop.f32.mrf.mxu0  ;;  %v11051_v37 = vld [vmem:[%s17500_s5 + $0x54] sm:$0xf0] }
 0xb95   :  { %v7940_v30 = vpop.f32.mrf.mxu2 }
 0xb96   :  { %v17175_v31 = vadd.f32 %v7940_v30, %v7852_v61 }
 0xb97   :  { %v17177_v3 = vpop.f32.mrf.mxu1 }
 0xb98   :  { %v7777_v55 = vpop.f32.mrf.mxu3 }
 0xb99   :  { %v7778_v56 = vadd.f32 %v7777_v55, %v17068_v42 }
 0xb9a   :  { %v7866_v63 = vpop.f32.mrf.mxu0 }
 0xb9b   :  { %v7867_v41 = vadd.f32 %v7866_v63, %v7778_v56 }
 0xb9d   :  { %v7942_v5 = vpop.f32.mrf.mxu2 }
 0xb9e   :  { %v17186_v50 = vadd.f32 %v7942_v5, %v7854_v32  ;;  %v10555_v32 = vld [vmem:[%s17500_s5 + $0x40] sm:$0xf] }
 0xb9f   :  { %v17188_v61 = vpop.f32.mrf.mxu1  ;;  %v10556_v60 = vor.u32 %v11049_v23, %v10555_v32 }
 0xba0   :  { %v17192_v10 = vpop.f32.mrf.mxu3 }
 0xba2   :  { %8394 = vmatmul.bf16.gmra.mxu1 %v10548_v44  ;;  %10517 = vmatmul.msk.bf16.gmra.mxu2 %vm5644_vm1, %v18908_v26  ;;  %v17194_v13 = vpop.f32.mrf.mxu0  ;;  %v18912_v44 = vld [vmem:[#allocation74_spill] sm:$0xff] }
 0xba5   :  { %v7945_v58 = vpop.f32.mrf.mxu2 }
 0xba6   :  { %v17196_v49 = vadd.f32 %v7945_v58, %v7857_v8 }
 0xba7   :  { %v17198_v42 = vpop.f32.mrf.mxu1 }
 0xba8   :  { %v7782_v0 = vpop.f32.mrf.mxu3 }
 0xba9   :  { %v7783_v19 = vadd.f32 %v7782_v0, %v17095_v16  ;;  %v10563_v16 = vld [vmem:[%s17500_s5 + $0x50] sm:$0xf]  ;;  %v11053_v0 = vld [vmem:[%s17500_s5 + $0x64] sm:$0xf0] }
 0xbaa   :  { %v7871_v34 = vpop.f32.mrf.mxu0  ;;  %v10564_v55 = vor.u32 %v11051_v37, %v10563_v16  ;;  %v18913_v37 = vld [vmem:[#allocation37_spill] sm:$0xff] }
 0xbab   :  { %v7872_v8 = vadd.f32 %v7871_v34, %v7783_v19 }
 0xbad   :  { %v17207_v22 = vpop.f32.mrf.mxu2 }
 0xbaf   :  { %v17209_v62 = vpop.f32.mrf.mxu1 }
 0xbb0   :  { %v17213_v40 = vpop.f32.mrf.mxu3 }
 0xbb1   :  { %18910 = vst [vmem:[#allocation65_spill] sm:$0xff] %v17213_v40 }
 0xbb2   :  { %8399 = vmatmul.bf16.gmra.mxu1 %v10556_v60  ;;  %10518 = vmatmul.msk.bf16.gmra.mxu2 %vm5644_vm1, %v18909_v35  ;;  %v17215_v15 = vpop.f32.mrf.mxu0 }
 0xbb3   :  { %18911 = vst [vmem:[#allocation77_spill] sm:$0xff] %v17215_v15 }
 0xbb5   :  { %v7950_v45 = vpop.f32.mrf.mxu2 }
 0xbb6   :  { %v17217_v54 = vadd.f32 %v7950_v45, %v7862_v21 }
 0xbb7   :  { %v17219_v9 = vpop.f32.mrf.mxu1 }
 0xbb8   :  { %v7787_v30 = vpop.f32.mrf.mxu3 }
 0xbb9   :  { %v7788_v12 = vadd.f32 %v7787_v30, %v17124_v47  ;;  %v10571_v47 = vld [vmem:[%s17500_s5 + $0x60] sm:$0xf] }
 0xbba   :  { %v7876_v56 = vpop.f32.mrf.mxu0  ;;  %v10572_v35 = vor.u32 %v11053_v0, %v10571_v47 }
 0xbbb   :  { %v7877_v21 = vadd.f32 %v7876_v56, %v7788_v12 }
 0xbbd   :  { %v17228_v33 = vpop.f32.mrf.mxu2 }
 0xbbf   :  { %v17230_v5 = vpop.f32.mrf.mxu1 }
 0xbc0   :  { %v7789_v63 = vpop.f32.mrf.mxu3 }
 0xbc2   :  { %8404 = vmatmul.bf16.gmra.mxu1 %v10564_v55  ;;  %10519 = vmatmul.msk.bf16.gmra.mxu2 %vm5644_vm1, %v18912_v44  ;;  %v7878_v58 = vpop.f32.mrf.mxu0 }
 0xbc5   :  { %v7955_v26 = vpop.f32.mrf.mxu2 }
 0xbc6   :  { %v17234_v32 = vadd.f32 %v7955_v26, %v7867_v41 }
 0xbc7   :  { %v17236_v23 = vpop.f32.mrf.mxu1 }
 0xbc8   :  { %v7792_v19 = vpop.f32.mrf.mxu3 }
 0xbc9   :  { %v7793_v60 = vadd.f32 %v7792_v19, %v17145_v52  ;;  %v17258_v52 = vld [vmem:[%s17500_s5 + $0x70] sm:$0xff] }
 0xbca   :  { %v7881_v45 = vpop.f32.mrf.mxu0  ;;  %18915 = vst [vmem:[#allocation11_spill] sm:$0xff] %v17258_v52  ;;  %v8241_v26 = vunpack.c.l.b16 %v17258_v52 }
 0xbcb   :  { %v7882_v41 = vadd.f32 %v7881_v45, %v7793_v60 }
 0xbcc   :  { %v8257_v60 = vpack.c.b16 %v8241_v26, %v8241_v26 }
 0xbcd   :  { %v17245_v34 = vpop.f32.mrf.mxu2 }
 0xbcf   :  { %v17247_v16 = vpop.f32.mrf.mxu1 }
 0xbd0   :  { %v7794_v30 = vpop.f32.mrf.mxu3 }
 0xbd2   :  { %8409 = vmatmul.bf16.gmra.mxu1 %v10572_v35  ;;  %10520 = vmatmul.msk.bf16.gmra.mxu2 %vm5644_vm1, %v18913_v37  ;;  %v7883_v55 = vpop.f32.mrf.mxu0 }
 0xbd5   :  { %v7960_v12 = vpop.f32.mrf.mxu2 }
 0xbd6   :  { %v17251_v56 = vadd.f32 %v7960_v12, %v7872_v8 }
 0xbd7   :  { %v17253_v44 = vpop.f32.mrf.mxu1 }
 0xbd8   :  { %18914 = vst [vmem:[#allocation52_spill] sm:$0xff] %v17251_v56  ;;  %v7797_v47 = vpop.f32.mrf.mxu3  ;;  %v7790_v56 = vadd.f32 %v7789_v63, %v17134_v59 }
 0xbd9   :  { %v7798_v0 = vadd.f32 %v7797_v47, %v17167_v2 }
 0xbda   :  { %v7886_v35 = vpop.f32.mrf.mxu0  ;;  %v7879_v2 = vadd.f32 %v7878_v58, %v7790_v56 }
 0xbdb   :  { %v7887_v8 = vadd.f32 %v7886_v35, %v7798_v0 }
 0xbdd   :  { %v17262_v19 = vpop.f32.mrf.mxu2 }
 0xbde   :  { %18916 = vst [vmem:[#allocation19_spill] sm:$0xff] %v17262_v19 }
 0xbdf   :  { %v17264_v45 = vpop.f32.mrf.mxu1 }
 0xbe0   :  { %v7799_v37 = vpop.f32.mrf.mxu3 }
 0xbe2   :  { %8414 = vmatmul.bf16.gmra.mxu1 %v8257_v60  ;;  %v7888_v38 = vpop.f32.mrf.mxu0 }
 0xbe5   :  { %v7965_v12 = vpop.f32.mrf.mxu2 }
 0xbe6   :  { %v7966_v27 = vadd.f32 %v7965_v12, %v7877_v21 }
 0xbe7   :  { %v17266_v15 = vpop.f32.mrf.mxu1 }
 0xbe8   :  { %v8005_v52 = vmax.f32 %v17110_v14, %v7966_v27  ;;  %v7802_v40 = vpop.f32.mrf.mxu3  ;;  %v7795_v27 = vadd.f32 %v7794_v30, %v17156_v11  ;;  %v7800_v11 = vadd.f32 %v7799_v37, %v17177_v3 }
 0xbe9   :  { %v7803_v47 = vadd.f32 %v7802_v40, %v17188_v61 }
 0xbea   :  { %v7891_v19 = vpop.f32.mrf.mxu0  ;;  %v7884_v61 = vadd.f32 %v7883_v55, %v7795_v27 }
 0xbeb   :  { %v7892_v60 = vadd.f32 %v7891_v19, %v7803_v47 }
 0xbed   :  { %v7967_v26 = vpop.f32.mrf.mxu2 }
 0xbee   :  { %v17271_v20 = vadd.f32 %v7967_v26, %v7879_v2  ;;  %v7889_v2 = vadd.f32 %v7888_v38, %v7800_v11 }
 0xbef   :  { %v17273_v0 = vpop.f32.mrf.mxu1 }
 0xbf0   :  { %v8006_v21 = vmax.f32 %v17122_v57, %v17271_v20  ;;  %v7804_v57 = vpop.f32.mrf.mxu3 }
 0xbf1   :  { %v7805_v3 = vadd.f32 %v7804_v57, %v17198_v42 }
 0xbf2   :  { %v7893_v55 = vpop.f32.mrf.mxu0 }
 0xbf3   :  { %v7894_v11 = vadd.f32 %v7893_v55, %v7805_v3  ;;  %v7770_v55 = vadd.f32 %v17150_v4, %v17029_v39 }
 0xbf5   :  { %v7970_v35 = vpop.f32.mrf.mxu2 }
 0xbf6   :  { %v17277_v12 = vadd.f32 %v7970_v35, %v7882_v41 }
 0xbf7   :  { %v17279_v59 = vpop.f32.mrf.mxu1 }
 0xbf8   :  { %v7807_v27 = vpop.f32.mrf.mxu3 }
 0xbf9   :  { %v7808_v30 = vadd.f32 %v7807_v27, %v17209_v62 }
 0xbfd   :  { %v7972_v40 = vpop.f32.mrf.mxu2 }
 0xbfe   :  { %v17284_v63 = vadd.f32 %v7972_v40, %v7884_v61 }
 0xbff   :  { %v17286_v58 = vpop.f32.mrf.mxu1 }
 0xc00   :  { %v7809_v37 = vpop.f32.mrf.mxu3 }
 0xc01   :  { %v7810_v3 = vadd.f32 %v7809_v37, %v17219_v9 }
 0xc05   :  { %v7975_v20 = vpop.f32.mrf.mxu2 }
 0xc06   :  { %v17290_v41 = vadd.f32 %v7975_v20, %v7887_v8  ;;  %v7896_v8 = vpop.f32.mrf.mxu0 }
 0xc07   :  { %v17292_v19 = vpop.f32.mrf.mxu1 }
 0xc08   :  { %18917 = vst [vmem:[#allocation15_spill] sm:$0xff] %v17292_v19 }
 0xc0d   :  { %v7977_v47 = vpop.f32.mrf.mxu2 }
 0xc0e   :  { %v17297_v26 = vadd.f32 %v7977_v47, %v7889_v2  ;;  %v7898_v47 = vpop.f32.mrf.mxu0 }
 0xc0f   :  { %v17299_v35 = vpop.f32.mrf.mxu1 }
 0xc10   :  { %18918 = vst [vmem:[#allocation72_spill] sm:$0xff] %v17299_v35 }
 0xc15   :  { %v7980_v40 = vpop.f32.mrf.mxu2 }
 0xc16   :  { %v17303_v20 = vadd.f32 %v7980_v40, %v7892_v60  ;;  %v7897_v40 = vadd.f32 %v7896_v8, %v7808_v30  ;;  %v7901_v38 = vpop.f32.mrf.mxu0 }
 0xc17   :  { %v17305_v56 = vpop.f32.mrf.mxu1 }
 0xc18   :  { %18919 = vst [vmem:[#allocation4_spill] sm:$0xff] %v17305_v56  ;;  %v7812_v56 = vpop.f32.mrf.mxu3 }
 0xc1d   :  { %v7982_v2 = vpop.f32.mrf.mxu2 }
 0xc1e   :  { %v17311_v14 = vadd.f32 %v7982_v2, %v7894_v11  ;;  %v7859_v11 = vadd.f32 %v17152_v43, %v7770_v55  ;;  %v7899_v2 = vadd.f32 %v7898_v47, %v7810_v3  ;;  %v7903_v19 = vpop.f32.mrf.mxu0 }
 0xc1f   :  { %v17313_v61 = vpop.f32.mrf.mxu1 }
 0xc20   :  { %18920 = vst [vmem:[#allocation58_spill] sm:$0xff] %v17313_v61  ;;  %v7814_v60 = vpop.f32.mrf.mxu3  ;;  %v7948_v30 = vadd.f32 %v17207_v22, %v7859_v11 }
 0xc25   :  { %v7985_v35 = vpop.f32.mrf.mxu2 }
 0xc26   :  { %v7986_v42 = vadd.f32 %v7985_v35, %v7897_v40  ;;  %v7813_v35 = vadd.f32 %v7812_v56, %v17230_v5  ;;  %v7775_v5 = vadd.f32 %v17171_v51, %v17054_v53 }
 0xc27   :  { %v17317_v57 = vpop.f32.mrf.mxu1 }
 0xc28   :  { %18921 = vst [vmem:[#allocation43_spill] sm:$0xff] %v17317_v57  ;;  %v8013_v62 = vmax.f32 %v17196_v49, %v7986_v42  ;;  %v7902_v4 = vadd.f32 %v7901_v38, %v7813_v35  ;;  %v7817_v22 = vpop.f32.mrf.mxu3  ;;  %v7864_v38 = vadd.f32 %v17173_v1, %v7775_v5 }
 0xc2a   :  { %v8021_v27 = vmax.f32 %v8005_v52, %v8013_v62  ;;  %v7953_v62 = vadd.f32 %v17228_v33, %v7864_v38 }
 0xc2c   :  { %v8029_v39 = vadd.f32 %v8021_v27, %v16389_v6  ;;  %v18922_v6 = vmax.f32 %v17132_v46, %v17277_v12  ;;  %v7818_v27 = vadd.f32 %v7817_v22, %v17247_v16  ;;  %v18923_v46 = vmax.f32 %v17143_v36, %v17284_v63 }
 0xc2d   :  { %v7987_v61 = vpop.f32.mrf.mxu2  ;;  %v18924_v36 = vmax.f32 %v17154_v48, %v17290_v41  ;;  %v18925_v48 = vmax.f32 %v17165_v29, %v17297_v26  ;;  %v18930_v26 = vld [vmem:[#allocation77_spill] sm:$0xff] }
 0xc2e   :  { %v7988_v8 = vadd.f32 %v7987_v61, %v7899_v2  ;;  %v8037_v43 = vmax.f32 %v8029_v39, 0.0  ;;  %v7815_v61 = vadd.f32 %v7814_v60, %v17236_v23 }
 0xc2f   :  { %v17326_v40 = vpop.f32.mrf.mxu1 }
 0xc30   :  { %v8014_v57 = vmax.f32 %v7948_v30, %v7988_v8  ;;  %v7819_v60 = vpop.f32.mrf.mxu3  ;;  %v7780_v8 = vadd.f32 %v17192_v10, %v17085_v17 }
 0xc32   :  { %v8022_v9 = vmax.f32 %v8006_v21, %v8014_v57  ;;  %v7906_v21 = vpop.f32.mrf.mxu0  ;;  %v7904_v57 = vadd.f32 %v7903_v19, %v7815_v61 }
 0xc33   :  { %v7907_v11 = vadd.f32 %v7906_v21, %v7818_v27 }
 0xc34   :  { %v8030_v49 = vadd.f32 %v8022_v9, %v16399_v25  ;;  %v7869_v9 = vadd.f32 %v17194_v13, %v7780_v8 }
 0xc35   :  { %v7990_v52 = vpop.f32.mrf.mxu2 }
 0xc36   :  { %v8038_v37 = vmax.f32 %v8030_v49, 0.0  ;;  %v7991_v47 = vadd.f32 %v7990_v52, %v7902_v4 }
 0xc37   :  { %v17330_v42 = vpop.f32.mrf.mxu1 }
 0xc38   :  { %v11439_v56 = vpack.c.bf16 %v8038_v37, %v8037_v43  ;;  %v8015_v55 = vmax.f32 %v17217_v54, %v7991_v47  ;;  %v7822_v63 = vpop.f32.mrf.mxu3  ;;  %v7958_v43 = vadd.f32 %v17245_v34, %v7869_v9  ;;  %v10525_v9 = vld [vmem:[%s17500_s5 + $0x8] sm:$0xf0] }
 0xc39   :  { %v7823_v37 = vadd.f32 %v7822_v63, %v17264_v45  ;;  %v11064_v63 = vld [vmem:[#allocation3 + $0x10] sm:$0xff] }
 0xc3a   :  { %11526 = vst [vmem:[#allocation3] sm:$0xff] %v11439_v56   ;;  %v8023_v25 = vmax.f32 %v18922_v6, %v8015_v55  ;;  %v7908_v19 = vpop.f32.mrf.mxu0  ;;  %v18926_v6 = vld [vmem:[#allocation23_spill] sm:$0xff] }
 0xc3c   :  { %v8031_v54 = vadd.f32 %v8023_v25, %v16376_v28  ;;  %v7820_v28 = vadd.f32 %v7819_v60, %v17253_v44  ;;  %v18927_v25 = vld [vmem:[#allocation65_spill] sm:$0xff]  ;;  %v18931_v60 = vld [vmem:[#allocation19_spill] sm:$0xff] }
 0xc3d   :  { %v7992_v3 = vpop.f32.mrf.mxu2  ;;  %v7785_v21 = vadd.f32 %v18927_v25, %v18926_v6  ;;  %v17422_v6 = vpop.permute.xlu1 %8185  ;;  %v11052_v25 = vld [vmem:[%s17500_s5 + $0x64] sm:$0xf] }
 0xc3e   :  { %v7993_v53 = vadd.f32 %v7992_v3, %v7904_v57  ;;  %v8039_v30 = vmax.f32 %v8031_v54, 0.0  ;;  %v7909_v49 = vadd.f32 %v7908_v19, %v7820_v28  ;;  %v18928_v57 = vld [vmem:[#allocation52_spill] sm:$0xff]  ;;  %v18933_v19 = vmax.f32 %v17186_v50, %v17311_v14 }
 0xc3f   :  { %v17342_v51 = vpop.f32.mrf.mxu1  ;;  %v7874_v27 = vadd.f32 %v18930_v26, %v7785_v21  ;;  %v11063_v50 = vld [vmem:[#allocation3 + $0x20] sm:$0xff]  ;;  %v10573_v21 = vld [vmem:[%s17500_s5 + $0x68] sm:$0xf0] }
 0xc40   :  { %v8016_v23 = vmax.f32 %v7953_v62, %v7993_v53  ;;  %v7824_v5 = vpop.f32.mrf.mxu3  ;;  %v11040_v14 = vld [vmem:[%s17500_s5 + $0x4] sm:$0xf] }
 0xc41   :  { %v7963_v54 = vadd.f32 %v18931_v60, %v7874_v27  ;;  %v17435_v27 = vpop.permute.xlu0 %8195 }
 0xc42   :  { %v8024_v12 = vmax.f32 %v18923_v46, %v8016_v23  ;;  %v7911_v44 = vpop.f32.mrf.mxu0 }
 0xc43   :  { %v7912_v22 = vadd.f32 %v7911_v44, %v7823_v37  ;;  %v10533_v37 = vld [vmem:[%s17500_s5 + $0x18] sm:$0xf0]  ;;  %v11044_v44 = vld [vmem:[%s17500_s5 + $0x24] sm:$0xf] }
 0xc44   :  { %v8032_v1 = vadd.f32 %v8024_v12, %v16432_v7 }
 0xc45   :  { %v7995_v2 = vpop.f32.mrf.mxu2 }
 0xc46   :  { %v8040_v33 = vmax.f32 %v8032_v1, 0.0  ;;  %v7996_v35 = vadd.f32 %v7995_v2, %v7907_v11  ;;  %v18932_v1 = vld [vmem:[#allocation71_spill] sm:$0xff] }
 0xc47   :  { %v17349_v16 = vpop.f32.mrf.mxu1 }
 0xc48   :  { %v11444_v39 = vpack.c.bf16 %v8040_v33, %v8039_v30  ;;  %v8017_v4 = vmax.f32 %v17234_v32, %v7996_v35  ;;  %v18934_v30 = vld [vmem:[#allocation8_spill] sm:$0xff] }
 0xc49   :  { %v8176_v60 = vpop.permute.xlu0 %8175 }
 0xc4a   :  { %11527 = vst [vmem:[#allocation3 + $0x78] sm:$0xff] %v11444_v39   ;;  %v8025_v7 = vmax.f32 %v18924_v36, %v8017_v4  ;;  %v7913_v62 = vpop.f32.mrf.mxu0  ;;  %v11066_v36 = vld [vmem:[#allocation3] sm:$0xff] }
 0xc4c   :  { %v8033_v32 = vadd.f32 %v8025_v7, %v16411_v18  ;;  %v7825_v18 = vadd.f32 %v7824_v5, %v17266_v15  ;;  %v11065_v7 = vld [vmem:[#allocation3 + $0x40] sm:$0xff]  ;;  %v10557_v5 = vld [vmem:[%s17500_s5 + $0x48] sm:$0xf0] }
 0xc4d   :  { %v7997_v52 = vpop.f32.mrf.mxu2 }
 0xc4e   :  { %v7998_v17 = vadd.f32 %v7997_v52, %v7909_v49  ;;  %v8041_v61 = vmax.f32 %v8033_v32, 0.0  ;;  %v7914_v53 = vadd.f32 %v7913_v62, %v7825_v18  ;;  %v11062_v49 = vld [vmem:[#allocation3 + $0x48] sm:$0xff]  ;;  %v10528_v52 = vor.u32 %v11040_v14, %v10525_v9  ;;  %v17430_v18 = vpop.permute.xlu2 %8190 }
 0xc4f   :  { %v17361_v10 = vpop.f32.mrf.mxu1 }
 0xc50   :  { %v8018_v47 = vmax.f32 %v7958_v43, %v7998_v17  ;;  %v11042_v43 = vld [vmem:[%s17500_s5 + $0x14] sm:$0xf] }
 0xc51   :  { %v11067_v4 = vld [vmem:[#allocation3 + $0x78] sm:$0xff]  ;;  %v10536_v17 = vor.u32 %v11042_v43, %v10533_v37 }
 0xc52   :  { %v8026_v41 = vmax.f32 %v18925_v48, %v8018_v47  ;;  %v10541_v47 = vld [vmem:[%s17500_s5 + $0x28] sm:$0xf0]  ;;  %v10549_v48 = vld [vmem:[%s17500_s5 + $0x38] sm:$0xf0] }
 0xc53   :  { %v10544_v32 = vor.u32 %v11044_v44, %v10541_v47  ;;  %v18938_v44 = vld [vmem:[#allocation4_spill] sm:$0xff] }
 0xc54   :  { %v8034_v13 = vadd.f32 %v8026_v41, %v18882_v24  ;;  %v18929_v24 = vmax.f32 %v17175_v31, %v17303_v20 }
 0xc55   :  { %v8000_v56 = vpop.f32.mrf.mxu2 }
 0xc56   :  { %v8042_v34 = vmax.f32 %v8034_v13, 0.0  ;;  %v8001_v55 = vadd.f32 %v8000_v56, %v7912_v22  ;;  %v11046_v22 = vld [vmem:[%s17500_s5 + $0x34] sm:$0xf]  ;;  %v11048_v13 = vld [vmem:[%s17500_s5 + $0x44] sm:$0xf] }
 0xc57   :  { %v17368_v45 = vpop.f32.mrf.mxu1  ;;  %v10552_v41 = vor.u32 %v11046_v22, %v10549_v48  ;;  %v10560_v56 = vor.u32 %v11048_v13, %v10557_v5  ;;  %v18939_v13 = vld [vmem:[#allocation58_spill] sm:$0xff] }
 0xc58   :  { %v11449_v38 = vpack.c.bf16 %v8042_v34, %v8041_v61  ;;  %v8019_v3 = vmax.f32 %v18928_v57, %v8001_v55  ;;  %v11050_v61 = vld [vmem:[%s17500_s5 + $0x54] sm:$0xf]  ;;  %v10565_v34 = vld [vmem:[%s17500_s5 + $0x58] sm:$0xf0]  ;;  %v17432_v57 = vpop.permute.xlu1 %8180 }
 0xc59   :  { %v10568_v55 = vor.u32 %v11050_v61, %v10565_v34  ;;  %v18940_v34 = vld [vmem:[#allocation43_spill] sm:$0xff] }
 0xc5a   :  { %11528 = vst [vmem:[#allocation3 + $0x38] sm:$0xff] %v11449_v38   ;;  %v8027_v29 = vmax.f32 %v18929_v24, %v8019_v3  ;;  %v10576_v38 = vor.u32 %v11052_v25, %v10573_v21  ;;  %v18935_v3 = vld [vmem:[#allocation11_spill] sm:$0xff]  ;;  %v8166_v24 = vpop.permute.xlu2 %8165 }
 0xc5b   :  { %v8242_v62 = vunpack.c.h.b16 %v18935_v3 }
 0xc5c   :  { %v8035_v15 = vadd.f32 %v8027_v29, %v18932_v1 }
 0xc5d   :  { %v8002_v23 = vpop.f32.mrf.mxu2  ;;  %v8258_v29 = vpack.c.b16 %v8242_v62, %v8242_v62 }
 0xc5e   :  { %v8003_v11 = vadd.f32 %v8002_v23, %v7914_v53  ;;  %v8043_v31 = vmax.f32 %v8035_v15, 0.0 }
 0xc5f   :  { %v17379_v46 = vpop.f32.mrf.mxu1 }
 0xc60   :  { %v8020_v12 = vmax.f32 %v7963_v54, %v8003_v11  ;;  %v8156_v26 = vpop.permute.xlu1 %8155 }
 0xc61   :  { %v11068_v28 = vld [vmem:[#allocation3 + $0x38] sm:$0xff]  ;;  %v8396_v5 = vadd.f32 %v18939_v13, %v8156_v26 }
 0xc62   :  { %v8028_v2 = vmax.f32 %v18933_v19, %v8020_v12  ;;  %v8161_v53 = vpop.permute.xlu2 %8160  ;;  %v8171_v19 = vpop.permute.xlu0 %8170 }
 0xc64   :  { %v8036_v33 = vadd.f32 %v8028_v2, %v18934_v30 }
 0xc66   :  { %v8044_v20 = vmax.f32 %v8036_v33, 0.0 }
 0xc67   :  { %v8417_v35 = vpop.f32.mrf.mxu1 }
 0xc68   :  { %v11454_v8 = vpack.c.bf16 %v8044_v20, %v8043_v31  ;;  %v8151_v23 = vpop.permute.xlu1 %8150 }
 0xc69   :  { %v8393_v47 = vadd.f32 %v18938_v44, %v8151_v23  ;;  %v8403_v23 = vadd.f32 %v17330_v42, %v8171_v19  ;;  %v8411_v42 = vadd.f32 %v17361_v10, %v17422_v6  ;;  %v8413_v19 = vadd.f32 %v17368_v45, %v17430_v18  ;;  %v11070_v10 = vld [vmem:[%s17501_s7] sm:$0xff]  ;;  %v11071_v45 = vld [vmem:[%s17501_s7 + $0x8] sm:$0xff]  ;;  %v11073_v6 = vld [vmem:[%s17501_s7 + $0x18] sm:$0xff] }
 0xc6a   :  { %11529 = vst [vmem:[#allocation3 + $0x28] sm:$0xff] %v11454_v8   ;;  %v8136_v54 = vpop.permute.xlu2 %8135  ;;  %v8146_v8 = vpop.permute.xlu0 %8145  ;;  %v11074_v18 = vld [vmem:[%s17501_s7 + $0x20] sm:$0xff] }
 0xc70   :  { %v8126_v11 = vpop.permute.xlu1 %8125 }
 0xc71   :  { %v11069_v39 = vld [vmem:[#allocation3 + $0x28] sm:$0xff]  ;;  %v8381_v12 = vadd.f32 %v17273_v0, %v8126_v11 }
 0xc72   :  { %8419 = vmatpush.bf16.msra.mxu3 %v11069_v39  ;;  %v8131_v2 = vpop.permute.xlu2 %8130 }
 0xc73   :  { %v8383_v30 = vadd.f32 %v17279_v59, %v8131_v2  ;;  %v18937_v59 = vld [vmem:[#allocation72_spill] sm:$0xff] }
 0xc74   :  { %v8391_v43 = vadd.f32 %v18937_v59, %v8146_v8 }
 0xc76   :  { %8420 = vmatpush.bf16.msra.mxu3 %v11068_v28  ;;  %v8386_v28 = vadd.f32 %v17286_v58, %v8136_v54  ;;  %v8401_v54 = vadd.f32 %v17326_v40, %v8166_v24 }
 0xc7a   :  { %8421 = vmatpush.bf16.msra.mxu3 %v11067_v4 }
 0xc7e   :  { %8422 = vmatpush.bf16.msra.mxu3 %v11066_v36 }
 0xc82   :  { %8423 = vmatpush.bf16.msra.mxu3 %v11065_v7  ;;  %v8141_v7 = vpop.permute.xlu0 %8140 }
 0xc86   :  { %8424 = vmatpush.bf16.msra.mxu3 %v11064_v63  ;;  %v18936_v63 = vld [vmem:[#allocation15_spill] sm:$0xff] }
 0xc87   :  { %v8388_v0 = vadd.f32 %v18936_v63, %v8141_v7 }
 0xc8a   :  { %8425 = vmatpush.bf16.msra.mxu3 %v11063_v50  ;;  %v8565_v59 = vpop.permute.xlu0 %8564 }
 0xc8e   :  { %8426 = vmatpush.bf16.msra.mxu3 %v11062_v49 }
 0xc91   :  { %8427 = vmatmul.bf16.vlgmr.msra.gmra.mxu3 %v10528_v52 }
 0xca1   :  { %8432 = vmatmul.bf16.gmra.mxu3 %v10536_v17 }
 0xcb1   :  { %8437 = vmatmul.bf16.gmra.mxu3 %v10544_v32 }
 0xcc1   :  { %8442 = vmatmul.bf16.gmra.mxu3 %v10552_v41 }
 0xcd1   :  { %8447 = vmatmul.bf16.gmra.mxu3 %v10560_v56 }
 0xce1   :  { %8452 = vmatmul.bf16.gmra.mxu3 %v10568_v55  ;;  %v8398_v55 = vadd.f32 %v18940_v34, %v8161_v53  ;;  %v8408_v53 = vadd.f32 %v17349_v16, %v17432_v57  ;;  %v8416_v16 = vadd.f32 %v17379_v46, %v17435_v27  ;;  %v11072_v46 = vld [vmem:[%s17501_s7 + $0x10] sm:$0xff]  ;;  %v8492_v27 = vld [vmem:[%s17501_s7 + $0x28] sm:$0x3] }
 0xcf1   :  { %8457 = vmatmul.bf16.gmra.mxu3 %v10576_v38 }
 0xd01   :  { %8462 = vmatmul.bf16.gmra.mxu3 %v8258_v29 }
 0xd14   :  { %v8428_v1 = vpop.f32.mrf.mxu3 }
 0xd15   :  { %v8429_v15 = vadd.f32 %v8428_v1, %v8381_v12 }
 0xd17   :  { %v8467_v20 = vmax.f32 %v8429_v15, 0.0 }
 0xd1c   :  { %v8430_v33 = vpop.f32.mrf.mxu3 }
 0xd1d   :  { %v8431_v31 = vadd.f32 %v8430_v33, %v8383_v30  ;;  %v8406_v33 = vadd.f32 %v17342_v51, %v8176_v60 }
 0xd1f   :  { %v8468_v35 = vmax.f32 %v8431_v31, 0.0 }
 0xd21   :  { %v17439_v39 = vpack.c.bf16 %v8468_v35, %v8467_v20 }
 0xd24   :  { %v8433_v4 = vpop.f32.mrf.mxu3 }
 0xd25   :  { %v8434_v36 = vadd.f32 %v8433_v4, %v8386_v28 }
 0xd27   :  { %v8469_v9 = vmax.f32 %v8434_v36, 0.0 }
 0xd2c   :  { %v8435_v50 = vpop.f32.mrf.mxu3 }
 0xd2d   :  { %v8436_v14 = vadd.f32 %v8435_v50, %v8388_v0 }
 0xd2f   :  { %v8470_v49 = vmax.f32 %v8436_v14, 0.0 }
 0xd31   :  { %v8494_v52 = vpack.c.bf16 %v8470_v49, %v8469_v9 }
 0xd34   :  { %v8438_v37 = vpop.f32.mrf.mxu3 }
 0xd35   :  { %v8439_v17 = vadd.f32 %v8438_v37, %v8391_v43  ;;  %v8555_v43 = vpop.permute.xlu1 %8554  ;;  %v8545_v37 = vpop.permute.xlu0 %8544 }
 0xd37   :  { %v8471_v48 = vmax.f32 %v8439_v17, 0.0 }
 0xd3c   :  { %v8440_v32 = vpop.f32.mrf.mxu3 }
 0xd3d   :  { %v8441_v22 = vadd.f32 %v8440_v32, %v8393_v47  ;;  %v8550_v17 = vpop.permute.xlu1 %8549  ;;  %v8540_v44 = vpop.permute.xlu0 %8539 }
 0xd3f   :  { %v8472_v58 = vmax.f32 %v8441_v22, 0.0  ;;  %v8560_v22 = vpop.permute.xlu2 %8559 }
 0xd41   :  { %v8495_v41 = vpack.c.bf16 %v8472_v58, %v8471_v48 }
 0xd44   :  { %v8443_v56 = vpop.f32.mrf.mxu3 }
 0xd45   :  { %v8444_v61 = vadd.f32 %v8443_v56, %v8396_v5  ;;  %v8525_v47 = vpop.permute.xlu1 %8524  ;;  %v8515_v48 = vpop.permute.xlu0 %8514 }
 0xd47   :  { %v8473_v38 = vmax.f32 %v8444_v61, 0.0 }
 0xd4c   :  { %v8445_v25 = vpop.f32.mrf.mxu3 }
 0xd4d   :  { %v8446_v21 = vadd.f32 %v8445_v25, %v8398_v55  ;;  %v8535_v55 = vpop.permute.xlu2 %8534 }
 0xd4f   :  { %v8474_v3 = vmax.f32 %v8446_v21, 0.0 }
 0xd51   :  { %v8496_v62 = vpack.c.bf16 %v8474_v3, %v8473_v38 }
 0xd54   :  { %v8448_v29 = vpop.f32.mrf.mxu3 }
 0xd55   :  { %v8449_v11 = vadd.f32 %v8448_v29, %v8401_v54  ;;  %v8530_v38 = vpop.permute.xlu2 %8529 }
 0xd57   :  { %v8475_v15 = vmax.f32 %v8449_v11, 0.0 }
 0xd5c   :  { %v8450_v12 = vpop.f32.mrf.mxu3 }
 0xd5d   :  { %v8451_v1 = vadd.f32 %v8450_v12, %v8403_v23 }
 0xd5f   :  { %v8476_v2 = vmax.f32 %v8451_v1, 0.0 }
 0xd61   :  { %v8497_v26 = vpack.c.bf16 %v8476_v2, %v8475_v15 }
 0xd64   :  { %v8453_v30 = vpop.f32.mrf.mxu3 }
 0xd65   :  { %v8454_v31 = vadd.f32 %v8453_v30, %v8406_v33 }
 0xd67   :  { %v8477_v8 = vmax.f32 %v8454_v31, 0.0 }
 0xd6c   :  { %v8455_v20 = vpop.f32.mrf.mxu3 }
 0xd6d   :  { %v8456_v35 = vadd.f32 %v8455_v20, %v8408_v53 }
 0xd6f   :  { %v8478_v28 = vmax.f32 %v8456_v35, 0.0 }
 0xd71   :  { %v8498_v40 = vpack.c.bf16 %v8478_v28, %v8477_v8 }
 0xd74   :  { %v8458_v24 = vpop.f32.mrf.mxu3 }
 0xd75   :  { %v8459_v4 = vadd.f32 %v8458_v24, %v8411_v42 }
 0xd77   :  { %v8479_v51 = vmax.f32 %v8459_v4, 0.0 }
 0xd7c   :  { %v8460_v36 = vpop.f32.mrf.mxu3 }
 0xd7d   :  { %v8461_v7 = vadd.f32 %v8460_v36, %v8413_v19 }
 0xd7f   :  { %v8480_v60 = vmax.f32 %v8461_v7, 0.0 }
 0xd81   :  { %v8499_v63 = vpack.c.bf16 %v8480_v60, %v8479_v51 }
 0xd84   :  { %v8463_v57 = vpop.f32.mrf.mxu3 }
 0xd85   :  { %v8464_v0 = vadd.f32 %v8463_v57, %v8416_v16 }
 0xd87   :  { %v8481_v50 = vmax.f32 %v8464_v0, 0.0 }
 0xd89   :  { %v8500_v14 = vpack.c.bf16 %v8481_v50, %v8481_v50  ;;  %v10669_v50 = vld [vmem:[%s17502_s9] sm:$0xf] }
 0xd8b   :  { %v8616_v9 = vsel %vm8614_vm2, %v8500_v14, 0  ;;  %v11075_v14 = vld [vmem:[%s17502_s9] sm:$0x10] }
 0xd8c   :  { %v8465_v49 = vpop.f32.mrf.mxu3  ;;  %8618 = vmatpush.bf16.msra.mxu0 %v8616_v9  ;;  %v10670_v9 = vor.u32 %v11075_v14, %v10669_v50 }
 0xd90   :  { %8619 = vmatpush.bf16.msra.mxu0 %v8499_v63 }
 0xd94   :  { %8620 = vmatpush.bf16.msra.mxu0 %v8498_v40 }
 0xd98   :  { %8621 = vmatpush.bf16.msra.mxu0 %v8497_v26 }
 0xd9c   :  { %8622 = vmatpush.bf16.msra.mxu0 %v8496_v62 }
 0xda0   :  { %8623 = vmatpush.bf16.msra.mxu0 %v8495_v41  ;;  %v8520_v41 = vpop.permute.xlu1 %8519 }
 0xda4   :  { %8624 = vmatpush.bf16.msra.mxu0 %v8494_v52 }
 0xda8   :  { %8625 = vmatpush.bf16.msra.mxu0 %v17439_v39  ;;  %v8588_v39 = vunpack.c.l.b16 %v8492_v27 }
 0xdaa   :  { %v8594_v52 = vpack.c.b16 %v8588_v39, %v8588_v39 }
 0xdab   :  { %10661 = vmatmul.msk.bf16.vlgmr.msra.gmra.mxu0 %vm8595_vm3, %v11070_v10  ;;  %v8685_v10 = vpop.permute.xlu2 %8684 }
 0xdbb   :  { %10662 = vmatmul.msk.bf16.gmra.mxu0 %vm8595_vm3, %v11071_v45 }
 0xdcb   :  { %10663 = vmatmul.msk.bf16.gmra.mxu0 %vm8595_vm3, %v11072_v46  ;;  %v8680_v46 = vpop.permute.xlu0 %8679 }
 0xddb   :  { %10664 = vmatmul.msk.bf16.gmra.mxu0 %vm8595_vm3, %v11073_v6 }
 0xdeb   :  { %10665 = vmatmul.msk.bf16.gmra.mxu0 %vm8595_vm3, %v11074_v18 }
 0xdfb   :  { %10666 = vmatmul.msk.bf16.gmra.mxu0 %vm8595_vm3, %v8594_v52 }
 0xe28   :  { %v8627_v32 = vpop.f32.mrf.mxu0 }
 0xe29   :  { %v8628_v58 = vadd.f32 %v8627_v32, %v8515_v48 }
 0xe2b   :  { %v8656_v56 = vmax.f32 %v8628_v58, 0.0 }
 0xe30   :  { %v8629_v13 = vpop.f32.mrf.mxu0 }
 0xe31   :  { %v8630_v5 = vadd.f32 %v8629_v13, %v8520_v41 }
 0xe33   :  { %v8657_v61 = vmax.f32 %v8630_v5, 0.0 }
 0xe35   :  { %v8669_v34 = vpack.c.bf16 %v8657_v61, %v8656_v56 }
 0xe38   :  { %v8632_v25 = vpop.f32.mrf.mxu0 }
 0xe39   :  { %v8633_v21 = vadd.f32 %v8632_v25, %v8525_v47 }
 0xe3b   :  { %v8658_v29 = vmax.f32 %v8633_v21, 0.0 }
 0xe40   :  { %v8634_v3 = vpop.f32.mrf.mxu0 }
 0xe41   :  { %v8635_v62 = vadd.f32 %v8634_v3, %v8530_v38 }
 0xe43   :  { %v8659_v54 = vmax.f32 %v8635_v62, 0.0 }
 0xe45   :  { %v8670_v23 = vpack.c.bf16 %v8659_v54, %v8658_v29 }
 0xe48   :  { %v8637_v11 = vpop.f32.mrf.mxu0 }
 0xe49   :  { %v8638_v51 = vadd.f32 %v8637_v11, %v8535_v55 }
 0xe4b   :  { %v8660_v57 = vmax.f32 %v8638_v51, 0.0 }
 0xe50   :  { %v8639_v12 = vpop.f32.mrf.mxu0 }
 0xe51   :  { %v8640_v4 = vadd.f32 %v8639_v12, %v8540_v44 }
 0xe53   :  { %v8661_v63 = vmax.f32 %v8640_v4, 0.0 }
 0xe55   :  { %v8671_v0 = vpack.c.bf16 %v8661_v63, %v8660_v57 }
 0xe58   :  { %v8642_v1 = vpop.f32.mrf.mxu0 }
 0xe59   :  { %v8643_v24 = vadd.f32 %v8642_v1, %v8545_v37 }
 0xe5b   :  { %v8662_v60 = vmax.f32 %v8643_v24, 0.0 }
 0xe60   :  { %v8644_v15 = vpop.f32.mrf.mxu0 }
 0xe61   :  { %v8645_v8 = vadd.f32 %v8644_v15, %v8550_v17 }
 0xe63   :  { %v8663_v36 = vmax.f32 %v8645_v8, 0.0 }
 0xe65   :  { %v8672_v16 = vpack.c.bf16 %v8663_v36, %v8662_v60 }
 0xe68   :  { %v8647_v2 = vpop.f32.mrf.mxu0 }
 0xe69   :  { %v8648_v20 = vadd.f32 %v8647_v2, %v8555_v43 }
 0xe6b   :  { %v8664_v42 = vmax.f32 %v8648_v20, 0.0 }
 0xe70   :  { %v8649_v26 = vpop.f32.mrf.mxu0 }
 0xe71   :  { %v8650_v53 = vadd.f32 %v8649_v26, %v8560_v22 }
 0xe73   :  { %v8665_v28 = vmax.f32 %v8650_v53, 0.0 }
 0xe75   :  { %v8673_v7 = vpack.c.bf16 %v8665_v28, %v8664_v42 }
 0xe78   :  { %v8652_v30 = vpop.f32.mrf.mxu0 }
 0xe79   :  { %v8653_v33 = vadd.f32 %v8652_v30, %v8565_v59 }
 0xe7b   :  { %v8666_v31 = vmax.f32 %v8653_v33, 0.0 }
 0xe7d   :  { %v8674_v35 = vpack.c.bf16 %v8666_v31, %v8666_v31 }
 0xe7f   :  { %v8698_v40 = vsel %vm8696_vm4, %v8674_v35, 0 }
 0xe80   :  { %v8654_v19 = vpop.f32.mrf.mxu0  ;;  %8702 = vmatpush.bf16.msrb.mxu2 %v8698_v40 }
 0xe84   :  { %8703 = vmatpush.bf16.msrb.mxu2 %v8673_v7 }
 0xe88   :  { %8704 = vmatpush.bf16.msrb.mxu2 %v8672_v16 }
 0xe8c   :  { %8705 = vmatpush.bf16.msrb.mxu2 %v8671_v0 }
 0xe90   :  { %8706 = vmatpush.bf16.msrb.mxu2 %v8670_v23 }
 0xe94   :  { %8707 = vmatpush.bf16.msrb.mxu2 %v8669_v34 }
 0xe97   :  { %10671 = vmatmul.msk.bf16.vlgmr.msrb.gmra.mxu2 %vm8692_vm5, %v10670_v9 }
 0xf1a   :  { %v8709_v49 = vpop.f32.mrf.mxu2 }
 0xf1b   :  { %v8710_v18 = vadd.f32 %v8709_v49, %v8680_v46 }
 0xf22   :  { %v8711_v45 = vpop.f32.mrf.mxu2 }
 0xf23   :  { %v8712_v6 = vadd.f32 %v8711_v45, %v8685_v10 }
 0xf25   :  { %v8714_v27 = vsel %vm8696_vm4, %v8712_v6, -inf }
 0xf26   :  { %v8715_v39 = vmax.f32 %v8710_v18, %v8714_v27 }
 0xf28   :  { %v8716_v52 = vrot.slane %v8715_v39, 4 }
 0xf2a   :  { %v8717_v59 = vmax.f32 %v8715_v39, %v8716_v52 }
 0xf2c   :  { %v8718_v43 = vrot.slane %v8717_v59, 2 }
 0xf2e   :  { %v8719_v37 = vmax.f32 %v8717_v59, %v8718_v43 }
 0xf30   :  { %v8720_v17 = vrot.slane %v8719_v37, 1 }
 0xf32   :  { %v8721_v44 = vmax.f32 %v8719_v37, %v8720_v17 }
 0xf34   :  { %v8722_v47 = vsub.f32 %v8710_v18, %v8721_v44  ;;  %v8723_v32 = vsub.f32 %v8712_v6, %v8721_v44 }
 0xf36   :  { %v8724_v22 = vmul.f32 1.442695, %v8722_v47  ;;  %v8726_v48 = vmul.f32 1.442695, %v8723_v32 }
 0xf38   :  { %11550 = vpow2.f32 %v8724_v22 }
 0xf39   :  { %11552 = vpow2.f32 %v8726_v48 }
 0xf3e   :  { %v11551_v58 = vpop.eup %11550 }
 0xf3f   :  { %v11553_v41 = vpop.eup %11552 }
 0xf40   :  { %v8728_v13 = vsel %vm8696_vm4, %v11553_v41, 0.0 }
 0xf41   :  { %v8729_v5 = vadd.f32 %v11551_v58, %v8728_v13 }
 0xf43   :  { %v8730_v56 = vrot.slane %v8729_v5, 4 }
 0xf45   :  { %v8731_v61 = vadd.f32 %v8730_v56, %v8729_v5 }
 0xf47   :  { %v8732_v34 = vrot.slane %v8731_v61, 2 }
 0xf49   :  { %v8733_v55 = vadd.f32 %v8732_v34, %v8731_v61 }
 0xf4b   :  { %v8734_v25 = vrot.slane %v8733_v55, 1 }
 0xf4d   :  { %v8735_v21 = vadd.f32 %v8734_v25, %v8733_v55 }
 0xf4f   :  { %11554 = vrcp.f32 %v8735_v21 }
 0xf55   :  { %v11555_v38 = vpop.eup %11554 }
 0xf56   :  { %v8737_v3 = vmul.f32 %v11555_v38, %v11551_v58  ;;  %v8738_v62 = vmul.f32 %v11555_v38, %v11553_v41 }
 0xf58   :  { %8739 = vst [vmem:[%s17503_s11] sm:$0xff] %v8737_v3 }
 0xf59   :  { %8740 = vst [vmem:[%s17503_s11 + $0x8] sm:$0x3] %v8738_v62 }

</bundles_post_ra>
